<compile_context>
chip_gen: v7x
topology: tpu7x:2x2x1
jax: 0.10.0
libtpu: 0.0.40
codegen_flags: <defaults>
</compile_context>

<pallas_src>
import functools

import numpy as np

import jax
import jax.numpy as jnp
from jax import lax
from jax.experimental import pallas as pl
from jax.experimental.pallas import tpu as pltpu


# ---------------------------------------------------------------------------
# Kernel 1/2: fused conv(5x5, valid) + bias + ReLU + 2x2 maxpool, one image/step
# ---------------------------------------------------------------------------
def _conv_pool_kernel(x_ref, w_ref, b_ref, o_ref, *, H_out, W_half, K, Q):
    # x_ref : (1, R_pad, 2*C_in)   width-parity-packed image (zero padded rows)
    # w_ref : (K*Q, 2*C_in, 256)   packed taps; lanes 0:128 -> even out col, 128:256 -> odd
    # b_ref : (1, 256)
    # o_ref : (1, H_out//2, W_half, 128)  pooled output (padded channels)
    L = H_out * W_half
    acc = jnp.zeros((L, 256), jnp.float32)
    for kh in range(K):
        for q0 in range(Q):
            start = kh * W_half + q0
            slab = x_ref[0, pl.ds(start, L), :]                 # (L, 2*C_in)
            acc = acc + jnp.dot(slab, w_ref[kh * Q + q0],
                                preferred_element_type=jnp.float32)
    act = jnp.maximum(acc + b_ref[...], 0.0)                    # bias + ReLU
    # pool over output-column parity (even cols in lanes 0:128, odd in 128:256)
    wpool = jnp.maximum(act[:, 0:128], act[:, 128:256])         # (L, 128)
    # pool over output-row pairs; lane-dense (W_half, 128) stores
    for ph in range(H_out // 2):
        top = wpool[(2 * ph) * W_half:(2 * ph + 1) * W_half, :]
        bot = wpool[(2 * ph + 1) * W_half:(2 * ph + 2) * W_half, :]
        o_ref[0, ph, :, :] = jnp.maximum(top, bot)


def conv_relu_pool(x_nhwc, rhs, bias, c_out, K=5):
    """x_nhwc: (N,H,W,C) f32 -> (N, H_out//2, W_out//2, c_out) f32."""
    N, H_in, W_in, C_in = x_nhwc.shape
    Q = K // 2 + 1
    H_out = H_in - K + 1
    W_out = W_in - K + 1
    P_h, P_w = H_out // 2, W_out // 2
    W_pad = ((W_in + 15) // 16) * 16          # keep W_half a multiple of 8
    W_half = W_pad // 2
    L = H_out * W_half

    # width-parity packing: (N,H,W_pad,C) -> (N, H*W_half, 2C)  (free reshape)
    xw = jnp.pad(x_nhwc, ((0, 0), (0, 0), (0, W_pad - W_in), (0, 0)))
    xp = xw.reshape(N, H_in, W_half, 2 * C_in).reshape(N, H_in * W_half, 2 * C_in)
    r_need = (K - 1) * W_half + (Q - 1) + L
    R_pad = ((r_need + 7) // 8) * 8
    xp = jnp.pad(xp, ((0, 0), (0, R_pad - H_in * W_half), (0, 0)))

    kern = functools.partial(_conv_pool_kernel, H_out=H_out, W_half=W_half, K=K, Q=Q)
    out = pl.pallas_call(
        kern,
        out_shape=jax.ShapeDtypeStruct((N, P_h, W_half, 128), jnp.float32),
        grid_spec=pltpu.PrefetchScalarGridSpec(
            num_scalar_prefetch=0,
            grid=(N,),
            in_specs=[
                pl.BlockSpec((1, R_pad, 2 * C_in), lambda n: (n, 0, 0)),
                pl.BlockSpec(rhs.shape, lambda n: (0, 0, 0)),
                pl.BlockSpec(bias.shape, lambda n: (0, 0)),
            ],
            out_specs=pl.BlockSpec((1, P_h, W_half, 128), lambda n: (n, 0, 0, 0)),
        ),
        compiler_params=pltpu.CompilerParams(dimension_semantics=("parallel",)),
        cost_estimate=pl.CostEstimate(
            flops=2 * N * K * Q * L * (2 * C_in) * 256,
            transcendentals=0,
            bytes_accessed=4 * (xp.size + rhs.size + bias.size + N * P_h * W_half * 128),
        ),
    )(xp, rhs, bias)
    return out[:, :, :P_w, :c_out]


# ---------------------------------------------------------------------------
# Kernel 3: fused fc1 -> ReLU -> fc2 -> ReLU -> fc3 (weights VMEM-resident)
# ---------------------------------------------------------------------------
def _fc_kernel(x_ref, w1_ref, b1_ref, w2_ref, b2_ref, w3_ref, b3_ref, o_ref):
    x = x_ref[...]
    h = jnp.dot(x, w1_ref[...], preferred_element_type=jnp.float32) + b1_ref[...]
    h = jnp.maximum(h, 0.0)
    h = jnp.dot(h, w2_ref[...], preferred_element_type=jnp.float32) + b2_ref[...]
    h = jnp.maximum(h, 0.0)
    o_ref[...] = jnp.dot(h, w3_ref[...], preferred_element_type=jnp.float32) + b3_ref[...]


def fc_fused(x, fc_params):
    W1, b1, W2, b2, W3, b3 = fc_params
    N, Kdim = x.shape
    TM = 256 if N >= 256 else max(8, ((N + 7) // 8) * 8)
    M_pad = ((N + TM - 1) // TM) * TM
    xp = jnp.pad(x, ((0, M_pad - N), (0, 0)))
    out = pl.pallas_call(
        _fc_kernel,
        out_shape=jax.ShapeDtypeStruct((M_pad, 128), jnp.float32),
        grid_spec=pltpu.PrefetchScalarGridSpec(
            num_scalar_prefetch=0,
            grid=(M_pad // TM,),
            in_specs=[
                pl.BlockSpec((TM, Kdim), lambda i: (i, 0)),
                pl.BlockSpec(W1.shape, lambda i: (0, 0)),
                pl.BlockSpec(b1.shape, lambda i: (0, 0)),
                pl.BlockSpec(W2.shape, lambda i: (0, 0)),
                pl.BlockSpec(b2.shape, lambda i: (0, 0)),
                pl.BlockSpec(W3.shape, lambda i: (0, 0)),
                pl.BlockSpec(b3.shape, lambda i: (0, 0)),
            ],
            out_specs=pl.BlockSpec((TM, 128), lambda i: (i, 0)),
        ),
        compiler_params=pltpu.CompilerParams(dimension_semantics=("parallel",)),
        cost_estimate=pl.CostEstimate(
            flops=2 * M_pad * (Kdim * 128 + 128 * 128 + 128 * 128),
            transcendentals=0,
            bytes_accessed=4 * (xp.size + W1.size + W2.size + W3.size + M_pad * 128),
        ),
    )(xp, W1, b1, W2, b2, W3, b3)
    return out[:N, :]


# ---------------------------------------------------------------------------
# Parameter preparation (done once, outside the hot path)
# ---------------------------------------------------------------------------
def pack_conv_params(w, b, K=5):
    """w: (C_out, C_in, K, K), b: (C_out,) -> rhs (K*Q, 2*C_in, 256), bias (1, 256)."""
    w = np.asarray(w, np.float32)
    b = np.asarray(b, np.float32)
    C_out, C_in = w.shape[0], w.shape[1]
    Q = K // 2 + 1
    rhs = np.zeros((K, Q, 2 * C_in, 256), np.float32)
    for dw in range(2):                      # output-column parity -> lane half
        for kh in range(K):
            for kw in range(K):
                q0, s = divmod(dw + kw, 2)   # packed-column offset / channel slot
                rhs[kh, q0, s * C_in:(s + 1) * C_in,
                    dw * 128:dw * 128 + C_out] = w[:, :, kh, kw].T
    rhs = rhs.reshape(K * Q, 2 * C_in, 256)
    bias = np.zeros((1, 256), np.float32)
    bias[0, 0:C_out] = b
    bias[0, 128:128 + C_out] = b
    return jnp.asarray(rhs), jnp.asarray(bias)


def _pad2(a, r, c):
    out = np.zeros((r, c), np.float32)
    out[:a.shape[0], :a.shape[1]] = a
    return out


def _pad_bias(b, c):
    b = np.asarray(b, np.float32)
    out = np.zeros((1, c), np.float32)
    out[0, :b.shape[0]] = b
    return out


def prepare_params(p):
    c1_rhs, c1_b = pack_conv_params(p["conv1_w"], p["conv1_b"])
    c2_rhs, c2_b = pack_conv_params(p["conv2_w"], p["conv2_b"])
    # fc1 expects PyTorch NCHW flatten order (c,h,w); our activations are (h,w,c):
    w1 = np.asarray(p["fc1_w"], np.float32).reshape(120, 16, 5, 5)
    w1 = w1.transpose(0, 2, 3, 1).reshape(120, 400)
    fc = (
        jnp.asarray(_pad2(w1.T, 400, 128)),
        jnp.asarray(_pad_bias(p["fc1_b"], 128)),
        jnp.asarray(_pad2(np.asarray(p["fc2_w"], np.float32).T, 128, 128)),
        jnp.asarray(_pad_bias(p["fc2_b"], 128)),
        jnp.asarray(_pad2(np.asarray(p["fc3_w"], np.float32).T, 128, 128)),
        jnp.asarray(_pad_bias(p["fc3_b"], 128)),
    )
    return {"c1_rhs": c1_rhs, "c1_b": c1_b, "c2_rhs": c2_rhs, "c2_b": c2_b, "fc": fc}


# ---------------------------------------------------------------------------
# Full forward pass (NCHW in, logits out) -- exactly 3 pallas_calls
# ---------------------------------------------------------------------------
@jax.jit
def lenet_forward(x_nchw, prep):
    N = x_nchw.shape[0]
    x = jnp.transpose(x_nchw, (0, 2, 3, 1)).astype(jnp.float32)      # NHWC
    y = conv_relu_pool(x, prep["c1_rhs"], prep["c1_b"], c_out=6)     # (N,14,14,6)
    y = conv_relu_pool(y, prep["c2_rhs"], prep["c2_b"], c_out=16)    # (N,5,5,16)
    y = y.reshape(N, 16 * 5 * 5)                                     # (h,w,c) flatten
    out = fc_fused(y, prep["fc"])                                    # (N,128)
    return out[:, :10]


# ---------------------------------------------------------------------------
# Reference (pure JAX) and deterministic init
# ---------------------------------------------------------------------------
def init_params(key):
    ks = jax.random.split(key, 10)

    def u(k, shape, fan_in):
        bound = 1.0 / float(np.sqrt(fan_in))
        return jax.random.uniform(k, shape, jnp.float32, -bound, bound)

    return {
        "conv1_w": u(ks[0], (6, 3, 5, 5), 3 * 25),
        "conv1_b": u(ks[1], (6,), 3 * 25),
        "conv2_w": u(ks[2], (16, 6, 5, 5), 6 * 25),
        "conv2_b": u(ks[3], (16,), 6 * 25),
        "fc1_w": u(ks[4], (120, 400), 400),
        "fc1_b": u(ks[5], (120,), 400),
        "fc2_w": u(ks[6], (84, 120), 120),
        "fc2_b": u(ks[7], (84,), 120),
        "fc3_w": u(ks[8], (10, 84), 84),
        "fc3_b": u(ks[9], (10,), 84),
    }


def _pool2_nchw(x):
    n, c, h, w = x.shape
    return jnp.max(x.reshape(n, c, h // 2, 2, w // 2, 2), axis=(3, 5))


def reference_forward(x, p):
    hp = lax.Precision.HIGHEST
    dn = ("NCHW", "OIHW", "NCHW")
    h = lax.conv_general_dilated(x, p["conv1_w"], (1, 1), "VALID",
                                 dimension_numbers=dn, precision=hp)
    h = _pool2_nchw(jax.nn.relu(h + p["conv1_b"][None, :, None, None]))
    h = lax.conv_general_dilated(h, p["conv2_w"], (1, 1), "VALID",
                                 dimension_numbers=dn, precision=hp)
    h = _pool2_nchw(jax.nn.relu(h + p["conv2_b"][None, :, None, None]))
    h = h.reshape(h.shape[0], -1)
    h = jax.nn.relu(jnp.dot(h, p["fc1_w"].T, precision=hp) + p["fc1_b"])
    h = jax.nn.relu(jnp.dot(h, p["fc2_w"].T, precision=hp) + p["fc2_b"])
    return jnp.dot(h, p["fc3_w"].T, precision=hp) + p["fc3_b"]


if __name__ == "__main__":
    key = jax.random.PRNGKey(0)
    k_x, k_p = jax.random.split(key)
    raw = init_params(k_p)
    prep = prepare_params(raw)

    x = jax.random.normal(k_x, (2, 3, 32, 32), dtype=jnp.float32)

    out = lenet_forward(x, prep)
    out = jax.block_until_ready(out)

    ref = jax.block_until_ready(reference_forward(x, raw))
    max_err = float(jnp.max(jnp.abs(out - ref)))

    if out.shape != (2, 10):
        raise SystemExit(f"bad output shape {out.shape}")
    if not bool(jnp.isfinite(out).all()) or max_err > 2e-2:
        raise SystemExit(f"mismatch vs reference: max_err={max_err}")
    print("KERNEL_OK")
</pallas_src>

<mosaic_0001>
module attributes {stable_mosaic.version = 11 : i64} {
  func.func @_conv_pool_kernel(%arg0: i32, %arg1: memref<1x520x6xf32, #tpu.memory_space<vmem>>, %arg2: memref<15x6x256xf32, #tpu.memory_space<vmem>>, %arg3: memref<1x256xf32, #tpu.memory_space<vmem>>, %arg4: memref<1x14x16x128xf32, #tpu.memory_space<vmem>>) attributes {dimension_semantics = [#tpu.dimension_semantics<parallel>], iteration_bounds = array<i64: 2>, scalar_prefetch = 0 : i64, scratch_operands = 0 : i64, tpu.core_type = #tpu.core_type<tc>, window_params = [{transform_indices = @transform_0, window_bounds = array<i64: 1, 520, 6>}, {pipeline_mode = #tpu.pipeline_mode<synchronous>, transform_indices = @transform_1, window_bounds = array<i64: 15, 6, 256>}, {pipeline_mode = #tpu.pipeline_mode<synchronous>, transform_indices = @transform_2, window_bounds = array<i64: 1, 256>}, {transform_indices = @transform_3, window_bounds = array<i64: 1, 14, 16, 128>}]} {
    %cst = arith.constant 0.000000e+00 : f32
    %0 = vector.broadcast %cst : f32 to vector<448x256xf32>
    %c0 = arith.constant 0 : index
    %c0_0 = arith.constant 0 : index
    %c0_1 = arith.constant 0 : index
    %1 = vector.load %arg1[%c0, %c0_0, %c0_1] : memref<1x520x6xf32, #tpu.memory_space<vmem>>, vector<1x448x6xf32>
    %2 = vector.shape_cast %1 : vector<1x448x6xf32> to vector<448x6xf32>
    %c0_2 = arith.constant 0 : index
    %c0_3 = arith.constant 0 : index
    %c0_4 = arith.constant 0 : index
    %3 = vector.load %arg2[%c0_2, %c0_3, %c0_4] : memref<15x6x256xf32, #tpu.memory_space<vmem>>, vector<1x6x256xf32>
    %4 = vector.shape_cast %3 : vector<1x6x256xf32> to vector<6x256xf32>
    %cst_5 = arith.constant dense<0.000000e+00> : vector<448x256xf32>
    %5 = tpu.matmul %2, %4, %cst_5 {dimension_numbers = #tpu.dot_dimension_numbers<[1], [0], [0], [1], [0, 0, 1, 1], [], []>} : vector<448x6xf32>, vector<6x256xf32>, vector<448x256xf32> -> vector<448x256xf32>
    %6 = arith.addf %0, %5 : vector<448x256xf32>
    %c0_6 = arith.constant 0 : index
    %c1 = arith.constant 1 : index
    %c0_7 = arith.constant 0 : index
    %7 = vector.load %arg1[%c0_6, %c1, %c0_7] : memref<1x520x6xf32, #tpu.memory_space<vmem>>, vector<1x448x6xf32>
    %8 = vector.shape_cast %7 : vector<1x448x6xf32> to vector<448x6xf32>
    %c1_8 = arith.constant 1 : index
    %c0_9 = arith.constant 0 : index
    %c0_10 = arith.constant 0 : index
    %9 = vector.load %arg2[%c1_8, %c0_9, %c0_10] : memref<15x6x256xf32, #tpu.memory_space<vmem>>, vector<1x6x256xf32>
    %10 = vector.shape_cast %9 : vector<1x6x256xf32> to vector<6x256xf32>
    %cst_11 = arith.constant dense<0.000000e+00> : vector<448x256xf32>
    %11 = tpu.matmul %8, %10, %cst_11 {dimension_numbers = #tpu.dot_dimension_numbers<[1], [0], [0], [1], [0, 0, 1, 1], [], []>} : vector<448x6xf32>, vector<6x256xf32>, vector<448x256xf32> -> vector<448x256xf32>
    %12 = arith.addf %6, %11 : vector<448x256xf32>
    %c0_12 = arith.constant 0 : index
    %c2 = arith.constant 2 : index
    %c0_13 = arith.constant 0 : index
    %13 = vector.load %arg1[%c0_12, %c2, %c0_13] : memref<1x520x6xf32, #tpu.memory_space<vmem>>, vector<1x448x6xf32>
    %14 = vector.shape_cast %13 : vector<1x448x6xf32> to vector<448x6xf32>
    %c2_14 = arith.constant 2 : index
    %c0_15 = arith.constant 0 : index
    %c0_16 = arith.constant 0 : index
    %15 = vector.load %arg2[%c2_14, %c0_15, %c0_16] : memref<15x6x256xf32, #tpu.memory_space<vmem>>, vector<1x6x256xf32>
    %16 = vector.shape_cast %15 : vector<1x6x256xf32> to vector<6x256xf32>
    %cst_17 = arith.constant dense<0.000000e+00> : vector<448x256xf32>
    %17 = tpu.matmul %14, %16, %cst_17 {dimension_numbers = #tpu.dot_dimension_numbers<[1], [0], [0], [1], [0, 0, 1, 1], [], []>} : vector<448x6xf32>, vector<6x256xf32>, vector<448x256xf32> -> vector<448x256xf32>
    %18 = arith.addf %12, %17 : vector<448x256xf32>
    %c0_18 = arith.constant 0 : index
    %c16 = arith.constant 16 : index
    %c0_19 = arith.constant 0 : index
    %19 = vector.load %arg1[%c0_18, %c16, %c0_19] : memref<1x520x6xf32, #tpu.memory_space<vmem>>, vector<1x448x6xf32>
    %20 = vector.shape_cast %19 : vector<1x448x6xf32> to vector<448x6xf32>
    %c3 = arith.constant 3 : index
    %c0_20 = arith.constant 0 : index
    %c0_21 = arith.constant 0 : index
    %21 = vector.load %arg2[%c3, %c0_20, %c0_21] : memref<15x6x256xf32, #tpu.memory_space<vmem>>, vector<1x6x256xf32>
    %22 = vector.shape_cast %21 : vector<1x6x256xf32> to vector<6x256xf32>
    %cst_22 = arith.constant dense<0.000000e+00> : vector<448x256xf32>
    %23 = tpu.matmul %20, %22, %cst_22 {dimension_numbers = #tpu.dot_dimension_numbers<[1], [0], [0], [1], [0, 0, 1, 1], [], []>} : vector<448x6xf32>, vector<6x256xf32>, vector<448x256xf32> -> vector<448x256xf32>
    %24 = arith.addf %18, %23 : vector<448x256xf32>
    %c0_23 = arith.constant 0 : index
    %c17 = arith.constant 17 : index
    %c0_24 = arith.constant 0 : index
    %25 = vector.load %arg1[%c0_23, %c17, %c0_24] : memref<1x520x6xf32, #tpu.memory_space<vmem>>, vector<1x448x6xf32>
    %26 = vector.shape_cast %25 : vector<1x448x6xf32> to vector<448x6xf32>
    %c4 = arith.constant 4 : index
    %c0_25 = arith.constant 0 : index
    %c0_26 = arith.constant 0 : index
    %27 = vector.load %arg2[%c4, %c0_25, %c0_26] : memref<15x6x256xf32, #tpu.memory_space<vmem>>, vector<1x6x256xf32>
    %28 = vector.shape_cast %27 : vector<1x6x256xf32> to vector<6x256xf32>
    %cst_27 = arith.constant dense<0.000000e+00> : vector<448x256xf32>
    %29 = tpu.matmul %26, %28, %cst_27 {dimension_numbers = #tpu.dot_dimension_numbers<[1], [0], [0], [1], [0, 0, 1, 1], [], []>} : vector<448x6xf32>, vector<6x256xf32>, vector<448x256xf32> -> vector<448x256xf32>
    %30 = arith.addf %24, %29 : vector<448x256xf32>
    %c0_28 = arith.constant 0 : index
    %c18 = arith.constant 18 : index
    %c0_29 = arith.constant 0 : index
    %31 = vector.load %arg1[%c0_28, %c18, %c0_29] : memref<1x520x6xf32, #tpu.memory_space<vmem>>, vector<1x448x6xf32>
    %32 = vector.shape_cast %31 : vector<1x448x6xf32> to vector<448x6xf32>
    %c5 = arith.constant 5 : index
    %c0_30 = arith.constant 0 : index
    %c0_31 = arith.constant 0 : index
    %33 = vector.load %arg2[%c5, %c0_30, %c0_31] : memref<15x6x256xf32, #tpu.memory_space<vmem>>, vector<1x6x256xf32>
    %34 = vector.shape_cast %33 : vector<1x6x256xf32> to vector<6x256xf32>
    %cst_32 = arith.constant dense<0.000000e+00> : vector<448x256xf32>
    %35 = tpu.matmul %32, %34, %cst_32 {dimension_numbers = #tpu.dot_dimension_numbers<[1], [0], [0], [1], [0, 0, 1, 1], [], []>} : vector<448x6xf32>, vector<6x256xf32>, vector<448x256xf32> -> vector<448x256xf32>
    %36 = arith.addf %30, %35 : vector<448x256xf32>
    %c0_33 = arith.constant 0 : index
    %c32 = arith.constant 32 : index
    %c0_34 = arith.constant 0 : index
    %37 = vector.load %arg1[%c0_33, %c32, %c0_34] : memref<1x520x6xf32, #tpu.memory_space<vmem>>, vector<1x448x6xf32>
    %38 = vector.shape_cast %37 : vector<1x448x6xf32> to vector<448x6xf32>
    %c6 = arith.constant 6 : index
    %c0_35 = arith.constant 0 : index
    %c0_36 = arith.constant 0 : index
    %39 = vector.load %arg2[%c6, %c0_35, %c0_36] : memref<15x6x256xf32, #tpu.memory_space<vmem>>, vector<1x6x256xf32>
    %40 = vector.shape_cast %39 : vector<1x6x256xf32> to vector<6x256xf32>
    %cst_37 = arith.constant dense<0.000000e+00> : vector<448x256xf32>
    %41 = tpu.matmul %38, %40, %cst_37 {dimension_numbers = #tpu.dot_dimension_numbers<[1], [0], [0], [1], [0, 0, 1, 1], [], []>} : vector<448x6xf32>, vector<6x256xf32>, vector<448x256xf32> -> vector<448x256xf32>
    %42 = arith.addf %36, %41 : vector<448x256xf32>
    %c0_38 = arith.constant 0 : index
    %c33 = arith.constant 33 : index
    %c0_39 = arith.constant 0 : index
    %43 = vector.load %arg1[%c0_38, %c33, %c0_39] : memref<1x520x6xf32, #tpu.memory_space<vmem>>, vector<1x448x6xf32>
    %44 = vector.shape_cast %43 : vector<1x448x6xf32> to vector<448x6xf32>
    %c7 = arith.constant 7 : index
    %c0_40 = arith.constant 0 : index
    %c0_41 = arith.constant 0 : index
    %45 = vector.load %arg2[%c7, %c0_40, %c0_41] : memref<15x6x256xf32, #tpu.memory_space<vmem>>, vector<1x6x256xf32>
    %46 = vector.shape_cast %45 : vector<1x6x256xf32> to vector<6x256xf32>
    %cst_42 = arith.constant dense<0.000000e+00> : vector<448x256xf32>
    %47 = tpu.matmul %44, %46, %cst_42 {dimension_numbers = #tpu.dot_dimension_numbers<[1], [0], [0], [1], [0, 0, 1, 1], [], []>} : vector<448x6xf32>, vector<6x256xf32>, vector<448x256xf32> -> vector<448x256xf32>
    %48 = arith.addf %42, %47 : vector<448x256xf32>
    %c0_43 = arith.constant 0 : index
    %c34 = arith.constant 34 : index
    %c0_44 = arith.constant 0 : index
    %49 = vector.load %arg1[%c0_43, %c34, %c0_44] : memref<1x520x6xf32, #tpu.memory_space<vmem>>, vector<1x448x6xf32>
    %50 = vector.shape_cast %49 : vector<1x448x6xf32> to vector<448x6xf32>
    %c8 = arith.constant 8 : index
    %c0_45 = arith.constant 0 : index
    %c0_46 = arith.constant 0 : index
    %51 = vector.load %arg2[%c8, %c0_45, %c0_46] : memref<15x6x256xf32, #tpu.memory_space<vmem>>, vector<1x6x256xf32>
    %52 = vector.shape_cast %51 : vector<1x6x256xf32> to vector<6x256xf32>
    %cst_47 = arith.constant dense<0.000000e+00> : vector<448x256xf32>
    %53 = tpu.matmul %50, %52, %cst_47 {dimension_numbers = #tpu.dot_dimension_numbers<[1], [0], [0], [1], [0, 0, 1, 1], [], []>} : vector<448x6xf32>, vector<6x256xf32>, vector<448x256xf32> -> vector<448x256xf32>
    %54 = arith.addf %48, %53 : vector<448x256xf32>
    %c0_48 = arith.constant 0 : index
    %c48 = arith.constant 48 : index
    %c0_49 = arith.constant 0 : index
    %55 = vector.load %arg1[%c0_48, %c48, %c0_49] : memref<1x520x6xf32, #tpu.memory_space<vmem>>, vector<1x448x6xf32>
    %56 = vector.shape_cast %55 : vector<1x448x6xf32> to vector<448x6xf32>
    %c9 = arith.constant 9 : index
    %c0_50 = arith.constant 0 : index
    %c0_51 = arith.constant 0 : index
    %57 = vector.load %arg2[%c9, %c0_50, %c0_51] : memref<15x6x256xf32, #tpu.memory_space<vmem>>, vector<1x6x256xf32>
    %58 = vector.shape_cast %57 : vector<1x6x256xf32> to vector<6x256xf32>
    %cst_52 = arith.constant dense<0.000000e+00> : vector<448x256xf32>
    %59 = tpu.matmul %56, %58, %cst_52 {dimension_numbers = #tpu.dot_dimension_numbers<[1], [0], [0], [1], [0, 0, 1, 1], [], []>} : vector<448x6xf32>, vector<6x256xf32>, vector<448x256xf32> -> vector<448x256xf32>
    %60 = arith.addf %54, %59 : vector<448x256xf32>
    %c0_53 = arith.constant 0 : index
    %c49 = arith.constant 49 : index
    %c0_54 = arith.constant 0 : index
    %61 = vector.load %arg1[%c0_53, %c49, %c0_54] : memref<1x520x6xf32, #tpu.memory_space<vmem>>, vector<1x448x6xf32>
    %62 = vector.shape_cast %61 : vector<1x448x6xf32> to vector<448x6xf32>
    %c10 = arith.constant 10 : index
    %c0_55 = arith.constant 0 : index
    %c0_56 = arith.constant 0 : index
    %63 = vector.load %arg2[%c10, %c0_55, %c0_56] : memref<15x6x256xf32, #tpu.memory_space<vmem>>, vector<1x6x256xf32>
    %64 = vector.shape_cast %63 : vector<1x6x256xf32> to vector<6x256xf32>
    %cst_57 = arith.constant dense<0.000000e+00> : vector<448x256xf32>
    %65 = tpu.matmul %62, %64, %cst_57 {dimension_numbers = #tpu.dot_dimension_numbers<[1], [0], [0], [1], [0, 0, 1, 1], [], []>} : vector<448x6xf32>, vector<6x256xf32>, vector<448x256xf32> -> vector<448x256xf32>
    %66 = arith.addf %60, %65 : vector<448x256xf32>
    %c0_58 = arith.constant 0 : index
    %c50 = arith.constant 50 : index
    %c0_59 = arith.constant 0 : index
    %67 = vector.load %arg1[%c0_58, %c50, %c0_59] : memref<1x520x6xf32, #tpu.memory_space<vmem>>, vector<1x448x6xf32>
    %68 = vector.shape_cast %67 : vector<1x448x6xf32> to vector<448x6xf32>
    %c11 = arith.constant 11 : index
    %c0_60 = arith.constant 0 : index
    %c0_61 = arith.constant 0 : index
    %69 = vector.load %arg2[%c11, %c0_60, %c0_61] : memref<15x6x256xf32, #tpu.memory_space<vmem>>, vector<1x6x256xf32>
    %70 = vector.shape_cast %69 : vector<1x6x256xf32> to vector<6x256xf32>
    %cst_62 = arith.constant dense<0.000000e+00> : vector<448x256xf32>
    %71 = tpu.matmul %68, %70, %cst_62 {dimension_numbers = #tpu.dot_dimension_numbers<[1], [0], [0], [1], [0, 0, 1, 1], [], []>} : vector<448x6xf32>, vector<6x256xf32>, vector<448x256xf32> -> vector<448x256xf32>
    %72 = arith.addf %66, %71 : vector<448x256xf32>
    %c0_63 = arith.constant 0 : index
    %c64 = arith.constant 64 : index
    %c0_64 = arith.constant 0 : index
    %73 = vector.load %arg1[%c0_63, %c64, %c0_64] : memref<1x520x6xf32, #tpu.memory_space<vmem>>, vector<1x448x6xf32>
    %74 = vector.shape_cast %73 : vector<1x448x6xf32> to vector<448x6xf32>
    %c12 = arith.constant 12 : index
    %c0_65 = arith.constant 0 : index
    %c0_66 = arith.constant 0 : index
    %75 = vector.load %arg2[%c12, %c0_65, %c0_66] : memref<15x6x256xf32, #tpu.memory_space<vmem>>, vector<1x6x256xf32>
    %76 = vector.shape_cast %75 : vector<1x6x256xf32> to vector<6x256xf32>
    %cst_67 = arith.constant dense<0.000000e+00> : vector<448x256xf32>
    %77 = tpu.matmul %74, %76, %cst_67 {dimension_numbers = #tpu.dot_dimension_numbers<[1], [0], [0], [1], [0, 0, 1, 1], [], []>} : vector<448x6xf32>, vector<6x256xf32>, vector<448x256xf32> -> vector<448x256xf32>
    %78 = arith.addf %72, %77 : vector<448x256xf32>
    %c0_68 = arith.constant 0 : index
    %c65 = arith.constant 65 : index
    %c0_69 = arith.constant 0 : index
    %79 = vector.load %arg1[%c0_68, %c65, %c0_69] : memref<1x520x6xf32, #tpu.memory_space<vmem>>, vector<1x448x6xf32>
    %80 = vector.shape_cast %79 : vector<1x448x6xf32> to vector<448x6xf32>
    %c13 = arith.constant 13 : index
    %c0_70 = arith.constant 0 : index
    %c0_71 = arith.constant 0 : index
    %81 = vector.load %arg2[%c13, %c0_70, %c0_71] : memref<15x6x256xf32, #tpu.memory_space<vmem>>, vector<1x6x256xf32>
    %82 = vector.shape_cast %81 : vector<1x6x256xf32> to vector<6x256xf32>
    %cst_72 = arith.constant dense<0.000000e+00> : vector<448x256xf32>
    %83 = tpu.matmul %80, %82, %cst_72 {dimension_numbers = #tpu.dot_dimension_numbers<[1], [0], [0], [1], [0, 0, 1, 1], [], []>} : vector<448x6xf32>, vector<6x256xf32>, vector<448x256xf32> -> vector<448x256xf32>
    %84 = arith.addf %78, %83 : vector<448x256xf32>
    %c0_73 = arith.constant 0 : index
    %c66 = arith.constant 66 : index
    %c0_74 = arith.constant 0 : index
    %85 = vector.load %arg1[%c0_73, %c66, %c0_74] : memref<1x520x6xf32, #tpu.memory_space<vmem>>, vector<1x448x6xf32>
    %86 = vector.shape_cast %85 : vector<1x448x6xf32> to vector<448x6xf32>
    %c14 = arith.constant 14 : index
    %c0_75 = arith.constant 0 : index
    %c0_76 = arith.constant 0 : index
    %87 = vector.load %arg2[%c14, %c0_75, %c0_76] : memref<15x6x256xf32, #tpu.memory_space<vmem>>, vector<1x6x256xf32>
    %88 = vector.shape_cast %87 : vector<1x6x256xf32> to vector<6x256xf32>
    %cst_77 = arith.constant dense<0.000000e+00> : vector<448x256xf32>
    %89 = tpu.matmul %86, %88, %cst_77 {dimension_numbers = #tpu.dot_dimension_numbers<[1], [0], [0], [1], [0, 0, 1, 1], [], []>} : vector<448x6xf32>, vector<6x256xf32>, vector<448x256xf32> -> vector<448x256xf32>
    %90 = arith.addf %84, %89 : vector<448x256xf32>
    %c0_78 = arith.constant 0 : index
    %c0_79 = arith.constant 0 : index
    %91 = vector.load %arg3[%c0_78, %c0_79] : memref<1x256xf32, #tpu.memory_space<vmem>>, vector<1x256xf32>
    %92 = vector.broadcast %91 : vector<1x256xf32> to vector<448x256xf32>
    %93 = arith.addf %90, %92 : vector<448x256xf32>
    %cst_80 = arith.constant 0.000000e+00 : f32
    %94 = vector.broadcast %cst_80 : f32 to vector<448x256xf32>
    %95 = arith.maximumf %93, %94 : vector<448x256xf32>
    %96 = vector.extract_strided_slice %95 {offsets = [0, 0], sizes = [448, 128], strides = [1, 1]} : vector<448x256xf32> to vector<448x128xf32>
    %97 = vector.extract_strided_slice %95 {offsets = [0, 128], sizes = [448, 128], strides = [1, 1]} : vector<448x256xf32> to vector<448x128xf32>
    %98 = arith.maximumf %96, %97 : vector<448x128xf32>
    %99 = vector.extract_strided_slice %98 {offsets = [0, 0], sizes = [16, 128], strides = [1, 1]} : vector<448x128xf32> to vector<16x128xf32>
    %100 = vector.extract_strided_slice %98 {offsets = [16, 0], sizes = [16, 128], strides = [1, 1]} : vector<448x128xf32> to vector<16x128xf32>
    %101 = arith.maximumf %99, %100 : vector<16x128xf32>
    %c0_81 = arith.constant 0 : index
    %c0_82 = arith.constant 0 : index
    %c0_83 = arith.constant 0 : index
    %c0_84 = arith.constant 0 : index
    %102 = vector.load %arg4[%c0_81, %c0_82, %c0_83, %c0_84] : memref<1x14x16x128xf32, #tpu.memory_space<vmem>>, vector<1x1x16x128xf32>
    %103 = vector.shape_cast %102 : vector<1x1x16x128xf32> to vector<16x128xf32>
    %104 = vector.shape_cast %101 : vector<16x128xf32> to vector<1x1x16x128xf32>
    tpu.vector_store %arg4[%c0_81, %c0_82, %c0_83, %c0_84], %104 {strides = array<i32>} : memref<1x14x16x128xf32, #tpu.memory_space<vmem>>, vector<1x1x16x128xf32>,
    %105 = vector.extract_strided_slice %98 {offsets = [32, 0], sizes = [16, 128], strides = [1, 1]} : vector<448x128xf32> to vector<16x128xf32>
    %106 = vector.extract_strided_slice %98 {offsets = [48, 0], sizes = [16, 128], strides = [1, 1]} : vector<448x128xf32> to vector<16x128xf32>
    %107 = arith.maximumf %105, %106 : vector<16x128xf32>
    %c0_85 = arith.constant 0 : index
    %c1_86 = arith.constant 1 : index
    %c0_87 = arith.constant 0 : index
    %c0_88 = arith.constant 0 : index
    %108 = vector.load %arg4[%c0_85, %c1_86, %c0_87, %c0_88] : memref<1x14x16x128xf32, #tpu.memory_space<vmem>>, vector<1x1x16x128xf32>
    %109 = vector.shape_cast %108 : vector<1x1x16x128xf32> to vector<16x128xf32>
    %110 = vector.shape_cast %107 : vector<16x128xf32> to vector<1x1x16x128xf32>
    tpu.vector_store %arg4[%c0_85, %c1_86, %c0_87, %c0_88], %110 {strides = array<i32>} : memref<1x14x16x128xf32, #tpu.memory_space<vmem>>, vector<1x1x16x128xf32>,
    %111 = vector.extract_strided_slice %98 {offsets = [64, 0], sizes = [16, 128], strides = [1, 1]} : vector<448x128xf32> to vector<16x128xf32>
    %112 = vector.extract_strided_slice %98 {offsets = [80, 0], sizes = [16, 128], strides = [1, 1]} : vector<448x128xf32> to vector<16x128xf32>
    %113 = arith.maximumf %111, %112 : vector<16x128xf32>
    %c0_89 = arith.constant 0 : index
    %c2_90 = arith.constant 2 : index
    %c0_91 = arith.constant 0 : index
    %c0_92 = arith.constant 0 : index
    %114 = vector.load %arg4[%c0_89, %c2_90, %c0_91, %c0_92] : memref<1x14x16x128xf32, #tpu.memory_space<vmem>>, vector<1x1x16x128xf32>
    %115 = vector.shape_cast %114 : vector<1x1x16x128xf32> to vector<16x128xf32>
    %116 = vector.shape_cast %113 : vector<16x128xf32> to vector<1x1x16x128xf32>
    tpu.vector_store %arg4[%c0_89, %c2_90, %c0_91, %c0_92], %116 {strides = array<i32>} : memref<1x14x16x128xf32, #tpu.memory_space<vmem>>, vector<1x1x16x128xf32>,
    %117 = vector.extract_strided_slice %98 {offsets = [96, 0], sizes = [16, 128], strides = [1, 1]} : vector<448x128xf32> to vector<16x128xf32>
    %118 = vector.extract_strided_slice %98 {offsets = [112, 0], sizes = [16, 128], strides = [1, 1]} : vector<448x128xf32> to vector<16x128xf32>
    %119 = arith.maximumf %117, %118 : vector<16x128xf32>
    %c0_93 = arith.constant 0 : index
    %c3_94 = arith.constant 3 : index
    %c0_95 = arith.constant 0 : index
    %c0_96 = arith.constant 0 : index
    %120 = vector.load %arg4[%c0_93, %c3_94, %c0_95, %c0_96] : memref<1x14x16x128xf32, #tpu.memory_space<vmem>>, vector<1x1x16x128xf32>
    %121 = vector.shape_cast %120 : vector<1x1x16x128xf32> to vector<16x128xf32>
    %122 = vector.shape_cast %119 : vector<16x128xf32> to vector<1x1x16x128xf32>
    tpu.vector_store %arg4[%c0_93, %c3_94, %c0_95, %c0_96], %122 {strides = array<i32>} : memref<1x14x16x128xf32, #tpu.memory_space<vmem>>, vector<1x1x16x128xf32>,
    %123 = vector.extract_strided_slice %98 {offsets = [128, 0], sizes = [16, 128], strides = [1, 1]} : vector<448x128xf32> to vector<16x128xf32>
    %124 = vector.extract_strided_slice %98 {offsets = [144, 0], sizes = [16, 128], strides = [1, 1]} : vector<448x128xf32> to vector<16x128xf32>
    %125 = arith.maximumf %123, %124 : vector<16x128xf32>
    %c0_97 = arith.constant 0 : index
    %c4_98 = arith.constant 4 : index
    %c0_99 = arith.constant 0 : index
    %c0_100 = arith.constant 0 : index
    %126 = vector.load %arg4[%c0_97, %c4_98, %c0_99, %c0_100] : memref<1x14x16x128xf32, #tpu.memory_space<vmem>>, vector<1x1x16x128xf32>
    %127 = vector.shape_cast %126 : vector<1x1x16x128xf32> to vector<16x128xf32>
    %128 = vector.shape_cast %125 : vector<16x128xf32> to vector<1x1x16x128xf32>
    tpu.vector_store %arg4[%c0_97, %c4_98, %c0_99, %c0_100], %128 {strides = array<i32>} : memref<1x14x16x128xf32, #tpu.memory_space<vmem>>, vector<1x1x16x128xf32>,
    %129 = vector.extract_strided_slice %98 {offsets = [160, 0], sizes = [16, 128], strides = [1, 1]} : vector<448x128xf32> to vector<16x128xf32>
    %130 = vector.extract_strided_slice %98 {offsets = [176, 0], sizes = [16, 128], strides = [1, 1]} : vector<448x128xf32> to vector<16x128xf32>
    %131 = arith.maximumf %129, %130 : vector<16x128xf32>
    %c0_101 = arith.constant 0 : index
    %c5_102 = arith.constant 5 : index
    %c0_103 = arith.constant 0 : index
    %c0_104 = arith.constant 0 : index
    %132 = vector.load %arg4[%c0_101, %c5_102, %c0_103, %c0_104] : memref<1x14x16x128xf32, #tpu.memory_space<vmem>>, vector<1x1x16x128xf32>
    %133 = vector.shape_cast %132 : vector<1x1x16x128xf32> to vector<16x128xf32>
    %134 = vector.shape_cast %131 : vector<16x128xf32> to vector<1x1x16x128xf32>
    tpu.vector_store %arg4[%c0_101, %c5_102, %c0_103, %c0_104], %134 {strides = array<i32>} : memref<1x14x16x128xf32, #tpu.memory_space<vmem>>, vector<1x1x16x128xf32>,
    %135 = vector.extract_strided_slice %98 {offsets = [192, 0], sizes = [16, 128], strides = [1, 1]} : vector<448x128xf32> to vector<16x128xf32>
    %136 = vector.extract_strided_slice %98 {offsets = [208, 0], sizes = [16, 128], strides = [1, 1]} : vector<448x128xf32> to vector<16x128xf32>
    %137 = arith.maximumf %135, %136 : vector<16x128xf32>
    %c0_105 = arith.constant 0 : index
    %c6_106 = arith.constant 6 : index
    %c0_107 = arith.constant 0 : index
    %c0_108 = arith.constant 0 : index
    %138 = vector.load %arg4[%c0_105, %c6_106, %c0_107, %c0_108] : memref<1x14x16x128xf32, #tpu.memory_space<vmem>>, vector<1x1x16x128xf32>
    %139 = vector.shape_cast %138 : vector<1x1x16x128xf32> to vector<16x128xf32>
    %140 = vector.shape_cast %137 : vector<16x128xf32> to vector<1x1x16x128xf32>
    tpu.vector_store %arg4[%c0_105, %c6_106, %c0_107, %c0_108], %140 {strides = array<i32>} : memref<1x14x16x128xf32, #tpu.memory_space<vmem>>, vector<1x1x16x128xf32>,
    %141 = vector.extract_strided_slice %98 {offsets = [224, 0], sizes = [16, 128], strides = [1, 1]} : vector<448x128xf32> to vector<16x128xf32>
    %142 = vector.extract_strided_slice %98 {offsets = [240, 0], sizes = [16, 128], strides = [1, 1]} : vector<448x128xf32> to vector<16x128xf32>
    %143 = arith.maximumf %141, %142 : vector<16x128xf32>
    %c0_109 = arith.constant 0 : index
    %c7_110 = arith.constant 7 : index
    %c0_111 = arith.constant 0 : index
    %c0_112 = arith.constant 0 : index
    %144 = vector.load %arg4[%c0_109, %c7_110, %c0_111, %c0_112] : memref<1x14x16x128xf32, #tpu.memory_space<vmem>>, vector<1x1x16x128xf32>
    %145 = vector.shape_cast %144 : vector<1x1x16x128xf32> to vector<16x128xf32>
    %146 = vector.shape_cast %143 : vector<16x128xf32> to vector<1x1x16x128xf32>
    tpu.vector_store %arg4[%c0_109, %c7_110, %c0_111, %c0_112], %146 {strides = array<i32>} : memref<1x14x16x128xf32, #tpu.memory_space<vmem>>, vector<1x1x16x128xf32>,
    %147 = vector.extract_strided_slice %98 {offsets = [256, 0], sizes = [16, 128], strides = [1, 1]} : vector<448x128xf32> to vector<16x128xf32>
    %148 = vector.extract_strided_slice %98 {offsets = [272, 0], sizes = [16, 128], strides = [1, 1]} : vector<448x128xf32> to vector<16x128xf32>
    %149 = arith.maximumf %147, %148 : vector<16x128xf32>
    %c0_113 = arith.constant 0 : index
    %c8_114 = arith.constant 8 : index
    %c0_115 = arith.constant 0 : index
    %c0_116 = arith.constant 0 : index
    %150 = vector.load %arg4[%c0_113, %c8_114, %c0_115, %c0_116] : memref<1x14x16x128xf32, #tpu.memory_space<vmem>>, vector<1x1x16x128xf32>
    %151 = vector.shape_cast %150 : vector<1x1x16x128xf32> to vector<16x128xf32>
    %152 = vector.shape_cast %149 : vector<16x128xf32> to vector<1x1x16x128xf32>
    tpu.vector_store %arg4[%c0_113, %c8_114, %c0_115, %c0_116], %152 {strides = array<i32>} : memref<1x14x16x128xf32, #tpu.memory_space<vmem>>, vector<1x1x16x128xf32>,
    %153 = vector.extract_strided_slice %98 {offsets = [288, 0], sizes = [16, 128], strides = [1, 1]} : vector<448x128xf32> to vector<16x128xf32>
    %154 = vector.extract_strided_slice %98 {offsets = [304, 0], sizes = [16, 128], strides = [1, 1]} : vector<448x128xf32> to vector<16x128xf32>
    %155 = arith.maximumf %153, %154 : vector<16x128xf32>
    %c0_117 = arith.constant 0 : index
    %c9_118 = arith.constant 9 : index
    %c0_119 = arith.constant 0 : index
    %c0_120 = arith.constant 0 : index
    %156 = vector.load %arg4[%c0_117, %c9_118, %c0_119, %c0_120] : memref<1x14x16x128xf32, #tpu.memory_space<vmem>>, vector<1x1x16x128xf32>
    %157 = vector.shape_cast %156 : vector<1x1x16x128xf32> to vector<16x128xf32>
    %158 = vector.shape_cast %155 : vector<16x128xf32> to vector<1x1x16x128xf32>
    tpu.vector_store %arg4[%c0_117, %c9_118, %c0_119, %c0_120], %158 {strides = array<i32>} : memref<1x14x16x128xf32, #tpu.memory_space<vmem>>, vector<1x1x16x128xf32>,
    %159 = vector.extract_strided_slice %98 {offsets = [320, 0], sizes = [16, 128], strides = [1, 1]} : vector<448x128xf32> to vector<16x128xf32>
    %160 = vector.extract_strided_slice %98 {offsets = [336, 0], sizes = [16, 128], strides = [1, 1]} : vector<448x128xf32> to vector<16x128xf32>
    %161 = arith.maximumf %159, %160 : vector<16x128xf32>
    %c0_121 = arith.constant 0 : index
    %c10_122 = arith.constant 10 : index
    %c0_123 = arith.constant 0 : index
    %c0_124 = arith.constant 0 : index
    %162 = vector.load %arg4[%c0_121, %c10_122, %c0_123, %c0_124] : memref<1x14x16x128xf32, #tpu.memory_space<vmem>>, vector<1x1x16x128xf32>
    %163 = vector.shape_cast %162 : vector<1x1x16x128xf32> to vector<16x128xf32>
    %164 = vector.shape_cast %161 : vector<16x128xf32> to vector<1x1x16x128xf32>
    tpu.vector_store %arg4[%c0_121, %c10_122, %c0_123, %c0_124], %164 {strides = array<i32>} : memref<1x14x16x128xf32, #tpu.memory_space<vmem>>, vector<1x1x16x128xf32>,
    %165 = vector.extract_strided_slice %98 {offsets = [352, 0], sizes = [16, 128], strides = [1, 1]} : vector<448x128xf32> to vector<16x128xf32>
    %166 = vector.extract_strided_slice %98 {offsets = [368, 0], sizes = [16, 128], strides = [1, 1]} : vector<448x128xf32> to vector<16x128xf32>
    %167 = arith.maximumf %165, %166 : vector<16x128xf32>
    %c0_125 = arith.constant 0 : index
    %c11_126 = arith.constant 11 : index
    %c0_127 = arith.constant 0 : index
    %c0_128 = arith.constant 0 : index
    %168 = vector.load %arg4[%c0_125, %c11_126, %c0_127, %c0_128] : memref<1x14x16x128xf32, #tpu.memory_space<vmem>>, vector<1x1x16x128xf32>
    %169 = vector.shape_cast %168 : vector<1x1x16x128xf32> to vector<16x128xf32>
    %170 = vector.shape_cast %167 : vector<16x128xf32> to vector<1x1x16x128xf32>
    tpu.vector_store %arg4[%c0_125, %c11_126, %c0_127, %c0_128], %170 {strides = array<i32>} : memref<1x14x16x128xf32, #tpu.memory_space<vmem>>, vector<1x1x16x128xf32>,
    %171 = vector.extract_strided_slice %98 {offsets = [384, 0], sizes = [16, 128], strides = [1, 1]} : vector<448x128xf32> to vector<16x128xf32>
    %172 = vector.extract_strided_slice %98 {offsets = [400, 0], sizes = [16, 128], strides = [1, 1]} : vector<448x128xf32> to vector<16x128xf32>
    %173 = arith.maximumf %171, %172 : vector<16x128xf32>
    %c0_129 = arith.constant 0 : index
    %c12_130 = arith.constant 12 : index
    %c0_131 = arith.constant 0 : index
    %c0_132 = arith.constant 0 : index
    %174 = vector.load %arg4[%c0_129, %c12_130, %c0_131, %c0_132] : memref<1x14x16x128xf32, #tpu.memory_space<vmem>>, vector<1x1x16x128xf32>
    %175 = vector.shape_cast %174 : vector<1x1x16x128xf32> to vector<16x128xf32>
    %176 = vector.shape_cast %173 : vector<16x128xf32> to vector<1x1x16x128xf32>
    tpu.vector_store %arg4[%c0_129, %c12_130, %c0_131, %c0_132], %176 {strides = array<i32>} : memref<1x14x16x128xf32, #tpu.memory_space<vmem>>, vector<1x1x16x128xf32>,
    %177 = vector.extract_strided_slice %98 {offsets = [416, 0], sizes = [16, 128], strides = [1, 1]} : vector<448x128xf32> to vector<16x128xf32>
    %178 = vector.extract_strided_slice %98 {offsets = [432, 0], sizes = [16, 128], strides = [1, 1]} : vector<448x128xf32> to vector<16x128xf32>
    %179 = arith.maximumf %177, %178 : vector<16x128xf32>
    %c0_133 = arith.constant 0 : index
    %c13_134 = arith.constant 13 : index
    %c0_135 = arith.constant 0 : index
    %c0_136 = arith.constant 0 : index
    %180 = vector.load %arg4[%c0_133, %c13_134, %c0_135, %c0_136] : memref<1x14x16x128xf32, #tpu.memory_space<vmem>>, vector<1x1x16x128xf32>
    %181 = vector.shape_cast %180 : vector<1x1x16x128xf32> to vector<16x128xf32>
    %182 = vector.shape_cast %179 : vector<16x128xf32> to vector<1x1x16x128xf32>
    tpu.vector_store %arg4[%c0_133, %c13_134, %c0_135, %c0_136], %182 {strides = array<i32>} : memref<1x14x16x128xf32, #tpu.memory_space<vmem>>, vector<1x1x16x128xf32>,
    return
  }
  func.func @transform_0(%arg0: i32) -> (i32, i32, i32) {
    %c0_i32 = arith.constant 0 : i32
    %c0_i32_0 = arith.constant 0 : i32
    %c0_i32_1 = arith.constant 0 : i32
    return %arg0, %c0_i32, %c0_i32_0 : i32, i32, i32
  }
  func.func @transform_1(%arg0: i32) -> (i32, i32, i32) {
    %c0_i32 = arith.constant 0 : i32
    %c0_i32_0 = arith.constant 0 : i32
    %c0_i32_1 = arith.constant 0 : i32
    %c0_i32_2 = arith.constant 0 : i32
    return %c0_i32, %c0_i32_0, %c0_i32_1 : i32, i32, i32
  }
  func.func @transform_2(%arg0: i32) -> (i32, i32) {
    %c0_i32 = arith.constant 0 : i32
    %c0_i32_0 = arith.constant 0 : i32
    %c0_i32_1 = arith.constant 0 : i32
    return %c0_i32, %c0_i32_0 : i32, i32
  }
  func.func @transform_3(%arg0: i32) -> (i32, i32, i32, i32) {
    %c0_i32 = arith.constant 0 : i32
    %c0_i32_0 = arith.constant 0 : i32
    %c0_i32_1 = arith.constant 0 : i32
    %c0_i32_2 = arith.constant 0 : i32
    return %arg0, %c0_i32, %c0_i32_0, %c0_i32_1 : i32, i32, i32, i32
  }
}

module attributes {stable_mosaic.version = 11 : i64} {
  func.func @_conv_pool_kernel(%arg0: i32, %arg1: memref<1x120x12xf32, #tpu.memory_space<vmem>>, %arg2: memref<15x12x256xf32, #tpu.memory_space<vmem>>, %arg3: memref<1x256xf32, #tpu.memory_space<vmem>>, %arg4: memref<1x5x8x128xf32, #tpu.memory_space<vmem>>) attributes {dimension_semantics = [#tpu.dimension_semantics<parallel>], iteration_bounds = array<i64: 2>, scalar_prefetch = 0 : i64, scratch_operands = 0 : i64, tpu.core_type = #tpu.core_type<tc>, window_params = [{transform_indices = @transform_0, window_bounds = array<i64: 1, 120, 12>}, {pipeline_mode = #tpu.pipeline_mode<synchronous>, transform_indices = @transform_1, window_bounds = array<i64: 15, 12, 256>}, {pipeline_mode = #tpu.pipeline_mode<synchronous>, transform_indices = @transform_2, window_bounds = array<i64: 1, 256>}, {transform_indices = @transform_3, window_bounds = array<i64: 1, 5, 8, 128>}]} {
    %cst = arith.constant 0.000000e+00 : f32
    %0 = vector.broadcast %cst : f32 to vector<80x256xf32>
    %c0 = arith.constant 0 : index
    %c0_0 = arith.constant 0 : index
    %c0_1 = arith.constant 0 : index
    %1 = vector.load %arg1[%c0, %c0_0, %c0_1] : memref<1x120x12xf32, #tpu.memory_space<vmem>>, vector<1x80x12xf32>
    %2 = vector.shape_cast %1 : vector<1x80x12xf32> to vector<80x12xf32>
    %c0_2 = arith.constant 0 : index
    %c0_3 = arith.constant 0 : index
    %c0_4 = arith.constant 0 : index
    %3 = vector.load %arg2[%c0_2, %c0_3, %c0_4] : memref<15x12x256xf32, #tpu.memory_space<vmem>>, vector<1x12x256xf32>
    %4 = vector.shape_cast %3 : vector<1x12x256xf32> to vector<12x256xf32>
    %cst_5 = arith.constant dense<0.000000e+00> : vector<80x256xf32>
    %5 = tpu.matmul %2, %4, %cst_5 {dimension_numbers = #tpu.dot_dimension_numbers<[1], [0], [0], [1], [0, 0, 1, 1], [], []>} : vector<80x12xf32>, vector<12x256xf32>, vector<80x256xf32> -> vector<80x256xf32>
    %6 = arith.addf %0, %5 : vector<80x256xf32>
    %c0_6 = arith.constant 0 : index
    %c1 = arith.constant 1 : index
    %c0_7 = arith.constant 0 : index
    %7 = vector.load %arg1[%c0_6, %c1, %c0_7] : memref<1x120x12xf32, #tpu.memory_space<vmem>>, vector<1x80x12xf32>
    %8 = vector.shape_cast %7 : vector<1x80x12xf32> to vector<80x12xf32>
    %c1_8 = arith.constant 1 : index
    %c0_9 = arith.constant 0 : index
    %c0_10 = arith.constant 0 : index
    %9 = vector.load %arg2[%c1_8, %c0_9, %c0_10] : memref<15x12x256xf32, #tpu.memory_space<vmem>>, vector<1x12x256xf32>
    %10 = vector.shape_cast %9 : vector<1x12x256xf32> to vector<12x256xf32>
    %cst_11 = arith.constant dense<0.000000e+00> : vector<80x256xf32>
    %11 = tpu.matmul %8, %10, %cst_11 {dimension_numbers = #tpu.dot_dimension_numbers<[1], [0], [0], [1], [0, 0, 1, 1], [], []>} : vector<80x12xf32>, vector<12x256xf32>, vector<80x256xf32> -> vector<80x256xf32>
    %12 = arith.addf %6, %11 : vector<80x256xf32>
    %c0_12 = arith.constant 0 : index
    %c2 = arith.constant 2 : index
    %c0_13 = arith.constant 0 : index
    %13 = vector.load %arg1[%c0_12, %c2, %c0_13] : memref<1x120x12xf32, #tpu.memory_space<vmem>>, vector<1x80x12xf32>
    %14 = vector.shape_cast %13 : vector<1x80x12xf32> to vector<80x12xf32>
    %c2_14 = arith.constant 2 : index
    %c0_15 = arith.constant 0 : index
    %c0_16 = arith.constant 0 : index
    %15 = vector.load %arg2[%c2_14, %c0_15, %c0_16] : memref<15x12x256xf32, #tpu.memory_space<vmem>>, vector<1x12x256xf32>
    %16 = vector.shape_cast %15 : vector<1x12x256xf32> to vector<12x256xf32>
    %cst_17 = arith.constant dense<0.000000e+00> : vector<80x256xf32>
    %17 = tpu.matmul %14, %16, %cst_17 {dimension_numbers = #tpu.dot_dimension_numbers<[1], [0], [0], [1], [0, 0, 1, 1], [], []>} : vector<80x12xf32>, vector<12x256xf32>, vector<80x256xf32> -> vector<80x256xf32>
    %18 = arith.addf %12, %17 : vector<80x256xf32>
    %c0_18 = arith.constant 0 : index
    %c8 = arith.constant 8 : index
    %c0_19 = arith.constant 0 : index
    %19 = vector.load %arg1[%c0_18, %c8, %c0_19] : memref<1x120x12xf32, #tpu.memory_space<vmem>>, vector<1x80x12xf32>
    %20 = vector.shape_cast %19 : vector<1x80x12xf32> to vector<80x12xf32>
    %c3 = arith.constant 3 : index
    %c0_20 = arith.constant 0 : index
    %c0_21 = arith.constant 0 : index
    %21 = vector.load %arg2[%c3, %c0_20, %c0_21] : memref<15x12x256xf32, #tpu.memory_space<vmem>>, vector<1x12x256xf32>
    %22 = vector.shape_cast %21 : vector<1x12x256xf32> to vector<12x256xf32>
    %cst_22 = arith.constant dense<0.000000e+00> : vector<80x256xf32>
    %23 = tpu.matmul %20, %22, %cst_22 {dimension_numbers = #tpu.dot_dimension_numbers<[1], [0], [0], [1], [0, 0, 1, 1], [], []>} : vector<80x12xf32>, vector<12x256xf32>, vector<80x256xf32> -> vector<80x256xf32>
    %24 = arith.addf %18, %23 : vector<80x256xf32>
    %c0_23 = arith.constant 0 : index
    %c9 = arith.constant 9 : index
    %c0_24 = arith.constant 0 : index
    %25 = vector.load %arg1[%c0_23, %c9, %c0_24] : memref<1x120x12xf32, #tpu.memory_space<vmem>>, vector<1x80x12xf32>
    %26 = vector.shape_cast %25 : vector<1x80x12xf32> to vector<80x12xf32>
    %c4 = arith.constant 4 : index
    %c0_25 = arith.constant 0 : index
    %c0_26 = arith.constant 0 : index
    %27 = vector.load %arg2[%c4, %c0_25, %c0_26] : memref<15x12x256xf32, #tpu.memory_space<vmem>>, vector<1x12x256xf32>
    %28 = vector.shape_cast %27 : vector<1x12x256xf32> to vector<12x256xf32>
    %cst_27 = arith.constant dense<0.000000e+00> : vector<80x256xf32>
    %29 = tpu.matmul %26, %28, %cst_27 {dimension_numbers = #tpu.dot_dimension_numbers<[1], [0], [0], [1], [0, 0, 1, 1], [], []>} : vector<80x12xf32>, vector<12x256xf32>, vector<80x256xf32> -> vector<80x256xf32>
    %30 = arith.addf %24, %29 : vector<80x256xf32>
    %c0_28 = arith.constant 0 : index
    %c10 = arith.constant 10 : index
    %c0_29 = arith.constant 0 : index
    %31 = vector.load %arg1[%c0_28, %c10, %c0_29] : memref<1x120x12xf32, #tpu.memory_space<vmem>>, vector<1x80x12xf32>
    %32 = vector.shape_cast %31 : vector<1x80x12xf32> to vector<80x12xf32>
    %c5 = arith.constant 5 : index
    %c0_30 = arith.constant 0 : index
    %c0_31 = arith.constant 0 : index
    %33 = vector.load %arg2[%c5, %c0_30, %c0_31] : memref<15x12x256xf32, #tpu.memory_space<vmem>>, vector<1x12x256xf32>
    %34 = vector.shape_cast %33 : vector<1x12x256xf32> to vector<12x256xf32>
    %cst_32 = arith.constant dense<0.000000e+00> : vector<80x256xf32>
    %35 = tpu.matmul %32, %34, %cst_32 {dimension_numbers = #tpu.dot_dimension_numbers<[1], [0], [0], [1], [0, 0, 1, 1], [], []>} : vector<80x12xf32>, vector<12x256xf32>, vector<80x256xf32> -> vector<80x256xf32>
    %36 = arith.addf %30, %35 : vector<80x256xf32>
    %c0_33 = arith.constant 0 : index
    %c16 = arith.constant 16 : index
    %c0_34 = arith.constant 0 : index
    %37 = vector.load %arg1[%c0_33, %c16, %c0_34] : memref<1x120x12xf32, #tpu.memory_space<vmem>>, vector<1x80x12xf32>
    %38 = vector.shape_cast %37 : vector<1x80x12xf32> to vector<80x12xf32>
    %c6 = arith.constant 6 : index
    %c0_35 = arith.constant 0 : index
    %c0_36 = arith.constant 0 : index
    %39 = vector.load %arg2[%c6, %c0_35, %c0_36] : memref<15x12x256xf32, #tpu.memory_space<vmem>>, vector<1x12x256xf32>
    %40 = vector.shape_cast %39 : vector<1x12x256xf32> to vector<12x256xf32>
    %cst_37 = arith.constant dense<0.000000e+00> : vector<80x256xf32>
    %41 = tpu.matmul %38, %40, %cst_37 {dimension_numbers = #tpu.dot_dimension_numbers<[1], [0], [0], [1], [0, 0, 1, 1], [], []>} : vector<80x12xf32>, vector<12x256xf32>, vector<80x256xf32> -> vector<80x256xf32>
    %42 = arith.addf %36, %41 : vector<80x256xf32>
    %c0_38 = arith.constant 0 : index
    %c17 = arith.constant 17 : index
    %c0_39 = arith.constant 0 : index
    %43 = vector.load %arg1[%c0_38, %c17, %c0_39] : memref<1x120x12xf32, #tpu.memory_space<vmem>>, vector<1x80x12xf32>
    %44 = vector.shape_cast %43 : vector<1x80x12xf32> to vector<80x12xf32>
    %c7 = arith.constant 7 : index
    %c0_40 = arith.constant 0 : index
    %c0_41 = arith.constant 0 : index
    %45 = vector.load %arg2[%c7, %c0_40, %c0_41] : memref<15x12x256xf32, #tpu.memory_space<vmem>>, vector<1x12x256xf32>
    %46 = vector.shape_cast %45 : vector<1x12x256xf32> to vector<12x256xf32>
    %cst_42 = arith.constant dense<0.000000e+00> : vector<80x256xf32>
    %47 = tpu.matmul %44, %46, %cst_42 {dimension_numbers = #tpu.dot_dimension_numbers<[1], [0], [0], [1], [0, 0, 1, 1], [], []>} : vector<80x12xf32>, vector<12x256xf32>, vector<80x256xf32> -> vector<80x256xf32>
    %48 = arith.addf %42, %47 : vector<80x256xf32>
    %c0_43 = arith.constant 0 : index
    %c18 = arith.constant 18 : index
    %c0_44 = arith.constant 0 : index
    %49 = vector.load %arg1[%c0_43, %c18, %c0_44] : memref<1x120x12xf32, #tpu.memory_space<vmem>>, vector<1x80x12xf32>
    %50 = vector.shape_cast %49 : vector<1x80x12xf32> to vector<80x12xf32>
    %c8_45 = arith.constant 8 : index
    %c0_46 = arith.constant 0 : index
    %c0_47 = arith.constant 0 : index
    %51 = vector.load %arg2[%c8_45, %c0_46, %c0_47] : memref<15x12x256xf32, #tpu.memory_space<vmem>>, vector<1x12x256xf32>
    %52 = vector.shape_cast %51 : vector<1x12x256xf32> to vector<12x256xf32>
    %cst_48 = arith.constant dense<0.000000e+00> : vector<80x256xf32>
    %53 = tpu.matmul %50, %52, %cst_48 {dimension_numbers = #tpu.dot_dimension_numbers<[1], [0], [0], [1], [0, 0, 1, 1], [], []>} : vector<80x12xf32>, vector<12x256xf32>, vector<80x256xf32> -> vector<80x256xf32>
    %54 = arith.addf %48, %53 : vector<80x256xf32>
    %c0_49 = arith.constant 0 : index
    %c24 = arith.constant 24 : index
    %c0_50 = arith.constant 0 : index
    %55 = vector.load %arg1[%c0_49, %c24, %c0_50] : memref<1x120x12xf32, #tpu.memory_space<vmem>>, vector<1x80x12xf32>
    %56 = vector.shape_cast %55 : vector<1x80x12xf32> to vector<80x12xf32>
    %c9_51 = arith.constant 9 : index
    %c0_52 = arith.constant 0 : index
    %c0_53 = arith.constant 0 : index
    %57 = vector.load %arg2[%c9_51, %c0_52, %c0_53] : memref<15x12x256xf32, #tpu.memory_space<vmem>>, vector<1x12x256xf32>
    %58 = vector.shape_cast %57 : vector<1x12x256xf32> to vector<12x256xf32>
    %cst_54 = arith.constant dense<0.000000e+00> : vector<80x256xf32>
    %59 = tpu.matmul %56, %58, %cst_54 {dimension_numbers = #tpu.dot_dimension_numbers<[1], [0], [0], [1], [0, 0, 1, 1], [], []>} : vector<80x12xf32>, vector<12x256xf32>, vector<80x256xf32> -> vector<80x256xf32>
    %60 = arith.addf %54, %59 : vector<80x256xf32>
    %c0_55 = arith.constant 0 : index
    %c25 = arith.constant 25 : index
    %c0_56 = arith.constant 0 : index
    %61 = vector.load %arg1[%c0_55, %c25, %c0_56] : memref<1x120x12xf32, #tpu.memory_space<vmem>>, vector<1x80x12xf32>
    %62 = vector.shape_cast %61 : vector<1x80x12xf32> to vector<80x12xf32>
    %c10_57 = arith.constant 10 : index
    %c0_58 = arith.constant 0 : index
    %c0_59 = arith.constant 0 : index
    %63 = vector.load %arg2[%c10_57, %c0_58, %c0_59] : memref<15x12x256xf32, #tpu.memory_space<vmem>>, vector<1x12x256xf32>
    %64 = vector.shape_cast %63 : vector<1x12x256xf32> to vector<12x256xf32>
    %cst_60 = arith.constant dense<0.000000e+00> : vector<80x256xf32>
    %65 = tpu.matmul %62, %64, %cst_60 {dimension_numbers = #tpu.dot_dimension_numbers<[1], [0], [0], [1], [0, 0, 1, 1], [], []>} : vector<80x12xf32>, vector<12x256xf32>, vector<80x256xf32> -> vector<80x256xf32>
    %66 = arith.addf %60, %65 : vector<80x256xf32>
    %c0_61 = arith.constant 0 : index
    %c26 = arith.constant 26 : index
    %c0_62 = arith.constant 0 : index
    %67 = vector.load %arg1[%c0_61, %c26, %c0_62] : memref<1x120x12xf32, #tpu.memory_space<vmem>>, vector<1x80x12xf32>
    %68 = vector.shape_cast %67 : vector<1x80x12xf32> to vector<80x12xf32>
    %c11 = arith.constant 11 : index
    %c0_63 = arith.constant 0 : index
    %c0_64 = arith.constant 0 : index
    %69 = vector.load %arg2[%c11, %c0_63, %c0_64] : memref<15x12x256xf32, #tpu.memory_space<vmem>>, vector<1x12x256xf32>
    %70 = vector.shape_cast %69 : vector<1x12x256xf32> to vector<12x256xf32>
    %cst_65 = arith.constant dense<0.000000e+00> : vector<80x256xf32>
    %71 = tpu.matmul %68, %70, %cst_65 {dimension_numbers = #tpu.dot_dimension_numbers<[1], [0], [0], [1], [0, 0, 1, 1], [], []>} : vector<80x12xf32>, vector<12x256xf32>, vector<80x256xf32> -> vector<80x256xf32>
    %72 = arith.addf %66, %71 : vector<80x256xf32>
    %c0_66 = arith.constant 0 : index
    %c32 = arith.constant 32 : index
    %c0_67 = arith.constant 0 : index
    %73 = vector.load %arg1[%c0_66, %c32, %c0_67] : memref<1x120x12xf32, #tpu.memory_space<vmem>>, vector<1x80x12xf32>
    %74 = vector.shape_cast %73 : vector<1x80x12xf32> to vector<80x12xf32>
    %c12 = arith.constant 12 : index
    %c0_68 = arith.constant 0 : index
    %c0_69 = arith.constant 0 : index
    %75 = vector.load %arg2[%c12, %c0_68, %c0_69] : memref<15x12x256xf32, #tpu.memory_space<vmem>>, vector<1x12x256xf32>
    %76 = vector.shape_cast %75 : vector<1x12x256xf32> to vector<12x256xf32>
    %cst_70 = arith.constant dense<0.000000e+00> : vector<80x256xf32>
    %77 = tpu.matmul %74, %76, %cst_70 {dimension_numbers = #tpu.dot_dimension_numbers<[1], [0], [0], [1], [0, 0, 1, 1], [], []>} : vector<80x12xf32>, vector<12x256xf32>, vector<80x256xf32> -> vector<80x256xf32>
    %78 = arith.addf %72, %77 : vector<80x256xf32>
    %c0_71 = arith.constant 0 : index
    %c33 = arith.constant 33 : index
    %c0_72 = arith.constant 0 : index
    %79 = vector.load %arg1[%c0_71, %c33, %c0_72] : memref<1x120x12xf32, #tpu.memory_space<vmem>>, vector<1x80x12xf32>
    %80 = vector.shape_cast %79 : vector<1x80x12xf32> to vector<80x12xf32>
    %c13 = arith.constant 13 : index
    %c0_73 = arith.constant 0 : index
    %c0_74 = arith.constant 0 : index
    %81 = vector.load %arg2[%c13, %c0_73, %c0_74] : memref<15x12x256xf32, #tpu.memory_space<vmem>>, vector<1x12x256xf32>
    %82 = vector.shape_cast %81 : vector<1x12x256xf32> to vector<12x256xf32>
    %cst_75 = arith.constant dense<0.000000e+00> : vector<80x256xf32>
    %83 = tpu.matmul %80, %82, %cst_75 {dimension_numbers = #tpu.dot_dimension_numbers<[1], [0], [0], [1], [0, 0, 1, 1], [], []>} : vector<80x12xf32>, vector<12x256xf32>, vector<80x256xf32> -> vector<80x256xf32>
    %84 = arith.addf %78, %83 : vector<80x256xf32>
    %c0_76 = arith.constant 0 : index
    %c34 = arith.constant 34 : index
    %c0_77 = arith.constant 0 : index
    %85 = vector.load %arg1[%c0_76, %c34, %c0_77] : memref<1x120x12xf32, #tpu.memory_space<vmem>>, vector<1x80x12xf32>
    %86 = vector.shape_cast %85 : vector<1x80x12xf32> to vector<80x12xf32>
    %c14 = arith.constant 14 : index
    %c0_78 = arith.constant 0 : index
    %c0_79 = arith.constant 0 : index
    %87 = vector.load %arg2[%c14, %c0_78, %c0_79] : memref<15x12x256xf32, #tpu.memory_space<vmem>>, vector<1x12x256xf32>
    %88 = vector.shape_cast %87 : vector<1x12x256xf32> to vector<12x256xf32>
    %cst_80 = arith.constant dense<0.000000e+00> : vector<80x256xf32>
    %89 = tpu.matmul %86, %88, %cst_80 {dimension_numbers = #tpu.dot_dimension_numbers<[1], [0], [0], [1], [0, 0, 1, 1], [], []>} : vector<80x12xf32>, vector<12x256xf32>, vector<80x256xf32> -> vector<80x256xf32>
    %90 = arith.addf %84, %89 : vector<80x256xf32>
    %c0_81 = arith.constant 0 : index
    %c0_82 = arith.constant 0 : index
    %91 = vector.load %arg3[%c0_81, %c0_82] : memref<1x256xf32, #tpu.memory_space<vmem>>, vector<1x256xf32>
    %92 = vector.broadcast %91 : vector<1x256xf32> to vector<80x256xf32>
    %93 = arith.addf %90, %92 : vector<80x256xf32>
    %cst_83 = arith.constant 0.000000e+00 : f32
    %94 = vector.broadcast %cst_83 : f32 to vector<80x256xf32>
    %95 = arith.maximumf %93, %94 : vector<80x256xf32>
    %96 = vector.extract_strided_slice %95 {offsets = [0, 0], sizes = [80, 128], strides = [1, 1]} : vector<80x256xf32> to vector<80x128xf32>
    %97 = vector.extract_strided_slice %95 {offsets = [0, 128], sizes = [80, 128], strides = [1, 1]} : vector<80x256xf32> to vector<80x128xf32>
    %98 = arith.maximumf %96, %97 : vector<80x128xf32>
    %99 = vector.extract_strided_slice %98 {offsets = [0, 0], sizes = [8, 128], strides = [1, 1]} : vector<80x128xf32> to vector<8x128xf32>
    %100 = vector.extract_strided_slice %98 {offsets = [8, 0], sizes = [8, 128], strides = [1, 1]} : vector<80x128xf32> to vector<8x128xf32>
    %101 = arith.maximumf %99, %100 : vector<8x128xf32>
    %c0_84 = arith.constant 0 : index
    %c0_85 = arith.constant 0 : index
    %c0_86 = arith.constant 0 : index
    %c0_87 = arith.constant 0 : index
    %102 = vector.load %arg4[%c0_84, %c0_85, %c0_86, %c0_87] : memref<1x5x8x128xf32, #tpu.memory_space<vmem>>, vector<1x1x8x128xf32>
    %103 = vector.shape_cast %102 : vector<1x1x8x128xf32> to vector<8x128xf32>
    %104 = vector.shape_cast %101 : vector<8x128xf32> to vector<1x1x8x128xf32>
    tpu.vector_store %arg4[%c0_84, %c0_85, %c0_86, %c0_87], %104 {strides = array<i32>} : memref<1x5x8x128xf32, #tpu.memory_space<vmem>>, vector<1x1x8x128xf32>,
    %105 = vector.extract_strided_slice %98 {offsets = [16, 0], sizes = [8, 128], strides = [1, 1]} : vector<80x128xf32> to vector<8x128xf32>
    %106 = vector.extract_strided_slice %98 {offsets = [24, 0], sizes = [8, 128], strides = [1, 1]} : vector<80x128xf32> to vector<8x128xf32>
    %107 = arith.maximumf %105, %106 : vector<8x128xf32>
    %c0_88 = arith.constant 0 : index
    %c1_89 = arith.constant 1 : index
    %c0_90 = arith.constant 0 : index
    %c0_91 = arith.constant 0 : index
    %108 = vector.load %arg4[%c0_88, %c1_89, %c0_90, %c0_91] : memref<1x5x8x128xf32, #tpu.memory_space<vmem>>, vector<1x1x8x128xf32>
    %109 = vector.shape_cast %108 : vector<1x1x8x128xf32> to vector<8x128xf32>
    %110 = vector.shape_cast %107 : vector<8x128xf32> to vector<1x1x8x128xf32>
    tpu.vector_store %arg4[%c0_88, %c1_89, %c0_90, %c0_91], %110 {strides = array<i32>} : memref<1x5x8x128xf32, #tpu.memory_space<vmem>>, vector<1x1x8x128xf32>,
    %111 = vector.extract_strided_slice %98 {offsets = [32, 0], sizes = [8, 128], strides = [1, 1]} : vector<80x128xf32> to vector<8x128xf32>
    %112 = vector.extract_strided_slice %98 {offsets = [40, 0], sizes = [8, 128], strides = [1, 1]} : vector<80x128xf32> to vector<8x128xf32>
    %113 = arith.maximumf %111, %112 : vector<8x128xf32>
    %c0_92 = arith.constant 0 : index
    %c2_93 = arith.constant 2 : index
    %c0_94 = arith.constant 0 : index
    %c0_95 = arith.constant 0 : index
    %114 = vector.load %arg4[%c0_92, %c2_93, %c0_94, %c0_95] : memref<1x5x8x128xf32, #tpu.memory_space<vmem>>, vector<1x1x8x128xf32>
    %115 = vector.shape_cast %114 : vector<1x1x8x128xf32> to vector<8x128xf32>
    %116 = vector.shape_cast %113 : vector<8x128xf32> to vector<1x1x8x128xf32>
    tpu.vector_store %arg4[%c0_92, %c2_93, %c0_94, %c0_95], %116 {strides = array<i32>} : memref<1x5x8x128xf32, #tpu.memory_space<vmem>>, vector<1x1x8x128xf32>,
    %117 = vector.extract_strided_slice %98 {offsets = [48, 0], sizes = [8, 128], strides = [1, 1]} : vector<80x128xf32> to vector<8x128xf32>
    %118 = vector.extract_strided_slice %98 {offsets = [56, 0], sizes = [8, 128], strides = [1, 1]} : vector<80x128xf32> to vector<8x128xf32>
    %119 = arith.maximumf %117, %118 : vector<8x128xf32>
    %c0_96 = arith.constant 0 : index
    %c3_97 = arith.constant 3 : index
    %c0_98 = arith.constant 0 : index
    %c0_99 = arith.constant 0 : index
    %120 = vector.load %arg4[%c0_96, %c3_97, %c0_98, %c0_99] : memref<1x5x8x128xf32, #tpu.memory_space<vmem>>, vector<1x1x8x128xf32>
    %121 = vector.shape_cast %120 : vector<1x1x8x128xf32> to vector<8x128xf32>
    %122 = vector.shape_cast %119 : vector<8x128xf32> to vector<1x1x8x128xf32>
    tpu.vector_store %arg4[%c0_96, %c3_97, %c0_98, %c0_99], %122 {strides = array<i32>} : memref<1x5x8x128xf32, #tpu.memory_space<vmem>>, vector<1x1x8x128xf32>,
    %123 = vector.extract_strided_slice %98 {offsets = [64, 0], sizes = [8, 128], strides = [1, 1]} : vector<80x128xf32> to vector<8x128xf32>
    %124 = vector.extract_strided_slice %98 {offsets = [72, 0], sizes = [8, 128], strides = [1, 1]} : vector<80x128xf32> to vector<8x128xf32>
    %125 = arith.maximumf %123, %124 : vector<8x128xf32>
    %c0_100 = arith.constant 0 : index
    %c4_101 = arith.constant 4 : index
    %c0_102 = arith.constant 0 : index
    %c0_103 = arith.constant 0 : index
    %126 = vector.load %arg4[%c0_100, %c4_101, %c0_102, %c0_103] : memref<1x5x8x128xf32, #tpu.memory_space<vmem>>, vector<1x1x8x128xf32>
    %127 = vector.shape_cast %126 : vector<1x1x8x128xf32> to vector<8x128xf32>
    %128 = vector.shape_cast %125 : vector<8x128xf32> to vector<1x1x8x128xf32>
    tpu.vector_store %arg4[%c0_100, %c4_101, %c0_102, %c0_103], %128 {strides = array<i32>} : memref<1x5x8x128xf32, #tpu.memory_space<vmem>>, vector<1x1x8x128xf32>,
    return
  }
  func.func @transform_0(%arg0: i32) -> (i32, i32, i32) {
    %c0_i32 = arith.constant 0 : i32
    %c0_i32_0 = arith.constant 0 : i32
    %c0_i32_1 = arith.constant 0 : i32
    return %arg0, %c0_i32, %c0_i32_0 : i32, i32, i32
  }
  func.func @transform_1(%arg0: i32) -> (i32, i32, i32) {
    %c0_i32 = arith.constant 0 : i32
    %c0_i32_0 = arith.constant 0 : i32
    %c0_i32_1 = arith.constant 0 : i32
    %c0_i32_2 = arith.constant 0 : i32
    return %c0_i32, %c0_i32_0, %c0_i32_1 : i32, i32, i32
  }
  func.func @transform_2(%arg0: i32) -> (i32, i32) {
    %c0_i32 = arith.constant 0 : i32
    %c0_i32_0 = arith.constant 0 : i32
    %c0_i32_1 = arith.constant 0 : i32
    return %c0_i32, %c0_i32_0 : i32, i32
  }
  func.func @transform_3(%arg0: i32) -> (i32, i32, i32, i32) {
    %c0_i32 = arith.constant 0 : i32
    %c0_i32_0 = arith.constant 0 : i32
    %c0_i32_1 = arith.constant 0 : i32
    %c0_i32_2 = arith.constant 0 : i32
    return %arg0, %c0_i32, %c0_i32_0, %c0_i32_1 : i32, i32, i32, i32
  }
}

module attributes {stable_mosaic.version = 11 : i64} {
  func.func @_fc_kernel(%arg0: i32, %arg1: memref<8x400xf32, #tpu.memory_space<vmem>>, %arg2: memref<400x128xf32, #tpu.memory_space<vmem>>, %arg3: memref<1x128xf32, #tpu.memory_space<vmem>>, %arg4: memref<128x128xf32, #tpu.memory_space<vmem>>, %arg5: memref<1x128xf32, #tpu.memory_space<vmem>>, %arg6: memref<128x128xf32, #tpu.memory_space<vmem>>, %arg7: memref<1x128xf32, #tpu.memory_space<vmem>>, %arg8: memref<8x128xf32, #tpu.memory_space<vmem>>) attributes {dimension_semantics = [#tpu.dimension_semantics<parallel>], iteration_bounds = array<i64: 1>, scalar_prefetch = 0 : i64, scratch_operands = 0 : i64, tpu.core_type = #tpu.core_type<tc>, window_params = [{transform_indices = @transform_0, window_bounds = array<i64: 8, 400>}, {pipeline_mode = #tpu.pipeline_mode<synchronous>, transform_indices = @transform_1, window_bounds = array<i64: 400, 128>}, {pipeline_mode = #tpu.pipeline_mode<synchronous>, transform_indices = @transform_2, window_bounds = array<i64: 1, 128>}, {pipeline_mode = #tpu.pipeline_mode<synchronous>, transform_indices = @transform_3, window_bounds = array<i64: 128, 128>}, {pipeline_mode = #tpu.pipeline_mode<synchronous>, transform_indices = @transform_4, window_bounds = array<i64: 1, 128>}, {pipeline_mode = #tpu.pipeline_mode<synchronous>, transform_indices = @transform_5, window_bounds = array<i64: 128, 128>}, {pipeline_mode = #tpu.pipeline_mode<synchronous>, transform_indices = @transform_6, window_bounds = array<i64: 1, 128>}, {transform_indices = @transform_7, window_bounds = array<i64: 8, 128>}]} {
    %c0 = arith.constant 0 : index
    %c0_0 = arith.constant 0 : index
    %0 = vector.load %arg1[%c0, %c0_0] : memref<8x400xf32, #tpu.memory_space<vmem>>, vector<8x400xf32>
    %c0_1 = arith.constant 0 : index
    %c0_2 = arith.constant 0 : index
    %1 = vector.load %arg2[%c0_1, %c0_2] : memref<400x128xf32, #tpu.memory_space<vmem>>, vector<400x128xf32>
    %cst = arith.constant dense<0.000000e+00> : vector<8x128xf32>
    %2 = tpu.matmul %0, %1, %cst {dimension_numbers = #tpu.dot_dimension_numbers<[1], [0], [0], [1], [0, 0, 1, 1], [], []>} : vector<8x400xf32>, vector<400x128xf32>, vector<8x128xf32> -> vector<8x128xf32>
    %c0_3 = arith.constant 0 : index
    %c0_4 = arith.constant 0 : index
    %3 = vector.load %arg3[%c0_3, %c0_4] : memref<1x128xf32, #tpu.memory_space<vmem>>, vector<1x128xf32>
    %4 = vector.broadcast %3 : vector<1x128xf32> to vector<8x128xf32>
    %5 = arith.addf %2, %4 : vector<8x128xf32>
    %cst_5 = arith.constant 0.000000e+00 : f32
    %6 = vector.broadcast %cst_5 : f32 to vector<8x128xf32>
    %7 = arith.maximumf %5, %6 : vector<8x128xf32>
    %c0_6 = arith.constant 0 : index
    %c0_7 = arith.constant 0 : index
    %8 = vector.load %arg4[%c0_6, %c0_7] : memref<128x128xf32, #tpu.memory_space<vmem>>, vector<128x128xf32>
    %cst_8 = arith.constant dense<0.000000e+00> : vector<8x128xf32>
    %9 = tpu.matmul %7, %8, %cst_8 {dimension_numbers = #tpu.dot_dimension_numbers<[1], [0], [0], [1], [0, 0, 1, 1], [], []>} : vector<8x128xf32>, vector<128x128xf32>, vector<8x128xf32> -> vector<8x128xf32>
    %c0_9 = arith.constant 0 : index
    %c0_10 = arith.constant 0 : index
    %10 = vector.load %arg5[%c0_9, %c0_10] : memref<1x128xf32, #tpu.memory_space<vmem>>, vector<1x128xf32>
    %11 = vector.broadcast %10 : vector<1x128xf32> to vector<8x128xf32>
    %12 = arith.addf %9, %11 : vector<8x128xf32>
    %cst_11 = arith.constant 0.000000e+00 : f32
    %13 = vector.broadcast %cst_11 : f32 to vector<8x128xf32>
    %14 = arith.maximumf %12, %13 : vector<8x128xf32>
    %c0_12 = arith.constant 0 : index
    %c0_13 = arith.constant 0 : index
    %15 = vector.load %arg6[%c0_12, %c0_13] : memref<128x128xf32, #tpu.memory_space<vmem>>, vector<128x128xf32>
    %cst_14 = arith.constant dense<0.000000e+00> : vector<8x128xf32>
    %16 = tpu.matmul %14, %15, %cst_14 {dimension_numbers = #tpu.dot_dimension_numbers<[1], [0], [0], [1], [0, 0, 1, 1], [], []>} : vector<8x128xf32>, vector<128x128xf32>, vector<8x128xf32> -> vector<8x128xf32>
    %c0_15 = arith.constant 0 : index
    %c0_16 = arith.constant 0 : index
    %17 = vector.load %arg7[%c0_15, %c0_16] : memref<1x128xf32, #tpu.memory_space<vmem>>, vector<1x128xf32>
    %18 = vector.broadcast %17 : vector<1x128xf32> to vector<8x128xf32>
    %19 = arith.addf %16, %18 : vector<8x128xf32>
    %c0_17 = arith.constant 0 : index
    %c0_18 = arith.constant 0 : index
    %20 = vector.load %arg8[%c0_17, %c0_18] : memref<8x128xf32, #tpu.memory_space<vmem>>, vector<8x128xf32>
    tpu.vector_store %arg8[%c0_17, %c0_18], %19 {strides = array<i32>} : memref<8x128xf32, #tpu.memory_space<vmem>>, vector<8x128xf32>,
    return
  }
  func.func @transform_0(%arg0: i32) -> (i32, i32) {
    %c0_i32 = arith.constant 0 : i32
    %c0_i32_0 = arith.constant 0 : i32
    return %arg0, %c0_i32 : i32, i32
  }
  func.func @transform_1(%arg0: i32) -> (i32, i32) {
    %c0_i32 = arith.constant 0 : i32
    %c0_i32_0 = arith.constant 0 : i32
    %c0_i32_1 = arith.constant 0 : i32
    return %c0_i32, %c0_i32_0 : i32, i32
  }
  func.func @transform_2(%arg0: i32) -> (i32, i32) {
    %c0_i32 = arith.constant 0 : i32
    %c0_i32_0 = arith.constant 0 : i32
    %c0_i32_1 = arith.constant 0 : i32
    return %c0_i32, %c0_i32_0 : i32, i32
  }
  func.func @transform_3(%arg0: i32) -> (i32, i32) {
    %c0_i32 = arith.constant 0 : i32
    %c0_i32_0 = arith.constant 0 : i32
    %c0_i32_1 = arith.constant 0 : i32
    return %c0_i32, %c0_i32_0 : i32, i32
  }
  func.func @transform_4(%arg0: i32) -> (i32, i32) {
    %c0_i32 = arith.constant 0 : i32
    %c0_i32_0 = arith.constant 0 : i32
    %c0_i32_1 = arith.constant 0 : i32
    return %c0_i32, %c0_i32_0 : i32, i32
  }
  func.func @transform_5(%arg0: i32) -> (i32, i32) {
    %c0_i32 = arith.constant 0 : i32
    %c0_i32_0 = arith.constant 0 : i32
    %c0_i32_1 = arith.constant 0 : i32
    return %c0_i32, %c0_i32_0 : i32, i32
  }
  func.func @transform_6(%arg0: i32) -> (i32, i32) {
    %c0_i32 = arith.constant 0 : i32
    %c0_i32_0 = arith.constant 0 : i32
    %c0_i32_1 = arith.constant 0 : i32
    return %c0_i32, %c0_i32_0 : i32, i32
  }
  func.func @transform_7(%arg0: i32) -> (i32, i32) {
    %c0_i32 = arith.constant 0 : i32
    %c0_i32_0 = arith.constant 0 : i32
    return %arg0, %c0_i32 : i32, i32
  }
}

</mosaic_0001>

<bundles_post_ra>
// kernel: lenet_forward.5
= control target key start
LH: loop header
LB: loop body
LE: loop exit
PB: predicated region body
PF: predicated region fallthrough
CT: control target
= control target key end

     0   :  { %v677_v2 = vmov 0.0|0.0   ;;  %vm87_vm0 = vcmask 130048   ;;  %vm678_vm1 = vmmov 0   ;;  %s1016_s1 = inlined_call_operand.vmem [shape: f32[400,128], index: 1, kind: input, shape index: {}]   ;;  %s1017_s0 = inlined_call_operand.vmem [shape: f32[8,400], index: 0, kind: input, shape index: {}]   ;;  %s1018_s3 = inlined_call_operand.vmem [shape: f32[128,128], index: 3, kind: input, shape index: {}]   ;;  %s1019_s5 = inlined_call_operand.vmem [shape: f32[128,128], index: 5, kind: input, shape index: {}]   ;;  %s1020_s2 = inlined_call_operand.vmem [shape: f32[1,128], index: 2, kind: input, shape index: {}]   ;;  %s1021_s4 = inlined_call_operand.vmem [shape: f32[1,128], index: 4, kind: input, shape index: {}]   ;;  %s1022_s6 = inlined_call_operand.vmem [shape: f32[1,128], index: 6, kind: input, shape index: {}]   ;;  %s1023_s7 = inlined_call_operand.vmem [shape: f32[8,128], index: 7, kind: output, shape index: {}]  }
   0x1   :  { %v46_v0 = vld [vmem:[%s1016_s1 + $0x80] sm:$0xff]  ;;  %v47_v1 = vld [vmem:[%s1016_s1 + $0x88] sm:$0xff]  ;;  %599 = vmatprep.subr.bf16.mxu1 %v677_v2  ;;  %v48_v10 = vld [vmem:[%s1016_s1 + $0x90] sm:$0xff] }
   0x2   :  { %v30_v3 = vld [vmem:[%s1016_s1] sm:$0xff]  ;;  %v567_v4 = vpack.c.bf16 %v47_v1, %v46_v0  ;;  %v31_v5 = vld [vmem:[%s1016_s1 + $0x8] sm:$0xff]  ;;  %v49_v11 = vld [vmem:[%s1016_s1 + $0x98] sm:$0xff] }
   0x3   :  { %v62_v6 = vld [vmem:[%s1016_s1 + $0x100] sm:$0xff]  ;;  %v63_v7 = vld [vmem:[%s1016_s1 + $0x108] sm:$0xff]  ;;  %v569_v8 = vpack.c.bf16 %v31_v5, %v30_v3  ;;  %v32_v12 = vld [vmem:[%s1016_s1 + $0x10] sm:$0xff]  ;;  %v571_v13 = vpack.c.bf16 %v49_v11, %v48_v10 }
   0x4   :  { %v600_v9 = vpack.c.bf16 %v63_v7, %v62_v6  ;;  %568 = vmatprep.subr.bf16.mxu0 %v567_v4  ;;  %v33_v14 = vld [vmem:[%s1016_s1 + $0x18] sm:$0xff]  ;;  %v64_v15 = vld [vmem:[%s1016_s1 + $0x110] sm:$0xff]  ;;  %v50_v19 = vld [vmem:[%s1016_s1 + $0xa0] sm:$0xff] }
   0x5   :  { %v65_v16 = vld [vmem:[%s1016_s1 + $0x118] sm:$0xff]  ;;  %570 = vmatpush3.bf16.msra.mxu0 %v569_v8  ;;  %v573_v17 = vpack.c.bf16 %v33_v14, %v32_v12  ;;  %v51_v20 = vld [vmem:[%s1016_s1 + $0xa8] sm:$0xff]  ;;  %v34_v21 = vld [vmem:[%s1016_s1 + $0x20] sm:$0xff] }
   0x6   :  { %601 = vmatpush1.bf16.msra.mxu1 %v600_v9  ;;  %v603_v18 = vpack.c.bf16 %v65_v16, %v64_v15  ;;  %572 = vmatprep.subr.bf16.mxu0 %v571_v13  ;;  %v575_v22 = vpack.c.bf16 %v51_v20, %v50_v19  ;;  %v35_v23 = vld [vmem:[%s1016_s1 + $0x28] sm:$0xff]  ;;  %v66_v24 = vld [vmem:[%s1016_s1 + $0x120] sm:$0xff]  ;;  %v52_v26 = vld [vmem:[%s1016_s1 + $0xb0] sm:$0xff] }
   0x7   :  { %602 = vmatprep.subr.bf16.mxu1 %v677_v2  ;;  %v67_v25 = vld [vmem:[%s1016_s1 + $0x128] sm:$0xff]  ;;  %v53_v27 = vld [vmem:[%s1016_s1 + $0xb8] sm:$0xff]  ;;  %v577_v28 = vpack.c.bf16 %v35_v23, %v34_v21  ;;  %v36_v30 = vld [vmem:[%s1016_s1 + $0x30] sm:$0xff] }
   0x8   :  { %v606_v29 = vpack.c.bf16 %v67_v25, %v66_v24  ;;  %v579_v31 = vpack.c.bf16 %v53_v27, %v52_v26  ;;  %v37_v32 = vld [vmem:[%s1016_s1 + $0x38] sm:$0xff]  ;;  %v68_v33 = vld [vmem:[%s1016_s1 + $0x130] sm:$0xff]  ;;  %v54_v35 = vld [vmem:[%s1016_s1 + $0xc0] sm:$0xff] }
   0x9   :  { %574 = vmatpush3.bf16.msra.mxu0 %v573_v17  ;;  %v69_v34 = vld [vmem:[%s1016_s1 + $0x138] sm:$0xff]  ;;  %v55_v36 = vld [vmem:[%s1016_s1 + $0xc8] sm:$0xff]  ;;  %v581_v37 = vpack.c.bf16 %v37_v32, %v36_v30  ;;  %v38_v39 = vld [vmem:[%s1016_s1 + $0x40] sm:$0xff] }
   0xa   :  { %604 = vmatpush1.bf16.msra.mxu1 %v603_v18  ;;  %576 = vmatprep.subr.bf16.mxu0 %v575_v22  ;;  %v609_v38 = vpack.c.bf16 %v69_v34, %v68_v33  ;;  %v583_v40 = vpack.c.bf16 %v55_v36, %v54_v35  ;;  %v39_v41 = vld [vmem:[%s1016_s1 + $0x48] sm:$0xff]  ;;  %v70_v42 = vld [vmem:[%s1016_s1 + $0x140] sm:$0xff]  ;;  %v56_v44 = vld [vmem:[%s1016_s1 + $0xd0] sm:$0xff] }
   0xb   :  { %605 = vmatprep.subr.bf16.mxu1 %v677_v2  ;;  %v71_v43 = vld [vmem:[%s1016_s1 + $0x148] sm:$0xff]  ;;  %v57_v45 = vld [vmem:[%s1016_s1 + $0xd8] sm:$0xff]  ;;  %v585_v46 = vpack.c.bf16 %v39_v41, %v38_v39  ;;  %v40_v48 = vld [vmem:[%s1016_s1 + $0x50] sm:$0xff]  ;;  %v679_v41 = vmov 0.0  }
   0xc   :  { %v612_v47 = vpack.c.bf16 %v71_v43, %v70_v42  ;;  %v41_v49 = vld [vmem:[%s1016_s1 + $0x58] sm:$0xff]  ;;  %v27_v50 = vld [vmem:[%s1017_s0 + $0x8] sm:$0xff]  ;;  %v587_v51 = vpack.c.bf16 %v57_v45, %v56_v44  ;;  %v72_v52 = vld [vmem:[%s1016_s1 + $0x150] sm:$0xff] }
   0xd   :  { %578 = vmatpush3.bf16.msra.mxu0 %v577_v28  ;;  %v73_v53 = vld [vmem:[%s1016_s1 + $0x158] sm:$0xff]  ;;  %v58_v55 = vld [vmem:[%s1016_s1 + $0xe0] sm:$0xff]  ;;  %v59_v56 = vld [vmem:[%s1016_s1 + $0xe8] sm:$0xff]  ;;  %155 = vmatprep.mubr.f32.mxu0 %v27_v50  ;;  %v589_v57 = vpack.c.bf16 %v41_v49, %v40_v48 }
   0xe   :  { %607 = vmatpush1.bf16.msra.mxu1 %v606_v29  ;;  %580 = vmatprep.subr.bf16.mxu0 %v579_v31  ;;  %v29_v54 = vld [vmem:[%s1017_s0 + $0x18] sm:$0xff]  ;;  %v615_v58 = vpack.c.bf16 %v73_v53, %v72_v52  ;;  %v42_v59 = vld [vmem:[%s1016_s1 + $0x60] sm:$0xff]  ;;  %v591_v60 = vpack.c.bf16 %v59_v56, %v58_v55  ;;  %v43_v61 = vld [vmem:[%s1016_s1 + $0x68] sm:$0xff] }
   0xf   :  { %608 = vmatprep.subr.bf16.mxu1 %v677_v2  ;;  %425 = vmatprep.mubr.msk.f32.mxu1 %vm87_vm0, %v29_v54  ;;  %v74_v62 = vld [vmem:[%s1016_s1 + $0x160] sm:$0xff]  ;;  %v75_v63 = vld [vmem:[%s1016_s1 + $0x168] sm:$0xff]  ;;  %v60_v0 = vld [vmem:[%s1016_s1 + $0xf0] sm:$0xff]  ;;  %v593_v3 = vpack.c.bf16 %v43_v61, %v42_v59 }
  0x10   :  { %v61_v1 = vld [vmem:[%s1016_s1 + $0xf8] sm:$0xff]  ;;  %v618_v4 = vpack.c.bf16 %v75_v63, %v74_v62  ;;  %v44_v5 = vld [vmem:[%s1016_s1 + $0x70] sm:$0xff]  ;;  %v78_v12 = vld [vmem:[%s1016_s1 + $0x180] sm:$0xff] }
  0x11   :  { %582 = vmatpush3.bf16.msra.mxu0 %v581_v37  ;;  %v595_v6 = vpack.c.bf16 %v61_v1, %v60_v0  ;;  %v45_v7 = vld [vmem:[%s1016_s1 + $0x78] sm:$0xff]  ;;  %v76_v8 = vld [vmem:[%s1016_s1 + $0x170] sm:$0xff]  ;;  %v79_v13 = vld [vmem:[%s1016_s1 + $0x188] sm:$0xff] }
  0x12   :  { %610 = vmatpush1.bf16.msra.mxu1 %v609_v38  ;;  %584 = vmatprep.subr.bf16.mxu0 %v583_v40  ;;  %v77_v9 = vld [vmem:[%s1016_s1 + $0x178] sm:$0xff]  ;;  %v597_v10 = vpack.c.bf16 %v45_v7, %v44_v5  ;;  %v232_v14 = vld [vmem:[%s1018_s3] sm:$0xff]  ;;  %v233_v15 = vld [vmem:[%s1018_s3 + $0x8] sm:$0xff]  ;;  %v624_v17 = vpack.c.bf16 %v79_v13, %v78_v12 }
  0x13   :  { %611 = vmatprep.subr.bf16.mxu1 %v677_v2  ;;  %v621_v11 = vpack.c.bf16 %v77_v9, %v76_v8  ;;  %v26_v16 = vld [vmem:[%s1017_s0] sm:$0xff]  ;;  %v627_v18 = vpack.c.bf16 %v233_v15, %v232_v14  ;;  %v234_v19 = vld [vmem:[%s1018_s3 + $0x10] sm:$0xff]  ;;  %v235_v20 = vld [vmem:[%s1018_s3 + $0x18] sm:$0xff] }
  0x14   :  { %v28_v21 = vld [vmem:[%s1017_s0 + $0x10] sm:$0xff]  ;;  %v630_v22 = vpack.c.bf16 %v235_v20, %v234_v19  ;;  %v236_v23 = vld [vmem:[%s1018_s3 + $0x20] sm:$0xff]  ;;  %v237_v24 = vld [vmem:[%s1018_s3 + $0x28] sm:$0xff] }
  0x15   :  { %586 = vmatpush3.bf16.msra.mxu0 %v585_v46  ;;  %v633_v25 = vpack.c.bf16 %v237_v24, %v236_v23  ;;  %v238_v26 = vld [vmem:[%s1018_s3 + $0x30] sm:$0xff]  ;;  %v239_v27 = vld [vmem:[%s1018_s3 + $0x38] sm:$0xff]  ;;  %v240_v29 = vld [vmem:[%s1018_s3 + $0x40] sm:$0xff] }
  0x16   :  { %613 = vmatpush1.bf16.msra.mxu1 %v612_v47  ;;  %588 = vmatprep.subr.bf16.mxu0 %v587_v51  ;;  %v636_v28 = vpack.c.bf16 %v239_v27, %v238_v26  ;;  %v241_v30 = vld [vmem:[%s1018_s3 + $0x48] sm:$0xff]  ;;  %v242_v32 = vld [vmem:[%s1018_s3 + $0x50] sm:$0xff]  ;;  %v243_v33 = vld [vmem:[%s1018_s3 + $0x58] sm:$0xff] }
  0x17   :  { %614 = vmatprep.subr.bf16.mxu1 %v677_v2  ;;  %v639_v31 = vpack.c.bf16 %v241_v30, %v240_v29  ;;  %v642_v34 = vpack.c.bf16 %v243_v33, %v242_v32  ;;  %v244_v35 = vld [vmem:[%s1018_s3 + $0x60] sm:$0xff]  ;;  %v245_v36 = vld [vmem:[%s1018_s3 + $0x68] sm:$0xff]  ;;  %v246_v38 = vld [vmem:[%s1018_s3 + $0x70] sm:$0xff] }
  0x18   :  { %v645_v37 = vpack.c.bf16 %v245_v36, %v244_v35  ;;  %v247_v39 = vld [vmem:[%s1018_s3 + $0x78] sm:$0xff]  ;;  %v326_v42 = vld [vmem:[%s1019_s5] sm:$0xff]  ;;  %v327_v43 = vld [vmem:[%s1019_s5 + $0x8] sm:$0xff] }
  0x19   :  { %590 = vmatpush3.bf16.msra.mxu0 %v589_v57  ;;  %v648_v40 = vpack.c.bf16 %v247_v39, %v246_v38  ;;  %v328_v44 = vld [vmem:[%s1019_s5 + $0x10] sm:$0xff]  ;;  %v651_v45 = vpack.c.bf16 %v327_v43, %v326_v42  ;;  %v329_v46 = vld [vmem:[%s1019_s5 + $0x18] sm:$0xff]  ;;  %v330_v48 = vld [vmem:[%s1019_s5 + $0x20] sm:$0xff] }
  0x1a   :  { %616 = vmatpush1.bf16.msra.mxu1 %v615_v58  ;;  %592 = vmatprep.subr.bf16.mxu0 %v591_v60  ;;  %v654_v47 = vpack.c.bf16 %v329_v46, %v328_v44  ;;  %v331_v49 = vld [vmem:[%s1019_s5 + $0x28] sm:$0xff]  ;;  %v332_v51 = vld [vmem:[%s1019_s5 + $0x30] sm:$0xff]  ;;  %v333_v52 = vld [vmem:[%s1019_s5 + $0x38] sm:$0xff] }
  0x1b   :  { %617 = vmatprep.subr.bf16.mxu1 %v677_v2  ;;  %v657_v50 = vpack.c.bf16 %v331_v49, %v330_v48  ;;  %v660_v53 = vpack.c.bf16 %v333_v52, %v332_v51  ;;  %v334_v54 = vld [vmem:[%s1019_s5 + $0x40] sm:$0xff]  ;;  %v335_v55 = vld [vmem:[%s1019_s5 + $0x48] sm:$0xff]  ;;  %v336_v57 = vld [vmem:[%s1019_s5 + $0x50] sm:$0xff] }
  0x1c   :  { %v663_v56 = vpack.c.bf16 %v335_v55, %v334_v54  ;;  %v337_v58 = vld [vmem:[%s1019_s5 + $0x58] sm:$0xff]  ;;  %v338_v60 = vld [vmem:[%s1019_s5 + $0x60] sm:$0xff]  ;;  %v339_v61 = vld [vmem:[%s1019_s5 + $0x68] sm:$0xff] }
  0x1d   :  { %594 = vmatpush3.bf16.msra.mxu0 %v593_v3  ;;  %v666_v59 = vpack.c.bf16 %v337_v58, %v336_v57  ;;  %v669_v62 = vpack.c.bf16 %v339_v61, %v338_v60  ;;  %v424_v1 = vld [vmem:[%s1020_s2] ss:$0 sm:$0xff]  ;;  %v340_v9 = vld [vmem:[%s1019_s5 + $0x70] sm:$0xff] }
  0x1e   :  { %619 = vmatpush1.bf16.msra.mxu1 %v618_v4  ;;  %596 = vmatprep.subr.bf16.mxu0 %v595_v6 }
  0x1f   :  { %620 = vmatprep.subr.bf16.mxu1 %v677_v2 }
  0x21   :  { %598 = vmatpush3.bf16.msra.mxu0 %v597_v10 }
  0x22   :  { %622 = vmatpush1.bf16.msra.mxu1 %v621_v11  ;;  %626 = vmatprep.subr.bf16.mxu0 %v677_v2  ;;  %v426_v11 = vld [vmem:[%s1021_s4] ss:$0 sm:$0xff] }
  0x23   :  { %623 = vmatprep.subr.bf16.mxu1 %v677_v2 }
  0x24   :  { %156 = vmatmul.mubr.f32.vlgmr.msra.gmra.mrb[0].mxu0 %v26_v16  ;;  %v427_v16 = vld [vmem:[%s1022_s6] ss:$0 sm:$0xff] }
  0x25   :  { %628 = vmatpush3.bf16.msra.mxu0 %v627_v18  ;;  %529 = vmatprep.mubr.msk.f32.mxu0 %vm678_vm1, %v679_v41 }
  0x26   :  { %625 = vmatpush1.bf16.msra.mxu1 %v624_v17  ;;  %629 = vmatprep.subr.bf16.mxu0 %v677_v2 }
  0x27   :  { %650 = vmatprep.subr.bf16.mxu1 %v677_v2 }
  0x29   :  { %226 = vmatmul.mubr.f32.vlgmr.msra.gmra.mrb[0].mxu1 %v28_v21  ;;  %631 = vmatpush3.bf16.msra.mxu0 %v630_v22 }
  0x2a   :  { %632 = vmatprep.subr.bf16.mxu0 %v677_v2  ;;  %564 = vmatprep.mubr.msk.f32.mxu1 %vm678_vm1, %v679_v41 }
  0x2b   :  { %652 = vmatpush3.bf16.msra.mxu1 %v651_v45 }
  0x2c   :  { %653 = vmatprep.subr.bf16.mxu1 %v677_v2 }
  0x2d   :  { %634 = vmatpush3.bf16.msra.mxu0 %v633_v25 }
  0x2e   :  { %635 = vmatprep.subr.bf16.mxu0 %v677_v2 }
  0x2f   :  { %655 = vmatpush3.bf16.msra.mxu1 %v654_v47 }
  0x30   :  { %656 = vmatprep.subr.bf16.mxu1 %v677_v2 }
  0x31   :  { %637 = vmatpush3.bf16.msra.mxu0 %v636_v28 }
  0x32   :  { %638 = vmatprep.subr.bf16.mxu0 %v677_v2 }
  0x33   :  { %658 = vmatpush3.bf16.msra.mxu1 %v657_v50 }
  0x34   :  { %659 = vmatprep.subr.bf16.mxu1 %v677_v2 }
  0x35   :  { %640 = vmatpush3.bf16.msra.mxu0 %v639_v31 }
  0x36   :  { %641 = vmatprep.subr.bf16.mxu0 %v677_v2 }
  0x37   :  { %661 = vmatpush3.bf16.msra.mxu1 %v660_v53 }
  0x38   :  { %662 = vmatprep.subr.bf16.mxu1 %v677_v2 }
  0x39   :  { %643 = vmatpush3.bf16.msra.mxu0 %v642_v34 }
  0x3a   :  { %644 = vmatprep.subr.bf16.mxu0 %v677_v2 }
  0x3b   :  { %664 = vmatpush3.bf16.msra.mxu1 %v663_v56 }
  0x3c   :  { %665 = vmatprep.subr.bf16.mxu1 %v677_v2 }
  0x3d   :  { %646 = vmatpush3.bf16.msra.mxu0 %v645_v37 }
  0x3e   :  { %647 = vmatprep.subr.bf16.mxu0 %v677_v2 }
  0x3f   :  { %667 = vmatpush3.bf16.msra.mxu1 %v666_v59 }
  0x40   :  { %668 = vmatprep.subr.bf16.mxu1 %v677_v2 }
  0x41   :  { %649 = vmatpush3.bf16.msra.mxu0 %v648_v40 }
  0x43   :  { %670 = vmatpush3.bf16.msra.mxu1 %v669_v62 }
  0x44   :  { %671 = vmatprep.subr.bf16.mxu1 %v677_v2  ;;  %v341_v2 = vld [vmem:[%s1019_s5 + $0x78] sm:$0xff] }
  0x45   :  { %v672_v10 = vpack.c.bf16 %v341_v2, %v340_v9 }
  0x47   :  { %673 = vmatpush3.bf16.msra.mxu1 %v672_v10 }
  0xf7   :  { %v460_v63 = vpop.f32.mrb[0].mxu0 }
  0xf8   :  { %v461_v0 = vpop.f32.mrb[1].mxu0 }
  0xf9   :  { %v462_v3 = vadd.f32 %v461_v0, %v460_v63 }
  0xfb   :  { %v158_v4 = vadd.f32 %v462_v3, %v424_v1 }
  0xfc   :  { %v227_v5 = vpop.f32.mrb[0].mxu1 }
  0xfd   :  { %v229_v6 = vpop.f32.mrb[1].mxu1  ;;  %v228_v7 = vadd.f32 %v227_v5, %v158_v4 }
  0xff   :  { %v231_v8 = vmax.f32 %v228_v7, 0.0 }
 0x101   :  { %530 = vmatmul.mubr.f32.vlgmr.msra.gmra.mrb[2].mxu0 %v231_v8 }
 0x1d4   :  { %v321_v12 = vpop.f32.mrb[2].mxu0 }
 0x1d5   :  { %v322_v13 = vadd.f32 %v426_v11, %v321_v12  ;;  %v531_v14 = vpop.f32.mrb[3].mxu0 }
 0x1d7   :  { %v325_v15 = vmax.f32 %v322_v13, 0.0 }
 0x1d9   :  { %565 = vmatmul.mubr.f32.vlgmr.msra.gmra.mrb[2].mxu1 %v325_v15 }
 0x2ac   :  { %v415_v17 = vpop.f32.mrb[2].mxu1 }
 0x2ad   :  { %v416_v18 = vadd.f32 %v427_v16, %v415_v17  ;;  %v566_v19 = vpop.f32.mrb[3].mxu1 }
 0x2af   :  { %419 = vst [vmem:[%s1023_s7] sm:$0xff] %v416_v18 }

// kernel: lenet_forward.4
= control target key start
LH: loop header
LB: loop body
LE: loop exit
PB: predicated region body
PF: predicated region fallthrough
CT: control target
= control target key end

     0   :  { %s3866_s12 = smov 0   ;;  %s4743_s0 = inlined_call_operand.vmem [shape: f32[2,120,12], index: 0, kind: input, shape index: {}]   ;;  %s4744_s1 = inlined_call_operand.vmem [shape: f32[15,12,256], index: 1, kind: input, shape index: {}]   ;;  %s4745_s2 = inlined_call_operand.vmem [shape: f32[1,256], index: 2, kind: input, shape index: {}]   ;;  %s4746_s3 = inlined_call_operand.vmem [shape: f32[2,5,8,128], index: 3, kind: output, shape index: {}]  }
   0x1 LB: > { %s3203_s13 = sadd.s32 4294967295, %s3842_s12   ;;  %p3207_p0 = scmp.ge.s32.totalorder %s3842_s12, 1  ;;  %s3842_s12 = sphi %s3866_s12, %s13_s12  }
   0x2   : > { %p137_p1 = scmp.lt.s32.totalorder %s3842_s12, 3 }
   0x4   : > { %p138_p2 = pnand %p3207_p0, %p137_p1 }
   0x5   : > { %v3211_v0 = vld [vmem:[%s4744_s1 + $0x28] sm:$0xff] (!%p138_p2)  ;;  %v3213_v1 = vld [vmem:[%s4744_s1 + $0x38] sm:$0xf] (!%p138_p2)  ;;  %vm231_vm0 = vcmask (!%p138_p2), 1043456   ;;  %vm3844_vm1 = vmmov (!%p138_p2), 1   ;;  %v3210_v6 = vld [vmem:[%s4744_s1 + $0x20] sm:$0xff] (!%p138_p2) }
   0x6   : > { %141 = sbr.rel (%p138_p2) target bundleno = 538 (0x21a), region = 32  ;;  %v3319_v2 = vld [vmem:[%s4744_s1 + $0xe8] sm:$0xff] (!%p138_p2)  ;;  %v3452_v3 = vpack.c.bf16 (!%p138_p2), %v3213_v1, %v3211_v0  ;;  %vm3883_vm2 = vmpackc.low (!%p138_p2), %vm231_vm0, %vm3844_vm1  ;;  %v3321_v5 = vld [vmem:[%s4744_s1 + $0xf8] sm:$0xf] (!%p138_p2)  ;;  %p3893_p3 = scmp.lt.s32.totalorder (!%p138_p2), %s3203_s13, 1  ;;  %v3845_v11 = vmov (!%p138_p2), 0.0  }
   0x7   : > { %v3897_v7 = vpack.c.bf16 (!%p138_p2), %v3321_v5, %v3319_v2  ;;  %v3212_v8 = vld [vmem:[%s4744_s1 + $0x30] sm:$0xf] (!%p138_p2)  ;;  %v3318_v9 = vld [vmem:[%s4744_s1 + $0xe0] sm:$0xff] (!%p138_p2)  ;;  %302 = vmatprep.mubr.f32.mxu1 (!%p138_p2), %v3845_v11  ;;  %1619 = vmatprep.mubr.f32.mxu0 (!%p138_p2), %v3845_v11  ;;  %v182_v14 = vld [vmem:[%s4744_s1 + $0x8] sm:$0xff] (!%p138_p2)  ;;  %vm200_vm3 = vcmask (!%p138_p2), 97280  }
   0x8   : > { %v3320_v10 = vld [vmem:[%s4744_s1 + $0xf0] sm:$0xf] (!%p138_p2)  ;;  %3454 = vmatprep.subr.msk.bf16.mxu1 (!%p138_p2), %vm3883_vm2, %v3452_v3  ;;  %v3455_v12 = vpack.c.bf16 (!%p138_p2), %v3212_v8, %v3210_v6  ;;  %v184_v15 = vld [vmem:[%s4744_s1 + $0x18] sm:$0xf] (!%p138_p2)  ;;  %v3335_v16 = vld [vmem:[%s4744_s1 + $0x108] sm:$0xff] (!%p138_p2) }
   0x9   : > { %v3912_v13 = vpack.c.bf16 (!%p138_p2), %v3320_v10, %v3318_v9  ;;  %3496 = vmatprep.subr.msk.bf16.mxu0 (!%p138_p2), %vm3883_vm2, %v3897_v7  ;;  %v3458_v17 = vpack.c.bf16 (!%p138_p2), %v184_v15, %v182_v14  ;;  %v3337_v18 = vld [vmem:[%s4744_s1 + $0x118] sm:$0xf] (!%p138_p2)  ;;  %v181_v19 = vld [vmem:[%s4744_s1] sm:$0xff] (!%p138_p2)  ;;  %v183_v20 = vld [vmem:[%s4744_s1 + $0x10] sm:$0xf] (!%p138_p2) }
   0xa   : > { %3457 = vmatpush1.bf16.msk.msra.mxu1 (!%p138_p2), %vm3883_vm2, %v3455_v12  ;;  %v3500_v21 = vpack.c.bf16 (!%p138_p2), %v3337_v18, %v3335_v16  ;;  %v3334_v22 = vld [vmem:[%s4744_s1 + $0x100] sm:$0xff] (!%p138_p2)  ;;  %v3336_v23 = vld [vmem:[%s4744_s1 + $0x110] sm:$0xf] (!%p138_p2)  ;;  %v3351_v24 = vld [vmem:[%s4744_s1 + $0x128] sm:$0xff] (!%p138_p2)  ;;  %v3461_v25 = vpack.c.bf16 (!%p138_p2), %v183_v20, %v181_v19 }
   0xb   : > { %3499 = vmatpush1.bf16.msk.msra.mxu0 (!%p138_p2), %vm3883_vm2, %v3912_v13  ;;  %3460 = vmatprep.subr.msk.bf16.mxu1 (!%p138_p2), %vm3883_vm2, %v3458_v17  ;;  %v3503_v26 = vpack.c.bf16 (!%p138_p2), %v3336_v23, %v3334_v22  ;;  %v3353_v27 = vld [vmem:[%s4744_s1 + $0x138] sm:$0xf] (!%p138_p2)  ;;  %v3239_v28 = vld [vmem:[%s4744_s1 + $0x48] sm:$0xff] (!%p138_p2)  ;;  %v3350_v39 = vld [vmem:[%s4744_s1 + $0x120] sm:$0xff] (!%p138_p2) }
   0xc   : > { %3502 = vmatprep.subr.msk.bf16.mxu0 (!%p138_p2), %vm3883_vm2, %v3500_v21  ;;  %v3241_v29 = vld [vmem:[%s4744_s1 + $0x58] sm:$0xf] (!%p138_p2)  ;;  %v3506_v32 = vpack.c.bf16 (!%p138_p2), %v3353_v27, %v3351_v24  ;;  %v3352_v40 = vld [vmem:[%s4744_s1 + $0x130] sm:$0xf] (!%p138_p2)  ;;  %v3367_v41 = vld [vmem:[%s4744_s1 + $0x148] sm:$0xff] (!%p138_p2) }
   0xd   : > { %s4751_s13 = smov (!%p3893_p3, %s3203_s13), 1  ;;  %v3464_v33 = vpack.c.bf16 %v3241_v29, %v3239_v28  ;;  %v3369_v42 = vld [vmem:[%s4744_s1 + $0x158] sm:$0xf]  ;;  %v3509_v44 = vpack.c.bf16 %v3352_v40, %v3350_v39  ;;  %v3238_v53 = vld [vmem:[%s4744_s1 + $0x40] sm:$0xff]  ;;  %v3240_v54 = vld [vmem:[%s4744_s1 + $0x50] sm:$0xf] }
   0xe   : > { %s3824_s18 = smul.u32 120, %s4751_s13  ;;  %v3512_v45 = vpack.c.bf16 %v3369_v42, %v3367_v41  ;;  %v3255_v55 = vld [vmem:[%s4744_s1 + $0x68] sm:$0xff]  ;;  %v3257_v56 = vld [vmem:[%s4744_s1 + $0x78] sm:$0xf]  ;;  %v3467_v58 = vpack.c.bf16 %v3240_v54, %v3238_v53  ;;  %v3366_v6 = vld [vmem:[%s4744_s1 + $0x140] sm:$0xff] }
   0xf   : > { %v3470_v60 = vpack.c.bf16 %v3257_v56, %v3255_v55  ;;  %v3368_v8 = vld [vmem:[%s4744_s1 + $0x150] sm:$0xf]  ;;  %v3383_v9 = vld [vmem:[%s4744_s1 + $0x168] sm:$0xff]  ;;  %v3385_v10 = vld [vmem:[%s4744_s1 + $0x178] sm:$0xf] }
  0x10   : > { %s3964_s29 = scalar_lea.vmem %s4743_s0, %s3824_s18  ;;  %v3515_v14 = vpack.c.bf16 %v3368_v8, %v3366_v6  ;;  %v3518_v15 = vpack.c.bf16 %v3385_v10, %v3383_v9  ;;  %v3254_v20 = vld [vmem:[%s4744_s1 + $0x60] sm:$0xff]  ;;  %v3256_v21 = vld [vmem:[%s4744_s1 + $0x70] sm:$0xf]  ;;  %v3271_v22 = vld [vmem:[%s4744_s1 + $0x88] sm:$0xff] }
  0x11   : > { %v185_v30 = vld [vmem:[%s3964_s29 + $0x1] sm:$0xff]  ;;  %v3974_v31 = vld [vmem:[%s3964_s29 + $0x11] sm:$0xff]  ;;  %v3984_v34 = vld [vmem:[%s3964_s29 + $0x9] sm:$0xff] }
  0x12   : > { %3216 = vmatmul.mubr.msk.f32.vlgmr.msra.gmra.mrb[0].mxu1 %vm200_vm3, %v185_v30  ;;  %3324 = vmatmul.mubr.msk.f32.vlgmr.msra.gmra.mrb[0].mxu0 %vm200_vm3, %v3974_v31  ;;  %v3987_v35 = vld [vmem:[%s3964_s29 + $0x19] sm:$0xff]  ;;  %v4002_v36 = vld [vmem:[%s3964_s29 + $0x21] sm:$0xff]  ;;  %v4011_v37 = vld [vmem:[%s3964_s29 + $0x29] sm:$0xff] }
  0x13   : > { %3463 = vmatpush1.bf16.msk.msra.mxu1 %vm3883_vm2, %v3461_v25  ;;  %3505 = vmatpush1.bf16.msk.msra.mxu0 %vm3883_vm2, %v3503_v26  ;;  %v4020_v38 = vld [vmem:[%s3964_s29 + $0x31] sm:$0xff]  ;;  %v4051_v46 = vld [vmem:[%s3964_s29 + $0x1a] sm:$0xff]  ;;  %v4066_v48 = vld [vmem:[%s3964_s29 + $0x22] sm:$0xff]  ;;  %v3473_v25 = vpack.c.bf16 %v3256_v21, %v3254_v20 }
  0x14   : > { %308 = vmatprep.mubr.f32.mxu1 %v3845_v11  ;;  %1625 = vmatprep.mubr.f32.mxu0 %v3845_v11  ;;  %v4041_v43 = vld [vmem:[%s3964_s29 + $0x12] sm:$0xff]  ;;  %v4075_v49 = vld [vmem:[%s3964_s29 + $0x41] sm:$0xff]  ;;  %v4078_v50 = vld [vmem:[%s3964_s29 + $0x2a] sm:$0xff] }
  0x15   : > { %3508 = vmatprep.subr.msk.bf16.mxu0 %vm3883_vm2, %v3506_v32  ;;  %3466 = vmatprep.subr.msk.bf16.mxu1 %vm3883_vm2, %v3464_v33  ;;  %v4063_v47 = vld [vmem:[%s3964_s29 + $0x39] sm:$0xff]  ;;  %v4087_v51 = vld [vmem:[%s3964_s29 + $0x49] sm:$0xff] }
  0x16   : > { %3217 = vmatmul.mubr.msk.f32.gmra.mrb[2].mxu1 %vm200_vm3, %v3984_v34  ;;  %3325 = vmatmul.mubr.msk.f32.gmra.mrb[2].mxu0 %vm200_vm3, %v3987_v35  ;;  %v4090_v52 = vld [vmem:[%s3964_s29 + $0x32] sm:$0xff]  ;;  %v171_v57 = vld [vmem:[%s3964_s29] sm:$0xff]  ;;  %v4121_v61 = vld [vmem:[%s3964_s29 + $0x8] sm:$0xff] }
  0x17   : > { %314 = vmatprep.mubr.f32.mxu1 %v3845_v11  ;;  %1631 = vmatprep.mubr.f32.mxu0 %v3845_v11  ;;  %v4112_v59 = vld [vmem:[%s3964_s29 + $0x3a] sm:$0xff]  ;;  %v4124_v62 = vld [vmem:[%s3964_s29 + $0x42] sm:$0xff]  ;;  %v4136_v63 = vld [vmem:[%s3964_s29 + $0x10] sm:$0xff] }
  0x18   : > { %v4139_v0 = vld [vmem:[%s3964_s29 + $0x4a] sm:$0xff]  ;;  %v4148_v1 = vld [vmem:[%s3964_s29 + $0x18] sm:$0xff]  ;;  %v4160_v3 = vld [vmem:[%s3964_s29 + $0x20] sm:$0xff] }
  0x19   : > { %v4151_v2 = vld [vmem:[%s3964_s29 + $0x52] sm:$0xff]  ;;  %v4163_v5 = vld [vmem:[%s3964_s29 + $0x5a] sm:$0xff]  ;;  %v4184_v12 = vld [vmem:[%s3964_s29 + $0x28] sm:$0xff] }
  0x1a   : > { %3218 = vmatmul.mubr.msk.f32.gmra.mrb[4].mxu1 %vm200_vm3, %v3974_v31  ;;  %3326 = vmatmul.mubr.msk.f32.gmra.mrb[4].mxu0 %vm200_vm3, %v4002_v36  ;;  %v4194_v16 = vld [vmem:[%s3964_s29 + $0x30] sm:$0xff]  ;;  %v4206_v17 = vld [vmem:[%s3964_s29 + $0x38] sm:$0xff]  ;;  %v4215_v18 = vld [vmem:[%s3964_s29 + $0x40] sm:$0xff] }
  0x1b   : > { %320 = vmatprep.mubr.f32.mxu1 %v3845_v11  ;;  %1637 = vmatprep.mubr.f32.mxu0 %v3845_v11  ;;  %v4224_v19 = vld [vmem:[%s3964_s29 + $0x48] sm:$0xff]  ;;  %v3273_v23 = vld [vmem:[%s4744_s1 + $0x98] sm:$0xf]  ;;  %v4264_v28 = vld [vmem:[%s3964_s29 + $0x50] sm:$0xff] }
  0x1c   : > { %v524_v24 = vld [vmem:[%s3964_s29 + $0x2] sm:$0xff]  ;;  %v3476_v26 = vpack.c.bf16 %v3273_v23, %v3271_v22  ;;  %v4252_v27 = vld [vmem:[%s3964_s29 + $0xa] sm:$0xff]  ;;  %v4273_v29 = vld [vmem:[%s3964_s29 + $0x58] sm:$0xff] }
  0x1d   : > { %v4282_v30 = vld [vmem:[%s3964_s29 + $0x60] sm:$0xff]  ;;  %v3384_v33 = vld [vmem:[%s4744_s1 + $0x170] sm:$0xf]  ;;  %v3399_v39 = vld [vmem:[%s4744_s1 + $0x188] sm:$0xff] }
  0x1e   : > { %3219 = vmatmul.mubr.msk.f32.gmra.mrb[6].mxu1 %vm200_vm3, %v3987_v35  ;;  %3327 = vmatmul.mubr.msk.f32.gmra.mrb[6].mxu0 %vm200_vm3, %v4011_v37  ;;  %v3382_v32 = vld [vmem:[%s4744_s1 + $0x160] sm:$0xff]  ;;  %v3401_v40 = vld [vmem:[%s4744_s1 + $0x198] sm:$0xf]  ;;  %v3287_v53 = vld [vmem:[%s4744_s1 + $0xa8] sm:$0xff] }
  0x1f   : > { %326 = vmatprep.mubr.f32.mxu1 %v3845_v11  ;;  %1643 = vmatprep.mubr.f32.mxu0 %v3845_v11  ;;  %v3521_v41 = vpack.c.bf16 %v3384_v33, %v3382_v32  ;;  %v3524_v42 = vpack.c.bf16 %v3401_v40, %v3399_v39  ;;  %v3289_v54 = vld [vmem:[%s4744_s1 + $0xb8] sm:$0xf]  ;;  %v3400_v6 = vld [vmem:[%s4744_s1 + $0x190] sm:$0xf]  ;;  %v3415_v8 = vld [vmem:[%s4744_s1 + $0x1a8] sm:$0xff] }
  0x20   : > { %v3482_v56 = vpack.c.bf16 %v3289_v54, %v3287_v53  ;;  %v3417_v9 = vld [vmem:[%s4744_s1 + $0x1b8] sm:$0xf]  ;;  %v3288_v20 = vld [vmem:[%s4744_s1 + $0xb0] sm:$0xf]  ;;  %v3303_v21 = vld [vmem:[%s4744_s1 + $0xc8] sm:$0xff] }
  0x21   : > { %v3305_v22 = vld [vmem:[%s4744_s1 + $0xd8] sm:$0xf]  ;;  %v3302_v39 = vld [vmem:[%s4744_s1 + $0xc0] sm:$0xff]  ;;  %v3304_v40 = vld [vmem:[%s4744_s1 + $0xd0] sm:$0xf] }
  0x22   : > { %3220 = vmatmul.mubr.msk.f32.gmra.mrb[8].mxu1 %vm200_vm3, %v4002_v36  ;;  %3328 = vmatmul.mubr.msk.f32.gmra.mrb[8].mxu0 %vm200_vm3, %v4020_v38  ;;  %v2689_v4 = vld [vmem:[%s3964_s29 + $0x69] sm:$0xff] }
  0x23   : > { %332 = vmatprep.mubr.f32.mxu1 %v3845_v11  ;;  %1815 = vmatprep.mubr.f32.mxu0 %v3845_v11 }
  0x26   : > { %3221 = vmatmul.mubr.msk.f32.gmra.mrb[10].mxu1 %vm200_vm3, %v4011_v37  ;;  %3340 = vmatmul.mubr.msk.f32.vlgmr.msra.gmra.mrb[0].mxu0 %vm200_vm3, %v4041_v43 }
  0x27   : > { %3511 = vmatpush1.bf16.msk.msra.mxu0 %vm3883_vm2, %v3509_v44  ;;  %338 = vmatprep.mubr.f32.mxu1 %v3845_v11  ;;  %v3270_v44 = vld [vmem:[%s4744_s1 + $0x80] sm:$0xff] }
  0x28   : > { %1821 = vmatprep.mubr.f32.mxu0 %v3845_v11  ;;  %3514 = vmatprep.subr.msk.bf16.mxu0 %vm3883_vm2, %v3512_v45  ;;  %v3272_v45 = vld [vmem:[%s4744_s1 + $0x90] sm:$0xf] }
  0x29   : > { %v3479_v55 = vpack.c.bf16 %v3272_v45, %v3270_v44 }
  0x2a   : > { %3222 = vmatmul.mubr.msk.f32.gmra.mrb[12].mxu1 %vm200_vm3, %v4020_v38  ;;  %3341 = vmatmul.mubr.msk.f32.gmra.mrb[2].mxu0 %vm200_vm3, %v4051_v46 }
  0x2b   : > { %344 = vmatprep.mubr.f32.mxu1 %v3845_v11  ;;  %1827 = vmatprep.mubr.f32.mxu0 %v3845_v11 }
  0x2e   : > { %3223 = vmatmul.mubr.msk.f32.gmra.mrb[14].mxu1 %vm200_vm3, %v4063_v47  ;;  %3342 = vmatmul.mubr.msk.f32.gmra.mrb[4].mxu0 %vm200_vm3, %v4066_v48 }
  0x2f   : > { %350 = vmatprep.mubr.f32.mxu1 %v3845_v11  ;;  %1833 = vmatprep.mubr.f32.mxu0 %v3845_v11 }
  0x32   : > { %3224 = vmatmul.mubr.msk.f32.gmra.mrb[16].mxu1 %vm200_vm3, %v4075_v49  ;;  %3343 = vmatmul.mubr.msk.f32.gmra.mrb[6].mxu0 %vm200_vm3, %v4078_v50 }
  0x33   : > { %356 = vmatprep.mubr.f32.mxu1 %v3845_v11  ;;  %1839 = vmatprep.mubr.f32.mxu0 %v3845_v11 }
  0x36   : > { %3225 = vmatmul.mubr.msk.f32.gmra.mrb[18].mxu1 %vm200_vm3, %v4087_v51  ;;  %3344 = vmatmul.mubr.msk.f32.gmra.mrb[8].mxu0 %vm200_vm3, %v4090_v52 }
  0x37   : > { %463 = vmatprep.mubr.f32.mxu1 %v3845_v11  ;;  %1845 = vmatprep.mubr.f32.mxu0 %v3845_v11 }
  0x3a   : > { %3228 = vmatmul.mubr.msk.f32.vlgmr.msra.gmra.mrb[0].mxu1 %vm200_vm3, %v171_v57  ;;  %3345 = vmatmul.mubr.msk.f32.gmra.mrb[10].mxu0 %vm200_vm3, %v4112_v59  ;;  %v4365_v57 = vld [vmem:[%s3964_s29 + $0x51] sm:$0xff] }
  0x3b   : > { %3469 = vmatpush1.bf16.msk.msra.mxu1 %vm3883_vm2, %v3467_v58  ;;  %469 = vmatprep.mubr.f32.mxu1 %v3845_v11  ;;  %v4374_v58 = vld [vmem:[%s3964_s29 + $0x59] sm:$0xff] }
  0x3c   : > { %1851 = vmatprep.mubr.f32.mxu0 %v3845_v11  ;;  %3472 = vmatprep.subr.msk.bf16.mxu1 %vm3883_vm2, %v3470_v60  ;;  %v4383_v60 = vld [vmem:[%s3964_s29 + $0x61] sm:$0xff] }
  0x3e   : > { %3229 = vmatmul.mubr.msk.f32.gmra.mrb[2].mxu1 %vm200_vm3, %v4121_v61  ;;  %3346 = vmatmul.mubr.msk.f32.gmra.mrb[12].mxu0 %vm200_vm3, %v4124_v62 }
  0x3f   : > { %475 = vmatprep.mubr.f32.mxu1 %v3845_v11  ;;  %1857 = vmatprep.mubr.f32.mxu0 %v3845_v11 }
  0x42   : > { %3230 = vmatmul.mubr.msk.f32.gmra.mrb[4].mxu1 %vm200_vm3, %v4136_v63  ;;  %3347 = vmatmul.mubr.msk.f32.gmra.mrb[14].mxu0 %vm200_vm3, %v4139_v0 }
  0x43   : > { %481 = vmatprep.mubr.f32.mxu1 %v3845_v11  ;;  %1863 = vmatprep.mubr.f32.mxu0 %v3845_v11 }
  0x46   : > { %3231 = vmatmul.mubr.msk.f32.gmra.mrb[6].mxu1 %vm200_vm3, %v4148_v1  ;;  %3348 = vmatmul.mubr.msk.f32.gmra.mrb[16].mxu0 %vm200_vm3, %v4151_v2 }
  0x47   : > { %487 = vmatprep.mubr.f32.mxu1 %v3845_v11  ;;  %1869 = vmatprep.mubr.f32.mxu0 %v3845_v11 }
  0x4a   : > { %3232 = vmatmul.mubr.msk.f32.gmra.mrb[8].mxu1 %vm200_vm3, %v4160_v3  ;;  %3349 = vmatmul.mubr.msk.f32.gmra.mrb[18].mxu0 %vm200_vm3, %v4163_v5 }
  0x4b   : > { %493 = vmatprep.mubr.f32.mxu1 %v3845_v11  ;;  %2011 = vmatprep.mubr.f32.mxu0 %v3845_v11 }
  0x4e   : > { %3233 = vmatmul.mubr.msk.f32.gmra.mrb[10].mxu1 %vm200_vm3, %v4184_v12  ;;  %3356 = vmatmul.mubr.msk.f32.vlgmr.msra.gmra.mrb[0].mxu0 %vm200_vm3, %v4148_v1 }
  0x4f   : > { %3517 = vmatpush1.bf16.msk.msra.mxu0 %vm3883_vm2, %v3515_v14  ;;  %499 = vmatprep.mubr.f32.mxu1 %v3845_v11  ;;  %v3530_v14 = vpack.c.bf16 %v3417_v9, %v3415_v8 }
  0x50   : > { %2017 = vmatprep.mubr.f32.mxu0 %v3845_v11  ;;  %3520 = vmatprep.subr.msk.bf16.mxu0 %vm3883_vm2, %v3518_v15  ;;  %v3286_v15 = vld [vmem:[%s4744_s1 + $0xa0] sm:$0xff] }
  0x51   : > { %v3485_v23 = vpack.c.bf16 %v3288_v20, %v3286_v15 }
  0x52   : > { %3234 = vmatmul.mubr.msk.f32.gmra.mrb[12].mxu1 %vm200_vm3, %v4194_v16  ;;  %3357 = vmatmul.mubr.msk.f32.gmra.mrb[2].mxu0 %vm200_vm3, %v4160_v3 }
  0x53   : > { %505 = vmatprep.mubr.f32.mxu1 %v3845_v11  ;;  %2023 = vmatprep.mubr.f32.mxu0 %v3845_v11 }
  0x56   : > { %3235 = vmatmul.mubr.msk.f32.gmra.mrb[14].mxu1 %vm200_vm3, %v4206_v17  ;;  %3358 = vmatmul.mubr.msk.f32.gmra.mrb[4].mxu0 %vm200_vm3, %v4184_v12 }
  0x57   : > { %511 = vmatprep.mubr.f32.mxu1 %v3845_v11  ;;  %2029 = vmatprep.mubr.f32.mxu0 %v3845_v11 }
  0x5a   : > { %3236 = vmatmul.mubr.msk.f32.gmra.mrb[16].mxu1 %vm200_vm3, %v4215_v18  ;;  %3359 = vmatmul.mubr.msk.f32.gmra.mrb[6].mxu0 %vm200_vm3, %v4194_v16 }
  0x5b   : > { %517 = vmatprep.mubr.f32.mxu1 %v3845_v11  ;;  %2035 = vmatprep.mubr.f32.mxu0 %v3845_v11 }
  0x5e   : > { %3237 = vmatmul.mubr.msk.f32.gmra.mrb[18].mxu1 %vm200_vm3, %v4224_v19  ;;  %3360 = vmatmul.mubr.msk.f32.gmra.mrb[8].mxu0 %vm200_vm3, %v4206_v17 }
  0x5f   : > { %639 = vmatprep.mubr.f32.mxu1 %v3845_v11  ;;  %2041 = vmatprep.mubr.f32.mxu0 %v3845_v11 }
  0x62   : > { %3244 = vmatmul.mubr.msk.f32.vlgmr.msra.gmra.mrb[0].mxu1 %vm200_vm3, %v524_v24  ;;  %3361 = vmatmul.mubr.msk.f32.gmra.mrb[10].mxu0 %vm200_vm3, %v4215_v18  ;;  %v3488_v24 = vpack.c.bf16 %v3305_v22, %v3303_v21 }
  0x63   : > { %3475 = vmatpush1.bf16.msk.msra.mxu1 %vm3883_vm2, %v3473_v25  ;;  %645 = vmatprep.mubr.f32.mxu1 %v3845_v11  ;;  %v3431_v25 = vld [vmem:[%s4744_s1 + $0x1c8] sm:$0xff] }
  0x64   : > { %2047 = vmatprep.mubr.f32.mxu0 %v3845_v11  ;;  %3478 = vmatprep.subr.msk.bf16.mxu1 %vm3883_vm2, %v3476_v26  ;;  %v3433_v26 = vld [vmem:[%s4744_s1 + $0x1d8] sm:$0xf] }
  0x65   : > { %v3536_v33 = vpack.c.bf16 %v3433_v26, %v3431_v25 }
  0x66   : > { %3245 = vmatmul.mubr.msk.f32.gmra.mrb[2].mxu1 %vm200_vm3, %v4252_v27  ;;  %3362 = vmatmul.mubr.msk.f32.gmra.mrb[12].mxu0 %vm200_vm3, %v4224_v19 }
  0x67   : > { %651 = vmatprep.mubr.f32.mxu1 %v3845_v11  ;;  %2053 = vmatprep.mubr.f32.mxu0 %v3845_v11 }
  0x6a   : > { %3246 = vmatmul.mubr.msk.f32.gmra.mrb[4].mxu1 %vm200_vm3, %v4041_v43  ;;  %3363 = vmatmul.mubr.msk.f32.gmra.mrb[14].mxu0 %vm200_vm3, %v4264_v28 }
  0x6b   : > { %657 = vmatprep.mubr.f32.mxu1 %v3845_v11  ;;  %2059 = vmatprep.mubr.f32.mxu0 %v3845_v11 }
  0x6e   : > { %3247 = vmatmul.mubr.msk.f32.gmra.mrb[6].mxu1 %vm200_vm3, %v4051_v46  ;;  %3364 = vmatmul.mubr.msk.f32.gmra.mrb[16].mxu0 %vm200_vm3, %v4273_v29 }
  0x6f   : > { %663 = vmatprep.mubr.f32.mxu1 %v3845_v11  ;;  %2065 = vmatprep.mubr.f32.mxu0 %v3845_v11 }
  0x72   : > { %3248 = vmatmul.mubr.msk.f32.gmra.mrb[8].mxu1 %vm200_vm3, %v4066_v48  ;;  %3365 = vmatmul.mubr.msk.f32.gmra.mrb[18].mxu0 %vm200_vm3, %v4282_v30 }
  0x73   : > { %669 = vmatprep.mubr.f32.mxu1 %v3845_v11  ;;  %2207 = vmatprep.mubr.f32.mxu0 %v3845_v11 }
  0x76   : > { %3249 = vmatmul.mubr.msk.f32.gmra.mrb[10].mxu1 %vm200_vm3, %v4078_v50  ;;  %3372 = vmatmul.mubr.msk.f32.vlgmr.msra.gmra.mrb[0].mxu0 %vm200_vm3, %v3987_v35 }
  0x77   : > { %3523 = vmatpush1.bf16.msk.msra.mxu0 %vm3883_vm2, %v3521_v41  ;;  %675 = vmatprep.mubr.f32.mxu1 %v3845_v11  ;;  %v3491_v41 = vpack.c.bf16 %v3304_v40, %v3302_v39 }
  0x78   : > { %2213 = vmatprep.mubr.f32.mxu0 %v3845_v11  ;;  %3526 = vmatprep.subr.msk.bf16.mxu0 %vm3883_vm2, %v3524_v42 }
  0x7a   : > { %3250 = vmatmul.mubr.msk.f32.gmra.mrb[12].mxu1 %vm200_vm3, %v4090_v52  ;;  %3373 = vmatmul.mubr.msk.f32.gmra.mrb[2].mxu0 %vm200_vm3, %v4002_v36 }
  0x7b   : > { %681 = vmatprep.mubr.f32.mxu1 %v3845_v11  ;;  %2219 = vmatprep.mubr.f32.mxu0 %v3845_v11 }
  0x7e   : > { %3251 = vmatmul.mubr.msk.f32.gmra.mrb[14].mxu1 %vm200_vm3, %v4112_v59  ;;  %3374 = vmatmul.mubr.msk.f32.gmra.mrb[4].mxu0 %vm200_vm3, %v4011_v37 }
  0x7f   : > { %687 = vmatprep.mubr.f32.mxu1 %v3845_v11  ;;  %2225 = vmatprep.mubr.f32.mxu0 %v3845_v11 }
  0x82   : > { %3252 = vmatmul.mubr.msk.f32.gmra.mrb[16].mxu1 %vm200_vm3, %v4124_v62  ;;  %3375 = vmatmul.mubr.msk.f32.gmra.mrb[6].mxu0 %vm200_vm3, %v4020_v38 }
  0x83   : > { %693 = vmatprep.mubr.f32.mxu1 %v3845_v11  ;;  %2231 = vmatprep.mubr.f32.mxu0 %v3845_v11 }
  0x86   : > { %3253 = vmatmul.mubr.msk.f32.gmra.mrb[18].mxu1 %vm200_vm3, %v4139_v0  ;;  %3376 = vmatmul.mubr.msk.f32.gmra.mrb[8].mxu0 %vm200_vm3, %v4063_v47 }
  0x87   : > { %835 = vmatprep.mubr.f32.mxu1 %v3845_v11  ;;  %2237 = vmatprep.mubr.f32.mxu0 %v3845_v11 }
  0x8a   : > { %3260 = vmatmul.mubr.msk.f32.vlgmr.msra.gmra.mrb[0].mxu1 %vm200_vm3, %v4121_v61  ;;  %3377 = vmatmul.mubr.msk.f32.gmra.mrb[10].mxu0 %vm200_vm3, %v4075_v49  ;;  %v3398_v61 = vld [vmem:[%s4744_s1 + $0x180] sm:$0xff] }
  0x8b   : > { %3481 = vmatpush1.bf16.msk.msra.mxu1 %vm3883_vm2, %v3479_v55  ;;  %841 = vmatprep.mubr.f32.mxu1 %v3845_v11  ;;  %v3527_v10 = vpack.c.bf16 %v3400_v6, %v3398_v61 }
  0x8c   : > { %2243 = vmatprep.mubr.f32.mxu0 %v3845_v11  ;;  %3484 = vmatprep.subr.msk.bf16.mxu1 %vm3883_vm2, %v3482_v56 }
  0x8e   : > { %3261 = vmatmul.mubr.msk.f32.gmra.mrb[2].mxu1 %vm200_vm3, %v4136_v63  ;;  %3378 = vmatmul.mubr.msk.f32.gmra.mrb[12].mxu0 %vm200_vm3, %v4087_v51 }
  0x8f   : > { %847 = vmatprep.mubr.f32.mxu1 %v3845_v11  ;;  %2249 = vmatprep.mubr.f32.mxu0 %v3845_v11 }
  0x92   : > { %3262 = vmatmul.mubr.msk.f32.gmra.mrb[4].mxu1 %vm200_vm3, %v4148_v1  ;;  %3379 = vmatmul.mubr.msk.f32.gmra.mrb[14].mxu0 %vm200_vm3, %v4365_v57 }
  0x93   : > { %853 = vmatprep.mubr.f32.mxu1 %v3845_v11  ;;  %2255 = vmatprep.mubr.f32.mxu0 %v3845_v11 }
  0x96   : > { %3263 = vmatmul.mubr.msk.f32.gmra.mrb[6].mxu1 %vm200_vm3, %v4160_v3  ;;  %3380 = vmatmul.mubr.msk.f32.gmra.mrb[16].mxu0 %vm200_vm3, %v4374_v58 }
  0x97   : > { %859 = vmatprep.mubr.f32.mxu1 %v3845_v11  ;;  %2261 = vmatprep.mubr.f32.mxu0 %v3845_v11 }
  0x9a   : > { %3264 = vmatmul.mubr.msk.f32.gmra.mrb[8].mxu1 %vm200_vm3, %v4184_v12  ;;  %3381 = vmatmul.mubr.msk.f32.gmra.mrb[18].mxu0 %vm200_vm3, %v4383_v60 }
  0x9b   : > { %865 = vmatprep.mubr.f32.mxu1 %v3845_v11  ;;  %2403 = vmatprep.mubr.f32.mxu0 %v3845_v11 }
  0x9e   : > { %3265 = vmatmul.mubr.msk.f32.gmra.mrb[10].mxu1 %vm200_vm3, %v4194_v16  ;;  %3388 = vmatmul.mubr.msk.f32.vlgmr.msra.gmra.mrb[0].mxu0 %vm200_vm3, %v4051_v46 }
  0x9f   : > { %3529 = vmatpush1.bf16.msk.msra.mxu0 %vm3883_vm2, %v3527_v10  ;;  %871 = vmatprep.mubr.f32.mxu1 %v3845_v11 }
  0xa0   : > { %2409 = vmatprep.mubr.f32.mxu0 %v3845_v11  ;;  %3532 = vmatprep.subr.msk.bf16.mxu0 %vm3883_vm2, %v3530_v14 }
  0xa2   : > { %3266 = vmatmul.mubr.msk.f32.gmra.mrb[12].mxu1 %vm200_vm3, %v4206_v17  ;;  %3389 = vmatmul.mubr.msk.f32.gmra.mrb[2].mxu0 %vm200_vm3, %v4066_v48 }
  0xa3   : > { %877 = vmatprep.mubr.f32.mxu1 %v3845_v11  ;;  %2415 = vmatprep.mubr.f32.mxu0 %v3845_v11 }
  0xa6   : > { %3267 = vmatmul.mubr.msk.f32.gmra.mrb[14].mxu1 %vm200_vm3, %v4215_v18  ;;  %3390 = vmatmul.mubr.msk.f32.gmra.mrb[4].mxu0 %vm200_vm3, %v4078_v50 }
  0xa7   : > { %883 = vmatprep.mubr.f32.mxu1 %v3845_v11  ;;  %2421 = vmatprep.mubr.f32.mxu0 %v3845_v11 }
  0xaa   : > { %3268 = vmatmul.mubr.msk.f32.gmra.mrb[16].mxu1 %vm200_vm3, %v4224_v19  ;;  %3391 = vmatmul.mubr.msk.f32.gmra.mrb[6].mxu0 %vm200_vm3, %v4090_v52 }
  0xab   : > { %889 = vmatprep.mubr.f32.mxu1 %v3845_v11  ;;  %2427 = vmatprep.mubr.f32.mxu0 %v3845_v11 }
  0xae   : > { %3269 = vmatmul.mubr.msk.f32.gmra.mrb[18].mxu1 %vm200_vm3, %v4264_v28  ;;  %3392 = vmatmul.mubr.msk.f32.gmra.mrb[8].mxu0 %vm200_vm3, %v4112_v59 }
  0xaf   : > { %1031 = vmatprep.mubr.f32.mxu1 %v3845_v11  ;;  %2433 = vmatprep.mubr.f32.mxu0 %v3845_v11 }
  0xb2   : > { %3276 = vmatmul.mubr.msk.f32.vlgmr.msra.gmra.mrb[0].mxu1 %vm200_vm3, %v3984_v34  ;;  %3393 = vmatmul.mubr.msk.f32.gmra.mrb[10].mxu0 %vm200_vm3, %v4124_v62  ;;  %v3414_v34 = vld [vmem:[%s4744_s1 + $0x1a0] sm:$0xff] }
  0xb3   : > { %3487 = vmatpush1.bf16.msk.msra.mxu1 %vm3883_vm2, %v3485_v23  ;;  %1037 = vmatprep.mubr.f32.mxu1 %v3845_v11 }
  0xb4   : > { %2439 = vmatprep.mubr.f32.mxu0 %v3845_v11  ;;  %3490 = vmatprep.subr.msk.bf16.mxu1 %vm3883_vm2, %v3488_v24 }
  0xb6   : > { %3277 = vmatmul.mubr.msk.f32.gmra.mrb[2].mxu1 %vm200_vm3, %v3974_v31  ;;  %3394 = vmatmul.mubr.msk.f32.gmra.mrb[12].mxu0 %vm200_vm3, %v4139_v0  ;;  %v4478_v31 = vld [vmem:[%s3964_s29 + $0x62] sm:$0xff] }
  0xb7   : > { %1043 = vmatprep.mubr.f32.mxu1 %v3845_v11  ;;  %2445 = vmatprep.mubr.f32.mxu0 %v3845_v11 }
  0xba   : > { %3278 = vmatmul.mubr.msk.f32.gmra.mrb[4].mxu1 %vm200_vm3, %v3987_v35  ;;  %3395 = vmatmul.mubr.msk.f32.gmra.mrb[14].mxu0 %vm200_vm3, %v4151_v2  ;;  %v3416_v35 = vld [vmem:[%s4744_s1 + $0x1b0] sm:$0xf] }
  0xbb   : > { %1049 = vmatprep.mubr.f32.mxu1 %v3845_v11  ;;  %2451 = vmatprep.mubr.f32.mxu0 %v3845_v11  ;;  %v3533_v32 = vpack.c.bf16 %v3416_v35, %v3414_v34 }
  0xbe   : > { %3279 = vmatmul.mubr.msk.f32.gmra.mrb[6].mxu1 %vm200_vm3, %v4002_v36  ;;  %3396 = vmatmul.mubr.msk.f32.gmra.mrb[16].mxu0 %vm200_vm3, %v4163_v5 }
  0xbf   : > { %1055 = vmatprep.mubr.f32.mxu1 %v3845_v11  ;;  %2457 = vmatprep.mubr.f32.mxu0 %v3845_v11 }
  0xc2   : > { %3280 = vmatmul.mubr.msk.f32.gmra.mrb[8].mxu1 %vm200_vm3, %v4011_v37  ;;  %3397 = vmatmul.mubr.msk.f32.gmra.mrb[18].mxu0 %vm200_vm3, %v4478_v31 }
  0xc3   : > { %1061 = vmatprep.mubr.f32.mxu1 %v3845_v11  ;;  %2599 = vmatprep.mubr.f32.mxu0 %v3845_v11 }
  0xc6   : > { %3281 = vmatmul.mubr.msk.f32.gmra.mrb[10].mxu1 %vm200_vm3, %v4020_v38  ;;  %3404 = vmatmul.mubr.msk.f32.vlgmr.msra.gmra.mrb[0].mxu0 %vm200_vm3, %v4160_v3 }
  0xc7   : > { %3535 = vmatpush1.bf16.msk.msra.mxu0 %vm3883_vm2, %v3533_v32  ;;  %1067 = vmatprep.mubr.f32.mxu1 %v3845_v11 }
  0xc8   : > { %2605 = vmatprep.mubr.f32.mxu0 %v3845_v11  ;;  %3538 = vmatprep.subr.msk.bf16.mxu0 %vm3883_vm2, %v3536_v33 }
  0xca   : > { %3282 = vmatmul.mubr.msk.f32.gmra.mrb[12].mxu1 %vm200_vm3, %v4063_v47  ;;  %3405 = vmatmul.mubr.msk.f32.gmra.mrb[2].mxu0 %vm200_vm3, %v4184_v12 }
  0xcb   : > { %1073 = vmatprep.mubr.f32.mxu1 %v3845_v11  ;;  %2611 = vmatprep.mubr.f32.mxu0 %v3845_v11 }
  0xce   : > { %3283 = vmatmul.mubr.msk.f32.gmra.mrb[14].mxu1 %vm200_vm3, %v4075_v49  ;;  %3406 = vmatmul.mubr.msk.f32.gmra.mrb[4].mxu0 %vm200_vm3, %v4194_v16 }
  0xcf   : > { %1079 = vmatprep.mubr.f32.mxu1 %v3845_v11  ;;  %2617 = vmatprep.mubr.f32.mxu0 %v3845_v11 }
  0xd2   : > { %3284 = vmatmul.mubr.msk.f32.gmra.mrb[16].mxu1 %vm200_vm3, %v4087_v51  ;;  %3407 = vmatmul.mubr.msk.f32.gmra.mrb[6].mxu0 %vm200_vm3, %v4206_v17 }
  0xd3   : > { %1085 = vmatprep.mubr.f32.mxu1 %v3845_v11  ;;  %2623 = vmatprep.mubr.f32.mxu0 %v3845_v11 }
  0xd6   : > { %3285 = vmatmul.mubr.msk.f32.gmra.mrb[18].mxu1 %vm200_vm3, %v4365_v57  ;;  %3408 = vmatmul.mubr.msk.f32.gmra.mrb[8].mxu0 %vm200_vm3, %v4215_v18 }
  0xd7   : > { %1227 = vmatprep.mubr.f32.mxu1 %v3845_v11  ;;  %2629 = vmatprep.mubr.f32.mxu0 %v3845_v11 }
  0xda   : > { %3292 = vmatmul.mubr.msk.f32.vlgmr.msra.gmra.mrb[0].mxu1 %vm200_vm3, %v4252_v27  ;;  %3409 = vmatmul.mubr.msk.f32.gmra.mrb[10].mxu0 %vm200_vm3, %v4224_v19 }
  0xdb   : > { %3493 = vmatpush1.bf16.msk.msra.mxu1 %vm3883_vm2, %v3491_v41  ;;  %1233 = vmatprep.mubr.f32.mxu1 %v3845_v11 }
  0xdc   : > { %2635 = vmatprep.mubr.f32.mxu0 %v3845_v11  ;;  %3542 = vmatprep.subr.msk.bf16.mxu1 %vm3883_vm2, %v3897_v7  ;;  %v2493_v7 = vld [vmem:[%s3964_s29 + $0x68] sm:$0xff] }
  0xde   : > { %3293 = vmatmul.mubr.msk.f32.gmra.mrb[2].mxu1 %vm200_vm3, %v4041_v43  ;;  %3410 = vmatmul.mubr.msk.f32.gmra.mrb[12].mxu0 %vm200_vm3, %v4264_v28  ;;  %v3430_v43 = vld [vmem:[%s4744_s1 + $0x1c0] sm:$0xff] }
  0xdf   : > { %1239 = vmatprep.mubr.f32.mxu1 %v3845_v11  ;;  %2641 = vmatprep.mubr.f32.mxu0 %v3845_v11 }
  0xe2   : > { %3294 = vmatmul.mubr.msk.f32.gmra.mrb[4].mxu1 %vm200_vm3, %v4051_v46  ;;  %3411 = vmatmul.mubr.msk.f32.gmra.mrb[14].mxu0 %vm200_vm3, %v4273_v29  ;;  %v3432_v46 = vld [vmem:[%s4744_s1 + $0x1d0] sm:$0xf] }
  0xe3   : > { %1245 = vmatprep.mubr.f32.mxu1 %v3845_v11  ;;  %2647 = vmatprep.mubr.f32.mxu0 %v3845_v11  ;;  %v3539_v27 = vpack.c.bf16 %v3432_v46, %v3430_v43 }
  0xe6   : > { %3295 = vmatmul.mubr.msk.f32.gmra.mrb[6].mxu1 %vm200_vm3, %v4066_v48  ;;  %3412 = vmatmul.mubr.msk.f32.gmra.mrb[16].mxu0 %vm200_vm3, %v4282_v30 }
  0xe7   : > { %1251 = vmatprep.mubr.f32.mxu1 %v3845_v11  ;;  %2653 = vmatprep.mubr.f32.mxu0 %v3845_v11 }
  0xea   : > { %3296 = vmatmul.mubr.msk.f32.gmra.mrb[8].mxu1 %vm200_vm3, %v4078_v50  ;;  %3413 = vmatmul.mubr.msk.f32.gmra.mrb[18].mxu0 %vm200_vm3, %v2493_v7 }
  0xeb   : > { %1257 = vmatprep.mubr.f32.mxu1 %v3845_v11  ;;  %2795 = vmatprep.mubr.f32.mxu0 %v3845_v11 }
  0xee   : > { %3297 = vmatmul.mubr.msk.f32.gmra.mrb[10].mxu1 %vm200_vm3, %v4090_v52  ;;  %3420 = vmatmul.mubr.msk.f32.vlgmr.msra.gmra.mrb[0].mxu0 %vm200_vm3, %v4002_v36 }
  0xef   : > { %3541 = vmatpush1.bf16.msk.msra.mxu0 %vm3883_vm2, %v3539_v27  ;;  %1263 = vmatprep.mubr.f32.mxu1 %v3845_v11 }
  0xf0   : > { %2801 = vmatprep.mubr.f32.mxu0 %v3845_v11 }
  0xf2   : > { %3298 = vmatmul.mubr.msk.f32.gmra.mrb[12].mxu1 %vm200_vm3, %v4112_v59  ;;  %3421 = vmatmul.mubr.msk.f32.gmra.mrb[2].mxu0 %vm200_vm3, %v4011_v37 }
  0xf3   : > { %1269 = vmatprep.mubr.f32.mxu1 %v3845_v11  ;;  %2807 = vmatprep.mubr.f32.mxu0 %v3845_v11 }
  0xf6   : > { %3299 = vmatmul.mubr.msk.f32.gmra.mrb[14].mxu1 %vm200_vm3, %v4124_v62  ;;  %3422 = vmatmul.mubr.msk.f32.gmra.mrb[4].mxu0 %vm200_vm3, %v4020_v38 }
  0xf7   : > { %1275 = vmatprep.mubr.f32.mxu1 %v3845_v11  ;;  %2813 = vmatprep.mubr.f32.mxu0 %v3845_v11 }
  0xfa   : > { %3300 = vmatmul.mubr.msk.f32.gmra.mrb[16].mxu1 %vm200_vm3, %v4139_v0  ;;  %3423 = vmatmul.mubr.msk.f32.gmra.mrb[6].mxu0 %vm200_vm3, %v4063_v47 }
  0xfb   : > { %1281 = vmatprep.mubr.f32.mxu1 %v3845_v11  ;;  %2819 = vmatprep.mubr.f32.mxu0 %v3845_v11 }
  0xfe   : > { %3301 = vmatmul.mubr.msk.f32.gmra.mrb[18].mxu1 %vm200_vm3, %v4151_v2  ;;  %3424 = vmatmul.mubr.msk.f32.gmra.mrb[8].mxu0 %vm200_vm3, %v4075_v49 }
  0xff   : > { %1423 = vmatprep.mubr.f32.mxu1 %v3845_v11  ;;  %2825 = vmatprep.mubr.f32.mxu0 %v3845_v11 }
 0x102   : > { %3308 = vmatmul.mubr.msk.f32.vlgmr.msra.gmra.mrb[0].mxu1 %vm200_vm3, %v4136_v63  ;;  %3425 = vmatmul.mubr.msk.f32.gmra.mrb[10].mxu0 %vm200_vm3, %v4087_v51 }
 0x103   : > { %3543 = vmatpush1.bf16.msk.msra.mxu1 %vm3883_vm2, %v3912_v13  ;;  %1429 = vmatprep.mubr.f32.mxu1 %v3845_v11  ;;  %v2885_v13 = vld [vmem:[%s3964_s29 + $0x6a] sm:$0xff]  ;;  %s3825_s29 = smul.u32 40, %s4751_s13 }
 0x104   : > { %2831 = vmatprep.mubr.f32.mxu0 %v3845_v11 }
 0x105   : > { %s4719_s21 = scalar_lea.vmem %s4746_s3, %s3825_s29 }
 0x106   : > { %3309 = vmatmul.mubr.msk.f32.gmra.mrb[2].mxu1 %vm200_vm3, %v4148_v1  ;;  %3426 = vmatmul.mubr.msk.f32.gmra.mrb[12].mxu0 %vm200_vm3, %v4365_v57 }
 0x107   : > { %1435 = vmatprep.mubr.f32.mxu1 %v3845_v11  ;;  %2837 = vmatprep.mubr.f32.mxu0 %v3845_v11 }
 0x10a   : > { %3310 = vmatmul.mubr.msk.f32.gmra.mrb[4].mxu1 %vm200_vm3, %v4160_v3  ;;  %3427 = vmatmul.mubr.msk.f32.gmra.mrb[14].mxu0 %vm200_vm3, %v4374_v58 }
 0x10b   : > { %1441 = vmatprep.mubr.f32.mxu1 %v3845_v11  ;;  %2843 = vmatprep.mubr.f32.mxu0 %v3845_v11 }
 0x10e   : > { %3311 = vmatmul.mubr.msk.f32.gmra.mrb[6].mxu1 %vm200_vm3, %v4184_v12  ;;  %3428 = vmatmul.mubr.msk.f32.gmra.mrb[16].mxu0 %vm200_vm3, %v4383_v60 }
 0x10f   : > { %1447 = vmatprep.mubr.f32.mxu1 %v3845_v11  ;;  %2849 = vmatprep.mubr.f32.mxu0 %v3845_v11 }
 0x112   : > { %3312 = vmatmul.mubr.msk.f32.gmra.mrb[8].mxu1 %vm200_vm3, %v4194_v16  ;;  %3429 = vmatmul.mubr.msk.f32.gmra.mrb[18].mxu0 %vm200_vm3, %v2689_v4 }
 0x113   : > { %1453 = vmatprep.mubr.f32.mxu1 %v3845_v11  ;;  %2991 = vmatprep.mubr.f32.mxu0 %v3845_v11 }
 0x116   : > { %3313 = vmatmul.mubr.msk.f32.gmra.mrb[10].mxu1 %vm200_vm3, %v4206_v17  ;;  %3436 = vmatmul.mubr.msk.f32.vlgmr.msra.gmra.mrb[0].mxu0 %vm200_vm3, %v4066_v48  ;;  %v3074_v48 = vlaneseq }
 0x117   : > { %1459 = vmatprep.mubr.f32.mxu1 %v3845_v11  ;;  %2997 = vmatprep.mubr.f32.mxu0 %v3845_v11 }
 0x11a   : > { %3314 = vmatmul.mubr.msk.f32.gmra.mrb[12].mxu1 %vm200_vm3, %v4215_v18  ;;  %3437 = vmatmul.mubr.msk.f32.gmra.mrb[2].mxu0 %vm200_vm3, %v4078_v50 }
 0x11b   : > { %1465 = vmatprep.mubr.f32.mxu1 %v3845_v11  ;;  %3003 = vmatprep.mubr.f32.mxu0 %v3845_v11 }
 0x11e   : > { %3315 = vmatmul.mubr.msk.f32.gmra.mrb[14].mxu1 %vm200_vm3, %v4224_v19  ;;  %3438 = vmatmul.mubr.msk.f32.gmra.mrb[4].mxu0 %vm200_vm3, %v4090_v52 }
 0x11f   : > { %1471 = vmatprep.mubr.f32.mxu1 %v3845_v11  ;;  %3009 = vmatprep.mubr.f32.mxu0 %v3845_v11 }
 0x122   : > { %3316 = vmatmul.mubr.msk.f32.gmra.mrb[16].mxu1 %vm200_vm3, %v4264_v28  ;;  %3439 = vmatmul.mubr.msk.f32.gmra.mrb[6].mxu0 %vm200_vm3, %v4112_v59 }
 0x123   : > { %1477 = vmatprep.mubr.f32.mxu1 %v3845_v11  ;;  %3015 = vmatprep.mubr.f32.mxu0 %v3845_v11 }
 0x126   : > { %3317 = vmatmul.mubr.msk.f32.gmra.mrb[18].mxu1 %vm200_vm3, %v4273_v29  ;;  %3440 = vmatmul.mubr.msk.f32.gmra.mrb[8].mxu0 %vm200_vm3, %v4124_v62 }
 0x127   : > { %1649 = vmatprep.mubr.f32.mxu1 %v3845_v11  ;;  %3021 = vmatprep.mubr.f32.mxu0 %v3845_v11 }
 0x12a   : > { %3329 = vmatmul.mubr.msk.f32.vlgmr.msra.gmra.mrb[10].mxu1 %vm200_vm3, %v4063_v47  ;;  %3441 = vmatmul.mubr.msk.f32.gmra.mrb[10].mxu0 %vm200_vm3, %v4139_v0 }
 0x12b   : > { %1655 = vmatprep.mubr.f32.mxu1 %v3845_v11  ;;  %3027 = vmatprep.mubr.f32.mxu0 %v3845_v11 }
 0x12e   : > { %3330 = vmatmul.mubr.msk.f32.gmra.mrb[12].mxu1 %vm200_vm3, %v4075_v49  ;;  %3442 = vmatmul.mubr.msk.f32.gmra.mrb[12].mxu0 %vm200_vm3, %v4151_v2 }
 0x12f   : > { %1661 = vmatprep.mubr.f32.mxu1 %v3845_v11  ;;  %3033 = vmatprep.mubr.f32.mxu0 %v3845_v11 }
 0x132   : > { %3331 = vmatmul.mubr.msk.f32.gmra.mrb[14].mxu1 %vm200_vm3, %v4087_v51  ;;  %3443 = vmatmul.mubr.msk.f32.gmra.mrb[14].mxu0 %vm200_vm3, %v4163_v5  ;;  %v3075_v51 = vshrl.u32 %v3074_v48, 7 }
 0x133   : > { %1667 = vmatprep.mubr.f32.mxu1 %v3845_v11  ;;  %3039 = vmatprep.mubr.f32.mxu0 %v3845_v11 }
 0x134   : > { %v3076_v62 = vsub.s32 0, %v3075_v51  ;;  %v3080_v0 = vsub.s32 1, %v3075_v51 }
 0x136   : > { %3332 = vmatmul.mubr.msk.f32.gmra.mrb[16].mxu1 %vm200_vm3, %v4365_v57  ;;  %3444 = vmatmul.mubr.msk.f32.gmra.mrb[16].mxu0 %vm200_vm3, %v4478_v31 }
 0x137   : > { %1673 = vmatprep.mubr.f32.mxu1 %v3845_v11  ;;  %3045 = vmatprep.mubr.f32.mxu0 %v3845_v11  ;;  %v3072_v11 = vld [vmem:[%s4745_s2] sm:$0x3] }
 0x138   : > { %v4705_v2 = vrot.slane %v3072_v11, %v3076_v62  ;;  %v4707_v5 = vrot.slane %v3072_v11, %v3080_v0 }
 0x13a   : > { %3333 = vmatmul.mubr.msk.f32.gmra.mrb[18].mxu1 %vm200_vm3, %v4374_v58  ;;  %3445 = vmatmul.mubr.msk.f32.gmra.mrb[18].mxu0 %vm200_vm3, %v2885_v13 }
 0x1d5   : > { %v1425_v36 = vpop.f32.mrb[0].mxu1 }
 0x1d6   : > { %v1427_v37 = vpop.f32.mrb[1].mxu1 }
 0x1d9   : > { %v1431_v38 = vpop.f32.mrb[2].mxu1 }
 0x1da   : > { %v1433_v47 = vpop.f32.mrb[3].mxu1 }
 0x1dd   : > { %v1437_v49 = vpop.f32.mrb[4].mxu1 }
 0x1de   : > { %v1439_v50 = vpop.f32.mrb[5].mxu1 }
 0x1e1   : > { %v1443_v52 = vpop.f32.mrb[6].mxu1 }
 0x1e2   : > { %v1445_v59 = vpop.f32.mrb[7].mxu1 }
 0x1e5   : > { %v1449_v63 = vpop.f32.mrb[8].mxu1 }
 0x1e6   : > { %v1451_v1 = vpop.f32.mrb[9].mxu1 }
 0x1e9   : > { %v2993_v3 = vpop.f32.mrb[0].mxu0 }
 0x1ea   : > { %v3544_v12 = vadd.f32 %v2993_v3, %v1425_v36  ;;  %v2995_v16 = vpop.f32.mrb[1].mxu0 }
 0x1eb   : > { %v3545_v17 = vadd.f32 %v2995_v16, %v1427_v37 }
 0x1ec   : > { %v3084_v18 = vadd.f32 %v3544_v12, %v4705_v2 }
 0x1ed   : > { %v3085_v19 = vadd.f32 %v3545_v17, %v4707_v5  ;;  %v2999_v28 = vpop.f32.mrb[2].mxu0 }
 0x1ee   : > { %v3104_v29 = vmax.f32 %v3084_v18, 0.0  ;;  %v3546_v30 = vadd.f32 %v2999_v28, %v1431_v38  ;;  %v3001_v42 = vpop.f32.mrb[3].mxu0 }
 0x1ef   : > { %v3105_v44 = vmax.f32 %v3085_v19, 0.0  ;;  %v3547_v45 = vadd.f32 %v3001_v42, %v1433_v47 }
 0x1f0   : > { %v3086_v53 = vadd.f32 %v3546_v30, %v4705_v2 }
 0x1f1   : > { %v3124_v54 = vmax.f32 %v3104_v29, %v3105_v44  ;;  %v3087_v55 = vadd.f32 %v3547_v45, %v4707_v5  ;;  %v3005_v56 = vpop.f32.mrb[4].mxu0 }
 0x1f2   : > { %v3106_v57 = vmax.f32 %v3086_v53, 0.0  ;;  %v3548_v58 = vadd.f32 %v3005_v56, %v1437_v49  ;;  %v3007_v60 = vpop.f32.mrb[5].mxu0 }
 0x1f3   : > { %v3107_v61 = vmax.f32 %v3087_v55, 0.0  ;;  %v3549_v6 = vadd.f32 %v3007_v60, %v1439_v50 }
 0x1f4   : > { %v3088_v8 = vadd.f32 %v3548_v58, %v4705_v2 }
 0x1f5   : > { %v3125_v9 = vmax.f32 %v3106_v57, %v3107_v61  ;;  %v3089_v10 = vadd.f32 %v3549_v6, %v4707_v5  ;;  %v3011_v14 = vpop.f32.mrb[6].mxu0 }
 0x1f6   : > { %v3108_v15 = vmax.f32 %v3088_v8, 0.0  ;;  %v3550_v20 = vadd.f32 %v3011_v14, %v1443_v52  ;;  %v3013_v21 = vpop.f32.mrb[7].mxu0 }
 0x1f7   : > { %v3134_v22 = vmax.f32 %v3124_v54, %v3125_v9  ;;  %v3109_v23 = vmax.f32 %v3089_v10, 0.0  ;;  %v3551_v24 = vadd.f32 %v3013_v21, %v1445_v59 }
 0x1f8   : > { %v3090_v31 = vadd.f32 %v3550_v20, %v4705_v2 }
 0x1f9   : > { %3135 = vst [vmem:[%s4719_s21] sm:$0xff] %v3134_v22  ;;  %v3126_v34 = vmax.f32 %v3108_v15, %v3109_v23  ;;  %v3091_v35 = vadd.f32 %v3551_v24, %v4707_v5  ;;  %v3017_v25 = vpop.f32.mrb[8].mxu0 }
 0x1fa   : > { %v3110_v26 = vmax.f32 %v3090_v31, 0.0  ;;  %v3552_v32 = vadd.f32 %v3017_v25, %v1449_v63  ;;  %v3019_v33 = vpop.f32.mrb[9].mxu0 }
 0x1fb   : > { %v3111_v39 = vmax.f32 %v3091_v35, 0.0  ;;  %v3553_v40 = vadd.f32 %v3019_v33, %v1451_v1 }
 0x1fc   : > { %v3092_v41 = vadd.f32 %v3552_v32, %v4705_v2 }
 0x1fd   : > { %v3127_v7 = vmax.f32 %v3110_v26, %v3111_v39  ;;  %v3093_v43 = vadd.f32 %v3553_v40, %v4707_v5  ;;  %v1651_v46 = vpop.f32.mrb[10].mxu1  ;;  %v3023_v27 = vpop.f32.mrb[10].mxu0 }
 0x1fe   : > { %v3112_v4 = vmax.f32 %v3092_v41, 0.0  ;;  %v3554_v13 = vadd.f32 %v3023_v27, %v1651_v46  ;;  %v1653_v36 = vpop.f32.mrb[11].mxu1  ;;  %v3025_v37 = vpop.f32.mrb[11].mxu0 }
 0x1ff   : > { %v3136_v38 = vmax.f32 %v3126_v34, %v3127_v7  ;;  %v3113_v47 = vmax.f32 %v3093_v43, 0.0  ;;  %v3555_v48 = vadd.f32 %v3025_v37, %v1653_v36 }
 0x200   : > { %v3094_v49 = vadd.f32 %v3554_v13, %v4705_v2 }
 0x201   : > { %3446 = vst [vmem:[%s4719_s21 + $0x8] sm:$0xff] %v3136_v38  ;;  %v3128_v50 = vmax.f32 %v3112_v4, %v3113_v47  ;;  %v3095_v51 = vadd.f32 %v3555_v48, %v4707_v5  ;;  %v1657_v52 = vpop.f32.mrb[12].mxu1  ;;  %v3029_v59 = vpop.f32.mrb[12].mxu0 }
 0x202   : > { %v3114_v62 = vmax.f32 %v3094_v49, 0.0  ;;  %v3556_v63 = vadd.f32 %v3029_v59, %v1657_v52  ;;  %v1659_v11 = vpop.f32.mrb[13].mxu1  ;;  %v3031_v0 = vpop.f32.mrb[13].mxu0 }
 0x203   : > { %v3115_v1 = vmax.f32 %v3095_v51, 0.0  ;;  %v3557_v3 = vadd.f32 %v3031_v0, %v1659_v11 }
 0x204   : > { %v3096_v12 = vadd.f32 %v3556_v63, %v4705_v2 }
 0x205   : > { %v3129_v16 = vmax.f32 %v3114_v62, %v3115_v1  ;;  %v3097_v17 = vadd.f32 %v3557_v3, %v4707_v5  ;;  %v1663_v18 = vpop.f32.mrb[14].mxu1  ;;  %v3035_v19 = vpop.f32.mrb[14].mxu0 }
 0x206   : > { %v3116_v28 = vmax.f32 %v3096_v12, 0.0  ;;  %v3558_v29 = vadd.f32 %v3035_v19, %v1663_v18  ;;  %v1665_v30 = vpop.f32.mrb[15].mxu1  ;;  %v3037_v42 = vpop.f32.mrb[15].mxu0 }
 0x207   : > { %v3139_v44 = vmax.f32 %v3128_v50, %v3129_v16  ;;  %v3117_v45 = vmax.f32 %v3097_v17, 0.0  ;;  %v3559_v53 = vadd.f32 %v3037_v42, %v1665_v30 }
 0x208   : > { %v3098_v54 = vadd.f32 %v3558_v29, %v4705_v2 }
 0x209   : > { %3447 = vst [vmem:[%s4719_s21 + $0x10] sm:$0xff] %v3139_v44  ;;  %v3130_v55 = vmax.f32 %v3116_v28, %v3117_v45  ;;  %v3099_v56 = vadd.f32 %v3559_v53, %v4707_v5  ;;  %v1669_v57 = vpop.f32.mrb[16].mxu1  ;;  %v3041_v58 = vpop.f32.mrb[16].mxu0 }
 0x20a   : > { %v3118_v60 = vmax.f32 %v3098_v54, 0.0  ;;  %v3560_v61 = vadd.f32 %v3041_v58, %v1669_v57  ;;  %v1671_v6 = vpop.f32.mrb[17].mxu1  ;;  %v3043_v8 = vpop.f32.mrb[17].mxu0 }
 0x20b   : > { %v3119_v9 = vmax.f32 %v3099_v56, 0.0  ;;  %v3561_v10 = vadd.f32 %v3043_v8, %v1671_v6 }
 0x20c   : > { %v3100_v14 = vadd.f32 %v3560_v61, %v4705_v2 }
 0x20d   : > { %v3131_v15 = vmax.f32 %v3118_v60, %v3119_v9  ;;  %v3101_v20 = vadd.f32 %v3561_v10, %v4707_v5  ;;  %v1675_v21 = vpop.f32.mrb[18].mxu1  ;;  %v3047_v22 = vpop.f32.mrb[18].mxu0 }
 0x20e   : > { %v3120_v23 = vmax.f32 %v3100_v14, 0.0  ;;  %v3562_v24 = vadd.f32 %v3047_v22, %v1675_v21  ;;  %v1677_v31 = vpop.f32.mrb[19].mxu1  ;;  %v3049_v34 = vpop.f32.mrb[19].mxu0 }
 0x20f   : > { %v3142_v35 = vmax.f32 %v3130_v55, %v3131_v15  ;;  %v3121_v25 = vmax.f32 %v3101_v20, 0.0  ;;  %v3563_v26 = vadd.f32 %v3049_v34, %v1677_v31 }
 0x210   : > { %v3102_v32 = vadd.f32 %v3562_v24, %v4705_v2 }
 0x211   : > { %3448 = vst [vmem:[%s4719_s21 + $0x18] sm:$0xff] %v3142_v35  ;;  %v3132_v33 = vmax.f32 %v3120_v23, %v3121_v25  ;;  %v3103_v39 = vadd.f32 %v3563_v26, %v4707_v5 }
 0x212   : > { %v3122_v40 = vmax.f32 %v3102_v32, 0.0 }
 0x213   : > { %v3123_v41 = vmax.f32 %v3103_v39, 0.0 }
 0x215   : > { %v3133_v7 = vmax.f32 %v3122_v40, %v3123_v41 }
 0x217   : > { %v3145_v43 = vmax.f32 %v3132_v33, %v3133_v7 }
 0x219   : > { %3449 = vst [vmem:[%s4719_s21 + $0x20] sm:$0xff] %v3145_v43 }
 0x21a PF: > { %s13_s12 = sadd.s32 1, %s3842_s12  }
 0x21b   : > { %p10_p4 = scmp.ge.s32.totalorder %s13_s12, 4  }
 0x21d   :  { %12 = sbr.rel (!%p10_p4) target bundleno = 1 (0x1), region = 80 }

// kernel: lenet_forward.3
= control target key start
LH: loop header
LB: loop body
LE: loop exit
PB: predicated region body
PF: predicated region fallthrough
CT: control target
= control target key end

     0   :  { %s14099_s12 = smov 0   ;;  %s17800_s0 = inlined_call_operand.vmem [shape: f32[2,520,6], index: 0, kind: input, shape index: {}]   ;;  %s17801_s1 = inlined_call_operand.vmem [shape: f32[15,6,256], index: 1, kind: input, shape index: {}]   ;;  %s17802_s2 = inlined_call_operand.vmem [shape: f32[1,256], index: 2, kind: input, shape index: {}]   ;;  %s17803_s3 = inlined_call_operand.vmem [shape: f32[2,14,16,128], index: 3, kind: output, shape index: {}]  }
   0x1 LB: > { %s11554_s13 = sadd.s32 4294967295, %s14076_s12   ;;  %p11558_p0 = scmp.ge.s32.totalorder %s14076_s12, 1  ;;  %s14076_s12 = sphi %s14099_s12, %s13_s12  }
   0x2   : > { %p137_p1 = scmp.lt.s32.totalorder %s14076_s12, 3 }
   0x4   : > { %p138_p2 = pnand %p11558_p0, %p137_p1 }
   0x6   : > { %141 = sbr.rel (%p138_p2) target bundleno = 1921 (0x781), region = 32 }
   0xd   : > { %v11562_v0 = vld [vmem:[%s17801_s1 + $0x18] sm:$0x3f]  ;;  %vm457_vm0 = vcmask 1045504   ;;  %v11561_v2 = vld [vmem:[%s17801_s1 + $0x10] sm:$0x3f]  ;;  %p161_p3 = scmp.lt.s32.totalorder %s11554_s13, 1 }
   0xe   : > { %v11980_v1 = vld [vmem:[%s17801_s1 + $0x78] sm:$0x3f]  ;;  %11563 = vmatprep.subr.msk.mxu1 %vm457_vm0, %v11562_v0  ;;  %v11979_v3 = vld [vmem:[%s17801_s1 + $0x70] sm:$0x3f]  ;;  %v228_v4 = vld [vmem:[%s17801_s1 + $0x8] sm:$0x3f] }
   0xf   : > { %11981 = vmatprep.subr.msk.mxu0 %vm457_vm0, %v11980_v1  ;;  %11564 = vmatpush1.msk.msra.mxu1 %vm457_vm0, %v11561_v2  ;;  %v12040_v5 = vld [vmem:[%s17801_s1 + $0x88] sm:$0x3f]  ;;  %v14078_v6 = vmov 0.0   ;;  %s17896_s13 = smov (!%p161_p3, %s11554_s13), 1  ;;  %vm288_vm1 = vcmask 48128  }
  0x10   : > { %11982 = vmatpush1.msk.msra.mxu0 %vm457_vm0, %v11979_v3  ;;  %528 = vmatprep.mubr.f32.mxu1 %v14078_v6  ;;  %s14057_s26 = smul.u32 520, %s17896_s13  ;;  %v227_v7 = vld [vmem:[%s17801_s1] sm:$0x3f]  ;;  %v12100_v11 = vld [vmem:[%s17801_s1 + $0x98] sm:$0x3f] }
  0x11   : > { %11621 = vmatprep.subr.msk.mxu1 %vm457_vm0, %v228_v4  ;;  %5467 = vmatprep.mubr.f32.mxu0 %v14078_v6  ;;  %v12039_v8 = vld [vmem:[%s17801_s1 + $0x80] sm:$0x3f]  ;;  %v11680_v39 = vld [vmem:[%s17801_s1 + $0x28] sm:$0x3f]  ;;  %v12099_v44 = vld [vmem:[%s17801_s1 + $0x90] sm:$0x3f] }
  0x12   : > { %12041 = vmatprep.subr.msk.mxu0 %vm457_vm0, %v12040_v5  ;;  %s14139_s29 = scalar_lea.vmem %s17800_s0, %s14057_s26 }
  0x13   : > { %v229_v9 = vld [vmem:[%s14139_s29 + $0x1] sm:$0xff]  ;;  %v230_v12 = vld [vmem:[%s14139_s29 + $0x9] sm:$0xff]  ;;  %v231_v14 = vld [vmem:[%s14139_s29 + $0x11] sm:$0xff] }
  0x14   : > { %v5170_v10 = vld [vmem:[%s14139_s29 + $0x21] sm:$0xff]  ;;  %11565 = vmatmul.mubr.msk.f32.vlgmr.msra.gmra.mrb[0].mxu1 %vm288_vm1, %v229_v9  ;;  %v5171_v13 = vld [vmem:[%s14139_s29 + $0x29] sm:$0xff]  ;;  %v5172_v15 = vld [vmem:[%s14139_s29 + $0x31] sm:$0xff] }
  0x15   : > { %11983 = vmatmul.mubr.msk.f32.vlgmr.msra.gmra.mrb[0].mxu0 %vm288_vm1, %v5170_v10  ;;  %11622 = vmatpush1.msk.msra.mxu1 %vm457_vm0, %v227_v7  ;;  %v232_v16 = vld [vmem:[%s14139_s29 + $0x19] sm:$0xff]  ;;  %v5174_v18 = vld [vmem:[%s14139_s29 + $0x41] sm:$0xff]  ;;  %v5175_v19 = vld [vmem:[%s14139_s29 + $0x49] sm:$0xff] }
  0x16   : > { %12042 = vmatpush1.msk.msra.mxu0 %vm457_vm0, %v12039_v8  ;;  %534 = vmatprep.mubr.f32.mxu1 %v14078_v6  ;;  %v5173_v17 = vld [vmem:[%s14139_s29 + $0x39] sm:$0xff]  ;;  %v5176_v20 = vld [vmem:[%s14139_s29 + $0x51] sm:$0xff]  ;;  %v5178_v22 = vld [vmem:[%s14139_s29 + $0x61] sm:$0xff] }
  0x17   : > { %5473 = vmatprep.mubr.f32.mxu0 %v14078_v6  ;;  %12101 = vmatprep.subr.msk.mxu0 %vm457_vm0, %v12100_v11  ;;  %v5177_v21 = vld [vmem:[%s14139_s29 + $0x59] sm:$0xff]  ;;  %v5179_v23 = vld [vmem:[%s14139_s29 + $0x69] sm:$0xff]  ;;  %v5180_v24 = vld [vmem:[%s14139_s29 + $0x71] sm:$0xff] }
  0x18   : > { %11566 = vmatmul.mubr.msk.f32.gmra.mrb[2].mxu1 %vm288_vm1, %v230_v12  ;;  %v5181_v25 = vld [vmem:[%s14139_s29 + $0x79] sm:$0xff]  ;;  %v5182_v26 = vld [vmem:[%s14139_s29 + $0x81] sm:$0xff]  ;;  %v5183_v27 = vld [vmem:[%s14139_s29 + $0x89] sm:$0xff]  ;;  %11681 = vmatprep.subr.msk.mxu1 %vm457_vm0, %v11680_v39 }
  0x19   : > { %11984 = vmatmul.mubr.msk.f32.gmra.mrb[2].mxu0 %vm288_vm1, %v5171_v13  ;;  %540 = vmatprep.mubr.f32.mxu1 %v14078_v6  ;;  %v5184_v28 = vld [vmem:[%s14139_s29 + $0x91] sm:$0xff]  ;;  %v5185_v29 = vld [vmem:[%s14139_s29 + $0x99] sm:$0xff]  ;;  %v5186_v30 = vld [vmem:[%s14139_s29 + $0xa1] sm:$0xff] }
  0x1a   : > { %5479 = vmatprep.mubr.f32.mxu0 %v14078_v6  ;;  %v5187_v31 = vld [vmem:[%s14139_s29 + $0xa9] sm:$0xff]  ;;  %v5188_v32 = vld [vmem:[%s14139_s29 + $0xb1] sm:$0xff]  ;;  %v5189_v33 = vld [vmem:[%s14139_s29 + $0xb9] sm:$0xff] }
  0x1b   : > { %v5190_v34 = vld [vmem:[%s14139_s29 + $0xc1] sm:$0xff]  ;;  %v5191_v35 = vld [vmem:[%s14139_s29 + $0xc9] sm:$0xff]  ;;  %v5192_v36 = vld [vmem:[%s14139_s29 + $0xd1] sm:$0xff] }
  0x1c   : > { %11567 = vmatmul.mubr.msk.f32.gmra.mrb[4].mxu1 %vm288_vm1, %v231_v14  ;;  %v5193_v37 = vld [vmem:[%s14139_s29 + $0xd9] sm:$0xff]  ;;  %v5194_v38 = vld [vmem:[%s14139_s29 + $0xe1] sm:$0xff]  ;;  %v5195_v40 = vld [vmem:[%s14139_s29 + $0xe9] sm:$0xff] }
  0x1d   : > { %11985 = vmatmul.mubr.msk.f32.gmra.mrb[4].mxu0 %vm288_vm1, %v5172_v15  ;;  %546 = vmatprep.mubr.f32.mxu1 %v14078_v6  ;;  %v5196_v41 = vld [vmem:[%s14139_s29 + $0xf1] sm:$0xff]  ;;  %v5197_v42 = vld [vmem:[%s14139_s29 + $0xf9] sm:$0xff]  ;;  %v5916_v43 = vld [vmem:[%s14139_s29 + $0x22] sm:$0xff] }
  0x1e   : > { %5485 = vmatprep.mubr.f32.mxu0 %v14078_v6  ;;  %v5917_v45 = vld [vmem:[%s14139_s29 + $0x2a] sm:$0xff]  ;;  %v5918_v46 = vld [vmem:[%s14139_s29 + $0x32] sm:$0xff]  ;;  %v5919_v47 = vld [vmem:[%s14139_s29 + $0x3a] sm:$0xff] }
  0x1f   : > { %v261_v48 = vld [vmem:[%s14139_s29 + $0x101] sm:$0xff]  ;;  %v262_v50 = vld [vmem:[%s14139_s29 + $0x109] sm:$0xff]  ;;  %v263_v52 = vld [vmem:[%s14139_s29 + $0x111] sm:$0xff] }
  0x20   : > { %11568 = vmatmul.mubr.msk.f32.gmra.mrb[6].mxu1 %vm288_vm1, %v232_v16  ;;  %v5920_v49 = vld [vmem:[%s14139_s29 + $0x42] sm:$0xff]  ;;  %v5921_v51 = vld [vmem:[%s14139_s29 + $0x4a] sm:$0xff]  ;;  %v5922_v53 = vld [vmem:[%s14139_s29 + $0x52] sm:$0xff] }
  0x21   : > { %11986 = vmatmul.mubr.msk.f32.gmra.mrb[6].mxu0 %vm288_vm1, %v5173_v17  ;;  %552 = vmatprep.mubr.f32.mxu1 %v14078_v6  ;;  %v264_v54 = vld [vmem:[%s14139_s29 + $0x119] sm:$0xff]  ;;  %v265_v56 = vld [vmem:[%s14139_s29 + $0x121] sm:$0xff]  ;;  %v266_v58 = vld [vmem:[%s14139_s29 + $0x129] sm:$0xff] }
  0x22   : > { %5491 = vmatprep.mubr.f32.mxu0 %v14078_v6  ;;  %v5923_v55 = vld [vmem:[%s14139_s29 + $0x5a] sm:$0xff]  ;;  %v5924_v57 = vld [vmem:[%s14139_s29 + $0x62] sm:$0xff]  ;;  %v5925_v59 = vld [vmem:[%s14139_s29 + $0x6a] sm:$0xff] }
  0x23   : > { %v267_v60 = vld [vmem:[%s14139_s29 + $0x131] sm:$0xff]  ;;  %v268_v62 = vld [vmem:[%s14139_s29 + $0x139] sm:$0xff]  ;;  %v269_v0 = vld [vmem:[%s14139_s29 + $0x141] sm:$0xff] }
  0x24   : > { %11569 = vmatmul.mubr.msk.f32.gmra.mrb[8].mxu1 %vm288_vm1, %v5170_v10  ;;  %v5926_v61 = vld [vmem:[%s14139_s29 + $0x72] sm:$0xff]  ;;  %v5927_v63 = vld [vmem:[%s14139_s29 + $0x7a] sm:$0xff]  ;;  %v5928_v1 = vld [vmem:[%s14139_s29 + $0x82] sm:$0xff] }
  0x25   : > { %11987 = vmatmul.mubr.msk.f32.gmra.mrb[8].mxu0 %vm288_vm1, %v5174_v18  ;;  %558 = vmatprep.mubr.f32.mxu1 %v14078_v6  ;;  %v270_v2 = vld [vmem:[%s14139_s29 + $0x149] sm:$0xff]  ;;  %v271_v4 = vld [vmem:[%s14139_s29 + $0x151] sm:$0xff]  ;;  %v272_v7 = vld [vmem:[%s14139_s29 + $0x159] sm:$0xff] }
  0x26   : > { %5497 = vmatprep.mubr.f32.mxu0 %v14078_v6  ;;  %v5929_v3 = vld [vmem:[%s14139_s29 + $0x8a] sm:$0xff]  ;;  %v5930_v5 = vld [vmem:[%s14139_s29 + $0x92] sm:$0xff]  ;;  %v5931_v8 = vld [vmem:[%s14139_s29 + $0x9a] sm:$0xff] }
  0x27   : > { %v273_v9 = vld [vmem:[%s14139_s29 + $0x161] sm:$0xff]  ;;  %v274_v11 = vld [vmem:[%s14139_s29 + $0x169] sm:$0xff]  ;;  %v5934_v14 = vld [vmem:[%s14139_s29 + $0xb2] sm:$0xff] }
  0x28   : > { %11570 = vmatmul.mubr.msk.f32.gmra.mrb[10].mxu1 %vm288_vm1, %v5171_v13  ;;  %v5932_v10 = vld [vmem:[%s14139_s29 + $0xa2] sm:$0xff]  ;;  %v5933_v12 = vld [vmem:[%s14139_s29 + $0xaa] sm:$0xff]  ;;  %v5935_v16 = vld [vmem:[%s14139_s29 + $0xba] sm:$0xff] }
  0x29   : > { %11988 = vmatmul.mubr.msk.f32.gmra.mrb[10].mxu0 %vm288_vm1, %v5175_v19  ;;  %564 = vmatprep.mubr.f32.mxu1 %v14078_v6  ;;  %v275_v13 = vld [vmem:[%s14139_s29 + $0x171] sm:$0xff] }
  0x2a   : > { %5503 = vmatprep.mubr.f32.mxu0 %v14078_v6  ;;  %v173_v39 = vld [vmem:[%s14139_s29 + $0x10] sm:$0xff] }
  0x2c   : > { %11571 = vmatmul.mubr.msk.f32.gmra.mrb[12].mxu1 %vm288_vm1, %v5172_v15  ;;  %v276_v15 = vld [vmem:[%s14139_s29 + $0x179] sm:$0xff] }
  0x2d   : > { %11989 = vmatmul.mubr.msk.f32.gmra.mrb[12].mxu0 %vm288_vm1, %v5176_v20  ;;  %570 = vmatprep.mubr.f32.mxu1 %v14078_v6 }
  0x2e   : > { %5509 = vmatprep.mubr.f32.mxu0 %v14078_v6 }
  0x30   : > { %11572 = vmatmul.mubr.msk.f32.gmra.mrb[14].mxu1 %vm288_vm1, %v5173_v17  ;;  %v277_v17 = vld [vmem:[%s14139_s29 + $0x181] sm:$0xff] }
  0x31   : > { %11990 = vmatmul.mubr.msk.f32.gmra.mrb[14].mxu0 %vm288_vm1, %v5177_v21  ;;  %576 = vmatprep.mubr.f32.mxu1 %v14078_v6 }
  0x32   : > { %5515 = vmatprep.mubr.f32.mxu0 %v14078_v6 }
  0x34   : > { %11573 = vmatmul.mubr.msk.f32.gmra.mrb[16].mxu1 %vm288_vm1, %v5174_v18  ;;  %v5936_v18 = vld [vmem:[%s14139_s29 + $0xc2] sm:$0xff] }
  0x35   : > { %11991 = vmatmul.mubr.msk.f32.gmra.mrb[16].mxu0 %vm288_vm1, %v5178_v22  ;;  %582 = vmatprep.mubr.f32.mxu1 %v14078_v6 }
  0x36   : > { %5521 = vmatprep.mubr.f32.mxu0 %v14078_v6 }
  0x38   : > { %11574 = vmatmul.mubr.msk.f32.gmra.mrb[18].mxu1 %vm288_vm1, %v5175_v19  ;;  %v278_v19 = vld [vmem:[%s14139_s29 + $0x189] sm:$0xff] }
  0x39   : > { %11992 = vmatmul.mubr.msk.f32.gmra.mrb[18].mxu0 %vm288_vm1, %v5179_v23  ;;  %588 = vmatprep.mubr.f32.mxu1 %v14078_v6 }
  0x3a   : > { %5527 = vmatprep.mubr.f32.mxu0 %v14078_v6 }
  0x3c   : > { %11575 = vmatmul.mubr.msk.f32.gmra.mrb[20].mxu1 %vm288_vm1, %v5176_v20  ;;  %v5937_v20 = vld [vmem:[%s14139_s29 + $0xca] sm:$0xff] }
  0x3d   : > { %11993 = vmatmul.mubr.msk.f32.gmra.mrb[20].mxu0 %vm288_vm1, %v5180_v24  ;;  %594 = vmatprep.mubr.f32.mxu1 %v14078_v6 }
  0x3e   : > { %5533 = vmatprep.mubr.f32.mxu0 %v14078_v6 }
  0x40   : > { %11576 = vmatmul.mubr.msk.f32.gmra.mrb[22].mxu1 %vm288_vm1, %v5177_v21  ;;  %v279_v21 = vld [vmem:[%s14139_s29 + $0x191] sm:$0xff] }
  0x41   : > { %11994 = vmatmul.mubr.msk.f32.gmra.mrb[22].mxu0 %vm288_vm1, %v5181_v25  ;;  %600 = vmatprep.mubr.f32.mxu1 %v14078_v6 }
  0x42   : > { %5539 = vmatprep.mubr.f32.mxu0 %v14078_v6 }
  0x44   : > { %11577 = vmatmul.mubr.msk.f32.gmra.mrb[24].mxu1 %vm288_vm1, %v5178_v22  ;;  %v5938_v22 = vld [vmem:[%s14139_s29 + $0xd2] sm:$0xff] }
  0x45   : > { %11995 = vmatmul.mubr.msk.f32.gmra.mrb[24].mxu0 %vm288_vm1, %v5182_v26  ;;  %606 = vmatprep.mubr.f32.mxu1 %v14078_v6 }
  0x46   : > { %5545 = vmatprep.mubr.f32.mxu0 %v14078_v6 }
  0x48   : > { %11578 = vmatmul.mubr.msk.f32.gmra.mrb[26].mxu1 %vm288_vm1, %v5179_v23  ;;  %v280_v23 = vld [vmem:[%s14139_s29 + $0x199] sm:$0xff] }
  0x49   : > { %11996 = vmatmul.mubr.msk.f32.gmra.mrb[26].mxu0 %vm288_vm1, %v5183_v27  ;;  %612 = vmatprep.mubr.f32.mxu1 %v14078_v6 }
  0x4a   : > { %5551 = vmatprep.mubr.f32.mxu0 %v14078_v6 }
  0x4c   : > { %11579 = vmatmul.mubr.msk.f32.gmra.mrb[28].mxu1 %vm288_vm1, %v5180_v24  ;;  %v5939_v24 = vld [vmem:[%s14139_s29 + $0xda] sm:$0xff] }
  0x4d   : > { %11997 = vmatmul.mubr.msk.f32.gmra.mrb[28].mxu0 %vm288_vm1, %v5184_v28  ;;  %618 = vmatprep.mubr.f32.mxu1 %v14078_v6 }
  0x4e   : > { %5557 = vmatprep.mubr.f32.mxu0 %v14078_v6 }
  0x50   : > { %11580 = vmatmul.mubr.msk.f32.gmra.mrb[30].mxu1 %vm288_vm1, %v5181_v25  ;;  %v281_v25 = vld [vmem:[%s14139_s29 + $0x1a1] sm:$0xff] }
  0x51   : > { %11998 = vmatmul.mubr.msk.f32.gmra.mrb[30].mxu0 %vm288_vm1, %v5185_v29  ;;  %624 = vmatprep.mubr.f32.mxu1 %v14078_v6 }
  0x52   : > { %5563 = vmatprep.mubr.f32.mxu0 %v14078_v6 }
  0x54   : > { %11581 = vmatmul.mubr.msk.f32.gmra.mrb[32].mxu1 %vm288_vm1, %v5182_v26  ;;  %v5940_v26 = vld [vmem:[%s14139_s29 + $0xe2] sm:$0xff] }
  0x55   : > { %11999 = vmatmul.mubr.msk.f32.gmra.mrb[32].mxu0 %vm288_vm1, %v5186_v30  ;;  %630 = vmatprep.mubr.f32.mxu1 %v14078_v6 }
  0x56   : > { %5569 = vmatprep.mubr.f32.mxu0 %v14078_v6 }
  0x58   : > { %11582 = vmatmul.mubr.msk.f32.gmra.mrb[34].mxu1 %vm288_vm1, %v5183_v27  ;;  %v12160_v27 = vld [vmem:[%s17801_s1 + $0xa8] sm:$0x3f] }
  0x59   : > { %12000 = vmatmul.mubr.msk.f32.gmra.mrb[34].mxu0 %vm288_vm1, %v5187_v31  ;;  %636 = vmatprep.mubr.f32.mxu1 %v14078_v6 }
  0x5a   : > { %5575 = vmatprep.mubr.f32.mxu0 %v14078_v6 }
  0x5c   : > { %11583 = vmatmul.mubr.msk.f32.gmra.mrb[36].mxu1 %vm288_vm1, %v5184_v28  ;;  %v282_v28 = vld [vmem:[%s14139_s29 + $0x1a9] sm:$0xff] }
  0x5d   : > { %12001 = vmatmul.mubr.msk.f32.gmra.mrb[36].mxu0 %vm288_vm1, %v5188_v32  ;;  %642 = vmatprep.mubr.f32.mxu1 %v14078_v6 }
  0x5e   : > { %5581 = vmatprep.mubr.f32.mxu0 %v14078_v6 }
  0x60   : > { %11584 = vmatmul.mubr.msk.f32.gmra.mrb[38].mxu1 %vm288_vm1, %v5185_v29  ;;  %v5941_v29 = vld [vmem:[%s14139_s29 + $0xea] sm:$0xff] }
  0x61   : > { %12002 = vmatmul.mubr.msk.f32.gmra.mrb[38].mxu0 %vm288_vm1, %v5189_v33  ;;  %648 = vmatprep.mubr.f32.mxu1 %v14078_v6 }
  0x62   : > { %5587 = vmatprep.mubr.f32.mxu0 %v14078_v6 }
  0x64   : > { %11585 = vmatmul.mubr.msk.f32.gmra.mrb[40].mxu1 %vm288_vm1, %v5186_v30  ;;  %v283_v30 = vld [vmem:[%s14139_s29 + $0x1b1] sm:$0xff] }
  0x65   : > { %12003 = vmatmul.mubr.msk.f32.gmra.mrb[40].mxu0 %vm288_vm1, %v5190_v34  ;;  %654 = vmatprep.mubr.f32.mxu1 %v14078_v6 }
  0x66   : > { %5593 = vmatprep.mubr.f32.mxu0 %v14078_v6 }
  0x68   : > { %11586 = vmatmul.mubr.msk.f32.gmra.mrb[42].mxu1 %vm288_vm1, %v5187_v31  ;;  %v5942_v31 = vld [vmem:[%s14139_s29 + $0xf2] sm:$0xff] }
  0x69   : > { %12004 = vmatmul.mubr.msk.f32.gmra.mrb[42].mxu0 %vm288_vm1, %v5191_v35  ;;  %660 = vmatprep.mubr.f32.mxu1 %v14078_v6 }
  0x6a   : > { %5599 = vmatprep.mubr.f32.mxu0 %v14078_v6 }
  0x6c   : > { %11587 = vmatmul.mubr.msk.f32.gmra.mrb[44].mxu1 %vm288_vm1, %v5188_v32  ;;  %v284_v32 = vld [vmem:[%s14139_s29 + $0x1b9] sm:$0xff] }
  0x6d   : > { %12005 = vmatmul.mubr.msk.f32.gmra.mrb[44].mxu0 %vm288_vm1, %v5192_v36  ;;  %666 = vmatprep.mubr.f32.mxu1 %v14078_v6 }
  0x6e   : > { %5605 = vmatprep.mubr.f32.mxu0 %v14078_v6 }
  0x70   : > { %11588 = vmatmul.mubr.msk.f32.gmra.mrb[46].mxu1 %vm288_vm1, %v5189_v33  ;;  %v5943_v33 = vld [vmem:[%s14139_s29 + $0xfa] sm:$0xff] }
  0x71   : > { %12006 = vmatmul.mubr.msk.f32.gmra.mrb[46].mxu0 %vm288_vm1, %v5193_v37  ;;  %672 = vmatprep.mubr.f32.mxu1 %v14078_v6 }
  0x72   : > { %5611 = vmatprep.mubr.f32.mxu0 %v14078_v6 }
  0x74   : > { %11589 = vmatmul.mubr.msk.f32.gmra.mrb[48].mxu1 %vm288_vm1, %v5190_v34  ;;  %v171_v34 = vld [vmem:[%s14139_s29] sm:$0xff] }
  0x75   : > { %12007 = vmatmul.mubr.msk.f32.gmra.mrb[48].mxu0 %vm288_vm1, %v5194_v38  ;;  %678 = vmatprep.mubr.f32.mxu1 %v14078_v6 }
  0x76   : > { %5617 = vmatprep.mubr.f32.mxu0 %v14078_v6 }
  0x78   : > { %11590 = vmatmul.mubr.msk.f32.gmra.mrb[50].mxu1 %vm288_vm1, %v5191_v35  ;;  %v5944_v35 = vld [vmem:[%s14139_s29 + $0x102] sm:$0xff] }
  0x79   : > { %12008 = vmatmul.mubr.msk.f32.gmra.mrb[50].mxu0 %vm288_vm1, %v5195_v40  ;;  %684 = vmatprep.mubr.f32.mxu1 %v14078_v6 }
  0x7a   : > { %5623 = vmatprep.mubr.f32.mxu0 %v14078_v6 }
  0x7c   : > { %11591 = vmatmul.mubr.msk.f32.gmra.mrb[52].mxu1 %vm288_vm1, %v5192_v36  ;;  %v11679_v36 = vld [vmem:[%s17801_s1 + $0x20] sm:$0x3f] }
  0x7d   : > { %12009 = vmatmul.mubr.msk.f32.gmra.mrb[52].mxu0 %vm288_vm1, %v5196_v41  ;;  %690 = vmatprep.mubr.f32.mxu1 %v14078_v6 }
  0x7e   : > { %5629 = vmatprep.mubr.f32.mxu0 %v14078_v6 }
  0x80   : > { %11592 = vmatmul.mubr.msk.f32.gmra.mrb[54].mxu1 %vm288_vm1, %v5193_v37  ;;  %v172_v37 = vld [vmem:[%s14139_s29 + $0x8] sm:$0xff] }
  0x81   : > { %12010 = vmatmul.mubr.msk.f32.gmra.mrb[54].mxu0 %vm288_vm1, %v5197_v42  ;;  %696 = vmatprep.mubr.f32.mxu1 %v14078_v6 }
  0x82   : > { %6213 = vmatprep.mubr.f32.mxu0 %v14078_v6 }
  0x84   : > { %11593 = vmatmul.mubr.msk.f32.gmra.mrb[56].mxu1 %vm288_vm1, %v5194_v38  ;;  %v5945_v38 = vld [vmem:[%s14139_s29 + $0x10a] sm:$0xff] }
  0x85   : > { %12043 = vmatmul.mubr.msk.f32.vlgmr.msra.gmra.mrb[0].mxu0 %vm288_vm1, %v5916_v43  ;;  %702 = vmatprep.mubr.f32.mxu1 %v14078_v6  ;;  %v175_v43 = vld [vmem:[%s14139_s29 + $0x20] sm:$0xff] }
  0x86   : > { %12102 = vmatpush1.msk.msra.mxu0 %vm457_vm0, %v12099_v44  ;;  %6219 = vmatprep.mubr.f32.mxu0 %v14078_v6  ;;  %v5948_v44 = vld [vmem:[%s14139_s29 + $0x122] sm:$0xff] }
  0x87   : > { %12161 = vmatprep.subr.msk.mxu0 %vm457_vm0, %v12160_v27  ;;  %v14707_v27 = vld [vmem:[%s14139_s29 + $0xd8] sm:$0xff] }
  0x88   : > { %11594 = vmatmul.mubr.msk.f32.gmra.mrb[58].mxu1 %vm288_vm1, %v5195_v40  ;;  %v5946_v40 = vld [vmem:[%s14139_s29 + $0x112] sm:$0xff] }
  0x89   : > { %12044 = vmatmul.mubr.msk.f32.gmra.mrb[2].mxu0 %vm288_vm1, %v5917_v45  ;;  %708 = vmatprep.mubr.f32.mxu1 %v14078_v6  ;;  %v176_v45 = vld [vmem:[%s14139_s29 + $0x28] sm:$0xff] }
  0x8a   : > { %6225 = vmatprep.mubr.f32.mxu0 %v14078_v6 }
  0x8c   : > { %11595 = vmatmul.mubr.msk.f32.gmra.mrb[60].mxu1 %vm288_vm1, %v5196_v41  ;;  %v174_v41 = vld [vmem:[%s14139_s29 + $0x18] sm:$0xff] }
  0x8d   : > { %12045 = vmatmul.mubr.msk.f32.gmra.mrb[4].mxu0 %vm288_vm1, %v5918_v46  ;;  %714 = vmatprep.mubr.f32.mxu1 %v14078_v6  ;;  %v5949_v46 = vld [vmem:[%s14139_s29 + $0x12a] sm:$0xff] }
  0x8e   : > { %6231 = vmatprep.mubr.f32.mxu0 %v14078_v6 }
  0x90   : > { %11596 = vmatmul.mubr.msk.f32.gmra.mrb[62].mxu1 %vm288_vm1, %v5197_v42  ;;  %v5947_v42 = vld [vmem:[%s14139_s29 + $0x11a] sm:$0xff] }
  0x91   : > { %12046 = vmatmul.mubr.msk.f32.gmra.mrb[6].mxu0 %vm288_vm1, %v5919_v47  ;;  %720 = vmatprep.mubr.f32.mxu1 %v14078_v6  ;;  %v14514_v47 = vld [vmem:[%s14139_s29 + $0x30] sm:$0xff] }
  0x92   : > { %6237 = vmatprep.mubr.f32.mxu0 %v14078_v6 }
  0x94   : > { %11597 = vmatmul.mubr.msk.f32.gmra.mrb[64].mxu1 %vm288_vm1, %v261_v48  ;;  %v5950_v48 = vld [vmem:[%s14139_s29 + $0x132] sm:$0xff] }
  0x95   : > { %12047 = vmatmul.mubr.msk.f32.gmra.mrb[8].mxu0 %vm288_vm1, %v5920_v49  ;;  %726 = vmatprep.mubr.f32.mxu1 %v14078_v6  ;;  %v14523_v49 = vld [vmem:[%s14139_s29 + $0x38] sm:$0xff] }
  0x96   : > { %6243 = vmatprep.mubr.f32.mxu0 %v14078_v6 }
  0x98   : > { %11598 = vmatmul.mubr.msk.f32.gmra.mrb[66].mxu1 %vm288_vm1, %v262_v50  ;;  %v5951_v50 = vld [vmem:[%s14139_s29 + $0x13a] sm:$0xff] }
  0x99   : > { %12048 = vmatmul.mubr.msk.f32.gmra.mrb[10].mxu0 %vm288_vm1, %v5921_v51  ;;  %732 = vmatprep.mubr.f32.mxu1 %v14078_v6  ;;  %v14532_v51 = vld [vmem:[%s14139_s29 + $0x40] sm:$0xff] }
  0x9a   : > { %6249 = vmatprep.mubr.f32.mxu0 %v14078_v6 }
  0x9c   : > { %11599 = vmatmul.mubr.msk.f32.gmra.mrb[68].mxu1 %vm288_vm1, %v263_v52  ;;  %v5952_v52 = vld [vmem:[%s14139_s29 + $0x142] sm:$0xff] }
  0x9d   : > { %12049 = vmatmul.mubr.msk.f32.gmra.mrb[12].mxu0 %vm288_vm1, %v5922_v53  ;;  %738 = vmatprep.mubr.f32.mxu1 %v14078_v6  ;;  %v14541_v53 = vld [vmem:[%s14139_s29 + $0x48] sm:$0xff] }
  0x9e   : > { %6255 = vmatprep.mubr.f32.mxu0 %v14078_v6 }
  0xa0   : > { %11600 = vmatmul.mubr.msk.f32.gmra.mrb[70].mxu1 %vm288_vm1, %v264_v54  ;;  %v5953_v54 = vld [vmem:[%s14139_s29 + $0x14a] sm:$0xff] }
  0xa1   : > { %12050 = vmatmul.mubr.msk.f32.gmra.mrb[14].mxu0 %vm288_vm1, %v5923_v55  ;;  %744 = vmatprep.mubr.f32.mxu1 %v14078_v6  ;;  %v14550_v55 = vld [vmem:[%s14139_s29 + $0x50] sm:$0xff] }
  0xa2   : > { %6261 = vmatprep.mubr.f32.mxu0 %v14078_v6 }
  0xa4   : > { %11601 = vmatmul.mubr.msk.f32.gmra.mrb[72].mxu1 %vm288_vm1, %v265_v56  ;;  %v5954_v56 = vld [vmem:[%s14139_s29 + $0x152] sm:$0xff] }
  0xa5   : > { %12051 = vmatmul.mubr.msk.f32.gmra.mrb[16].mxu0 %vm288_vm1, %v5924_v57  ;;  %750 = vmatprep.mubr.f32.mxu1 %v14078_v6  ;;  %v14559_v57 = vld [vmem:[%s14139_s29 + $0x58] sm:$0xff] }
  0xa6   : > { %6267 = vmatprep.mubr.f32.mxu0 %v14078_v6 }
  0xa8   : > { %11602 = vmatmul.mubr.msk.f32.gmra.mrb[74].mxu1 %vm288_vm1, %v266_v58  ;;  %v5955_v58 = vld [vmem:[%s14139_s29 + $0x15a] sm:$0xff] }
  0xa9   : > { %12052 = vmatmul.mubr.msk.f32.gmra.mrb[18].mxu0 %vm288_vm1, %v5925_v59  ;;  %756 = vmatprep.mubr.f32.mxu1 %v14078_v6  ;;  %v14568_v59 = vld [vmem:[%s14139_s29 + $0x60] sm:$0xff] }
  0xaa   : > { %6273 = vmatprep.mubr.f32.mxu0 %v14078_v6 }
  0xac   : > { %11603 = vmatmul.mubr.msk.f32.gmra.mrb[76].mxu1 %vm288_vm1, %v267_v60  ;;  %v5956_v60 = vld [vmem:[%s14139_s29 + $0x162] sm:$0xff] }
  0xad   : > { %12053 = vmatmul.mubr.msk.f32.gmra.mrb[20].mxu0 %vm288_vm1, %v5926_v61  ;;  %762 = vmatprep.mubr.f32.mxu1 %v14078_v6  ;;  %v14577_v61 = vld [vmem:[%s14139_s29 + $0x68] sm:$0xff] }
  0xae   : > { %6279 = vmatprep.mubr.f32.mxu0 %v14078_v6 }
  0xb0   : > { %11604 = vmatmul.mubr.msk.f32.gmra.mrb[78].mxu1 %vm288_vm1, %v268_v62  ;;  %v5957_v62 = vld [vmem:[%s14139_s29 + $0x16a] sm:$0xff] }
  0xb1   : > { %12054 = vmatmul.mubr.msk.f32.gmra.mrb[22].mxu0 %vm288_vm1, %v5927_v63  ;;  %768 = vmatprep.mubr.f32.mxu1 %v14078_v6  ;;  %v14586_v63 = vld [vmem:[%s14139_s29 + $0x70] sm:$0xff] }
  0xb2   : > { %6285 = vmatprep.mubr.f32.mxu0 %v14078_v6 }
  0xb4   : > { %11605 = vmatmul.mubr.msk.f32.gmra.mrb[80].mxu1 %vm288_vm1, %v269_v0  ;;  %v5958_v0 = vld [vmem:[%s14139_s29 + $0x172] sm:$0xff] }
  0xb5   : > { %12055 = vmatmul.mubr.msk.f32.gmra.mrb[24].mxu0 %vm288_vm1, %v5928_v1  ;;  %774 = vmatprep.mubr.f32.mxu1 %v14078_v6  ;;  %v14595_v1 = vld [vmem:[%s14139_s29 + $0x78] sm:$0xff] }
  0xb6   : > { %6291 = vmatprep.mubr.f32.mxu0 %v14078_v6 }
  0xb8   : > { %11606 = vmatmul.mubr.msk.f32.gmra.mrb[82].mxu1 %vm288_vm1, %v270_v2  ;;  %v5959_v2 = vld [vmem:[%s14139_s29 + $0x17a] sm:$0xff] }
  0xb9   : > { %12056 = vmatmul.mubr.msk.f32.gmra.mrb[26].mxu0 %vm288_vm1, %v5929_v3  ;;  %780 = vmatprep.mubr.f32.mxu1 %v14078_v6  ;;  %v14604_v3 = vld [vmem:[%s14139_s29 + $0x80] sm:$0xff] }
  0xba   : > { %6297 = vmatprep.mubr.f32.mxu0 %v14078_v6 }
  0xbc   : > { %11607 = vmatmul.mubr.msk.f32.gmra.mrb[84].mxu1 %vm288_vm1, %v271_v4  ;;  %v5960_v4 = vld [vmem:[%s14139_s29 + $0x182] sm:$0xff] }
  0xbd   : > { %12057 = vmatmul.mubr.msk.f32.gmra.mrb[28].mxu0 %vm288_vm1, %v5930_v5  ;;  %786 = vmatprep.mubr.f32.mxu1 %v14078_v6  ;;  %v14613_v5 = vld [vmem:[%s14139_s29 + $0x88] sm:$0xff] }
  0xbe   : > { %6303 = vmatprep.mubr.f32.mxu0 %v14078_v6 }
  0xc0   : > { %11608 = vmatmul.mubr.msk.f32.gmra.mrb[86].mxu1 %vm288_vm1, %v272_v7  ;;  %v5961_v7 = vld [vmem:[%s14139_s29 + $0x18a] sm:$0xff] }
  0xc1   : > { %12058 = vmatmul.mubr.msk.f32.gmra.mrb[30].mxu0 %vm288_vm1, %v5931_v8  ;;  %792 = vmatprep.mubr.f32.mxu1 %v14078_v6  ;;  %v14622_v8 = vld [vmem:[%s14139_s29 + $0x90] sm:$0xff] }
  0xc2   : > { %6309 = vmatprep.mubr.f32.mxu0 %v14078_v6 }
  0xc4   : > { %11609 = vmatmul.mubr.msk.f32.gmra.mrb[88].mxu1 %vm288_vm1, %v273_v9  ;;  %v5962_v9 = vld [vmem:[%s14139_s29 + $0x192] sm:$0xff] }
  0xc5   : > { %12059 = vmatmul.mubr.msk.f32.gmra.mrb[32].mxu0 %vm288_vm1, %v5932_v10  ;;  %798 = vmatprep.mubr.f32.mxu1 %v14078_v6  ;;  %v14631_v10 = vld [vmem:[%s14139_s29 + $0x98] sm:$0xff] }
  0xc6   : > { %6315 = vmatprep.mubr.f32.mxu0 %v14078_v6 }
  0xc8   : > { %11610 = vmatmul.mubr.msk.f32.gmra.mrb[90].mxu1 %vm288_vm1, %v274_v11  ;;  %v5963_v11 = vld [vmem:[%s14139_s29 + $0x19a] sm:$0xff] }
  0xc9   : > { %12060 = vmatmul.mubr.msk.f32.gmra.mrb[34].mxu0 %vm288_vm1, %v5933_v12  ;;  %804 = vmatprep.mubr.f32.mxu1 %v14078_v6  ;;  %v14640_v12 = vld [vmem:[%s14139_s29 + $0xa0] sm:$0xff] }
  0xca   : > { %6321 = vmatprep.mubr.f32.mxu0 %v14078_v6 }
  0xcc   : > { %11611 = vmatmul.mubr.msk.f32.gmra.mrb[92].mxu1 %vm288_vm1, %v275_v13  ;;  %v5964_v13 = vld [vmem:[%s14139_s29 + $0x1a2] sm:$0xff] }
  0xcd   : > { %12061 = vmatmul.mubr.msk.f32.gmra.mrb[36].mxu0 %vm288_vm1, %v5934_v14  ;;  %810 = vmatprep.mubr.f32.mxu1 %v14078_v6  ;;  %v14649_v14 = vld [vmem:[%s14139_s29 + $0xa8] sm:$0xff] }
  0xce   : > { %6327 = vmatprep.mubr.f32.mxu0 %v14078_v6 }
  0xd0   : > { %11612 = vmatmul.mubr.msk.f32.gmra.mrb[94].mxu1 %vm288_vm1, %v276_v15  ;;  %v5965_v15 = vld [vmem:[%s14139_s29 + $0x1aa] sm:$0xff] }
  0xd1   : > { %12062 = vmatmul.mubr.msk.f32.gmra.mrb[38].mxu0 %vm288_vm1, %v5935_v16  ;;  %816 = vmatprep.mubr.f32.mxu1 %v14078_v6  ;;  %v14658_v16 = vld [vmem:[%s14139_s29 + $0xb0] sm:$0xff] }
  0xd2   : > { %6333 = vmatprep.mubr.f32.mxu0 %v14078_v6 }
  0xd4   : > { %11613 = vmatmul.mubr.msk.f32.gmra.mrb[96].mxu1 %vm288_vm1, %v277_v17  ;;  %v5966_v17 = vld [vmem:[%s14139_s29 + $0x1b2] sm:$0xff] }
  0xd5   : > { %12063 = vmatmul.mubr.msk.f32.gmra.mrb[40].mxu0 %vm288_vm1, %v5936_v18  ;;  %822 = vmatprep.mubr.f32.mxu1 %v14078_v6  ;;  %v14667_v18 = vld [vmem:[%s14139_s29 + $0xb8] sm:$0xff] }
  0xd6   : > { %6339 = vmatprep.mubr.f32.mxu0 %v14078_v6 }
  0xd8   : > { %11614 = vmatmul.mubr.msk.f32.gmra.mrb[98].mxu1 %vm288_vm1, %v278_v19  ;;  %v5967_v19 = vld [vmem:[%s14139_s29 + $0x1ba] sm:$0xff] }
  0xd9   : > { %12064 = vmatmul.mubr.msk.f32.gmra.mrb[42].mxu0 %vm288_vm1, %v5937_v20  ;;  %828 = vmatprep.mubr.f32.mxu1 %v14078_v6  ;;  %v14676_v20 = vld [vmem:[%s14139_s29 + $0xc0] sm:$0xff] }
  0xda   : > { %6345 = vmatprep.mubr.f32.mxu0 %v14078_v6 }
  0xdc   : > { %11615 = vmatmul.mubr.msk.f32.gmra.mrb[100].mxu1 %vm288_vm1, %v279_v21  ;;  %v5968_v21 = vld [vmem:[%s14139_s29 + $0x1c2] sm:$0xff] }
  0xdd   : > { %12065 = vmatmul.mubr.msk.f32.gmra.mrb[44].mxu0 %vm288_vm1, %v5938_v22  ;;  %834 = vmatprep.mubr.f32.mxu1 %v14078_v6  ;;  %v11740_v22 = vld [vmem:[%s17801_s1 + $0x38] sm:$0x3f] }
  0xde   : > { %6351 = vmatprep.mubr.f32.mxu0 %v14078_v6 }
  0xe0   : > { %11616 = vmatmul.mubr.msk.f32.gmra.mrb[102].mxu1 %vm288_vm1, %v280_v23  ;;  %v14689_v23 = vld [vmem:[%s14139_s29 + $0xc8] sm:$0xff] }
  0xe1   : > { %12066 = vmatmul.mubr.msk.f32.gmra.mrb[46].mxu0 %vm288_vm1, %v5939_v24  ;;  %840 = vmatprep.mubr.f32.mxu1 %v14078_v6  ;;  %v5969_v24 = vld [vmem:[%s14139_s29 + $0x1ca] sm:$0xff] }
  0xe2   : > { %6357 = vmatprep.mubr.f32.mxu0 %v14078_v6 }
  0xe4   : > { %11617 = vmatmul.mubr.msk.f32.gmra.mrb[104].mxu1 %vm288_vm1, %v281_v25  ;;  %v14698_v25 = vld [vmem:[%s14139_s29 + $0xd0] sm:$0xff] }
  0xe5   : > { %12067 = vmatmul.mubr.msk.f32.gmra.mrb[48].mxu0 %vm288_vm1, %v5940_v26  ;;  %846 = vmatprep.mubr.f32.mxu1 %v14078_v6  ;;  %v5970_v26 = vld [vmem:[%s14139_s29 + $0x1d2] sm:$0xff] }
  0xe6   : > { %6363 = vmatprep.mubr.f32.mxu0 %v14078_v6 }
  0xe8   : > { %11618 = vmatmul.mubr.msk.f32.gmra.mrb[106].mxu1 %vm288_vm1, %v282_v28  ;;  %v5971_v28 = vld [vmem:[%s14139_s29 + $0x1da] sm:$0xff] }
  0xe9   : > { %12068 = vmatmul.mubr.msk.f32.gmra.mrb[50].mxu0 %vm288_vm1, %v5941_v29  ;;  %852 = vmatprep.mubr.f32.mxu1 %v14078_v6  ;;  %v14716_v29 = vld [vmem:[%s14139_s29 + $0xe0] sm:$0xff] }
  0xea   : > { %6369 = vmatprep.mubr.f32.mxu0 %v14078_v6 }
  0xec   : > { %11619 = vmatmul.mubr.msk.f32.gmra.mrb[108].mxu1 %vm288_vm1, %v283_v30  ;;  %v12159_v30 = vld [vmem:[%s17801_s1 + $0xa0] sm:$0x3f] }
  0xed   : > { %12069 = vmatmul.mubr.msk.f32.gmra.mrb[52].mxu0 %vm288_vm1, %v5942_v31  ;;  %858 = vmatprep.mubr.f32.mxu1 %v14078_v6  ;;  %v14728_v31 = vld [vmem:[%s14139_s29 + $0xe8] sm:$0xff] }
  0xee   : > { %6375 = vmatprep.mubr.f32.mxu0 %v14078_v6 }
  0xf0   : > { %11620 = vmatmul.mubr.msk.f32.gmra.mrb[110].mxu1 %vm288_vm1, %v284_v32  ;;  %v14738_v32 = vld [vmem:[%s14139_s29 + $0xf0] sm:$0xff] }
  0xf1   : > { %12070 = vmatmul.mubr.msk.f32.gmra.mrb[54].mxu0 %vm288_vm1, %v5943_v33  ;;  %1103 = vmatprep.mubr.f32.mxu1 %v14078_v6  ;;  %v14747_v33 = vld [vmem:[%s14139_s29 + $0xf8] sm:$0xff] }
  0xf2   : > { %6381 = vmatprep.mubr.f32.mxu0 %v14078_v6 }
  0xf4   : > { %11623 = vmatmul.mubr.msk.f32.vlgmr.msra.gmra.mrb[0].mxu1 %vm288_vm1, %v171_v34  ;;  %v14756_v34 = vld [vmem:[%s14139_s29 + $0x100] sm:$0xff] }
  0xf5   : > { %12071 = vmatmul.mubr.msk.f32.gmra.mrb[56].mxu0 %vm288_vm1, %v5944_v35  ;;  %11682 = vmatpush1.msk.msra.mxu1 %vm457_vm0, %v11679_v36  ;;  %v14765_v35 = vld [vmem:[%s14139_s29 + $0x108] sm:$0xff]  ;;  %v14774_v36 = vld [vmem:[%s14139_s29 + $0x110] sm:$0xff] }
  0xf6   : > { %1109 = vmatprep.mubr.f32.mxu1 %v14078_v6  ;;  %6387 = vmatprep.mubr.f32.mxu0 %v14078_v6 }
  0xf7   : > { %11741 = vmatprep.subr.msk.mxu1 %vm457_vm0, %v11740_v22  ;;  %v6713_v22 = vld [vmem:[%s14139_s29 + $0x1c8] sm:$0xff] }
  0xf8   : > { %11624 = vmatmul.mubr.msk.f32.gmra.mrb[2].mxu1 %vm288_vm1, %v172_v37  ;;  %v14783_v37 = vld [vmem:[%s14139_s29 + $0x118] sm:$0xff] }
  0xf9   : > { %12072 = vmatmul.mubr.msk.f32.gmra.mrb[58].mxu0 %vm288_vm1, %v5945_v38  ;;  %1115 = vmatprep.mubr.f32.mxu1 %v14078_v6  ;;  %v14792_v38 = vld [vmem:[%s14139_s29 + $0x120] sm:$0xff] }
  0xfa   : > { %6393 = vmatprep.mubr.f32.mxu0 %v14078_v6 }
  0xfc   : > { %11625 = vmatmul.mubr.msk.f32.gmra.mrb[4].mxu1 %vm288_vm1, %v173_v39  ;;  %v14801_v39 = vld [vmem:[%s14139_s29 + $0x128] sm:$0xff] }
  0xfd   : > { %12073 = vmatmul.mubr.msk.f32.gmra.mrb[60].mxu0 %vm288_vm1, %v5946_v40  ;;  %1121 = vmatprep.mubr.f32.mxu1 %v14078_v6  ;;  %v14810_v40 = vld [vmem:[%s14139_s29 + $0x130] sm:$0xff] }
  0xfe   : > { %6399 = vmatprep.mubr.f32.mxu0 %v14078_v6 }
 0x100   : > { %11626 = vmatmul.mubr.msk.f32.gmra.mrb[6].mxu1 %vm288_vm1, %v174_v41  ;;  %v14819_v41 = vld [vmem:[%s14139_s29 + $0x138] sm:$0xff] }
 0x101   : > { %12074 = vmatmul.mubr.msk.f32.gmra.mrb[62].mxu0 %vm288_vm1, %v5947_v42  ;;  %1127 = vmatprep.mubr.f32.mxu1 %v14078_v6  ;;  %v14828_v42 = vld [vmem:[%s14139_s29 + $0x140] sm:$0xff] }
 0x102   : > { %6405 = vmatprep.mubr.f32.mxu0 %v14078_v6 }
 0x104   : > { %11627 = vmatmul.mubr.msk.f32.gmra.mrb[8].mxu1 %vm288_vm1, %v175_v43  ;;  %v14837_v43 = vld [vmem:[%s14139_s29 + $0x148] sm:$0xff] }
 0x105   : > { %12075 = vmatmul.mubr.msk.f32.gmra.mrb[64].mxu0 %vm288_vm1, %v5948_v44  ;;  %1133 = vmatprep.mubr.f32.mxu1 %v14078_v6  ;;  %v14846_v44 = vld [vmem:[%s14139_s29 + $0x150] sm:$0xff] }
 0x106   : > { %6411 = vmatprep.mubr.f32.mxu0 %v14078_v6 }
 0x108   : > { %11628 = vmatmul.mubr.msk.f32.gmra.mrb[10].mxu1 %vm288_vm1, %v176_v45  ;;  %v14855_v45 = vld [vmem:[%s14139_s29 + $0x158] sm:$0xff] }
 0x109   : > { %12076 = vmatmul.mubr.msk.f32.gmra.mrb[66].mxu0 %vm288_vm1, %v5949_v46  ;;  %1139 = vmatprep.mubr.f32.mxu1 %v14078_v6  ;;  %v14864_v46 = vld [vmem:[%s14139_s29 + $0x160] sm:$0xff] }
 0x10a   : > { %6417 = vmatprep.mubr.f32.mxu0 %v14078_v6 }
 0x10c   : > { %11629 = vmatmul.mubr.msk.f32.gmra.mrb[12].mxu1 %vm288_vm1, %v14514_v47 }
 0x10d   : > { %12077 = vmatmul.mubr.msk.f32.gmra.mrb[68].mxu0 %vm288_vm1, %v5950_v48  ;;  %1145 = vmatprep.mubr.f32.mxu1 %v14078_v6  ;;  %v14882_v48 = vld [vmem:[%s14139_s29 + $0x170] sm:$0xff] }
 0x10e   : > { %6423 = vmatprep.mubr.f32.mxu0 %v14078_v6 }
 0x110   : > { %11630 = vmatmul.mubr.msk.f32.gmra.mrb[14].mxu1 %vm288_vm1, %v14523_v49 }
 0x111   : > { %12078 = vmatmul.mubr.msk.f32.gmra.mrb[70].mxu0 %vm288_vm1, %v5951_v50  ;;  %1151 = vmatprep.mubr.f32.mxu1 %v14078_v6  ;;  %v14900_v50 = vld [vmem:[%s14139_s29 + $0x180] sm:$0xff] }
 0x112   : > { %6429 = vmatprep.mubr.f32.mxu0 %v14078_v6 }
 0x114   : > { %11631 = vmatmul.mubr.msk.f32.gmra.mrb[16].mxu1 %vm288_vm1, %v14532_v51 }
 0x115   : > { %12079 = vmatmul.mubr.msk.f32.gmra.mrb[72].mxu0 %vm288_vm1, %v5952_v52  ;;  %1157 = vmatprep.mubr.f32.mxu1 %v14078_v6  ;;  %v14918_v52 = vld [vmem:[%s14139_s29 + $0x190] sm:$0xff] }
 0x116   : > { %6435 = vmatprep.mubr.f32.mxu0 %v14078_v6 }
 0x118   : > { %11632 = vmatmul.mubr.msk.f32.gmra.mrb[18].mxu1 %vm288_vm1, %v14541_v53 }
 0x119   : > { %12080 = vmatmul.mubr.msk.f32.gmra.mrb[74].mxu0 %vm288_vm1, %v5953_v54  ;;  %1163 = vmatprep.mubr.f32.mxu1 %v14078_v6  ;;  %v14936_v54 = vld [vmem:[%s14139_s29 + $0x1a0] sm:$0xff] }
 0x11a   : > { %6441 = vmatprep.mubr.f32.mxu0 %v14078_v6 }
 0x11c   : > { %11633 = vmatmul.mubr.msk.f32.gmra.mrb[20].mxu1 %vm288_vm1, %v14550_v55 }
 0x11d   : > { %12081 = vmatmul.mubr.msk.f32.gmra.mrb[76].mxu0 %vm288_vm1, %v5954_v56  ;;  %1169 = vmatprep.mubr.f32.mxu1 %v14078_v6  ;;  %v14949_v56 = vld [vmem:[%s14139_s29 + $0x1a8] sm:$0xff] }
 0x11e   : > { %6447 = vmatprep.mubr.f32.mxu0 %v14078_v6 }
 0x120   : > { %11634 = vmatmul.mubr.msk.f32.gmra.mrb[22].mxu1 %vm288_vm1, %v14559_v57 }
 0x121   : > { %12082 = vmatmul.mubr.msk.f32.gmra.mrb[78].mxu0 %vm288_vm1, %v5955_v58  ;;  %1175 = vmatprep.mubr.f32.mxu1 %v14078_v6  ;;  %v14967_v58 = vld [vmem:[%s14139_s29 + $0x1b8] sm:$0xff] }
 0x122   : > { %6453 = vmatprep.mubr.f32.mxu0 %v14078_v6 }
 0x124   : > { %11635 = vmatmul.mubr.msk.f32.gmra.mrb[24].mxu1 %vm288_vm1, %v14568_v59 }
 0x125   : > { %12083 = vmatmul.mubr.msk.f32.gmra.mrb[80].mxu0 %vm288_vm1, %v5956_v60  ;;  %1181 = vmatprep.mubr.f32.mxu1 %v14078_v6  ;;  %v11739_v60 = vld [vmem:[%s17801_s1 + $0x30] sm:$0x3f] }
 0x126   : > { %6459 = vmatprep.mubr.f32.mxu0 %v14078_v6 }
 0x128   : > { %11636 = vmatmul.mubr.msk.f32.gmra.mrb[26].mxu1 %vm288_vm1, %v14577_v61 }
 0x129   : > { %12084 = vmatmul.mubr.msk.f32.gmra.mrb[82].mxu0 %vm288_vm1, %v5957_v62  ;;  %1187 = vmatprep.mubr.f32.mxu1 %v14078_v6  ;;  %v1442_v62 = vld [vmem:[%s14139_s29 + $0x12] sm:$0xff] }
 0x12a   : > { %6465 = vmatprep.mubr.f32.mxu0 %v14078_v6 }
 0x12c   : > { %11637 = vmatmul.mubr.msk.f32.gmra.mrb[28].mxu1 %vm288_vm1, %v14586_v63 }
 0x12d   : > { %12085 = vmatmul.mubr.msk.f32.gmra.mrb[84].mxu0 %vm288_vm1, %v5958_v0  ;;  %1193 = vmatprep.mubr.f32.mxu1 %v14078_v6  ;;  %v1444_v0 = vld [vmem:[%s14139_s29 + $0x22] sm:$0xff] }
 0x12e   : > { %6471 = vmatprep.mubr.f32.mxu0 %v14078_v6 }
 0x130   : > { %11638 = vmatmul.mubr.msk.f32.gmra.mrb[30].mxu1 %vm288_vm1, %v14595_v1 }
 0x131   : > { %12086 = vmatmul.mubr.msk.f32.gmra.mrb[86].mxu0 %vm288_vm1, %v5959_v2  ;;  %1199 = vmatprep.mubr.f32.mxu1 %v14078_v6  ;;  %v15016_v2 = vld [vmem:[%s14139_s29 + $0x32] sm:$0xff] }
 0x132   : > { %6477 = vmatprep.mubr.f32.mxu0 %v14078_v6 }
 0x134   : > { %11639 = vmatmul.mubr.msk.f32.gmra.mrb[32].mxu1 %vm288_vm1, %v14604_v3 }
 0x135   : > { %12087 = vmatmul.mubr.msk.f32.gmra.mrb[88].mxu0 %vm288_vm1, %v5960_v4  ;;  %1205 = vmatprep.mubr.f32.mxu1 %v14078_v6  ;;  %v15034_v4 = vld [vmem:[%s14139_s29 + $0x42] sm:$0xff] }
 0x136   : > { %6483 = vmatprep.mubr.f32.mxu0 %v14078_v6 }
 0x138   : > { %11640 = vmatmul.mubr.msk.f32.gmra.mrb[34].mxu1 %vm288_vm1, %v14613_v5 }
 0x139   : > { %12088 = vmatmul.mubr.msk.f32.gmra.mrb[90].mxu0 %vm288_vm1, %v5961_v7  ;;  %1211 = vmatprep.mubr.f32.mxu1 %v14078_v6  ;;  %v15052_v7 = vld [vmem:[%s14139_s29 + $0x52] sm:$0xff] }
 0x13a   : > { %6489 = vmatprep.mubr.f32.mxu0 %v14078_v6 }
 0x13c   : > { %11641 = vmatmul.mubr.msk.f32.gmra.mrb[36].mxu1 %vm288_vm1, %v14622_v8 }
 0x13d   : > { %12089 = vmatmul.mubr.msk.f32.gmra.mrb[92].mxu0 %vm288_vm1, %v5962_v9  ;;  %1217 = vmatprep.mubr.f32.mxu1 %v14078_v6  ;;  %v15070_v9 = vld [vmem:[%s14139_s29 + $0x62] sm:$0xff] }
 0x13e   : > { %6495 = vmatprep.mubr.f32.mxu0 %v14078_v6 }
 0x140   : > { %11642 = vmatmul.mubr.msk.f32.gmra.mrb[38].mxu1 %vm288_vm1, %v14631_v10 }
 0x141   : > { %12090 = vmatmul.mubr.msk.f32.gmra.mrb[94].mxu0 %vm288_vm1, %v5963_v11  ;;  %1223 = vmatprep.mubr.f32.mxu1 %v14078_v6  ;;  %v15088_v11 = vld [vmem:[%s14139_s29 + $0x72] sm:$0xff] }
 0x142   : > { %6501 = vmatprep.mubr.f32.mxu0 %v14078_v6 }
 0x144   : > { %11643 = vmatmul.mubr.msk.f32.gmra.mrb[40].mxu1 %vm288_vm1, %v14640_v12 }
 0x145   : > { %12091 = vmatmul.mubr.msk.f32.gmra.mrb[96].mxu0 %vm288_vm1, %v5964_v13  ;;  %1229 = vmatprep.mubr.f32.mxu1 %v14078_v6  ;;  %v15106_v13 = vld [vmem:[%s14139_s29 + $0x82] sm:$0xff] }
 0x146   : > { %6507 = vmatprep.mubr.f32.mxu0 %v14078_v6 }
 0x148   : > { %11644 = vmatmul.mubr.msk.f32.gmra.mrb[42].mxu1 %vm288_vm1, %v14649_v14 }
 0x149   : > { %12092 = vmatmul.mubr.msk.f32.gmra.mrb[98].mxu0 %vm288_vm1, %v5965_v15  ;;  %1235 = vmatprep.mubr.f32.mxu1 %v14078_v6  ;;  %v15124_v15 = vld [vmem:[%s14139_s29 + $0x92] sm:$0xff] }
 0x14a   : > { %6513 = vmatprep.mubr.f32.mxu0 %v14078_v6 }
 0x14c   : > { %11645 = vmatmul.mubr.msk.f32.gmra.mrb[44].mxu1 %vm288_vm1, %v14658_v16 }
 0x14d   : > { %12093 = vmatmul.mubr.msk.f32.gmra.mrb[100].mxu0 %vm288_vm1, %v5966_v17  ;;  %1241 = vmatprep.mubr.f32.mxu1 %v14078_v6  ;;  %v15142_v17 = vld [vmem:[%s14139_s29 + $0xa2] sm:$0xff] }
 0x14e   : > { %6519 = vmatprep.mubr.f32.mxu0 %v14078_v6 }
 0x150   : > { %11646 = vmatmul.mubr.msk.f32.gmra.mrb[46].mxu1 %vm288_vm1, %v14667_v18 }
 0x151   : > { %12094 = vmatmul.mubr.msk.f32.gmra.mrb[102].mxu0 %vm288_vm1, %v5967_v19  ;;  %1247 = vmatprep.mubr.f32.mxu1 %v14078_v6  ;;  %v15160_v19 = vld [vmem:[%s14139_s29 + $0xb2] sm:$0xff] }
 0x152   : > { %6525 = vmatprep.mubr.f32.mxu0 %v14078_v6 }
 0x154   : > { %11647 = vmatmul.mubr.msk.f32.gmra.mrb[48].mxu1 %vm288_vm1, %v14676_v20 }
 0x155   : > { %12095 = vmatmul.mubr.msk.f32.gmra.mrb[104].mxu0 %vm288_vm1, %v5968_v21  ;;  %1253 = vmatprep.mubr.f32.mxu1 %v14078_v6  ;;  %v15169_v21 = vld [vmem:[%s14139_s29 + $0xba] sm:$0xff] }
 0x156   : > { %6531 = vmatprep.mubr.f32.mxu0 %v14078_v6 }
 0x158   : > { %11648 = vmatmul.mubr.msk.f32.gmra.mrb[50].mxu1 %vm288_vm1, %v14689_v23 }
 0x159   : > { %12096 = vmatmul.mubr.msk.f32.gmra.mrb[106].mxu0 %vm288_vm1, %v5969_v24  ;;  %1259 = vmatprep.mubr.f32.mxu1 %v14078_v6  ;;  %v6714_v24 = vld [vmem:[%s14139_s29 + $0x1d0] sm:$0xff] }
 0x15a   : > { %6537 = vmatprep.mubr.f32.mxu0 %v14078_v6 }
 0x15c   : > { %11649 = vmatmul.mubr.msk.f32.gmra.mrb[52].mxu1 %vm288_vm1, %v14698_v25 }
 0x15d   : > { %12097 = vmatmul.mubr.msk.f32.gmra.mrb[108].mxu0 %vm288_vm1, %v5970_v26  ;;  %1265 = vmatprep.mubr.f32.mxu1 %v14078_v6  ;;  %v15191_v26 = vld [vmem:[%s14139_s29 + $0xca] sm:$0xff] }
 0x15e   : > { %6543 = vmatprep.mubr.f32.mxu0 %v14078_v6 }
 0x160   : > { %11650 = vmatmul.mubr.msk.f32.gmra.mrb[54].mxu1 %vm288_vm1, %v14707_v27 }
 0x161   : > { %12098 = vmatmul.mubr.msk.f32.gmra.mrb[110].mxu0 %vm288_vm1, %v5971_v28  ;;  %1271 = vmatprep.mubr.f32.mxu1 %v14078_v6  ;;  %v15200_v28 = vld [vmem:[%s14139_s29 + $0xd2] sm:$0xff] }
 0x162   : > { %6959 = vmatprep.mubr.f32.mxu0 %v14078_v6 }
 0x164   : > { %11651 = vmatmul.mubr.msk.f32.gmra.mrb[56].mxu1 %vm288_vm1, %v14716_v29 }
 0x165   : > { %12103 = vmatmul.mubr.msk.f32.vlgmr.msra.gmra.mrb[0].mxu0 %vm288_vm1, %v14514_v47  ;;  %1277 = vmatprep.mubr.f32.mxu1 %v14078_v6  ;;  %v14873_v47 = vld [vmem:[%s14139_s29 + $0x168] sm:$0xff] }
 0x166   : > { %12162 = vmatpush1.msk.msra.mxu0 %vm457_vm0, %v12159_v30  ;;  %6965 = vmatprep.mubr.f32.mxu0 %v14078_v6  ;;  %v15209_v30 = vld [vmem:[%s14139_s29 + $0xda] sm:$0xff] }
 0x168   : > { %11652 = vmatmul.mubr.msk.f32.gmra.mrb[58].mxu1 %vm288_vm1, %v14728_v31 }
 0x169   : > { %12104 = vmatmul.mubr.msk.f32.gmra.mrb[2].mxu0 %vm288_vm1, %v14523_v49  ;;  %1283 = vmatprep.mubr.f32.mxu1 %v14078_v6  ;;  %v14891_v49 = vld [vmem:[%s14139_s29 + $0x178] sm:$0xff] }
 0x16a   : > { %6971 = vmatprep.mubr.f32.mxu0 %v14078_v6 }
 0x16c   : > { %11653 = vmatmul.mubr.msk.f32.gmra.mrb[60].mxu1 %vm288_vm1, %v14738_v32 }
 0x16d   : > { %12105 = vmatmul.mubr.msk.f32.gmra.mrb[4].mxu0 %vm288_vm1, %v14532_v51  ;;  %1289 = vmatprep.mubr.f32.mxu1 %v14078_v6  ;;  %v14909_v51 = vld [vmem:[%s14139_s29 + $0x188] sm:$0xff] }
 0x16e   : > { %6977 = vmatprep.mubr.f32.mxu0 %v14078_v6 }
 0x170   : > { %11654 = vmatmul.mubr.msk.f32.gmra.mrb[62].mxu1 %vm288_vm1, %v14747_v33 }
 0x171   : > { %12106 = vmatmul.mubr.msk.f32.gmra.mrb[6].mxu0 %vm288_vm1, %v14541_v53  ;;  %1295 = vmatprep.mubr.f32.mxu1 %v14078_v6  ;;  %v14927_v53 = vld [vmem:[%s14139_s29 + $0x198] sm:$0xff] }
 0x172   : > { %6983 = vmatprep.mubr.f32.mxu0 %v14078_v6 }
 0x174   : > { %11655 = vmatmul.mubr.msk.f32.gmra.mrb[64].mxu1 %vm288_vm1, %v14756_v34 }
 0x175   : > { %12107 = vmatmul.mubr.msk.f32.gmra.mrb[8].mxu0 %vm288_vm1, %v14550_v55  ;;  %1301 = vmatprep.mubr.f32.mxu1 %v14078_v6  ;;  %v12220_v55 = vld [vmem:[%s17801_s1 + $0xb8] sm:$0x3f] }
 0x176   : > { %6989 = vmatprep.mubr.f32.mxu0 %v14078_v6  ;;  %12221 = vmatprep.subr.msk.mxu0 %vm457_vm0, %v12220_v55  ;;  %v15321_v55 = vld [vmem:[%s14139_s29 + $0x13a] sm:$0xff] }
 0x178   : > { %11656 = vmatmul.mubr.msk.f32.gmra.mrb[66].mxu1 %vm288_vm1, %v14765_v35 }
 0x179   : > { %12108 = vmatmul.mubr.msk.f32.gmra.mrb[10].mxu0 %vm288_vm1, %v14559_v57  ;;  %1307 = vmatprep.mubr.f32.mxu1 %v14078_v6  ;;  %v14958_v57 = vld [vmem:[%s14139_s29 + $0x1b0] sm:$0xff] }
 0x17a   : > { %6995 = vmatprep.mubr.f32.mxu0 %v14078_v6 }
 0x17c   : > { %11657 = vmatmul.mubr.msk.f32.gmra.mrb[68].mxu1 %vm288_vm1, %v14774_v36 }
 0x17d   : > { %12109 = vmatmul.mubr.msk.f32.gmra.mrb[12].mxu0 %vm288_vm1, %v14568_v59  ;;  %1313 = vmatprep.mubr.f32.mxu1 %v14078_v6  ;;  %v1440_v59 = vld [vmem:[%s14139_s29 + $0x2] sm:$0xff] }
 0x17e   : > { %7001 = vmatprep.mubr.f32.mxu0 %v14078_v6 }
 0x180   : > { %11658 = vmatmul.mubr.msk.f32.gmra.mrb[70].mxu1 %vm288_vm1, %v14783_v37 }
 0x181   : > { %12110 = vmatmul.mubr.msk.f32.gmra.mrb[14].mxu0 %vm288_vm1, %v14577_v61  ;;  %1319 = vmatprep.mubr.f32.mxu1 %v14078_v6  ;;  %v1441_v61 = vld [vmem:[%s14139_s29 + $0xa] sm:$0xff] }
 0x182   : > { %7007 = vmatprep.mubr.f32.mxu0 %v14078_v6 }
 0x184   : > { %11659 = vmatmul.mubr.msk.f32.gmra.mrb[72].mxu1 %vm288_vm1, %v14792_v38 }
 0x185   : > { %12111 = vmatmul.mubr.msk.f32.gmra.mrb[16].mxu0 %vm288_vm1, %v14586_v63  ;;  %1325 = vmatprep.mubr.f32.mxu1 %v14078_v6  ;;  %v1443_v63 = vld [vmem:[%s14139_s29 + $0x1a] sm:$0xff] }
 0x186   : > { %7013 = vmatprep.mubr.f32.mxu0 %v14078_v6 }
 0x188   : > { %11660 = vmatmul.mubr.msk.f32.gmra.mrb[74].mxu1 %vm288_vm1, %v14801_v39 }
 0x189   : > { %12112 = vmatmul.mubr.msk.f32.gmra.mrb[18].mxu0 %vm288_vm1, %v14595_v1  ;;  %1331 = vmatprep.mubr.f32.mxu1 %v14078_v6  ;;  %v1445_v1 = vld [vmem:[%s14139_s29 + $0x2a] sm:$0xff] }
 0x18a   : > { %7019 = vmatprep.mubr.f32.mxu0 %v14078_v6 }
 0x18c   : > { %11661 = vmatmul.mubr.msk.f32.gmra.mrb[76].mxu1 %vm288_vm1, %v14810_v40 }
 0x18d   : > { %12113 = vmatmul.mubr.msk.f32.gmra.mrb[20].mxu0 %vm288_vm1, %v14604_v3  ;;  %1337 = vmatprep.mubr.f32.mxu1 %v14078_v6  ;;  %v15025_v3 = vld [vmem:[%s14139_s29 + $0x3a] sm:$0xff] }
 0x18e   : > { %7025 = vmatprep.mubr.f32.mxu0 %v14078_v6 }
 0x190   : > { %11662 = vmatmul.mubr.msk.f32.gmra.mrb[78].mxu1 %vm288_vm1, %v14819_v41 }
 0x191   : > { %12114 = vmatmul.mubr.msk.f32.gmra.mrb[22].mxu0 %vm288_vm1, %v14613_v5  ;;  %1343 = vmatprep.mubr.f32.mxu1 %v14078_v6  ;;  %v15043_v5 = vld [vmem:[%s14139_s29 + $0x4a] sm:$0xff] }
 0x192   : > { %7031 = vmatprep.mubr.f32.mxu0 %v14078_v6 }
 0x194   : > { %11663 = vmatmul.mubr.msk.f32.gmra.mrb[80].mxu1 %vm288_vm1, %v14828_v42 }
 0x195   : > { %12115 = vmatmul.mubr.msk.f32.gmra.mrb[24].mxu0 %vm288_vm1, %v14622_v8  ;;  %1349 = vmatprep.mubr.f32.mxu1 %v14078_v6  ;;  %v15061_v8 = vld [vmem:[%s14139_s29 + $0x5a] sm:$0xff] }
 0x196   : > { %7037 = vmatprep.mubr.f32.mxu0 %v14078_v6 }
 0x198   : > { %11664 = vmatmul.mubr.msk.f32.gmra.mrb[82].mxu1 %vm288_vm1, %v14837_v43 }
 0x199   : > { %12116 = vmatmul.mubr.msk.f32.gmra.mrb[26].mxu0 %vm288_vm1, %v14631_v10  ;;  %1355 = vmatprep.mubr.f32.mxu1 %v14078_v6  ;;  %v15079_v10 = vld [vmem:[%s14139_s29 + $0x6a] sm:$0xff] }
 0x19a   : > { %7043 = vmatprep.mubr.f32.mxu0 %v14078_v6 }
 0x19c   : > { %11665 = vmatmul.mubr.msk.f32.gmra.mrb[84].mxu1 %vm288_vm1, %v14846_v44 }
 0x19d   : > { %12117 = vmatmul.mubr.msk.f32.gmra.mrb[28].mxu0 %vm288_vm1, %v14640_v12  ;;  %1361 = vmatprep.mubr.f32.mxu1 %v14078_v6  ;;  %v15097_v12 = vld [vmem:[%s14139_s29 + $0x7a] sm:$0xff] }
 0x19e   : > { %7049 = vmatprep.mubr.f32.mxu0 %v14078_v6 }
 0x1a0   : > { %11666 = vmatmul.mubr.msk.f32.gmra.mrb[86].mxu1 %vm288_vm1, %v14855_v45 }
 0x1a1   : > { %12118 = vmatmul.mubr.msk.f32.gmra.mrb[30].mxu0 %vm288_vm1, %v14649_v14  ;;  %1367 = vmatprep.mubr.f32.mxu1 %v14078_v6  ;;  %v15115_v14 = vld [vmem:[%s14139_s29 + $0x8a] sm:$0xff] }
 0x1a2   : > { %7055 = vmatprep.mubr.f32.mxu0 %v14078_v6 }
 0x1a4   : > { %11667 = vmatmul.mubr.msk.f32.gmra.mrb[88].mxu1 %vm288_vm1, %v14864_v46 }
 0x1a5   : > { %12119 = vmatmul.mubr.msk.f32.gmra.mrb[32].mxu0 %vm288_vm1, %v14658_v16  ;;  %1373 = vmatprep.mubr.f32.mxu1 %v14078_v6  ;;  %v15133_v16 = vld [vmem:[%s14139_s29 + $0x9a] sm:$0xff] }
 0x1a6   : > { %7061 = vmatprep.mubr.f32.mxu0 %v14078_v6 }
 0x1a8   : > { %11668 = vmatmul.mubr.msk.f32.gmra.mrb[90].mxu1 %vm288_vm1, %v14873_v47 }
 0x1a9   : > { %12120 = vmatmul.mubr.msk.f32.gmra.mrb[34].mxu0 %vm288_vm1, %v14667_v18  ;;  %1379 = vmatprep.mubr.f32.mxu1 %v14078_v6  ;;  %v15151_v18 = vld [vmem:[%s14139_s29 + $0xaa] sm:$0xff] }
 0x1aa   : > { %7067 = vmatprep.mubr.f32.mxu0 %v14078_v6 }
 0x1ac   : > { %11669 = vmatmul.mubr.msk.f32.gmra.mrb[92].mxu1 %vm288_vm1, %v14882_v48 }
 0x1ad   : > { %12121 = vmatmul.mubr.msk.f32.gmra.mrb[36].mxu0 %vm288_vm1, %v14676_v20  ;;  %1385 = vmatprep.mubr.f32.mxu1 %v14078_v6  ;;  %v6712_v20 = vld [vmem:[%s14139_s29 + $0x1c0] sm:$0xff] }
 0x1ae   : > { %7073 = vmatprep.mubr.f32.mxu0 %v14078_v6 }
 0x1b0   : > { %11670 = vmatmul.mubr.msk.f32.gmra.mrb[94].mxu1 %vm288_vm1, %v14891_v49 }
 0x1b1   : > { %12122 = vmatmul.mubr.msk.f32.gmra.mrb[38].mxu0 %vm288_vm1, %v14689_v23  ;;  %1391 = vmatprep.mubr.f32.mxu1 %v14078_v6  ;;  %v15178_v23 = vld [vmem:[%s14139_s29 + $0xc2] sm:$0xff] }
 0x1b2   : > { %7079 = vmatprep.mubr.f32.mxu0 %v14078_v6 }
 0x1b4   : > { %11671 = vmatmul.mubr.msk.f32.gmra.mrb[96].mxu1 %vm288_vm1, %v14900_v50 }
 0x1b5   : > { %12123 = vmatmul.mubr.msk.f32.gmra.mrb[40].mxu0 %vm288_vm1, %v14698_v25  ;;  %1397 = vmatprep.mubr.f32.mxu1 %v14078_v6  ;;  %v11800_v25 = vld [vmem:[%s17801_s1 + $0x48] sm:$0x3f] }
 0x1b6   : > { %7085 = vmatprep.mubr.f32.mxu0 %v14078_v6 }
 0x1b8   : > { %11672 = vmatmul.mubr.msk.f32.gmra.mrb[98].mxu1 %vm288_vm1, %v14909_v51 }
 0x1b9   : > { %12124 = vmatmul.mubr.msk.f32.gmra.mrb[42].mxu0 %vm288_vm1, %v14707_v27  ;;  %1403 = vmatprep.mubr.f32.mxu1 %v14078_v6  ;;  %v6715_v27 = vld [vmem:[%s14139_s29 + $0x1d8] sm:$0xff] }
 0x1ba   : > { %7091 = vmatprep.mubr.f32.mxu0 %v14078_v6 }
 0x1bc   : > { %11673 = vmatmul.mubr.msk.f32.gmra.mrb[100].mxu1 %vm288_vm1, %v14918_v52 }
 0x1bd   : > { %12125 = vmatmul.mubr.msk.f32.gmra.mrb[44].mxu0 %vm288_vm1, %v14716_v29  ;;  %1409 = vmatprep.mubr.f32.mxu1 %v14078_v6  ;;  %v6716_v29 = vld [vmem:[%s14139_s29 + $0x1e0] sm:$0xff] }
 0x1be   : > { %7097 = vmatprep.mubr.f32.mxu0 %v14078_v6 }
 0x1c0   : > { %11674 = vmatmul.mubr.msk.f32.gmra.mrb[102].mxu1 %vm288_vm1, %v14927_v53 }
 0x1c1   : > { %12126 = vmatmul.mubr.msk.f32.gmra.mrb[46].mxu0 %vm288_vm1, %v14728_v31  ;;  %1415 = vmatprep.mubr.f32.mxu1 %v14078_v6  ;;  %v6717_v31 = vld [vmem:[%s14139_s29 + $0x1e8] sm:$0xff] }
 0x1c2   : > { %7103 = vmatprep.mubr.f32.mxu0 %v14078_v6 }
 0x1c4   : > { %11675 = vmatmul.mubr.msk.f32.gmra.mrb[104].mxu1 %vm288_vm1, %v14936_v54 }
 0x1c5   : > { %12127 = vmatmul.mubr.msk.f32.gmra.mrb[48].mxu0 %vm288_vm1, %v14738_v32  ;;  %1421 = vmatprep.mubr.f32.mxu1 %v14078_v6  ;;  %v15218_v32 = vld [vmem:[%s14139_s29 + $0xe2] sm:$0xff] }
 0x1c6   : > { %7109 = vmatprep.mubr.f32.mxu0 %v14078_v6 }
 0x1c8   : > { %11676 = vmatmul.mubr.msk.f32.gmra.mrb[106].mxu1 %vm288_vm1, %v14949_v56 }
 0x1c9   : > { %12128 = vmatmul.mubr.msk.f32.gmra.mrb[50].mxu0 %vm288_vm1, %v14747_v33  ;;  %1427 = vmatprep.mubr.f32.mxu1 %v14078_v6  ;;  %v7408_v33 = vld [vmem:[%s14139_s29 + $0x31] sm:$0xff] }
 0x1ca   : > { %7115 = vmatprep.mubr.f32.mxu0 %v14078_v6 }
 0x1cc   : > { %11677 = vmatmul.mubr.msk.f32.gmra.mrb[108].mxu1 %vm288_vm1, %v14958_v57 }
 0x1cd   : > { %12129 = vmatmul.mubr.msk.f32.gmra.mrb[52].mxu0 %vm288_vm1, %v14756_v34  ;;  %1433 = vmatprep.mubr.f32.mxu1 %v14078_v6  ;;  %v12219_v34 = vld [vmem:[%s17801_s1 + $0xb0] sm:$0x3f] }
 0x1ce   : > { %7121 = vmatprep.mubr.f32.mxu0 %v14078_v6 }
 0x1d0   : > { %11678 = vmatmul.mubr.msk.f32.gmra.mrb[110].mxu1 %vm288_vm1, %v14967_v58 }
 0x1d1   : > { %12130 = vmatmul.mubr.msk.f32.gmra.mrb[54].mxu0 %vm288_vm1, %v14765_v35  ;;  %1737 = vmatprep.mubr.f32.mxu1 %v14078_v6  ;;  %v15230_v35 = vld [vmem:[%s14139_s29 + $0xea] sm:$0xff] }
 0x1d2   : > { %7127 = vmatprep.mubr.f32.mxu0 %v14078_v6 }
 0x1d4   : > { %11683 = vmatmul.mubr.msk.f32.vlgmr.msra.gmra.mrb[0].mxu1 %vm288_vm1, %v1440_v59  ;;  %v15339_v59 = vld [vmem:[%s14139_s29 + $0x14a] sm:$0xff] }
 0x1d5   : > { %12131 = vmatmul.mubr.msk.f32.gmra.mrb[56].mxu0 %vm288_vm1, %v14774_v36  ;;  %11742 = vmatpush1.msk.msra.mxu1 %vm457_vm0, %v11739_v60  ;;  %v7409_v36 = vld [vmem:[%s14139_s29 + $0x39] sm:$0xff] }
 0x1d6   : > { %1743 = vmatprep.mubr.f32.mxu1 %v14078_v6  ;;  %7133 = vmatprep.mubr.f32.mxu0 %v14078_v6  ;;  %v7421_v60 = vld [vmem:[%s14139_s29 + $0x99] sm:$0xff] }
 0x1d7   : > { %11801 = vmatprep.subr.msk.mxu1 %vm457_vm0, %v11800_v25  ;;  %v15384_v25 = vld [vmem:[%s14139_s29 + $0x172] sm:$0xff] }
 0x1d8   : > { %11684 = vmatmul.mubr.msk.f32.gmra.mrb[2].mxu1 %vm288_vm1, %v1441_v61  ;;  %v15348_v61 = vld [vmem:[%s14139_s29 + $0x152] sm:$0xff] }
 0x1d9   : > { %12132 = vmatmul.mubr.msk.f32.gmra.mrb[58].mxu0 %vm288_vm1, %v14783_v37  ;;  %1749 = vmatprep.mubr.f32.mxu1 %v14078_v6  ;;  %v15240_v37 = vld [vmem:[%s14139_s29 + $0xf2] sm:$0xff] }
 0x1da   : > { %7139 = vmatprep.mubr.f32.mxu0 %v14078_v6 }
 0x1dc   : > { %11685 = vmatmul.mubr.msk.f32.gmra.mrb[4].mxu1 %vm288_vm1, %v1442_v62  ;;  %v7422_v62 = vld [vmem:[%s14139_s29 + $0xa1] sm:$0xff] }
 0x1dd   : > { %12133 = vmatmul.mubr.msk.f32.gmra.mrb[60].mxu0 %vm288_vm1, %v14792_v38  ;;  %1755 = vmatprep.mubr.f32.mxu1 %v14078_v6  ;;  %v7410_v38 = vld [vmem:[%s14139_s29 + $0x41] sm:$0xff] }
 0x1de   : > { %7145 = vmatprep.mubr.f32.mxu0 %v14078_v6 }
 0x1e0   : > { %11686 = vmatmul.mubr.msk.f32.gmra.mrb[6].mxu1 %vm288_vm1, %v1443_v63  ;;  %v15357_v63 = vld [vmem:[%s14139_s29 + $0x15a] sm:$0xff] }
 0x1e1   : > { %12134 = vmatmul.mubr.msk.f32.gmra.mrb[62].mxu0 %vm288_vm1, %v14801_v39  ;;  %1761 = vmatprep.mubr.f32.mxu1 %v14078_v6  ;;  %v15249_v39 = vld [vmem:[%s14139_s29 + $0xfa] sm:$0xff] }
 0x1e2   : > { %7151 = vmatprep.mubr.f32.mxu0 %v14078_v6 }
 0x1e4   : > { %11687 = vmatmul.mubr.msk.f32.gmra.mrb[8].mxu1 %vm288_vm1, %v1444_v0  ;;  %v7423_v0 = vld [vmem:[%s14139_s29 + $0xa9] sm:$0xff] }
 0x1e5   : > { %12135 = vmatmul.mubr.msk.f32.gmra.mrb[64].mxu0 %vm288_vm1, %v14810_v40  ;;  %1767 = vmatprep.mubr.f32.mxu1 %v14078_v6  ;;  %v7411_v40 = vld [vmem:[%s14139_s29 + $0x49] sm:$0xff] }
 0x1e6   : > { %7157 = vmatprep.mubr.f32.mxu0 %v14078_v6 }
 0x1e8   : > { %11688 = vmatmul.mubr.msk.f32.gmra.mrb[10].mxu1 %vm288_vm1, %v1445_v1  ;;  %v15366_v1 = vld [vmem:[%s14139_s29 + $0x162] sm:$0xff] }
 0x1e9   : > { %12136 = vmatmul.mubr.msk.f32.gmra.mrb[66].mxu0 %vm288_vm1, %v14819_v41  ;;  %1773 = vmatprep.mubr.f32.mxu1 %v14078_v6  ;;  %v15258_v41 = vld [vmem:[%s14139_s29 + $0x102] sm:$0xff] }
 0x1ea   : > { %7163 = vmatprep.mubr.f32.mxu0 %v14078_v6 }
 0x1ec   : > { %11689 = vmatmul.mubr.msk.f32.gmra.mrb[12].mxu1 %vm288_vm1, %v15016_v2 }
 0x1ed   : > { %12137 = vmatmul.mubr.msk.f32.gmra.mrb[68].mxu0 %vm288_vm1, %v14828_v42  ;;  %1779 = vmatprep.mubr.f32.mxu1 %v14078_v6  ;;  %v7412_v42 = vld [vmem:[%s14139_s29 + $0x51] sm:$0xff] }
 0x1ee   : > { %7169 = vmatprep.mubr.f32.mxu0 %v14078_v6 }
 0x1f0   : > { %11690 = vmatmul.mubr.msk.f32.gmra.mrb[14].mxu1 %vm288_vm1, %v15025_v3 }
 0x1f1   : > { %12138 = vmatmul.mubr.msk.f32.gmra.mrb[70].mxu0 %vm288_vm1, %v14837_v43  ;;  %1785 = vmatprep.mubr.f32.mxu1 %v14078_v6  ;;  %v15267_v43 = vld [vmem:[%s14139_s29 + $0x10a] sm:$0xff] }
 0x1f2   : > { %7175 = vmatprep.mubr.f32.mxu0 %v14078_v6 }
 0x1f4   : > { %11691 = vmatmul.mubr.msk.f32.gmra.mrb[16].mxu1 %vm288_vm1, %v15034_v4 }
 0x1f5   : > { %12139 = vmatmul.mubr.msk.f32.gmra.mrb[72].mxu0 %vm288_vm1, %v14846_v44  ;;  %1791 = vmatprep.mubr.f32.mxu1 %v14078_v6  ;;  %v7413_v44 = vld [vmem:[%s14139_s29 + $0x59] sm:$0xff] }
 0x1f6   : > { %7181 = vmatprep.mubr.f32.mxu0 %v14078_v6 }
 0x1f8   : > { %11692 = vmatmul.mubr.msk.f32.gmra.mrb[18].mxu1 %vm288_vm1, %v15043_v5 }
 0x1f9   : > { %12140 = vmatmul.mubr.msk.f32.gmra.mrb[74].mxu0 %vm288_vm1, %v14855_v45  ;;  %1797 = vmatprep.mubr.f32.mxu1 %v14078_v6  ;;  %v15276_v45 = vld [vmem:[%s14139_s29 + $0x112] sm:$0xff] }
 0x1fa   : > { %7187 = vmatprep.mubr.f32.mxu0 %v14078_v6 }
 0x1fc   : > { %11693 = vmatmul.mubr.msk.f32.gmra.mrb[20].mxu1 %vm288_vm1, %v15052_v7 }
 0x1fd   : > { %12141 = vmatmul.mubr.msk.f32.gmra.mrb[76].mxu0 %vm288_vm1, %v14864_v46  ;;  %1803 = vmatprep.mubr.f32.mxu1 %v14078_v6  ;;  %v7414_v46 = vld [vmem:[%s14139_s29 + $0x61] sm:$0xff] }
 0x1fe   : > { %7193 = vmatprep.mubr.f32.mxu0 %v14078_v6 }
 0x200   : > { %11694 = vmatmul.mubr.msk.f32.gmra.mrb[22].mxu1 %vm288_vm1, %v15061_v8 }
 0x201   : > { %12142 = vmatmul.mubr.msk.f32.gmra.mrb[78].mxu0 %vm288_vm1, %v14873_v47  ;;  %1809 = vmatprep.mubr.f32.mxu1 %v14078_v6  ;;  %v15285_v47 = vld [vmem:[%s14139_s29 + $0x11a] sm:$0xff] }
 0x202   : > { %7199 = vmatprep.mubr.f32.mxu0 %v14078_v6 }
 0x204   : > { %11695 = vmatmul.mubr.msk.f32.gmra.mrb[24].mxu1 %vm288_vm1, %v15070_v9 }
 0x205   : > { %12143 = vmatmul.mubr.msk.f32.gmra.mrb[80].mxu0 %vm288_vm1, %v14882_v48  ;;  %1815 = vmatprep.mubr.f32.mxu1 %v14078_v6  ;;  %v7415_v48 = vld [vmem:[%s14139_s29 + $0x69] sm:$0xff] }
 0x206   : > { %7205 = vmatprep.mubr.f32.mxu0 %v14078_v6 }
 0x208   : > { %11696 = vmatmul.mubr.msk.f32.gmra.mrb[26].mxu1 %vm288_vm1, %v15079_v10 }
 0x209   : > { %12144 = vmatmul.mubr.msk.f32.gmra.mrb[82].mxu0 %vm288_vm1, %v14891_v49  ;;  %1821 = vmatprep.mubr.f32.mxu1 %v14078_v6  ;;  %v15294_v49 = vld [vmem:[%s14139_s29 + $0x122] sm:$0xff] }
 0x20a   : > { %7211 = vmatprep.mubr.f32.mxu0 %v14078_v6 }
 0x20c   : > { %11697 = vmatmul.mubr.msk.f32.gmra.mrb[28].mxu1 %vm288_vm1, %v15088_v11 }
 0x20d   : > { %12145 = vmatmul.mubr.msk.f32.gmra.mrb[84].mxu0 %vm288_vm1, %v14900_v50  ;;  %1827 = vmatprep.mubr.f32.mxu1 %v14078_v6  ;;  %v7416_v50 = vld [vmem:[%s14139_s29 + $0x71] sm:$0xff] }
 0x20e   : > { %7217 = vmatprep.mubr.f32.mxu0 %v14078_v6 }
 0x210   : > { %11698 = vmatmul.mubr.msk.f32.gmra.mrb[30].mxu1 %vm288_vm1, %v15097_v12 }
 0x211   : > { %12146 = vmatmul.mubr.msk.f32.gmra.mrb[86].mxu0 %vm288_vm1, %v14909_v51  ;;  %1833 = vmatprep.mubr.f32.mxu1 %v14078_v6  ;;  %v15303_v51 = vld [vmem:[%s14139_s29 + $0x12a] sm:$0xff] }
 0x212   : > { %7223 = vmatprep.mubr.f32.mxu0 %v14078_v6 }
 0x214   : > { %11699 = vmatmul.mubr.msk.f32.gmra.mrb[32].mxu1 %vm288_vm1, %v15106_v13 }
 0x215   : > { %12147 = vmatmul.mubr.msk.f32.gmra.mrb[88].mxu0 %vm288_vm1, %v14918_v52  ;;  %1839 = vmatprep.mubr.f32.mxu1 %v14078_v6  ;;  %v7417_v52 = vld [vmem:[%s14139_s29 + $0x79] sm:$0xff] }
 0x216   : > { %7229 = vmatprep.mubr.f32.mxu0 %v14078_v6 }
 0x218   : > { %11700 = vmatmul.mubr.msk.f32.gmra.mrb[34].mxu1 %vm288_vm1, %v15115_v14 }
 0x219   : > { %12148 = vmatmul.mubr.msk.f32.gmra.mrb[90].mxu0 %vm288_vm1, %v14927_v53  ;;  %1845 = vmatprep.mubr.f32.mxu1 %v14078_v6  ;;  %v15312_v53 = vld [vmem:[%s14139_s29 + $0x132] sm:$0xff] }
 0x21a   : > { %7235 = vmatprep.mubr.f32.mxu0 %v14078_v6 }
 0x21c   : > { %11701 = vmatmul.mubr.msk.f32.gmra.mrb[36].mxu1 %vm288_vm1, %v15124_v15 }
 0x21d   : > { %12149 = vmatmul.mubr.msk.f32.gmra.mrb[92].mxu0 %vm288_vm1, %v14936_v54  ;;  %1851 = vmatprep.mubr.f32.mxu1 %v14078_v6  ;;  %v7418_v54 = vld [vmem:[%s14139_s29 + $0x81] sm:$0xff] }
 0x21e   : > { %7241 = vmatprep.mubr.f32.mxu0 %v14078_v6 }
 0x220   : > { %11702 = vmatmul.mubr.msk.f32.gmra.mrb[38].mxu1 %vm288_vm1, %v15133_v16 }
 0x221   : > { %12150 = vmatmul.mubr.msk.f32.gmra.mrb[94].mxu0 %vm288_vm1, %v14949_v56  ;;  %1857 = vmatprep.mubr.f32.mxu1 %v14078_v6  ;;  %v7419_v56 = vld [vmem:[%s14139_s29 + $0x89] sm:$0xff] }
 0x222   : > { %7247 = vmatprep.mubr.f32.mxu0 %v14078_v6 }
 0x224   : > { %11703 = vmatmul.mubr.msk.f32.gmra.mrb[40].mxu1 %vm288_vm1, %v15142_v17 }
 0x225   : > { %12151 = vmatmul.mubr.msk.f32.gmra.mrb[96].mxu0 %vm288_vm1, %v14958_v57  ;;  %1863 = vmatprep.mubr.f32.mxu1 %v14078_v6  ;;  %v15330_v57 = vld [vmem:[%s14139_s29 + $0x142] sm:$0xff] }
 0x226   : > { %7253 = vmatprep.mubr.f32.mxu0 %v14078_v6 }
 0x228   : > { %11704 = vmatmul.mubr.msk.f32.gmra.mrb[42].mxu1 %vm288_vm1, %v15151_v18 }
 0x229   : > { %12152 = vmatmul.mubr.msk.f32.gmra.mrb[98].mxu0 %vm288_vm1, %v14967_v58  ;;  %1869 = vmatprep.mubr.f32.mxu1 %v14078_v6  ;;  %v7420_v58 = vld [vmem:[%s14139_s29 + $0x91] sm:$0xff] }
 0x22a   : > { %7259 = vmatprep.mubr.f32.mxu0 %v14078_v6 }
 0x22c   : > { %11705 = vmatmul.mubr.msk.f32.gmra.mrb[44].mxu1 %vm288_vm1, %v15160_v19 }
 0x22d   : > { %12153 = vmatmul.mubr.msk.f32.gmra.mrb[100].mxu0 %vm288_vm1, %v6712_v20  ;;  %1875 = vmatprep.mubr.f32.mxu1 %v14078_v6  ;;  %v7424_v20 = vld [vmem:[%s14139_s29 + $0xb1] sm:$0xff] }
 0x22e   : > { %7265 = vmatprep.mubr.f32.mxu0 %v14078_v6 }
 0x230   : > { %11706 = vmatmul.mubr.msk.f32.gmra.mrb[46].mxu1 %vm288_vm1, %v15169_v21 }
 0x231   : > { %12154 = vmatmul.mubr.msk.f32.gmra.mrb[102].mxu0 %vm288_vm1, %v6713_v22  ;;  %1881 = vmatprep.mubr.f32.mxu1 %v14078_v6  ;;  %v15375_v22 = vld [vmem:[%s14139_s29 + $0x16a] sm:$0xff] }
 0x232   : > { %7271 = vmatprep.mubr.f32.mxu0 %v14078_v6 }
 0x234   : > { %11707 = vmatmul.mubr.msk.f32.gmra.mrb[48].mxu1 %vm288_vm1, %v15178_v23 }
 0x235   : > { %12155 = vmatmul.mubr.msk.f32.gmra.mrb[104].mxu0 %vm288_vm1, %v6714_v24  ;;  %1887 = vmatprep.mubr.f32.mxu1 %v14078_v6  ;;  %v7425_v24 = vld [vmem:[%s14139_s29 + $0xb9] sm:$0xff] }
 0x236   : > { %7277 = vmatprep.mubr.f32.mxu0 %v14078_v6 }
 0x238   : > { %11708 = vmatmul.mubr.msk.f32.gmra.mrb[50].mxu1 %vm288_vm1, %v15191_v26 }
 0x239   : > { %12156 = vmatmul.mubr.msk.f32.gmra.mrb[106].mxu0 %vm288_vm1, %v6715_v27  ;;  %1893 = vmatprep.mubr.f32.mxu1 %v14078_v6  ;;  %v7426_v27 = vld [vmem:[%s14139_s29 + $0xc1] sm:$0xff] }
 0x23a   : > { %7283 = vmatprep.mubr.f32.mxu0 %v14078_v6 }
 0x23c   : > { %11709 = vmatmul.mubr.msk.f32.gmra.mrb[52].mxu1 %vm288_vm1, %v15200_v28 }
 0x23d   : > { %12157 = vmatmul.mubr.msk.f32.gmra.mrb[108].mxu0 %vm288_vm1, %v6716_v29  ;;  %1899 = vmatprep.mubr.f32.mxu1 %v14078_v6  ;;  %v15393_v29 = vld [vmem:[%s14139_s29 + $0x17a] sm:$0xff] }
 0x23e   : > { %7289 = vmatprep.mubr.f32.mxu0 %v14078_v6 }
 0x240   : > { %11710 = vmatmul.mubr.msk.f32.gmra.mrb[54].mxu1 %vm288_vm1, %v15209_v30 }
 0x241   : > { %12158 = vmatmul.mubr.msk.f32.gmra.mrb[110].mxu0 %vm288_vm1, %v6717_v31  ;;  %1905 = vmatprep.mubr.f32.mxu1 %v14078_v6  ;;  %v7427_v31 = vld [vmem:[%s14139_s29 + $0xc9] sm:$0xff] }
 0x242   : > { %7705 = vmatprep.mubr.f32.mxu0 %v14078_v6 }
 0x244   : > { %11711 = vmatmul.mubr.msk.f32.gmra.mrb[56].mxu1 %vm288_vm1, %v15218_v32 }
 0x245   : > { %12163 = vmatmul.mubr.msk.f32.vlgmr.msra.gmra.mrb[0].mxu0 %vm288_vm1, %v7408_v33  ;;  %1911 = vmatprep.mubr.f32.mxu1 %v14078_v6  ;;  %v15402_v33 = vld [vmem:[%s14139_s29 + $0x182] sm:$0xff] }
 0x246   : > { %12222 = vmatpush1.msk.msra.mxu0 %vm457_vm0, %v12219_v34  ;;  %7711 = vmatprep.mubr.f32.mxu0 %v14078_v6  ;;  %v7428_v34 = vld [vmem:[%s14139_s29 + $0xd1] sm:$0xff] }
 0x248   : > { %11712 = vmatmul.mubr.msk.f32.gmra.mrb[58].mxu1 %vm288_vm1, %v15230_v35 }
 0x249   : > { %12164 = vmatmul.mubr.msk.f32.gmra.mrb[2].mxu0 %vm288_vm1, %v7409_v36  ;;  %1917 = vmatprep.mubr.f32.mxu1 %v14078_v6  ;;  %v15411_v36 = vld [vmem:[%s14139_s29 + $0x18a] sm:$0xff] }
 0x24a   : > { %7717 = vmatprep.mubr.f32.mxu0 %v14078_v6 }
 0x24c   : > { %11713 = vmatmul.mubr.msk.f32.gmra.mrb[60].mxu1 %vm288_vm1, %v15240_v37 }
 0x24d   : > { %12165 = vmatmul.mubr.msk.f32.gmra.mrb[4].mxu0 %vm288_vm1, %v7410_v38  ;;  %1923 = vmatprep.mubr.f32.mxu1 %v14078_v6  ;;  %v7429_v38 = vld [vmem:[%s14139_s29 + $0xd9] sm:$0xff] }
 0x24e   : > { %7723 = vmatprep.mubr.f32.mxu0 %v14078_v6 }
 0x250   : > { %11714 = vmatmul.mubr.msk.f32.gmra.mrb[62].mxu1 %vm288_vm1, %v15249_v39 }
 0x251   : > { %12166 = vmatmul.mubr.msk.f32.gmra.mrb[6].mxu0 %vm288_vm1, %v7411_v40  ;;  %1929 = vmatprep.mubr.f32.mxu1 %v14078_v6  ;;  %v15420_v40 = vld [vmem:[%s14139_s29 + $0x192] sm:$0xff] }
 0x252   : > { %7729 = vmatprep.mubr.f32.mxu0 %v14078_v6 }
 0x254   : > { %11715 = vmatmul.mubr.msk.f32.gmra.mrb[64].mxu1 %vm288_vm1, %v15258_v41 }
 0x255   : > { %12167 = vmatmul.mubr.msk.f32.gmra.mrb[8].mxu0 %vm288_vm1, %v7412_v42  ;;  %1935 = vmatprep.mubr.f32.mxu1 %v14078_v6  ;;  %v7430_v42 = vld [vmem:[%s14139_s29 + $0xe1] sm:$0xff] }
 0x256   : > { %7735 = vmatprep.mubr.f32.mxu0 %v14078_v6 }
 0x258   : > { %11716 = vmatmul.mubr.msk.f32.gmra.mrb[66].mxu1 %vm288_vm1, %v15267_v43 }
 0x259   : > { %12168 = vmatmul.mubr.msk.f32.gmra.mrb[10].mxu0 %vm288_vm1, %v7413_v44  ;;  %1941 = vmatprep.mubr.f32.mxu1 %v14078_v6  ;;  %v15429_v44 = vld [vmem:[%s14139_s29 + $0x19a] sm:$0xff] }
 0x25a   : > { %7741 = vmatprep.mubr.f32.mxu0 %v14078_v6 }
 0x25c   : > { %11717 = vmatmul.mubr.msk.f32.gmra.mrb[68].mxu1 %vm288_vm1, %v15276_v45 }
 0x25d   : > { %12169 = vmatmul.mubr.msk.f32.gmra.mrb[12].mxu0 %vm288_vm1, %v7414_v46  ;;  %1947 = vmatprep.mubr.f32.mxu1 %v14078_v6  ;;  %v7431_v46 = vld [vmem:[%s14139_s29 + $0xe9] sm:$0xff] }
 0x25e   : > { %7747 = vmatprep.mubr.f32.mxu0 %v14078_v6 }
 0x260   : > { %11718 = vmatmul.mubr.msk.f32.gmra.mrb[70].mxu1 %vm288_vm1, %v15285_v47 }
 0x261   : > { %12170 = vmatmul.mubr.msk.f32.gmra.mrb[14].mxu0 %vm288_vm1, %v7415_v48  ;;  %1953 = vmatprep.mubr.f32.mxu1 %v14078_v6  ;;  %v15438_v48 = vld [vmem:[%s14139_s29 + $0x1a2] sm:$0xff] }
 0x262   : > { %7753 = vmatprep.mubr.f32.mxu0 %v14078_v6 }
 0x264   : > { %11719 = vmatmul.mubr.msk.f32.gmra.mrb[72].mxu1 %vm288_vm1, %v15294_v49 }
 0x265   : > { %12171 = vmatmul.mubr.msk.f32.gmra.mrb[16].mxu0 %vm288_vm1, %v7416_v50  ;;  %1959 = vmatprep.mubr.f32.mxu1 %v14078_v6  ;;  %v7432_v50 = vld [vmem:[%s14139_s29 + $0xf1] sm:$0xff] }
 0x266   : > { %7759 = vmatprep.mubr.f32.mxu0 %v14078_v6 }
 0x268   : > { %11720 = vmatmul.mubr.msk.f32.gmra.mrb[74].mxu1 %vm288_vm1, %v15303_v51 }
 0x269   : > { %12172 = vmatmul.mubr.msk.f32.gmra.mrb[18].mxu0 %vm288_vm1, %v7417_v52  ;;  %1965 = vmatprep.mubr.f32.mxu1 %v14078_v6  ;;  %v12280_v52 = vld [vmem:[%s17801_s1 + $0xc8] sm:$0x3f] }
 0x26a   : > { %7765 = vmatprep.mubr.f32.mxu0 %v14078_v6  ;;  %12281 = vmatprep.subr.msk.mxu0 %vm457_vm0, %v12280_v52  ;;  %v2190_v52 = vld [vmem:[%s14139_s29 + $0x30] sm:$0xff] }
 0x26c   : > { %11721 = vmatmul.mubr.msk.f32.gmra.mrb[76].mxu1 %vm288_vm1, %v15312_v53 }
 0x26d   : > { %12173 = vmatmul.mubr.msk.f32.gmra.mrb[20].mxu0 %vm288_vm1, %v7418_v54  ;;  %1971 = vmatprep.mubr.f32.mxu1 %v14078_v6  ;;  %v15451_v54 = vld [vmem:[%s14139_s29 + $0x1aa] sm:$0xff] }
 0x26e   : > { %7771 = vmatprep.mubr.f32.mxu0 %v14078_v6 }
 0x270   : > { %11722 = vmatmul.mubr.msk.f32.gmra.mrb[78].mxu1 %vm288_vm1, %v15321_v55 }
 0x271   : > { %12174 = vmatmul.mubr.msk.f32.gmra.mrb[22].mxu0 %vm288_vm1, %v7419_v56  ;;  %1977 = vmatprep.mubr.f32.mxu1 %v14078_v6  ;;  %v7433_v56 = vld [vmem:[%s14139_s29 + $0xf9] sm:$0xff] }
 0x272   : > { %7777 = vmatprep.mubr.f32.mxu0 %v14078_v6 }
 0x274   : > { %11723 = vmatmul.mubr.msk.f32.gmra.mrb[80].mxu1 %vm288_vm1, %v15330_v57 }
 0x275   : > { %12175 = vmatmul.mubr.msk.f32.gmra.mrb[24].mxu0 %vm288_vm1, %v7420_v58  ;;  %1983 = vmatprep.mubr.f32.mxu1 %v14078_v6  ;;  %v15460_v58 = vld [vmem:[%s14139_s29 + $0x1b2] sm:$0xff] }
 0x276   : > { %7783 = vmatprep.mubr.f32.mxu0 %v14078_v6 }
 0x278   : > { %11724 = vmatmul.mubr.msk.f32.gmra.mrb[82].mxu1 %vm288_vm1, %v15339_v59 }
 0x279   : > { %12176 = vmatmul.mubr.msk.f32.gmra.mrb[26].mxu0 %vm288_vm1, %v7421_v60  ;;  %1989 = vmatprep.mubr.f32.mxu1 %v14078_v6  ;;  %v7434_v60 = vld [vmem:[%s14139_s29 + $0x101] sm:$0xff] }
 0x27a   : > { %7789 = vmatprep.mubr.f32.mxu0 %v14078_v6 }
 0x27c   : > { %11725 = vmatmul.mubr.msk.f32.gmra.mrb[84].mxu1 %vm288_vm1, %v15348_v61 }
 0x27d   : > { %12177 = vmatmul.mubr.msk.f32.gmra.mrb[28].mxu0 %vm288_vm1, %v7422_v62  ;;  %1995 = vmatprep.mubr.f32.mxu1 %v14078_v6  ;;  %v15469_v62 = vld [vmem:[%s14139_s29 + $0x1ba] sm:$0xff] }
 0x27e   : > { %7795 = vmatprep.mubr.f32.mxu0 %v14078_v6 }
 0x280   : > { %11726 = vmatmul.mubr.msk.f32.gmra.mrb[86].mxu1 %vm288_vm1, %v15357_v63 }
 0x281   : > { %12178 = vmatmul.mubr.msk.f32.gmra.mrb[30].mxu0 %vm288_vm1, %v7423_v0  ;;  %2001 = vmatprep.mubr.f32.mxu1 %v14078_v6  ;;  %v7435_v0 = vld [vmem:[%s14139_s29 + $0x109] sm:$0xff] }
 0x282   : > { %7801 = vmatprep.mubr.f32.mxu0 %v14078_v6 }
 0x284   : > { %11727 = vmatmul.mubr.msk.f32.gmra.mrb[88].mxu1 %vm288_vm1, %v15366_v1 }
 0x285   : > { %12179 = vmatmul.mubr.msk.f32.gmra.mrb[32].mxu0 %vm288_vm1, %v7424_v20  ;;  %2007 = vmatprep.mubr.f32.mxu1 %v14078_v6  ;;  %v2186_v20 = vld [vmem:[%s14139_s29 + $0x10] sm:$0xff] }
 0x286   : > { %7807 = vmatprep.mubr.f32.mxu0 %v14078_v6 }
 0x288   : > { %11728 = vmatmul.mubr.msk.f32.gmra.mrb[90].mxu1 %vm288_vm1, %v15375_v22 }
 0x289   : > { %12180 = vmatmul.mubr.msk.f32.gmra.mrb[34].mxu0 %vm288_vm1, %v7425_v24  ;;  %2013 = vmatprep.mubr.f32.mxu1 %v14078_v6  ;;  %v7436_v24 = vld [vmem:[%s14139_s29 + $0x111] sm:$0xff] }
 0x28a   : > { %7813 = vmatprep.mubr.f32.mxu0 %v14078_v6 }
 0x28c   : > { %11729 = vmatmul.mubr.msk.f32.gmra.mrb[92].mxu1 %vm288_vm1, %v15384_v25 }
 0x28d   : > { %12181 = vmatmul.mubr.msk.f32.gmra.mrb[36].mxu0 %vm288_vm1, %v7426_v27  ;;  %2019 = vmatprep.mubr.f32.mxu1 %v14078_v6  ;;  %v11799_v27 = vld [vmem:[%s17801_s1 + $0x40] sm:$0x3f] }
 0x28e   : > { %7819 = vmatprep.mubr.f32.mxu0 %v14078_v6 }
 0x290   : > { %11730 = vmatmul.mubr.msk.f32.gmra.mrb[94].mxu1 %vm288_vm1, %v15393_v29 }
 0x291   : > { %12182 = vmatmul.mubr.msk.f32.gmra.mrb[38].mxu0 %vm288_vm1, %v7427_v31  ;;  %2025 = vmatprep.mubr.f32.mxu1 %v14078_v6  ;;  %v2187_v31 = vld [vmem:[%s14139_s29 + $0x18] sm:$0xff] }
 0x292   : > { %7825 = vmatprep.mubr.f32.mxu0 %v14078_v6 }
 0x294   : > { %11731 = vmatmul.mubr.msk.f32.gmra.mrb[96].mxu1 %vm288_vm1, %v15402_v33 }
 0x295   : > { %12183 = vmatmul.mubr.msk.f32.gmra.mrb[40].mxu0 %vm288_vm1, %v7428_v34  ;;  %2031 = vmatprep.mubr.f32.mxu1 %v14078_v6  ;;  %v7437_v34 = vld [vmem:[%s14139_s29 + $0x119] sm:$0xff] }
 0x296   : > { %7831 = vmatprep.mubr.f32.mxu0 %v14078_v6 }
 0x298   : > { %11732 = vmatmul.mubr.msk.f32.gmra.mrb[98].mxu1 %vm288_vm1, %v15411_v36 }
 0x299   : > { %12184 = vmatmul.mubr.msk.f32.gmra.mrb[42].mxu0 %vm288_vm1, %v7429_v38  ;;  %2037 = vmatprep.mubr.f32.mxu1 %v14078_v6  ;;  %v2188_v38 = vld [vmem:[%s14139_s29 + $0x20] sm:$0xff] }
 0x29a   : > { %7837 = vmatprep.mubr.f32.mxu0 %v14078_v6 }
 0x29c   : > { %11733 = vmatmul.mubr.msk.f32.gmra.mrb[100].mxu1 %vm288_vm1, %v15420_v40 }
 0x29d   : > { %12185 = vmatmul.mubr.msk.f32.gmra.mrb[44].mxu0 %vm288_vm1, %v7430_v42  ;;  %2043 = vmatprep.mubr.f32.mxu1 %v14078_v6  ;;  %v7438_v42 = vld [vmem:[%s14139_s29 + $0x121] sm:$0xff] }
 0x29e   : > { %7843 = vmatprep.mubr.f32.mxu0 %v14078_v6 }
 0x2a0   : > { %11734 = vmatmul.mubr.msk.f32.gmra.mrb[102].mxu1 %vm288_vm1, %v15429_v44 }
 0x2a1   : > { %12186 = vmatmul.mubr.msk.f32.gmra.mrb[46].mxu0 %vm288_vm1, %v7431_v46  ;;  %2049 = vmatprep.mubr.f32.mxu1 %v14078_v6  ;;  %v2189_v46 = vld [vmem:[%s14139_s29 + $0x28] sm:$0xff] }
 0x2a2   : > { %7849 = vmatprep.mubr.f32.mxu0 %v14078_v6 }
 0x2a4   : > { %11735 = vmatmul.mubr.msk.f32.gmra.mrb[104].mxu1 %vm288_vm1, %v15438_v48 }
 0x2a5   : > { %12187 = vmatmul.mubr.msk.f32.gmra.mrb[48].mxu0 %vm288_vm1, %v7432_v50  ;;  %2055 = vmatprep.mubr.f32.mxu1 %v14078_v6  ;;  %v7439_v50 = vld [vmem:[%s14139_s29 + $0x129] sm:$0xff] }
 0x2a6   : > { %7855 = vmatprep.mubr.f32.mxu0 %v14078_v6 }
 0x2a8   : > { %11736 = vmatmul.mubr.msk.f32.gmra.mrb[106].mxu1 %vm288_vm1, %v15451_v54 }
 0x2a9   : > { %12188 = vmatmul.mubr.msk.f32.gmra.mrb[50].mxu0 %vm288_vm1, %v7433_v56  ;;  %2061 = vmatprep.mubr.f32.mxu1 %v14078_v6  ;;  %v7440_v56 = vld [vmem:[%s14139_s29 + $0x131] sm:$0xff] }
 0x2aa   : > { %7861 = vmatprep.mubr.f32.mxu0 %v14078_v6 }
 0x2ac   : > { %11737 = vmatmul.mubr.msk.f32.gmra.mrb[108].mxu1 %vm288_vm1, %v15460_v58 }
 0x2ad   : > { %12189 = vmatmul.mubr.msk.f32.gmra.mrb[52].mxu0 %vm288_vm1, %v7434_v60  ;;  %2067 = vmatprep.mubr.f32.mxu1 %v14078_v6  ;;  %v2191_v60 = vld [vmem:[%s14139_s29 + $0x38] sm:$0xff] }
 0x2ae   : > { %7867 = vmatprep.mubr.f32.mxu0 %v14078_v6 }
 0x2b0   : > { %11738 = vmatmul.mubr.msk.f32.gmra.mrb[110].mxu1 %vm288_vm1, %v15469_v62 }
 0x2b1   : > { %12190 = vmatmul.mubr.msk.f32.gmra.mrb[54].mxu0 %vm288_vm1, %v7435_v0  ;;  %2483 = vmatprep.mubr.f32.mxu1 %v14078_v6  ;;  %v7441_v0 = vld [vmem:[%s14139_s29 + $0x139] sm:$0xff] }
 0x2b2   : > { %7873 = vmatprep.mubr.f32.mxu0 %v14078_v6 }
 0x2b4   : > { %11743 = vmatmul.mubr.msk.f32.vlgmr.msra.gmra.mrb[0].mxu1 %vm288_vm1, %v2186_v20  ;;  %v15518_v20 = vld [vmem:[%s14139_s29 + $0x40] sm:$0xff] }
 0x2b5   : > { %12191 = vmatmul.mubr.msk.f32.gmra.mrb[56].mxu0 %vm288_vm1, %v7436_v24  ;;  %11802 = vmatpush1.msk.msra.mxu1 %vm457_vm0, %v11799_v27  ;;  %v7442_v24 = vld [vmem:[%s14139_s29 + $0x141] sm:$0xff] }
 0x2b6   : > { %2489 = vmatprep.mubr.f32.mxu1 %v14078_v6  ;;  %7879 = vmatprep.mubr.f32.mxu0 %v14078_v6  ;;  %v15527_v27 = vld [vmem:[%s14139_s29 + $0x48] sm:$0xff] }
 0x2b8   : > { %11744 = vmatmul.mubr.msk.f32.gmra.mrb[2].mxu1 %vm288_vm1, %v2187_v31  ;;  %v7443_v31 = vld [vmem:[%s14139_s29 + $0x149] sm:$0xff] }
 0x2b9   : > { %12192 = vmatmul.mubr.msk.f32.gmra.mrb[58].mxu0 %vm288_vm1, %v7437_v34  ;;  %2495 = vmatprep.mubr.f32.mxu1 %v14078_v6  ;;  %v15536_v34 = vld [vmem:[%s14139_s29 + $0x50] sm:$0xff] }
 0x2ba   : > { %7885 = vmatprep.mubr.f32.mxu0 %v14078_v6 }
 0x2bc   : > { %11745 = vmatmul.mubr.msk.f32.gmra.mrb[4].mxu1 %vm288_vm1, %v2188_v38  ;;  %v7444_v38 = vld [vmem:[%s14139_s29 + $0x151] sm:$0xff] }
 0x2bd   : > { %12193 = vmatmul.mubr.msk.f32.gmra.mrb[60].mxu0 %vm288_vm1, %v7438_v42  ;;  %2501 = vmatprep.mubr.f32.mxu1 %v14078_v6  ;;  %v15545_v42 = vld [vmem:[%s14139_s29 + $0x58] sm:$0xff] }
 0x2be   : > { %7891 = vmatprep.mubr.f32.mxu0 %v14078_v6 }
 0x2c0   : > { %11746 = vmatmul.mubr.msk.f32.gmra.mrb[6].mxu1 %vm288_vm1, %v2189_v46  ;;  %v7445_v46 = vld [vmem:[%s14139_s29 + $0x159] sm:$0xff] }
 0x2c1   : > { %12194 = vmatmul.mubr.msk.f32.gmra.mrb[62].mxu0 %vm288_vm1, %v7439_v50  ;;  %2507 = vmatprep.mubr.f32.mxu1 %v14078_v6  ;;  %v15554_v50 = vld [vmem:[%s14139_s29 + $0x60] sm:$0xff] }
 0x2c2   : > { %7897 = vmatprep.mubr.f32.mxu0 %v14078_v6 }
 0x2c4   : > { %11747 = vmatmul.mubr.msk.f32.gmra.mrb[8].mxu1 %vm288_vm1, %v2190_v52  ;;  %v7446_v52 = vld [vmem:[%s14139_s29 + $0x161] sm:$0xff] }
 0x2c5   : > { %12195 = vmatmul.mubr.msk.f32.gmra.mrb[64].mxu0 %vm288_vm1, %v7440_v56  ;;  %2513 = vmatprep.mubr.f32.mxu1 %v14078_v6  ;;  %v15563_v56 = vld [vmem:[%s14139_s29 + $0x68] sm:$0xff] }
 0x2c6   : > { %7903 = vmatprep.mubr.f32.mxu0 %v14078_v6 }
 0x2c8   : > { %11748 = vmatmul.mubr.msk.f32.gmra.mrb[10].mxu1 %vm288_vm1, %v2191_v60  ;;  %v7447_v60 = vld [vmem:[%s14139_s29 + $0x169] sm:$0xff] }
 0x2c9   : > { %12196 = vmatmul.mubr.msk.f32.gmra.mrb[66].mxu0 %vm288_vm1, %v7441_v0  ;;  %2519 = vmatprep.mubr.f32.mxu1 %v14078_v6  ;;  %v15572_v0 = vld [vmem:[%s14139_s29 + $0x70] sm:$0xff] }
 0x2ca   : > { %7909 = vmatprep.mubr.f32.mxu0 %v14078_v6 }
 0x2cc   : > { %11749 = vmatmul.mubr.msk.f32.gmra.mrb[12].mxu1 %vm288_vm1, %v15518_v20 }
 0x2cd   : > { %12197 = vmatmul.mubr.msk.f32.gmra.mrb[68].mxu0 %vm288_vm1, %v7442_v24  ;;  %2525 = vmatprep.mubr.f32.mxu1 %v14078_v6  ;;  %v7448_v24 = vld [vmem:[%s14139_s29 + $0x171] sm:$0xff] }
 0x2ce   : > { %7915 = vmatprep.mubr.f32.mxu0 %v14078_v6 }
 0x2d0   : > { %11750 = vmatmul.mubr.msk.f32.gmra.mrb[14].mxu1 %vm288_vm1, %v15527_v27 }
 0x2d1   : > { %12198 = vmatmul.mubr.msk.f32.gmra.mrb[70].mxu0 %vm288_vm1, %v7443_v31  ;;  %2531 = vmatprep.mubr.f32.mxu1 %v14078_v6  ;;  %v15581_v31 = vld [vmem:[%s14139_s29 + $0x78] sm:$0xff] }
 0x2d2   : > { %7921 = vmatprep.mubr.f32.mxu0 %v14078_v6 }
 0x2d4   : > { %11751 = vmatmul.mubr.msk.f32.gmra.mrb[16].mxu1 %vm288_vm1, %v15536_v34 }
 0x2d5   : > { %12199 = vmatmul.mubr.msk.f32.gmra.mrb[72].mxu0 %vm288_vm1, %v7444_v38  ;;  %2537 = vmatprep.mubr.f32.mxu1 %v14078_v6  ;;  %v7449_v38 = vld [vmem:[%s14139_s29 + $0x179] sm:$0xff] }
 0x2d6   : > { %7927 = vmatprep.mubr.f32.mxu0 %v14078_v6 }
 0x2d8   : > { %11752 = vmatmul.mubr.msk.f32.gmra.mrb[18].mxu1 %vm288_vm1, %v15545_v42 }
 0x2d9   : > { %12200 = vmatmul.mubr.msk.f32.gmra.mrb[74].mxu0 %vm288_vm1, %v7445_v46  ;;  %2543 = vmatprep.mubr.f32.mxu1 %v14078_v6  ;;  %v15590_v46 = vld [vmem:[%s14139_s29 + $0x80] sm:$0xff] }
 0x2da   : > { %7933 = vmatprep.mubr.f32.mxu0 %v14078_v6  ;;  %17829 = vst [vmem:[#allocation2_spill] sm:$0xff] %v15590_v46 }
 0x2dc   : > { %11753 = vmatmul.mubr.msk.f32.gmra.mrb[20].mxu1 %vm288_vm1, %v15554_v50 }
 0x2dd   : > { %12201 = vmatmul.mubr.msk.f32.gmra.mrb[76].mxu0 %vm288_vm1, %v7446_v52  ;;  %2549 = vmatprep.mubr.f32.mxu1 %v14078_v6  ;;  %v7450_v52 = vld [vmem:[%s14139_s29 + $0x181] sm:$0xff] }
 0x2de   : > { %7939 = vmatprep.mubr.f32.mxu0 %v14078_v6 }
 0x2e0   : > { %11754 = vmatmul.mubr.msk.f32.gmra.mrb[22].mxu1 %vm288_vm1, %v15563_v56 }
 0x2e1   : > { %12202 = vmatmul.mubr.msk.f32.gmra.mrb[78].mxu0 %vm288_vm1, %v7447_v60  ;;  %2555 = vmatprep.mubr.f32.mxu1 %v14078_v6  ;;  %v15599_v60 = vld [vmem:[%s14139_s29 + $0x88] sm:$0xff] }
 0x2e2   : > { %7945 = vmatprep.mubr.f32.mxu0 %v14078_v6  ;;  %17830 = vst [vmem:[#allocation3_spill] sm:$0xff] %v15599_v60 }
 0x2e4   : > { %11755 = vmatmul.mubr.msk.f32.gmra.mrb[24].mxu1 %vm288_vm1, %v15572_v0 }
 0x2e5   : > { %12203 = vmatmul.mubr.msk.f32.gmra.mrb[80].mxu0 %vm288_vm1, %v7448_v24  ;;  %2561 = vmatprep.mubr.f32.mxu1 %v14078_v6  ;;  %v7451_v24 = vld [vmem:[%s14139_s29 + $0x189] sm:$0xff] }
 0x2e6   : > { %7951 = vmatprep.mubr.f32.mxu0 %v14078_v6 }
 0x2e8   : > { %11756 = vmatmul.mubr.msk.f32.gmra.mrb[26].mxu1 %vm288_vm1, %v15581_v31 }
 0x2e9   : > { %12204 = vmatmul.mubr.msk.f32.gmra.mrb[82].mxu0 %vm288_vm1, %v7449_v38  ;;  %2567 = vmatprep.mubr.f32.mxu1 %v14078_v6  ;;  %v15608_v38 = vld [vmem:[%s14139_s29 + $0x90] sm:$0xff] }
 0x2ea   : > { %7957 = vmatprep.mubr.f32.mxu0 %v14078_v6  ;;  %17831 = vst [vmem:[#allocation4_spill] sm:$0xff] %v15608_v38 }
 0x2ec   : > { %11757 = vmatmul.mubr.msk.f32.gmra.mrb[28].mxu1 %vm288_vm1, %v15590_v46  ;;  %v11860_v46 = vld [vmem:[%s17801_s1 + $0x58] sm:$0x3f] }
 0x2ed   : > { %12205 = vmatmul.mubr.msk.f32.gmra.mrb[84].mxu0 %vm288_vm1, %v7450_v52  ;;  %2573 = vmatprep.mubr.f32.mxu1 %v14078_v6  ;;  %v7452_v52 = vld [vmem:[%s14139_s29 + $0x191] sm:$0xff] }
 0x2ee   : > { %7963 = vmatprep.mubr.f32.mxu0 %v14078_v6  ;;  %11861 = vmatprep.subr.msk.mxu1 %vm457_vm0, %v11860_v46  ;;  %v15702_v46 = vld [vmem:[%s14139_s29 + $0xe0] sm:$0xff] }
 0x2ef   : > { %17840 = vst [vmem:[#allocation13_spill] sm:$0xff] %v15702_v46 }
 0x2f0   : > { %11758 = vmatmul.mubr.msk.f32.gmra.mrb[30].mxu1 %vm288_vm1, %v15599_v60  ;;  %v7453_v60 = vld [vmem:[%s14139_s29 + $0x199] sm:$0xff] }
 0x2f1   : > { %12206 = vmatmul.mubr.msk.f32.gmra.mrb[86].mxu0 %vm288_vm1, %v7451_v24  ;;  %2579 = vmatprep.mubr.f32.mxu1 %v14078_v6  ;;  %v15617_v24 = vld [vmem:[%s14139_s29 + $0x98] sm:$0xff] }
 0x2f2   : > { %7969 = vmatprep.mubr.f32.mxu0 %v14078_v6  ;;  %17832 = vst [vmem:[#allocation5_spill] sm:$0xff] %v15617_v24 }
 0x2f4   : > { %11759 = vmatmul.mubr.msk.f32.gmra.mrb[32].mxu1 %vm288_vm1, %v15608_v38  ;;  %v7454_v38 = vld [vmem:[%s14139_s29 + $0x1a1] sm:$0xff] }
 0x2f5   : > { %12207 = vmatmul.mubr.msk.f32.gmra.mrb[88].mxu0 %vm288_vm1, %v7452_v52  ;;  %2585 = vmatprep.mubr.f32.mxu1 %v14078_v6  ;;  %v15626_v52 = vld [vmem:[%s14139_s29 + $0xa0] sm:$0xff] }
 0x2f6   : > { %7975 = vmatprep.mubr.f32.mxu0 %v14078_v6  ;;  %17833 = vst [vmem:[#allocation6_spill] sm:$0xff] %v15626_v52 }
 0x2f8   : > { %11760 = vmatmul.mubr.msk.f32.gmra.mrb[34].mxu1 %vm288_vm1, %v15617_v24  ;;  %v7455_v24 = vld [vmem:[%s14139_s29 + $0x1a9] sm:$0xff] }
 0x2f9   : > { %12208 = vmatmul.mubr.msk.f32.gmra.mrb[90].mxu0 %vm288_vm1, %v7453_v60  ;;  %2591 = vmatprep.mubr.f32.mxu1 %v14078_v6  ;;  %v15635_v60 = vld [vmem:[%s14139_s29 + $0xa8] sm:$0xff] }
 0x2fa   : > { %7981 = vmatprep.mubr.f32.mxu0 %v14078_v6  ;;  %17834 = vst [vmem:[#allocation7_spill] sm:$0xff] %v15635_v60 }
 0x2fc   : > { %11761 = vmatmul.mubr.msk.f32.gmra.mrb[36].mxu1 %vm288_vm1, %v15626_v52  ;;  %v7456_v52 = vld [vmem:[%s14139_s29 + $0x1b1] sm:$0xff] }
 0x2fd   : > { %12209 = vmatmul.mubr.msk.f32.gmra.mrb[92].mxu0 %vm288_vm1, %v7454_v38  ;;  %2597 = vmatprep.mubr.f32.mxu1 %v14078_v6  ;;  %v15644_v38 = vld [vmem:[%s14139_s29 + $0xb0] sm:$0xff] }
 0x2fe   : > { %7987 = vmatprep.mubr.f32.mxu0 %v14078_v6  ;;  %17835 = vst [vmem:[#allocation8_spill] sm:$0xff] %v15644_v38 }
 0x300   : > { %11762 = vmatmul.mubr.msk.f32.gmra.mrb[38].mxu1 %vm288_vm1, %v15635_v60  ;;  %v7457_v60 = vld [vmem:[%s14139_s29 + $0x1b9] sm:$0xff] }
 0x301   : > { %12210 = vmatmul.mubr.msk.f32.gmra.mrb[94].mxu0 %vm288_vm1, %v7455_v24  ;;  %2603 = vmatprep.mubr.f32.mxu1 %v14078_v6  ;;  %v15653_v24 = vld [vmem:[%s14139_s29 + $0xb8] sm:$0xff] }
 0x302   : > { %7993 = vmatprep.mubr.f32.mxu0 %v14078_v6  ;;  %17836 = vst [vmem:[#allocation9_spill] sm:$0xff] %v15653_v24 }
 0x304   : > { %11763 = vmatmul.mubr.msk.f32.gmra.mrb[40].mxu1 %vm288_vm1, %v15644_v38  ;;  %v7458_v38 = vld [vmem:[%s14139_s29 + $0x1c1] sm:$0xff] }
 0x305   : > { %12211 = vmatmul.mubr.msk.f32.gmra.mrb[96].mxu0 %vm288_vm1, %v7456_v52  ;;  %2609 = vmatprep.mubr.f32.mxu1 %v14078_v6  ;;  %v15662_v52 = vld [vmem:[%s14139_s29 + $0xc0] sm:$0xff] }
 0x306   : > { %7999 = vmatprep.mubr.f32.mxu0 %v14078_v6  ;;  %17837 = vst [vmem:[#allocation10_spill] sm:$0xff] %v15662_v52 }
 0x308   : > { %11764 = vmatmul.mubr.msk.f32.gmra.mrb[42].mxu1 %vm288_vm1, %v15653_v24  ;;  %v7459_v24 = vld [vmem:[%s14139_s29 + $0x1c9] sm:$0xff] }
 0x309   : > { %12212 = vmatmul.mubr.msk.f32.gmra.mrb[98].mxu0 %vm288_vm1, %v7457_v60  ;;  %2615 = vmatprep.mubr.f32.mxu1 %v14078_v6  ;;  %v15671_v60 = vld [vmem:[%s14139_s29 + $0xc8] sm:$0xff] }
 0x30a   : > { %8005 = vmatprep.mubr.f32.mxu0 %v14078_v6  ;;  %17838 = vst [vmem:[#allocation11_spill] sm:$0xff] %v15671_v60 }
 0x30c   : > { %11765 = vmatmul.mubr.msk.f32.gmra.mrb[44].mxu1 %vm288_vm1, %v15662_v52  ;;  %v7460_v52 = vld [vmem:[%s14139_s29 + $0x1d1] sm:$0xff] }
 0x30d   : > { %12213 = vmatmul.mubr.msk.f32.gmra.mrb[100].mxu0 %vm288_vm1, %v7458_v38  ;;  %2621 = vmatprep.mubr.f32.mxu1 %v14078_v6  ;;  %v15680_v38 = vld [vmem:[%s14139_s29 + $0xd0] sm:$0xff] }
 0x30e   : > { %8011 = vmatprep.mubr.f32.mxu0 %v14078_v6 }
 0x310   : > { %11766 = vmatmul.mubr.msk.f32.gmra.mrb[46].mxu1 %vm288_vm1, %v15671_v60  ;;  %v7461_v60 = vld [vmem:[%s14139_s29 + $0x1d9] sm:$0xff] }
 0x311   : > { %12214 = vmatmul.mubr.msk.f32.gmra.mrb[102].mxu0 %vm288_vm1, %v7459_v24  ;;  %2627 = vmatprep.mubr.f32.mxu1 %v14078_v6  ;;  %v15693_v24 = vld [vmem:[%s14139_s29 + $0xd8] sm:$0xff] }
 0x312   : > { %8017 = vmatprep.mubr.f32.mxu0 %v14078_v6  ;;  %17839 = vst [vmem:[#allocation12_spill] sm:$0xff] %v15693_v24 }
 0x314   : > { %11767 = vmatmul.mubr.msk.f32.gmra.mrb[48].mxu1 %vm288_vm1, %v15680_v38 }
 0x315   : > { %12215 = vmatmul.mubr.msk.f32.gmra.mrb[104].mxu0 %vm288_vm1, %v7460_v52  ;;  %2633 = vmatprep.mubr.f32.mxu1 %v14078_v6  ;;  %v7462_v52 = vld [vmem:[%s14139_s29 + $0x1e1] sm:$0xff] }
 0x316   : > { %8023 = vmatprep.mubr.f32.mxu0 %v14078_v6 }
 0x318   : > { %11768 = vmatmul.mubr.msk.f32.gmra.mrb[50].mxu1 %vm288_vm1, %v15693_v24  ;;  %v15711_v24 = vld [vmem:[%s14139_s29 + $0xe8] sm:$0xff] }
 0x319   : > { %12216 = vmatmul.mubr.msk.f32.gmra.mrb[106].mxu0 %vm288_vm1, %v7461_v60  ;;  %2639 = vmatprep.mubr.f32.mxu1 %v14078_v6  ;;  %v7463_v60 = vld [vmem:[%s14139_s29 + $0x1e9] sm:$0xff] }
 0x31a   : > { %8029 = vmatprep.mubr.f32.mxu0 %v14078_v6 }
 0x31c   : > { %11769 = vmatmul.mubr.msk.f32.gmra.mrb[52].mxu1 %vm288_vm1, %v15702_v46  ;;  %v15720_v46 = vld [vmem:[%s14139_s29 + $0xf0] sm:$0xff] }
 0x31d   : > { %12217 = vmatmul.mubr.msk.f32.gmra.mrb[108].mxu0 %vm288_vm1, %v7462_v52  ;;  %2645 = vmatprep.mubr.f32.mxu1 %v14078_v6  ;;  %v12279_v52 = vld [vmem:[%s17801_s1 + $0xc0] sm:$0x3f] }
 0x31e   : > { %8035 = vmatprep.mubr.f32.mxu0 %v14078_v6 }
 0x320   : > { %11770 = vmatmul.mubr.msk.f32.gmra.mrb[54].mxu1 %vm288_vm1, %v15711_v24 }
 0x321   : > { %12218 = vmatmul.mubr.msk.f32.gmra.mrb[110].mxu0 %vm288_vm1, %v7463_v60  ;;  %2651 = vmatprep.mubr.f32.mxu1 %v14078_v6  ;;  %v15732_v60 = vld [vmem:[%s14139_s29 + $0xf8] sm:$0xff] }
 0x322   : > { %8451 = vmatprep.mubr.f32.mxu0 %v14078_v6 }
 0x324   : > { %11771 = vmatmul.mubr.msk.f32.gmra.mrb[56].mxu1 %vm288_vm1, %v15720_v46 }
 0x325   : > { %12223 = vmatmul.mubr.msk.f32.vlgmr.msra.gmra.mrb[0].mxu0 %vm288_vm1, %v15016_v2  ;;  %2657 = vmatprep.mubr.f32.mxu1 %v14078_v6  ;;  %v15742_v2 = vld [vmem:[%s14139_s29 + $0x100] sm:$0xff] }
 0x326   : > { %12282 = vmatpush1.msk.msra.mxu0 %vm457_vm0, %v12279_v52  ;;  %8457 = vmatprep.mubr.f32.mxu0 %v14078_v6  ;;  %v15751_v52 = vld [vmem:[%s14139_s29 + $0x108] sm:$0xff] }
 0x328   : > { %11772 = vmatmul.mubr.msk.f32.gmra.mrb[58].mxu1 %vm288_vm1, %v15732_v60 }
 0x329   : > { %12224 = vmatmul.mubr.msk.f32.gmra.mrb[2].mxu0 %vm288_vm1, %v15025_v3  ;;  %2663 = vmatprep.mubr.f32.mxu1 %v14078_v6  ;;  %v15760_v3 = vld [vmem:[%s14139_s29 + $0x110] sm:$0xff] }
 0x32a   : > { %8463 = vmatprep.mubr.f32.mxu0 %v14078_v6 }
 0x32c   : > { %11773 = vmatmul.mubr.msk.f32.gmra.mrb[60].mxu1 %vm288_vm1, %v15742_v2 }
 0x32d   : > { %12225 = vmatmul.mubr.msk.f32.gmra.mrb[4].mxu0 %vm288_vm1, %v15034_v4  ;;  %2669 = vmatprep.mubr.f32.mxu1 %v14078_v6  ;;  %v15769_v4 = vld [vmem:[%s14139_s29 + $0x118] sm:$0xff] }
 0x32e   : > { %8469 = vmatprep.mubr.f32.mxu0 %v14078_v6 }
 0x330   : > { %11774 = vmatmul.mubr.msk.f32.gmra.mrb[62].mxu1 %vm288_vm1, %v15751_v52 }
 0x331   : > { %12226 = vmatmul.mubr.msk.f32.gmra.mrb[6].mxu0 %vm288_vm1, %v15043_v5  ;;  %2675 = vmatprep.mubr.f32.mxu1 %v14078_v6  ;;  %v15778_v5 = vld [vmem:[%s14139_s29 + $0x120] sm:$0xff] }
 0x332   : > { %8475 = vmatprep.mubr.f32.mxu0 %v14078_v6 }
 0x334   : > { %11775 = vmatmul.mubr.msk.f32.gmra.mrb[64].mxu1 %vm288_vm1, %v15760_v3 }
 0x335   : > { %12227 = vmatmul.mubr.msk.f32.gmra.mrb[8].mxu0 %vm288_vm1, %v15052_v7  ;;  %2681 = vmatprep.mubr.f32.mxu1 %v14078_v6  ;;  %v15787_v7 = vld [vmem:[%s14139_s29 + $0x128] sm:$0xff] }
 0x336   : > { %8481 = vmatprep.mubr.f32.mxu0 %v14078_v6 }
 0x338   : > { %11776 = vmatmul.mubr.msk.f32.gmra.mrb[66].mxu1 %vm288_vm1, %v15769_v4 }
 0x339   : > { %12228 = vmatmul.mubr.msk.f32.gmra.mrb[10].mxu0 %vm288_vm1, %v15061_v8  ;;  %2687 = vmatprep.mubr.f32.mxu1 %v14078_v6  ;;  %v15796_v8 = vld [vmem:[%s14139_s29 + $0x130] sm:$0xff] }
 0x33a   : > { %8487 = vmatprep.mubr.f32.mxu0 %v14078_v6 }
 0x33c   : > { %11777 = vmatmul.mubr.msk.f32.gmra.mrb[68].mxu1 %vm288_vm1, %v15778_v5 }
 0x33d   : > { %12229 = vmatmul.mubr.msk.f32.gmra.mrb[12].mxu0 %vm288_vm1, %v15070_v9  ;;  %2693 = vmatprep.mubr.f32.mxu1 %v14078_v6  ;;  %v15805_v9 = vld [vmem:[%s14139_s29 + $0x138] sm:$0xff] }
 0x33e   : > { %8493 = vmatprep.mubr.f32.mxu0 %v14078_v6 }
 0x340   : > { %11778 = vmatmul.mubr.msk.f32.gmra.mrb[70].mxu1 %vm288_vm1, %v15787_v7 }
 0x341   : > { %12230 = vmatmul.mubr.msk.f32.gmra.mrb[14].mxu0 %vm288_vm1, %v15079_v10  ;;  %2699 = vmatprep.mubr.f32.mxu1 %v14078_v6  ;;  %v15814_v10 = vld [vmem:[%s14139_s29 + $0x140] sm:$0xff] }
 0x342   : > { %8499 = vmatprep.mubr.f32.mxu0 %v14078_v6 }
 0x344   : > { %11779 = vmatmul.mubr.msk.f32.gmra.mrb[72].mxu1 %vm288_vm1, %v15796_v8 }
 0x345   : > { %12231 = vmatmul.mubr.msk.f32.gmra.mrb[16].mxu0 %vm288_vm1, %v15088_v11  ;;  %2705 = vmatprep.mubr.f32.mxu1 %v14078_v6  ;;  %v15823_v11 = vld [vmem:[%s14139_s29 + $0x148] sm:$0xff] }
 0x346   : > { %8505 = vmatprep.mubr.f32.mxu0 %v14078_v6 }
 0x348   : > { %11780 = vmatmul.mubr.msk.f32.gmra.mrb[74].mxu1 %vm288_vm1, %v15805_v9 }
 0x349   : > { %12232 = vmatmul.mubr.msk.f32.gmra.mrb[18].mxu0 %vm288_vm1, %v15097_v12  ;;  %2711 = vmatprep.mubr.f32.mxu1 %v14078_v6  ;;  %v15832_v12 = vld [vmem:[%s14139_s29 + $0x150] sm:$0xff] }
 0x34a   : > { %8511 = vmatprep.mubr.f32.mxu0 %v14078_v6 }
 0x34c   : > { %11781 = vmatmul.mubr.msk.f32.gmra.mrb[76].mxu1 %vm288_vm1, %v15814_v10 }
 0x34d   : > { %12233 = vmatmul.mubr.msk.f32.gmra.mrb[20].mxu0 %vm288_vm1, %v15106_v13  ;;  %2717 = vmatprep.mubr.f32.mxu1 %v14078_v6  ;;  %v15841_v13 = vld [vmem:[%s14139_s29 + $0x158] sm:$0xff] }
 0x34e   : > { %8517 = vmatprep.mubr.f32.mxu0 %v14078_v6 }
 0x350   : > { %11782 = vmatmul.mubr.msk.f32.gmra.mrb[78].mxu1 %vm288_vm1, %v15823_v11 }
 0x351   : > { %12234 = vmatmul.mubr.msk.f32.gmra.mrb[22].mxu0 %vm288_vm1, %v15115_v14  ;;  %2723 = vmatprep.mubr.f32.mxu1 %v14078_v6  ;;  %v15850_v14 = vld [vmem:[%s14139_s29 + $0x160] sm:$0xff] }
 0x352   : > { %8523 = vmatprep.mubr.f32.mxu0 %v14078_v6 }
 0x354   : > { %11783 = vmatmul.mubr.msk.f32.gmra.mrb[80].mxu1 %vm288_vm1, %v15832_v12 }
 0x355   : > { %12235 = vmatmul.mubr.msk.f32.gmra.mrb[24].mxu0 %vm288_vm1, %v15124_v15  ;;  %2729 = vmatprep.mubr.f32.mxu1 %v14078_v6  ;;  %v15859_v15 = vld [vmem:[%s14139_s29 + $0x168] sm:$0xff] }
 0x356   : > { %8529 = vmatprep.mubr.f32.mxu0 %v14078_v6 }
 0x358   : > { %11784 = vmatmul.mubr.msk.f32.gmra.mrb[82].mxu1 %vm288_vm1, %v15841_v13 }
 0x359   : > { %12236 = vmatmul.mubr.msk.f32.gmra.mrb[26].mxu0 %vm288_vm1, %v15133_v16  ;;  %2735 = vmatprep.mubr.f32.mxu1 %v14078_v6  ;;  %v15868_v16 = vld [vmem:[%s14139_s29 + $0x170] sm:$0xff] }
 0x35a   : > { %8535 = vmatprep.mubr.f32.mxu0 %v14078_v6 }
 0x35c   : > { %11785 = vmatmul.mubr.msk.f32.gmra.mrb[84].mxu1 %vm288_vm1, %v15850_v14 }
 0x35d   : > { %12237 = vmatmul.mubr.msk.f32.gmra.mrb[28].mxu0 %vm288_vm1, %v15142_v17  ;;  %2741 = vmatprep.mubr.f32.mxu1 %v14078_v6  ;;  %v15877_v17 = vld [vmem:[%s14139_s29 + $0x178] sm:$0xff] }
 0x35e   : > { %8541 = vmatprep.mubr.f32.mxu0 %v14078_v6 }
 0x360   : > { %11786 = vmatmul.mubr.msk.f32.gmra.mrb[86].mxu1 %vm288_vm1, %v15859_v15 }
 0x361   : > { %12238 = vmatmul.mubr.msk.f32.gmra.mrb[30].mxu0 %vm288_vm1, %v15151_v18  ;;  %2747 = vmatprep.mubr.f32.mxu1 %v14078_v6  ;;  %v15886_v18 = vld [vmem:[%s14139_s29 + $0x180] sm:$0xff] }
 0x362   : > { %8547 = vmatprep.mubr.f32.mxu0 %v14078_v6 }
 0x364   : > { %11787 = vmatmul.mubr.msk.f32.gmra.mrb[88].mxu1 %vm288_vm1, %v15868_v16 }
 0x365   : > { %12239 = vmatmul.mubr.msk.f32.gmra.mrb[32].mxu0 %vm288_vm1, %v15160_v19  ;;  %2753 = vmatprep.mubr.f32.mxu1 %v14078_v6  ;;  %v15895_v19 = vld [vmem:[%s14139_s29 + $0x188] sm:$0xff] }
 0x366   : > { %8553 = vmatprep.mubr.f32.mxu0 %v14078_v6 }
 0x368   : > { %11788 = vmatmul.mubr.msk.f32.gmra.mrb[90].mxu1 %vm288_vm1, %v15877_v17 }
 0x369   : > { %12240 = vmatmul.mubr.msk.f32.gmra.mrb[34].mxu0 %vm288_vm1, %v15169_v21  ;;  %2759 = vmatprep.mubr.f32.mxu1 %v14078_v6  ;;  %v15904_v21 = vld [vmem:[%s14139_s29 + $0x190] sm:$0xff] }
 0x36a   : > { %8559 = vmatprep.mubr.f32.mxu0 %v14078_v6 }
 0x36c   : > { %11789 = vmatmul.mubr.msk.f32.gmra.mrb[92].mxu1 %vm288_vm1, %v15886_v18 }
 0x36d   : > { %12241 = vmatmul.mubr.msk.f32.gmra.mrb[36].mxu0 %vm288_vm1, %v15178_v23  ;;  %2765 = vmatprep.mubr.f32.mxu1 %v14078_v6  ;;  %v15913_v23 = vld [vmem:[%s14139_s29 + $0x198] sm:$0xff] }
 0x36e   : > { %8565 = vmatprep.mubr.f32.mxu0 %v14078_v6 }
 0x370   : > { %11790 = vmatmul.mubr.msk.f32.gmra.mrb[94].mxu1 %vm288_vm1, %v15895_v19 }
 0x371   : > { %12242 = vmatmul.mubr.msk.f32.gmra.mrb[38].mxu0 %vm288_vm1, %v15191_v26  ;;  %2771 = vmatprep.mubr.f32.mxu1 %v14078_v6  ;;  %v15922_v26 = vld [vmem:[%s14139_s29 + $0x1a0] sm:$0xff] }
 0x372   : > { %8571 = vmatprep.mubr.f32.mxu0 %v14078_v6 }
 0x374   : > { %11791 = vmatmul.mubr.msk.f32.gmra.mrb[96].mxu1 %vm288_vm1, %v15904_v21 }
 0x375   : > { %12243 = vmatmul.mubr.msk.f32.gmra.mrb[40].mxu0 %vm288_vm1, %v15200_v28  ;;  %2777 = vmatprep.mubr.f32.mxu1 %v14078_v6  ;;  %v15931_v28 = vld [vmem:[%s14139_s29 + $0x1a8] sm:$0xff] }
 0x376   : > { %8577 = vmatprep.mubr.f32.mxu0 %v14078_v6 }
 0x378   : > { %11792 = vmatmul.mubr.msk.f32.gmra.mrb[98].mxu1 %vm288_vm1, %v15913_v23 }
 0x379   : > { %12244 = vmatmul.mubr.msk.f32.gmra.mrb[42].mxu0 %vm288_vm1, %v15209_v30  ;;  %2783 = vmatprep.mubr.f32.mxu1 %v14078_v6  ;;  %v15940_v30 = vld [vmem:[%s14139_s29 + $0x1b0] sm:$0xff] }
 0x37a   : > { %8583 = vmatprep.mubr.f32.mxu0 %v14078_v6 }
 0x37c   : > { %11793 = vmatmul.mubr.msk.f32.gmra.mrb[100].mxu1 %vm288_vm1, %v15922_v26 }
 0x37d   : > { %12245 = vmatmul.mubr.msk.f32.gmra.mrb[44].mxu0 %vm288_vm1, %v15218_v32  ;;  %2789 = vmatprep.mubr.f32.mxu1 %v14078_v6  ;;  %v12340_v32 = vld [vmem:[%s17801_s1 + $0xd8] sm:$0x3f] }
 0x37e   : > { %8589 = vmatprep.mubr.f32.mxu0 %v14078_v6  ;;  %12341 = vmatprep.subr.msk.mxu0 %vm457_vm0, %v12340_v32  ;;  %v15962_v32 = vld [vmem:[%s14139_s29 + $0x1c0] sm:$0xff] }
 0x380   : > { %11794 = vmatmul.mubr.msk.f32.gmra.mrb[102].mxu1 %vm288_vm1, %v15931_v28 }
 0x381   : > { %12246 = vmatmul.mubr.msk.f32.gmra.mrb[46].mxu0 %vm288_vm1, %v15230_v35  ;;  %2795 = vmatprep.mubr.f32.mxu1 %v14078_v6  ;;  %v15953_v35 = vld [vmem:[%s14139_s29 + $0x1b8] sm:$0xff] }
 0x382   : > { %8595 = vmatprep.mubr.f32.mxu0 %v14078_v6 }
 0x384   : > { %11795 = vmatmul.mubr.msk.f32.gmra.mrb[104].mxu1 %vm288_vm1, %v15940_v30 }
 0x385   : > { %12247 = vmatmul.mubr.msk.f32.gmra.mrb[48].mxu0 %vm288_vm1, %v15240_v37  ;;  %2801 = vmatprep.mubr.f32.mxu1 %v14078_v6  ;;  %v15971_v37 = vld [vmem:[%s14139_s29 + $0x1c8] sm:$0xff] }
 0x386   : > { %8601 = vmatprep.mubr.f32.mxu0 %v14078_v6 }
 0x388   : > { %11796 = vmatmul.mubr.msk.f32.gmra.mrb[106].mxu1 %vm288_vm1, %v15953_v35 }
 0x389   : > { %12248 = vmatmul.mubr.msk.f32.gmra.mrb[50].mxu0 %vm288_vm1, %v15249_v39  ;;  %2807 = vmatprep.mubr.f32.mxu1 %v14078_v6  ;;  %v2932_v39 = vld [vmem:[%s14139_s29 + $0x11] sm:$0xff] }
 0x38a   : > { %8607 = vmatprep.mubr.f32.mxu0 %v14078_v6 }
 0x38c   : > { %11797 = vmatmul.mubr.msk.f32.gmra.mrb[108].mxu1 %vm288_vm1, %v15962_v32 }
 0x38d   : > { %12249 = vmatmul.mubr.msk.f32.gmra.mrb[52].mxu0 %vm288_vm1, %v15258_v41  ;;  %2813 = vmatprep.mubr.f32.mxu1 %v14078_v6  ;;  %v11859_v41 = vld [vmem:[%s17801_s1 + $0x50] sm:$0x3f] }
 0x38e   : > { %8613 = vmatprep.mubr.f32.mxu0 %v14078_v6 }
 0x390   : > { %11798 = vmatmul.mubr.msk.f32.gmra.mrb[110].mxu1 %vm288_vm1, %v15971_v37 }
 0x391   : > { %12250 = vmatmul.mubr.msk.f32.gmra.mrb[54].mxu0 %vm288_vm1, %v15267_v43  ;;  %3229 = vmatprep.mubr.f32.mxu1 %v14078_v6  ;;  %v2933_v43 = vld [vmem:[%s14139_s29 + $0x19] sm:$0xff] }
 0x392   : > { %8619 = vmatprep.mubr.f32.mxu0 %v14078_v6 }
 0x394   : > { %11803 = vmatmul.mubr.msk.f32.vlgmr.msra.gmra.mrb[0].mxu1 %vm288_vm1, %v2932_v39  ;;  %v2934_v39 = vld [vmem:[%s14139_s29 + $0x21] sm:$0xff] }
 0x395   : > { %12251 = vmatmul.mubr.msk.f32.gmra.mrb[56].mxu0 %vm288_vm1, %v15276_v45  ;;  %11862 = vmatpush1.msk.msra.mxu1 %vm457_vm0, %v11859_v41  ;;  %v2935_v45 = vld [vmem:[%s14139_s29 + $0x29] sm:$0xff] }
 0x396   : > { %3235 = vmatprep.mubr.f32.mxu1 %v14078_v6  ;;  %8625 = vmatprep.mubr.f32.mxu0 %v14078_v6  ;;  %v8205_v41 = vld [vmem:[%s14139_s29 + $0x1ca] sm:$0xff] }
 0x398   : > { %11804 = vmatmul.mubr.msk.f32.gmra.mrb[2].mxu1 %vm288_vm1, %v2933_v43  ;;  %v16182_v43 = vld [vmem:[%s14139_s29 + $0xd1] sm:$0xff] }
 0x399   : > { %12252 = vmatmul.mubr.msk.f32.gmra.mrb[58].mxu0 %vm288_vm1, %v15285_v47  ;;  %3241 = vmatprep.mubr.f32.mxu1 %v14078_v6  ;;  %v2936_v47 = vld [vmem:[%s14139_s29 + $0x31] sm:$0xff] }
 0x39a   : > { %8631 = vmatprep.mubr.f32.mxu0 %v14078_v6 }
 0x39c   : > { %11805 = vmatmul.mubr.msk.f32.gmra.mrb[4].mxu1 %vm288_vm1, %v2934_v39  ;;  %v8206_v39 = vld [vmem:[%s14139_s29 + $0x1d2] sm:$0xff] }
 0x39d   : > { %12253 = vmatmul.mubr.msk.f32.gmra.mrb[60].mxu0 %vm288_vm1, %v15294_v49  ;;  %3247 = vmatprep.mubr.f32.mxu1 %v14078_v6  ;;  %v2937_v49 = vld [vmem:[%s14139_s29 + $0x39] sm:$0xff] }
 0x39e   : > { %8637 = vmatprep.mubr.f32.mxu0 %v14078_v6 }
 0x3a0   : > { %11806 = vmatmul.mubr.msk.f32.gmra.mrb[6].mxu1 %vm288_vm1, %v2935_v45  ;;  %v11920_v45 = vld [vmem:[%s17801_s1 + $0x68] sm:$0x3f] }
 0x3a1   : > { %12254 = vmatmul.mubr.msk.f32.gmra.mrb[62].mxu0 %vm288_vm1, %v15303_v51  ;;  %3253 = vmatprep.mubr.f32.mxu1 %v14078_v6  ;;  %v16020_v51 = vld [vmem:[%s14139_s29 + $0x41] sm:$0xff] }
 0x3a2   : > { %8643 = vmatprep.mubr.f32.mxu0 %v14078_v6  ;;  %11921 = vmatprep.subr.msk.mxu1 %vm457_vm0, %v11920_v45  ;;  %v8209_v45 = vld [vmem:[%s14139_s29 + $0x1ea] sm:$0xff] }
 0x3a4   : > { %11807 = vmatmul.mubr.msk.f32.gmra.mrb[8].mxu1 %vm288_vm1, %v2936_v47  ;;  %v16195_v47 = vld [vmem:[%s14139_s29 + $0xd9] sm:$0xff] }
 0x3a5   : > { %12255 = vmatmul.mubr.msk.f32.gmra.mrb[64].mxu0 %vm288_vm1, %v15312_v53  ;;  %3259 = vmatprep.mubr.f32.mxu1 %v14078_v6  ;;  %v16029_v53 = vld [vmem:[%s14139_s29 + $0x49] sm:$0xff] }
 0x3a6   : > { %8649 = vmatprep.mubr.f32.mxu0 %v14078_v6 }
 0x3a8   : > { %11808 = vmatmul.mubr.msk.f32.gmra.mrb[10].mxu1 %vm288_vm1, %v2937_v49  ;;  %v8207_v49 = vld [vmem:[%s14139_s29 + $0x1da] sm:$0xff] }
 0x3a9   : > { %12256 = vmatmul.mubr.msk.f32.gmra.mrb[66].mxu0 %vm288_vm1, %v15321_v55  ;;  %3265 = vmatprep.mubr.f32.mxu1 %v14078_v6  ;;  %v16038_v55 = vld [vmem:[%s14139_s29 + $0x51] sm:$0xff] }
 0x3aa   : > { %8655 = vmatprep.mubr.f32.mxu0 %v14078_v6 }
 0x3ac   : > { %11809 = vmatmul.mubr.msk.f32.gmra.mrb[12].mxu1 %vm288_vm1, %v16020_v51 }
 0x3ad   : > { %12257 = vmatmul.mubr.msk.f32.gmra.mrb[68].mxu0 %vm288_vm1, %v15330_v57  ;;  %3271 = vmatprep.mubr.f32.mxu1 %v14078_v6  ;;  %v16047_v57 = vld [vmem:[%s14139_s29 + $0x59] sm:$0xff] }
 0x3ae   : > { %8661 = vmatprep.mubr.f32.mxu0 %v14078_v6 }
 0x3b0   : > { %11810 = vmatmul.mubr.msk.f32.gmra.mrb[14].mxu1 %vm288_vm1, %v16029_v53 }
 0x3b1   : > { %12258 = vmatmul.mubr.msk.f32.gmra.mrb[70].mxu0 %vm288_vm1, %v15339_v59  ;;  %3277 = vmatprep.mubr.f32.mxu1 %v14078_v6  ;;  %v16056_v59 = vld [vmem:[%s14139_s29 + $0x61] sm:$0xff] }
 0x3b2   : > { %8667 = vmatprep.mubr.f32.mxu0 %v14078_v6 }
 0x3b4   : > { %11811 = vmatmul.mubr.msk.f32.gmra.mrb[16].mxu1 %vm288_vm1, %v16038_v55 }
 0x3b5   : > { %12259 = vmatmul.mubr.msk.f32.gmra.mrb[72].mxu0 %vm288_vm1, %v15348_v61  ;;  %3283 = vmatprep.mubr.f32.mxu1 %v14078_v6  ;;  %v16065_v61 = vld [vmem:[%s14139_s29 + $0x69] sm:$0xff] }
 0x3b6   : > { %8673 = vmatprep.mubr.f32.mxu0 %v14078_v6 }
 0x3b8   : > { %11812 = vmatmul.mubr.msk.f32.gmra.mrb[18].mxu1 %vm288_vm1, %v16047_v57 }
 0x3b9   : > { %12260 = vmatmul.mubr.msk.f32.gmra.mrb[74].mxu0 %vm288_vm1, %v15357_v63  ;;  %3289 = vmatprep.mubr.f32.mxu1 %v14078_v6  ;;  %v16074_v63 = vld [vmem:[%s14139_s29 + $0x71] sm:$0xff] }
 0x3ba   : > { %8679 = vmatprep.mubr.f32.mxu0 %v14078_v6 }
 0x3bc   : > { %11813 = vmatmul.mubr.msk.f32.gmra.mrb[20].mxu1 %vm288_vm1, %v16056_v59 }
 0x3bd   : > { %12261 = vmatmul.mubr.msk.f32.gmra.mrb[76].mxu0 %vm288_vm1, %v15366_v1  ;;  %3295 = vmatprep.mubr.f32.mxu1 %v14078_v6  ;;  %v16083_v1 = vld [vmem:[%s14139_s29 + $0x79] sm:$0xff] }
 0x3be   : > { %8685 = vmatprep.mubr.f32.mxu0 %v14078_v6 }
 0x3c0   : > { %11814 = vmatmul.mubr.msk.f32.gmra.mrb[22].mxu1 %vm288_vm1, %v16065_v61 }
 0x3c1   : > { %12262 = vmatmul.mubr.msk.f32.gmra.mrb[78].mxu0 %vm288_vm1, %v15375_v22  ;;  %3301 = vmatprep.mubr.f32.mxu1 %v14078_v6  ;;  %v16092_v22 = vld [vmem:[%s14139_s29 + $0x81] sm:$0xff] }
 0x3c2   : > { %8691 = vmatprep.mubr.f32.mxu0 %v14078_v6 }
 0x3c4   : > { %11815 = vmatmul.mubr.msk.f32.gmra.mrb[24].mxu1 %vm288_vm1, %v16074_v63 }
 0x3c5   : > { %12263 = vmatmul.mubr.msk.f32.gmra.mrb[80].mxu0 %vm288_vm1, %v15384_v25  ;;  %3307 = vmatprep.mubr.f32.mxu1 %v14078_v6  ;;  %v16101_v25 = vld [vmem:[%s14139_s29 + $0x89] sm:$0xff] }
 0x3c6   : > { %8697 = vmatprep.mubr.f32.mxu0 %v14078_v6 }
 0x3c8   : > { %11816 = vmatmul.mubr.msk.f32.gmra.mrb[26].mxu1 %vm288_vm1, %v16083_v1 }
 0x3c9   : > { %12264 = vmatmul.mubr.msk.f32.gmra.mrb[82].mxu0 %vm288_vm1, %v15393_v29  ;;  %3313 = vmatprep.mubr.f32.mxu1 %v14078_v6  ;;  %v16110_v29 = vld [vmem:[%s14139_s29 + $0x91] sm:$0xff] }
 0x3ca   : > { %8703 = vmatprep.mubr.f32.mxu0 %v14078_v6 }
 0x3cc   : > { %11817 = vmatmul.mubr.msk.f32.gmra.mrb[28].mxu1 %vm288_vm1, %v16092_v22 }
 0x3cd   : > { %12265 = vmatmul.mubr.msk.f32.gmra.mrb[84].mxu0 %vm288_vm1, %v15402_v33  ;;  %3319 = vmatprep.mubr.f32.mxu1 %v14078_v6  ;;  %v16119_v33 = vld [vmem:[%s14139_s29 + $0x99] sm:$0xff] }
 0x3ce   : > { %8709 = vmatprep.mubr.f32.mxu0 %v14078_v6 }
 0x3d0   : > { %11818 = vmatmul.mubr.msk.f32.gmra.mrb[30].mxu1 %vm288_vm1, %v16101_v25 }
 0x3d1   : > { %12266 = vmatmul.mubr.msk.f32.gmra.mrb[86].mxu0 %vm288_vm1, %v15411_v36  ;;  %3325 = vmatprep.mubr.f32.mxu1 %v14078_v6  ;;  %v16128_v36 = vld [vmem:[%s14139_s29 + $0xa1] sm:$0xff] }
 0x3d2   : > { %8715 = vmatprep.mubr.f32.mxu0 %v14078_v6 }
 0x3d4   : > { %11819 = vmatmul.mubr.msk.f32.gmra.mrb[32].mxu1 %vm288_vm1, %v16110_v29 }
 0x3d5   : > { %12267 = vmatmul.mubr.msk.f32.gmra.mrb[88].mxu0 %vm288_vm1, %v15420_v40  ;;  %3331 = vmatprep.mubr.f32.mxu1 %v14078_v6  ;;  %v16137_v40 = vld [vmem:[%s14139_s29 + $0xa9] sm:$0xff] }
 0x3d6   : > { %8721 = vmatprep.mubr.f32.mxu0 %v14078_v6 }
 0x3d8   : > { %11820 = vmatmul.mubr.msk.f32.gmra.mrb[34].mxu1 %vm288_vm1, %v16119_v33 }
 0x3d9   : > { %12268 = vmatmul.mubr.msk.f32.gmra.mrb[90].mxu0 %vm288_vm1, %v15429_v44  ;;  %3337 = vmatprep.mubr.f32.mxu1 %v14078_v6  ;;  %v16146_v44 = vld [vmem:[%s14139_s29 + $0xb1] sm:$0xff] }
 0x3da   : > { %8727 = vmatprep.mubr.f32.mxu0 %v14078_v6 }
 0x3dc   : > { %11821 = vmatmul.mubr.msk.f32.gmra.mrb[36].mxu1 %vm288_vm1, %v16128_v36 }
 0x3dd   : > { %12269 = vmatmul.mubr.msk.f32.gmra.mrb[92].mxu0 %vm288_vm1, %v15438_v48  ;;  %3343 = vmatprep.mubr.f32.mxu1 %v14078_v6  ;;  %v16155_v48 = vld [vmem:[%s14139_s29 + $0xb9] sm:$0xff] }
 0x3de   : > { %8733 = vmatprep.mubr.f32.mxu0 %v14078_v6 }
 0x3e0   : > { %11822 = vmatmul.mubr.msk.f32.gmra.mrb[38].mxu1 %vm288_vm1, %v16137_v40 }
 0x3e1   : > { %12270 = vmatmul.mubr.msk.f32.gmra.mrb[94].mxu0 %vm288_vm1, %v15451_v54  ;;  %3349 = vmatprep.mubr.f32.mxu1 %v14078_v6  ;;  %v16164_v54 = vld [vmem:[%s14139_s29 + $0xc1] sm:$0xff] }
 0x3e2   : > { %8739 = vmatprep.mubr.f32.mxu0 %v14078_v6 }
 0x3e4   : > { %11823 = vmatmul.mubr.msk.f32.gmra.mrb[40].mxu1 %vm288_vm1, %v16146_v44 }
 0x3e5   : > { %12271 = vmatmul.mubr.msk.f32.gmra.mrb[96].mxu0 %vm288_vm1, %v15460_v58  ;;  %3355 = vmatprep.mubr.f32.mxu1 %v14078_v6  ;;  %v8204_v58 = vld [vmem:[%s14139_s29 + $0x1c2] sm:$0xff] }
 0x3e6   : > { %8745 = vmatprep.mubr.f32.mxu0 %v14078_v6 }
 0x3e8   : > { %11824 = vmatmul.mubr.msk.f32.gmra.mrb[42].mxu1 %vm288_vm1, %v16155_v48 }
 0x3e9   : > { %12272 = vmatmul.mubr.msk.f32.gmra.mrb[98].mxu0 %vm288_vm1, %v15469_v62  ;;  %3361 = vmatprep.mubr.f32.mxu1 %v14078_v6  ;;  %v16173_v62 = vld [vmem:[%s14139_s29 + $0xc9] sm:$0xff] }
 0x3ea   : > { %8751 = vmatprep.mubr.f32.mxu0 %v14078_v6 }
 0x3ec   : > { %11825 = vmatmul.mubr.msk.f32.gmra.mrb[44].mxu1 %vm288_vm1, %v16164_v54 }
 0x3ed   : > { %12273 = vmatmul.mubr.msk.f32.gmra.mrb[100].mxu0 %vm288_vm1, %v8204_v58  ;;  %3367 = vmatprep.mubr.f32.mxu1 %v14078_v6  ;;  %v16204_v58 = vld [vmem:[%s14139_s29 + $0xe1] sm:$0xff] }
 0x3ee   : > { %8757 = vmatprep.mubr.f32.mxu0 %v14078_v6 }
 0x3f0   : > { %11826 = vmatmul.mubr.msk.f32.gmra.mrb[46].mxu1 %vm288_vm1, %v16173_v62 }
 0x3f1   : > { %12274 = vmatmul.mubr.msk.f32.gmra.mrb[102].mxu0 %vm288_vm1, %v8205_v41  ;;  %3373 = vmatprep.mubr.f32.mxu1 %v14078_v6  ;;  %v8208_v41 = vld [vmem:[%s14139_s29 + $0x1e2] sm:$0xff] }
 0x3f2   : > { %8763 = vmatprep.mubr.f32.mxu0 %v14078_v6 }
 0x3f4   : > { %11827 = vmatmul.mubr.msk.f32.gmra.mrb[48].mxu1 %vm288_vm1, %v16182_v43 }
 0x3f5   : > { %12275 = vmatmul.mubr.msk.f32.gmra.mrb[104].mxu0 %vm288_vm1, %v8206_v39  ;;  %3379 = vmatprep.mubr.f32.mxu1 %v14078_v6  ;;  %v16213_v39 = vld [vmem:[%s14139_s29 + $0xe9] sm:$0xff] }
 0x3f6   : > { %8769 = vmatprep.mubr.f32.mxu0 %v14078_v6 }
 0x3f8   : > { %11828 = vmatmul.mubr.msk.f32.gmra.mrb[50].mxu1 %vm288_vm1, %v16195_v47 }
 0x3f9   : > { %12276 = vmatmul.mubr.msk.f32.gmra.mrb[106].mxu0 %vm288_vm1, %v8207_v49  ;;  %3385 = vmatprep.mubr.f32.mxu1 %v14078_v6  ;;  %v16222_v49 = vld [vmem:[%s14139_s29 + $0xf1] sm:$0xff] }
 0x3fa   : > { %8775 = vmatprep.mubr.f32.mxu0 %v14078_v6 }
 0x3fc   : > { %11829 = vmatmul.mubr.msk.f32.gmra.mrb[52].mxu1 %vm288_vm1, %v16204_v58 }
 0x3fd   : > { %12277 = vmatmul.mubr.msk.f32.gmra.mrb[108].mxu0 %vm288_vm1, %v8208_v41  ;;  %3391 = vmatprep.mubr.f32.mxu1 %v14078_v6  ;;  %v12339_v41 = vld [vmem:[%s17801_s1 + $0xd0] sm:$0x3f] }
 0x3fe   : > { %8781 = vmatprep.mubr.f32.mxu0 %v14078_v6 }
 0x400   : > { %11830 = vmatmul.mubr.msk.f32.gmra.mrb[54].mxu1 %vm288_vm1, %v16213_v39 }
 0x401   : > { %12278 = vmatmul.mubr.msk.f32.gmra.mrb[110].mxu0 %vm288_vm1, %v8209_v45  ;;  %3397 = vmatprep.mubr.f32.mxu1 %v14078_v6  ;;  %v16234_v45 = vld [vmem:[%s14139_s29 + $0xf9] sm:$0xff] }
 0x402   : > { %9197 = vmatprep.mubr.f32.mxu0 %v14078_v6 }
 0x404   : > { %11831 = vmatmul.mubr.msk.f32.gmra.mrb[56].mxu1 %vm288_vm1, %v16222_v49 }
 0x405   : > { %12283 = vmatmul.mubr.msk.f32.vlgmr.msra.gmra.mrb[0].mxu0 %vm288_vm1, %v15518_v20  ;;  %3403 = vmatprep.mubr.f32.mxu1 %v14078_v6  ;;  %v16244_v20 = vld [vmem:[%s14139_s29 + $0x101] sm:$0xff] }
 0x406   : > { %12342 = vmatpush1.msk.msra.mxu0 %vm457_vm0, %v12339_v41  ;;  %9203 = vmatprep.mubr.f32.mxu0 %v14078_v6  ;;  %v16253_v41 = vld [vmem:[%s14139_s29 + $0x109] sm:$0xff] }
 0x408   : > { %11832 = vmatmul.mubr.msk.f32.gmra.mrb[58].mxu1 %vm288_vm1, %v16234_v45 }
 0x409   : > { %12284 = vmatmul.mubr.msk.f32.gmra.mrb[2].mxu0 %vm288_vm1, %v15527_v27  ;;  %3409 = vmatprep.mubr.f32.mxu1 %v14078_v6  ;;  %v16262_v27 = vld [vmem:[%s14139_s29 + $0x111] sm:$0xff] }
 0x40a   : > { %9209 = vmatprep.mubr.f32.mxu0 %v14078_v6 }
 0x40c   : > { %11833 = vmatmul.mubr.msk.f32.gmra.mrb[60].mxu1 %vm288_vm1, %v16244_v20 }
 0x40d   : > { %12285 = vmatmul.mubr.msk.f32.gmra.mrb[4].mxu0 %vm288_vm1, %v15536_v34  ;;  %3415 = vmatprep.mubr.f32.mxu1 %v14078_v6  ;;  %v16271_v34 = vld [vmem:[%s14139_s29 + $0x119] sm:$0xff] }
 0x40e   : > { %9215 = vmatprep.mubr.f32.mxu0 %v14078_v6 }
 0x410   : > { %11834 = vmatmul.mubr.msk.f32.gmra.mrb[62].mxu1 %vm288_vm1, %v16253_v41 }
 0x411   : > { %12286 = vmatmul.mubr.msk.f32.gmra.mrb[6].mxu0 %vm288_vm1, %v15545_v42  ;;  %3421 = vmatprep.mubr.f32.mxu1 %v14078_v6  ;;  %v16280_v42 = vld [vmem:[%s14139_s29 + $0x121] sm:$0xff] }
 0x412   : > { %9221 = vmatprep.mubr.f32.mxu0 %v14078_v6 }
 0x414   : > { %11835 = vmatmul.mubr.msk.f32.gmra.mrb[64].mxu1 %vm288_vm1, %v16262_v27 }
 0x415   : > { %12287 = vmatmul.mubr.msk.f32.gmra.mrb[8].mxu0 %vm288_vm1, %v15554_v50  ;;  %3427 = vmatprep.mubr.f32.mxu1 %v14078_v6  ;;  %v16289_v50 = vld [vmem:[%s14139_s29 + $0x129] sm:$0xff] }
 0x416   : > { %9227 = vmatprep.mubr.f32.mxu0 %v14078_v6  ;;  %17841 = vst [vmem:[#allocation14_spill] sm:$0xff] %v16289_v50 }
 0x418   : > { %11836 = vmatmul.mubr.msk.f32.gmra.mrb[66].mxu1 %vm288_vm1, %v16271_v34 }
 0x419   : > { %12288 = vmatmul.mubr.msk.f32.gmra.mrb[10].mxu0 %vm288_vm1, %v15563_v56  ;;  %3433 = vmatprep.mubr.f32.mxu1 %v14078_v6  ;;  %v16298_v56 = vld [vmem:[%s14139_s29 + $0x131] sm:$0xff] }
 0x41a   : > { %9233 = vmatprep.mubr.f32.mxu0 %v14078_v6  ;;  %17842 = vst [vmem:[#allocation15_spill] sm:$0xff] %v16298_v56 }
 0x41c   : > { %11837 = vmatmul.mubr.msk.f32.gmra.mrb[68].mxu1 %vm288_vm1, %v16280_v42 }
 0x41d   : > { %12289 = vmatmul.mubr.msk.f32.gmra.mrb[12].mxu0 %vm288_vm1, %v15572_v0  ;;  %3439 = vmatprep.mubr.f32.mxu1 %v14078_v6  ;;  %v17843_v0 = vld [vmem:[#allocation2_spill] sm:$0xff] }
 0x41e   : > { %9239 = vmatprep.mubr.f32.mxu0 %v14078_v6 }
 0x420   : > { %11838 = vmatmul.mubr.msk.f32.gmra.mrb[70].mxu1 %vm288_vm1, %v16289_v50  ;;  %v16307_v50 = vld [vmem:[%s14139_s29 + $0x139] sm:$0xff] }
 0x421   : > { %12290 = vmatmul.mubr.msk.f32.gmra.mrb[14].mxu0 %vm288_vm1, %v15581_v31  ;;  %3445 = vmatprep.mubr.f32.mxu1 %v14078_v6  ;;  %17844 = vst [vmem:[#allocation2_spill] sm:$0xff] %v16307_v50  ;;  %v17845_v31 = vld [vmem:[#allocation3_spill] sm:$0xff] }
 0x422   : > { %9245 = vmatprep.mubr.f32.mxu0 %v14078_v6 }
 0x424   : > { %11839 = vmatmul.mubr.msk.f32.gmra.mrb[72].mxu1 %vm288_vm1, %v16298_v56  ;;  %v16316_v56 = vld [vmem:[%s14139_s29 + $0x141] sm:$0xff] }
 0x425   : > { %12291 = vmatmul.mubr.msk.f32.gmra.mrb[16].mxu0 %vm288_vm1, %v17843_v0  ;;  %3451 = vmatprep.mubr.f32.mxu1 %v14078_v6  ;;  %17846 = vst [vmem:[#allocation3_spill] sm:$0xff] %v16316_v56  ;;  %v17847_v0 = vld [vmem:[#allocation4_spill] sm:$0xff] }
 0x426   : > { %9251 = vmatprep.mubr.f32.mxu0 %v14078_v6 }
 0x428   : > { %11840 = vmatmul.mubr.msk.f32.gmra.mrb[74].mxu1 %vm288_vm1, %v16307_v50  ;;  %v16325_v50 = vld [vmem:[%s14139_s29 + $0x149] sm:$0xff] }
 0x429   : > { %12292 = vmatmul.mubr.msk.f32.gmra.mrb[18].mxu0 %vm288_vm1, %v17845_v31  ;;  %3457 = vmatprep.mubr.f32.mxu1 %v14078_v6  ;;  %17848 = vst [vmem:[#allocation4_spill] sm:$0xff] %v16325_v50  ;;  %v17849_v31 = vld [vmem:[#allocation5_spill] sm:$0xff] }
 0x42a   : > { %9257 = vmatprep.mubr.f32.mxu0 %v14078_v6 }
 0x42c   : > { %11841 = vmatmul.mubr.msk.f32.gmra.mrb[76].mxu1 %vm288_vm1, %v16316_v56  ;;  %v16334_v56 = vld [vmem:[%s14139_s29 + $0x151] sm:$0xff] }
 0x42d   : > { %12293 = vmatmul.mubr.msk.f32.gmra.mrb[20].mxu0 %vm288_vm1, %v17847_v0  ;;  %3463 = vmatprep.mubr.f32.mxu1 %v14078_v6  ;;  %17850 = vst [vmem:[#allocation5_spill] sm:$0xff] %v16334_v56  ;;  %v17851_v0 = vld [vmem:[#allocation6_spill] sm:$0xff] }
 0x42e   : > { %9263 = vmatprep.mubr.f32.mxu0 %v14078_v6 }
 0x430   : > { %11842 = vmatmul.mubr.msk.f32.gmra.mrb[78].mxu1 %vm288_vm1, %v16325_v50  ;;  %v16343_v50 = vld [vmem:[%s14139_s29 + $0x159] sm:$0xff] }
 0x431   : > { %12294 = vmatmul.mubr.msk.f32.gmra.mrb[22].mxu0 %vm288_vm1, %v17849_v31  ;;  %3469 = vmatprep.mubr.f32.mxu1 %v14078_v6  ;;  %17852 = vst [vmem:[#allocation6_spill] sm:$0xff] %v16343_v50  ;;  %v17853_v31 = vld [vmem:[#allocation7_spill] sm:$0xff] }
 0x432   : > { %9269 = vmatprep.mubr.f32.mxu0 %v14078_v6 }
 0x434   : > { %11843 = vmatmul.mubr.msk.f32.gmra.mrb[80].mxu1 %vm288_vm1, %v16334_v56  ;;  %v16352_v56 = vld [vmem:[%s14139_s29 + $0x161] sm:$0xff] }
 0x435   : > { %12295 = vmatmul.mubr.msk.f32.gmra.mrb[24].mxu0 %vm288_vm1, %v17851_v0  ;;  %3475 = vmatprep.mubr.f32.mxu1 %v14078_v6  ;;  %17854 = vst [vmem:[#allocation7_spill] sm:$0xff] %v16352_v56  ;;  %v17855_v0 = vld [vmem:[#allocation8_spill] sm:$0xff] }
 0x436   : > { %9275 = vmatprep.mubr.f32.mxu0 %v14078_v6 }
 0x438   : > { %11844 = vmatmul.mubr.msk.f32.gmra.mrb[82].mxu1 %vm288_vm1, %v16343_v50  ;;  %v16361_v50 = vld [vmem:[%s14139_s29 + $0x169] sm:$0xff] }
 0x439   : > { %12296 = vmatmul.mubr.msk.f32.gmra.mrb[26].mxu0 %vm288_vm1, %v17853_v31  ;;  %3481 = vmatprep.mubr.f32.mxu1 %v14078_v6  ;;  %17856 = vst [vmem:[#allocation8_spill] sm:$0xff] %v16361_v50  ;;  %v17857_v31 = vld [vmem:[#allocation9_spill] sm:$0xff] }
 0x43a   : > { %9281 = vmatprep.mubr.f32.mxu0 %v14078_v6 }
 0x43c   : > { %11845 = vmatmul.mubr.msk.f32.gmra.mrb[84].mxu1 %vm288_vm1, %v16352_v56  ;;  %v16370_v56 = vld [vmem:[%s14139_s29 + $0x171] sm:$0xff] }
 0x43d   : > { %12297 = vmatmul.mubr.msk.f32.gmra.mrb[28].mxu0 %vm288_vm1, %v17855_v0  ;;  %3487 = vmatprep.mubr.f32.mxu1 %v14078_v6  ;;  %17858 = vst [vmem:[#allocation9_spill] sm:$0xff] %v16370_v56  ;;  %v17859_v0 = vld [vmem:[#allocation10_spill] sm:$0xff] }
 0x43e   : > { %9287 = vmatprep.mubr.f32.mxu0 %v14078_v6 }
 0x440   : > { %11846 = vmatmul.mubr.msk.f32.gmra.mrb[86].mxu1 %vm288_vm1, %v16361_v50  ;;  %v16379_v50 = vld [vmem:[%s14139_s29 + $0x179] sm:$0xff] }
 0x441   : > { %12298 = vmatmul.mubr.msk.f32.gmra.mrb[30].mxu0 %vm288_vm1, %v17857_v31  ;;  %3493 = vmatprep.mubr.f32.mxu1 %v14078_v6  ;;  %v17860_v31 = vld [vmem:[#allocation11_spill] sm:$0xff] }
 0x442   : > { %9293 = vmatprep.mubr.f32.mxu0 %v14078_v6 }
 0x444   : > { %11847 = vmatmul.mubr.msk.f32.gmra.mrb[88].mxu1 %vm288_vm1, %v16370_v56  ;;  %v16388_v56 = vld [vmem:[%s14139_s29 + $0x181] sm:$0xff] }
 0x445   : > { %12299 = vmatmul.mubr.msk.f32.gmra.mrb[32].mxu0 %vm288_vm1, %v17859_v0  ;;  %3499 = vmatprep.mubr.f32.mxu1 %v14078_v6  ;;  %17861 = vst [vmem:[#allocation10_spill] sm:$0xff] %v16388_v56  ;;  %v16397_v0 = vld [vmem:[%s14139_s29 + $0x189] sm:$0xff] }
 0x446   : > { %9299 = vmatprep.mubr.f32.mxu0 %v14078_v6  ;;  %17862 = vst [vmem:[#allocation11_spill] sm:$0xff] %v16397_v0 }
 0x448   : > { %11848 = vmatmul.mubr.msk.f32.gmra.mrb[90].mxu1 %vm288_vm1, %v16379_v50 }
 0x449   : > { %12300 = vmatmul.mubr.msk.f32.gmra.mrb[34].mxu0 %vm288_vm1, %v17860_v31  ;;  %3505 = vmatprep.mubr.f32.mxu1 %v14078_v6  ;;  %v17863_v31 = vld [vmem:[#allocation12_spill] sm:$0xff] }
 0x44a   : > { %9305 = vmatprep.mubr.f32.mxu0 %v14078_v6 }
 0x44c   : > { %11849 = vmatmul.mubr.msk.f32.gmra.mrb[92].mxu1 %vm288_vm1, %v16388_v56  ;;  %v16406_v56 = vld [vmem:[%s14139_s29 + $0x191] sm:$0xff] }
 0x44d   : > { %12301 = vmatmul.mubr.msk.f32.gmra.mrb[36].mxu0 %vm288_vm1, %v15680_v38  ;;  %3511 = vmatprep.mubr.f32.mxu1 %v14078_v6  ;;  %v17864_v38 = vld [vmem:[#allocation13_spill] sm:$0xff] }
 0x44e   : > { %9311 = vmatprep.mubr.f32.mxu0 %v14078_v6 }
 0x450   : > { %11850 = vmatmul.mubr.msk.f32.gmra.mrb[94].mxu1 %vm288_vm1, %v16397_v0  ;;  %v16415_v0 = vld [vmem:[%s14139_s29 + $0x199] sm:$0xff] }
 0x451   : > { %12302 = vmatmul.mubr.msk.f32.gmra.mrb[38].mxu0 %vm288_vm1, %v17863_v31  ;;  %3517 = vmatprep.mubr.f32.mxu1 %v14078_v6  ;;  %v16424_v31 = vld [vmem:[%s14139_s29 + $0x1a1] sm:$0xff] }
 0x452   : > { %9317 = vmatprep.mubr.f32.mxu0 %v14078_v6 }
 0x454   : > { %11851 = vmatmul.mubr.msk.f32.gmra.mrb[96].mxu1 %vm288_vm1, %v16406_v56 }
 0x455   : > { %12303 = vmatmul.mubr.msk.f32.gmra.mrb[40].mxu0 %vm288_vm1, %v17864_v38  ;;  %3523 = vmatprep.mubr.f32.mxu1 %v14078_v6  ;;  %v16433_v38 = vld [vmem:[%s14139_s29 + $0x1a9] sm:$0xff] }
 0x456   : > { %9323 = vmatprep.mubr.f32.mxu0 %v14078_v6 }
 0x458   : > { %11852 = vmatmul.mubr.msk.f32.gmra.mrb[98].mxu1 %vm288_vm1, %v16415_v0 }
 0x459   : > { %12304 = vmatmul.mubr.msk.f32.gmra.mrb[42].mxu0 %vm288_vm1, %v15711_v24  ;;  %3529 = vmatprep.mubr.f32.mxu1 %v14078_v6  ;;  %v16442_v24 = vld [vmem:[%s14139_s29 + $0x1b1] sm:$0xff] }
 0x45a   : > { %9329 = vmatprep.mubr.f32.mxu0 %v14078_v6 }
 0x45c   : > { %11853 = vmatmul.mubr.msk.f32.gmra.mrb[100].mxu1 %vm288_vm1, %v16424_v31 }
 0x45d   : > { %12305 = vmatmul.mubr.msk.f32.gmra.mrb[44].mxu0 %vm288_vm1, %v15720_v46  ;;  %3535 = vmatprep.mubr.f32.mxu1 %v14078_v6  ;;  %v12400_v46 = vld [vmem:[%s17801_s1 + $0xe8] sm:$0x3f] }
 0x45e   : > { %9335 = vmatprep.mubr.f32.mxu0 %v14078_v6  ;;  %12401 = vmatprep.subr.msk.mxu0 %vm457_vm0, %v12400_v46  ;;  %v16464_v46 = vld [vmem:[%s14139_s29 + $0x1c1] sm:$0xff] }
 0x460   : > { %11854 = vmatmul.mubr.msk.f32.gmra.mrb[102].mxu1 %vm288_vm1, %v16433_v38 }
 0x461   : > { %12306 = vmatmul.mubr.msk.f32.gmra.mrb[46].mxu0 %vm288_vm1, %v15732_v60  ;;  %3541 = vmatprep.mubr.f32.mxu1 %v14078_v6  ;;  %v16455_v60 = vld [vmem:[%s14139_s29 + $0x1b9] sm:$0xff] }
 0x462   : > { %9341 = vmatprep.mubr.f32.mxu0 %v14078_v6 }
 0x464   : > { %11855 = vmatmul.mubr.msk.f32.gmra.mrb[104].mxu1 %vm288_vm1, %v16442_v24 }
 0x465   : > { %12307 = vmatmul.mubr.msk.f32.gmra.mrb[48].mxu0 %vm288_vm1, %v15742_v2  ;;  %3547 = vmatprep.mubr.f32.mxu1 %v14078_v6  ;;  %v16473_v2 = vld [vmem:[%s14139_s29 + $0x1c9] sm:$0xff] }
 0x466   : > { %9347 = vmatprep.mubr.f32.mxu0 %v14078_v6  ;;  %17865 = vst [vmem:[#allocation12_spill] sm:$0xff] %v16473_v2 }
 0x468   : > { %11856 = vmatmul.mubr.msk.f32.gmra.mrb[106].mxu1 %vm288_vm1, %v16455_v60 }
 0x469   : > { %12308 = vmatmul.mubr.msk.f32.gmra.mrb[50].mxu0 %vm288_vm1, %v15751_v52  ;;  %3553 = vmatprep.mubr.f32.mxu1 %v14078_v6  ;;  %v3678_v52 = vld [vmem:[%s14139_s29 + $0x12] sm:$0xff] }
 0x46a   : > { %9353 = vmatprep.mubr.f32.mxu0 %v14078_v6 }
 0x46c   : > { %11857 = vmatmul.mubr.msk.f32.gmra.mrb[108].mxu1 %vm288_vm1, %v16464_v46 }
 0x46d   : > { %12309 = vmatmul.mubr.msk.f32.gmra.mrb[52].mxu0 %vm288_vm1, %v15760_v3  ;;  %3559 = vmatprep.mubr.f32.mxu1 %v14078_v6  ;;  %v11919_v3 = vld [vmem:[%s17801_s1 + $0x60] sm:$0x3f] }
 0x46e   : > { %9359 = vmatprep.mubr.f32.mxu0 %v14078_v6 }
 0x470   : > { %11858 = vmatmul.mubr.msk.f32.gmra.mrb[110].mxu1 %vm288_vm1, %v16473_v2  ;;  %v14068_v2 = vld [vmem:[%s17801_s1 + $0x78] sm:$0x3f] }
 0x471   : > { %12310 = vmatmul.mubr.msk.f32.gmra.mrb[54].mxu0 %vm288_vm1, %v15769_v4  ;;  %3975 = vmatprep.mubr.f32.mxu1 %v14078_v6  ;;  %v3679_v4 = vld [vmem:[%s14139_s29 + $0x1a] sm:$0xff] }
 0x472   : > { %9365 = vmatprep.mubr.f32.mxu0 %v14078_v6 }
 0x474   : > { %11863 = vmatmul.mubr.msk.f32.vlgmr.msra.gmra.mrb[0].mxu1 %vm288_vm1, %v3678_v52  ;;  %v8951_v52 = vld [vmem:[%s14139_s29 + $0x1d8] sm:$0xff] }
 0x475   : > { %12311 = vmatmul.mubr.msk.f32.gmra.mrb[56].mxu0 %vm288_vm1, %v15778_v5  ;;  %11922 = vmatpush1.msk.msra.mxu1 %vm457_vm0, %v11919_v3  ;;  %v3680_v5 = vld [vmem:[%s14139_s29 + $0x22] sm:$0xff]  ;;  %v16688_v3 = vld [vmem:[%s14139_s29 + $0xd2] sm:$0xff] }
 0x476   : > { %3981 = vmatprep.mubr.f32.mxu1 %v14078_v6  ;;  %9371 = vmatprep.mubr.f32.mxu0 %v14078_v6 }
 0x477   : > { %12487 = vmatprep.subr.msk.mxu1 %vm457_vm0, %v14068_v2  ;;  %v3681_v2 = vld [vmem:[%s14139_s29 + $0x2a] sm:$0xff] }
 0x478   : > { %11864 = vmatmul.mubr.msk.f32.gmra.mrb[2].mxu1 %vm288_vm1, %v3679_v4  ;;  %v8952_v4 = vld [vmem:[%s14139_s29 + $0x1e0] sm:$0xff] }
 0x479   : > { %12312 = vmatmul.mubr.msk.f32.gmra.mrb[58].mxu0 %vm288_vm1, %v15787_v7  ;;  %3987 = vmatprep.mubr.f32.mxu1 %v14078_v6  ;;  %v3682_v7 = vld [vmem:[%s14139_s29 + $0x32] sm:$0xff] }
 0x47a   : > { %9377 = vmatprep.mubr.f32.mxu0 %v14078_v6 }
 0x47c   : > { %11865 = vmatmul.mubr.msk.f32.gmra.mrb[4].mxu1 %vm288_vm1, %v3680_v5  ;;  %v16697_v5 = vld [vmem:[%s14139_s29 + $0xda] sm:$0xff] }
 0x47d   : > { %12313 = vmatmul.mubr.msk.f32.gmra.mrb[60].mxu0 %vm288_vm1, %v15796_v8  ;;  %3993 = vmatprep.mubr.f32.mxu1 %v14078_v6  ;;  %v3683_v8 = vld [vmem:[%s14139_s29 + $0x3a] sm:$0xff] }
 0x47e   : > { %9383 = vmatprep.mubr.f32.mxu0 %v14078_v6 }
 0x480   : > { %11866 = vmatmul.mubr.msk.f32.gmra.mrb[6].mxu1 %vm288_vm1, %v3681_v2  ;;  %v8953_v2 = vld [vmem:[%s14139_s29 + $0x1e8] sm:$0xff] }
 0x481   : > { %12314 = vmatmul.mubr.msk.f32.gmra.mrb[62].mxu0 %vm288_vm1, %v15805_v9  ;;  %3999 = vmatprep.mubr.f32.mxu1 %v14078_v6  ;;  %v16526_v9 = vld [vmem:[%s14139_s29 + $0x42] sm:$0xff] }
 0x482   : > { %9389 = vmatprep.mubr.f32.mxu0 %v14078_v6 }
 0x484   : > { %11867 = vmatmul.mubr.msk.f32.gmra.mrb[8].mxu1 %vm288_vm1, %v3682_v7  ;;  %v16706_v7 = vld [vmem:[%s14139_s29 + $0xe2] sm:$0xff] }
 0x485   : > { %12315 = vmatmul.mubr.msk.f32.gmra.mrb[64].mxu0 %vm288_vm1, %v15814_v10  ;;  %4005 = vmatprep.mubr.f32.mxu1 %v14078_v6  ;;  %v16535_v10 = vld [vmem:[%s14139_s29 + $0x4a] sm:$0xff] }
 0x486   : > { %9395 = vmatprep.mubr.f32.mxu0 %v14078_v6 }
 0x488   : > { %11868 = vmatmul.mubr.msk.f32.gmra.mrb[10].mxu1 %vm288_vm1, %v3683_v8  ;;  %v8954_v8 = vld [vmem:[%s14139_s29 + $0x1f0] sm:$0xff] }
 0x489   : > { %12316 = vmatmul.mubr.msk.f32.gmra.mrb[66].mxu0 %vm288_vm1, %v15823_v11  ;;  %4011 = vmatprep.mubr.f32.mxu1 %v14078_v6  ;;  %v16544_v11 = vld [vmem:[%s14139_s29 + $0x52] sm:$0xff] }
 0x48a   : > { %9401 = vmatprep.mubr.f32.mxu0 %v14078_v6 }
 0x48c   : > { %11869 = vmatmul.mubr.msk.f32.gmra.mrb[12].mxu1 %vm288_vm1, %v16526_v9 }
 0x48d   : > { %12317 = vmatmul.mubr.msk.f32.gmra.mrb[68].mxu0 %vm288_vm1, %v15832_v12  ;;  %4017 = vmatprep.mubr.f32.mxu1 %v14078_v6  ;;  %v16553_v12 = vld [vmem:[%s14139_s29 + $0x5a] sm:$0xff] }
 0x48e   : > { %9407 = vmatprep.mubr.f32.mxu0 %v14078_v6 }
 0x490   : > { %11870 = vmatmul.mubr.msk.f32.gmra.mrb[14].mxu1 %vm288_vm1, %v16535_v10 }
 0x491   : > { %12318 = vmatmul.mubr.msk.f32.gmra.mrb[70].mxu0 %vm288_vm1, %v15841_v13  ;;  %4023 = vmatprep.mubr.f32.mxu1 %v14078_v6  ;;  %v16562_v13 = vld [vmem:[%s14139_s29 + $0x62] sm:$0xff] }
 0x492   : > { %9413 = vmatprep.mubr.f32.mxu0 %v14078_v6 }
 0x494   : > { %11871 = vmatmul.mubr.msk.f32.gmra.mrb[16].mxu1 %vm288_vm1, %v16544_v11 }
 0x495   : > { %12319 = vmatmul.mubr.msk.f32.gmra.mrb[72].mxu0 %vm288_vm1, %v15850_v14  ;;  %4029 = vmatprep.mubr.f32.mxu1 %v14078_v6  ;;  %v16571_v14 = vld [vmem:[%s14139_s29 + $0x6a] sm:$0xff] }
 0x496   : > { %9419 = vmatprep.mubr.f32.mxu0 %v14078_v6 }
 0x498   : > { %11872 = vmatmul.mubr.msk.f32.gmra.mrb[18].mxu1 %vm288_vm1, %v16553_v12 }
 0x499   : > { %12320 = vmatmul.mubr.msk.f32.gmra.mrb[74].mxu0 %vm288_vm1, %v15859_v15  ;;  %4035 = vmatprep.mubr.f32.mxu1 %v14078_v6  ;;  %v16580_v15 = vld [vmem:[%s14139_s29 + $0x72] sm:$0xff] }
 0x49a   : > { %9425 = vmatprep.mubr.f32.mxu0 %v14078_v6 }
 0x49c   : > { %11873 = vmatmul.mubr.msk.f32.gmra.mrb[20].mxu1 %vm288_vm1, %v16562_v13 }
 0x49d   : > { %12321 = vmatmul.mubr.msk.f32.gmra.mrb[76].mxu0 %vm288_vm1, %v15868_v16  ;;  %4041 = vmatprep.mubr.f32.mxu1 %v14078_v6  ;;  %v16589_v16 = vld [vmem:[%s14139_s29 + $0x7a] sm:$0xff] }
 0x49e   : > { %9431 = vmatprep.mubr.f32.mxu0 %v14078_v6 }
 0x4a0   : > { %11874 = vmatmul.mubr.msk.f32.gmra.mrb[22].mxu1 %vm288_vm1, %v16571_v14 }
 0x4a1   : > { %12322 = vmatmul.mubr.msk.f32.gmra.mrb[78].mxu0 %vm288_vm1, %v15877_v17  ;;  %4047 = vmatprep.mubr.f32.mxu1 %v14078_v6  ;;  %v16598_v17 = vld [vmem:[%s14139_s29 + $0x82] sm:$0xff] }
 0x4a2   : > { %9437 = vmatprep.mubr.f32.mxu0 %v14078_v6 }
 0x4a4   : > { %11875 = vmatmul.mubr.msk.f32.gmra.mrb[24].mxu1 %vm288_vm1, %v16580_v15 }
 0x4a5   : > { %12323 = vmatmul.mubr.msk.f32.gmra.mrb[80].mxu0 %vm288_vm1, %v15886_v18  ;;  %4053 = vmatprep.mubr.f32.mxu1 %v14078_v6  ;;  %v16607_v18 = vld [vmem:[%s14139_s29 + $0x8a] sm:$0xff] }
 0x4a6   : > { %9443 = vmatprep.mubr.f32.mxu0 %v14078_v6 }
 0x4a8   : > { %11876 = vmatmul.mubr.msk.f32.gmra.mrb[26].mxu1 %vm288_vm1, %v16589_v16 }
 0x4a9   : > { %12324 = vmatmul.mubr.msk.f32.gmra.mrb[82].mxu0 %vm288_vm1, %v15895_v19  ;;  %4059 = vmatprep.mubr.f32.mxu1 %v14078_v6  ;;  %v16616_v19 = vld [vmem:[%s14139_s29 + $0x92] sm:$0xff] }
 0x4aa   : > { %9449 = vmatprep.mubr.f32.mxu0 %v14078_v6 }
 0x4ac   : > { %11877 = vmatmul.mubr.msk.f32.gmra.mrb[28].mxu1 %vm288_vm1, %v16598_v17 }
 0x4ad   : > { %12325 = vmatmul.mubr.msk.f32.gmra.mrb[84].mxu0 %vm288_vm1, %v15904_v21  ;;  %4065 = vmatprep.mubr.f32.mxu1 %v14078_v6  ;;  %v16625_v21 = vld [vmem:[%s14139_s29 + $0x9a] sm:$0xff] }
 0x4ae   : > { %9455 = vmatprep.mubr.f32.mxu0 %v14078_v6 }
 0x4b0   : > { %11878 = vmatmul.mubr.msk.f32.gmra.mrb[30].mxu1 %vm288_vm1, %v16607_v18 }
 0x4b1   : > { %12326 = vmatmul.mubr.msk.f32.gmra.mrb[86].mxu0 %vm288_vm1, %v15913_v23  ;;  %4071 = vmatprep.mubr.f32.mxu1 %v14078_v6  ;;  %v16634_v23 = vld [vmem:[%s14139_s29 + $0xa2] sm:$0xff] }
 0x4b2   : > { %9461 = vmatprep.mubr.f32.mxu0 %v14078_v6 }
 0x4b4   : > { %11879 = vmatmul.mubr.msk.f32.gmra.mrb[32].mxu1 %vm288_vm1, %v16616_v19 }
 0x4b5   : > { %12327 = vmatmul.mubr.msk.f32.gmra.mrb[88].mxu0 %vm288_vm1, %v15922_v26  ;;  %4077 = vmatprep.mubr.f32.mxu1 %v14078_v6  ;;  %v16643_v26 = vld [vmem:[%s14139_s29 + $0xaa] sm:$0xff] }
 0x4b6   : > { %9467 = vmatprep.mubr.f32.mxu0 %v14078_v6 }
 0x4b8   : > { %11880 = vmatmul.mubr.msk.f32.gmra.mrb[34].mxu1 %vm288_vm1, %v16625_v21 }
 0x4b9   : > { %12328 = vmatmul.mubr.msk.f32.gmra.mrb[90].mxu0 %vm288_vm1, %v15931_v28  ;;  %4083 = vmatprep.mubr.f32.mxu1 %v14078_v6  ;;  %v16652_v28 = vld [vmem:[%s14139_s29 + $0xb2] sm:$0xff] }
 0x4ba   : > { %9473 = vmatprep.mubr.f32.mxu0 %v14078_v6 }
 0x4bc   : > { %11881 = vmatmul.mubr.msk.f32.gmra.mrb[36].mxu1 %vm288_vm1, %v16634_v23 }
 0x4bd   : > { %12329 = vmatmul.mubr.msk.f32.gmra.mrb[92].mxu0 %vm288_vm1, %v15940_v30  ;;  %4089 = vmatprep.mubr.f32.mxu1 %v14078_v6  ;;  %v16661_v30 = vld [vmem:[%s14139_s29 + $0xba] sm:$0xff] }
 0x4be   : > { %9479 = vmatprep.mubr.f32.mxu0 %v14078_v6 }
 0x4c0   : > { %11882 = vmatmul.mubr.msk.f32.gmra.mrb[38].mxu1 %vm288_vm1, %v16643_v26 }
 0x4c1   : > { %12330 = vmatmul.mubr.msk.f32.gmra.mrb[94].mxu0 %vm288_vm1, %v15953_v35  ;;  %4095 = vmatprep.mubr.f32.mxu1 %v14078_v6  ;;  %v16670_v35 = vld [vmem:[%s14139_s29 + $0xc2] sm:$0xff] }
 0x4c2   : > { %9485 = vmatprep.mubr.f32.mxu0 %v14078_v6 }
 0x4c4   : > { %11883 = vmatmul.mubr.msk.f32.gmra.mrb[40].mxu1 %vm288_vm1, %v16652_v28 }
 0x4c5   : > { %12331 = vmatmul.mubr.msk.f32.gmra.mrb[96].mxu0 %vm288_vm1, %v15962_v32  ;;  %4101 = vmatprep.mubr.f32.mxu1 %v14078_v6  ;;  %v8950_v32 = vld [vmem:[%s14139_s29 + $0x1d0] sm:$0xff] }
 0x4c6   : > { %9491 = vmatprep.mubr.f32.mxu0 %v14078_v6 }
 0x4c8   : > { %11884 = vmatmul.mubr.msk.f32.gmra.mrb[42].mxu1 %vm288_vm1, %v16661_v30 }
 0x4c9   : > { %12332 = vmatmul.mubr.msk.f32.gmra.mrb[98].mxu0 %vm288_vm1, %v15971_v37  ;;  %4107 = vmatprep.mubr.f32.mxu1 %v14078_v6  ;;  %v16679_v37 = vld [vmem:[%s14139_s29 + $0xca] sm:$0xff] }
 0x4ca   : > { %9497 = vmatprep.mubr.f32.mxu0 %v14078_v6 }
 0x4cc   : > { %11885 = vmatmul.mubr.msk.f32.gmra.mrb[44].mxu1 %vm288_vm1, %v16670_v35 }
 0x4cd   : > { %12333 = vmatmul.mubr.msk.f32.gmra.mrb[100].mxu0 %vm288_vm1, %v8950_v32  ;;  %4113 = vmatprep.mubr.f32.mxu1 %v14078_v6  ;;  %v16715_v32 = vld [vmem:[%s14139_s29 + $0xea] sm:$0xff] }
 0x4ce   : > { %9503 = vmatprep.mubr.f32.mxu0 %v14078_v6 }
 0x4d0   : > { %11886 = vmatmul.mubr.msk.f32.gmra.mrb[46].mxu1 %vm288_vm1, %v16679_v37 }
 0x4d1   : > { %12334 = vmatmul.mubr.msk.f32.gmra.mrb[102].mxu0 %vm288_vm1, %v8951_v52  ;;  %4119 = vmatprep.mubr.f32.mxu1 %v14078_v6  ;;  %v8955_v52 = vld [vmem:[%s14139_s29 + $0x1f8] sm:$0xff] }
 0x4d2   : > { %9509 = vmatprep.mubr.f32.mxu0 %v14078_v6 }
 0x4d4   : > { %11887 = vmatmul.mubr.msk.f32.gmra.mrb[48].mxu1 %vm288_vm1, %v16688_v3 }
 0x4d5   : > { %12335 = vmatmul.mubr.msk.f32.gmra.mrb[104].mxu0 %vm288_vm1, %v8952_v4  ;;  %4125 = vmatprep.mubr.f32.mxu1 %v14078_v6  ;;  %v16724_v4 = vld [vmem:[%s14139_s29 + $0xf2] sm:$0xff] }
 0x4d6   : > { %9515 = vmatprep.mubr.f32.mxu0 %v14078_v6 }
 0x4d8   : > { %11888 = vmatmul.mubr.msk.f32.gmra.mrb[50].mxu1 %vm288_vm1, %v16697_v5 }
 0x4d9   : > { %12336 = vmatmul.mubr.msk.f32.gmra.mrb[106].mxu0 %vm288_vm1, %v8953_v2  ;;  %4131 = vmatprep.mubr.f32.mxu1 %v14078_v6  ;;  %v12399_v2 = vld [vmem:[%s17801_s1 + $0xe0] sm:$0x3f] }
 0x4da   : > { %9521 = vmatprep.mubr.f32.mxu0 %v14078_v6 }
 0x4dc   : > { %11889 = vmatmul.mubr.msk.f32.gmra.mrb[52].mxu1 %vm288_vm1, %v16706_v7 }
 0x4dd   : > { %12337 = vmatmul.mubr.msk.f32.gmra.mrb[108].mxu0 %vm288_vm1, %v8954_v8  ;;  %4137 = vmatprep.mubr.f32.mxu1 %v14078_v6  ;;  %v16736_v8 = vld [vmem:[%s14139_s29 + $0xfa] sm:$0xff] }
 0x4de   : > { %9527 = vmatprep.mubr.f32.mxu0 %v14078_v6 }
 0x4e0   : > { %11890 = vmatmul.mubr.msk.f32.gmra.mrb[54].mxu1 %vm288_vm1, %v16715_v32 }
 0x4e1   : > { %12338 = vmatmul.mubr.msk.f32.gmra.mrb[110].mxu0 %vm288_vm1, %v8955_v52  ;;  %4143 = vmatprep.mubr.f32.mxu1 %v14078_v6  ;;  %v16755_v52 = vld [vmem:[%s14139_s29 + $0x10a] sm:$0xff] }
 0x4e2   : > { %9943 = vmatprep.mubr.f32.mxu0 %v14078_v6 }
 0x4e4   : > { %11891 = vmatmul.mubr.msk.f32.gmra.mrb[56].mxu1 %vm288_vm1, %v16724_v4 }
 0x4e5   : > { %12343 = vmatmul.mubr.msk.f32.vlgmr.msra.gmra.mrb[0].mxu0 %vm288_vm1, %v16020_v51  ;;  %4149 = vmatprep.mubr.f32.mxu1 %v14078_v6  ;;  %v16746_v51 = vld [vmem:[%s14139_s29 + $0x102] sm:$0xff] }
 0x4e6   : > { %12402 = vmatpush1.msk.msra.mxu0 %vm457_vm0, %v12399_v2  ;;  %9949 = vmatprep.mubr.f32.mxu0 %v14078_v6  ;;  %v17866_v2 = vld [vmem:[#allocation14_spill] sm:$0xff] }
 0x4e8   : > { %11892 = vmatmul.mubr.msk.f32.gmra.mrb[58].mxu1 %vm288_vm1, %v16736_v8 }
 0x4e9   : > { %12344 = vmatmul.mubr.msk.f32.gmra.mrb[2].mxu0 %vm288_vm1, %v16029_v53  ;;  %4155 = vmatprep.mubr.f32.mxu1 %v14078_v6  ;;  %v16764_v53 = vld [vmem:[%s14139_s29 + $0x112] sm:$0xff] }
 0x4ea   : > { %9955 = vmatprep.mubr.f32.mxu0 %v14078_v6 }
 0x4ec   : > { %11893 = vmatmul.mubr.msk.f32.gmra.mrb[60].mxu1 %vm288_vm1, %v16746_v51 }
 0x4ed   : > { %12345 = vmatmul.mubr.msk.f32.gmra.mrb[4].mxu0 %vm288_vm1, %v16038_v55  ;;  %4161 = vmatprep.mubr.f32.mxu1 %v14078_v6  ;;  %v16773_v55 = vld [vmem:[%s14139_s29 + $0x11a] sm:$0xff] }
 0x4ee   : > { %9961 = vmatprep.mubr.f32.mxu0 %v14078_v6 }
 0x4f0   : > { %11894 = vmatmul.mubr.msk.f32.gmra.mrb[62].mxu1 %vm288_vm1, %v16755_v52 }
 0x4f1   : > { %12346 = vmatmul.mubr.msk.f32.gmra.mrb[6].mxu0 %vm288_vm1, %v16047_v57  ;;  %4167 = vmatprep.mubr.f32.mxu1 %v14078_v6  ;;  %v16782_v57 = vld [vmem:[%s14139_s29 + $0x122] sm:$0xff] }
 0x4f2   : > { %9967 = vmatprep.mubr.f32.mxu0 %v14078_v6 }
 0x4f4   : > { %11895 = vmatmul.mubr.msk.f32.gmra.mrb[64].mxu1 %vm288_vm1, %v16764_v53 }
 0x4f5   : > { %12347 = vmatmul.mubr.msk.f32.gmra.mrb[8].mxu0 %vm288_vm1, %v16056_v59  ;;  %4173 = vmatprep.mubr.f32.mxu1 %v14078_v6  ;;  %v16791_v59 = vld [vmem:[%s14139_s29 + $0x12a] sm:$0xff] }
 0x4f6   : > { %9973 = vmatprep.mubr.f32.mxu0 %v14078_v6 }
 0x4f8   : > { %11896 = vmatmul.mubr.msk.f32.gmra.mrb[66].mxu1 %vm288_vm1, %v16773_v55 }
 0x4f9   : > { %12348 = vmatmul.mubr.msk.f32.gmra.mrb[10].mxu0 %vm288_vm1, %v16065_v61  ;;  %4179 = vmatprep.mubr.f32.mxu1 %v14078_v6  ;;  %v16800_v61 = vld [vmem:[%s14139_s29 + $0x132] sm:$0xff] }
 0x4fa   : > { %9979 = vmatprep.mubr.f32.mxu0 %v14078_v6 }
 0x4fc   : > { %11897 = vmatmul.mubr.msk.f32.gmra.mrb[68].mxu1 %vm288_vm1, %v16782_v57 }
 0x4fd   : > { %12349 = vmatmul.mubr.msk.f32.gmra.mrb[12].mxu0 %vm288_vm1, %v16074_v63  ;;  %4185 = vmatprep.mubr.f32.mxu1 %v14078_v6  ;;  %v16809_v63 = vld [vmem:[%s14139_s29 + $0x13a] sm:$0xff] }
 0x4fe   : > { %9985 = vmatprep.mubr.f32.mxu0 %v14078_v6 }
 0x500   : > { %11898 = vmatmul.mubr.msk.f32.gmra.mrb[70].mxu1 %vm288_vm1, %v16791_v59 }
 0x501   : > { %12350 = vmatmul.mubr.msk.f32.gmra.mrb[14].mxu0 %vm288_vm1, %v16083_v1  ;;  %4191 = vmatprep.mubr.f32.mxu1 %v14078_v6  ;;  %v16818_v1 = vld [vmem:[%s14139_s29 + $0x142] sm:$0xff] }
 0x502   : > { %9991 = vmatprep.mubr.f32.mxu0 %v14078_v6 }
 0x504   : > { %11899 = vmatmul.mubr.msk.f32.gmra.mrb[72].mxu1 %vm288_vm1, %v16800_v61 }
 0x505   : > { %12351 = vmatmul.mubr.msk.f32.gmra.mrb[16].mxu0 %vm288_vm1, %v16092_v22  ;;  %4197 = vmatprep.mubr.f32.mxu1 %v14078_v6  ;;  %v16827_v22 = vld [vmem:[%s14139_s29 + $0x14a] sm:$0xff] }
 0x506   : > { %9997 = vmatprep.mubr.f32.mxu0 %v14078_v6 }
 0x508   : > { %11900 = vmatmul.mubr.msk.f32.gmra.mrb[74].mxu1 %vm288_vm1, %v16809_v63 }
 0x509   : > { %12352 = vmatmul.mubr.msk.f32.gmra.mrb[18].mxu0 %vm288_vm1, %v16101_v25  ;;  %4203 = vmatprep.mubr.f32.mxu1 %v14078_v6  ;;  %v16836_v25 = vld [vmem:[%s14139_s29 + $0x152] sm:$0xff] }
 0x50a   : > { %10003 = vmatprep.mubr.f32.mxu0 %v14078_v6 }
 0x50c   : > { %11901 = vmatmul.mubr.msk.f32.gmra.mrb[76].mxu1 %vm288_vm1, %v16818_v1 }
 0x50d   : > { %12353 = vmatmul.mubr.msk.f32.gmra.mrb[20].mxu0 %vm288_vm1, %v16110_v29  ;;  %4209 = vmatprep.mubr.f32.mxu1 %v14078_v6  ;;  %v16845_v29 = vld [vmem:[%s14139_s29 + $0x15a] sm:$0xff] }
 0x50e   : > { %10009 = vmatprep.mubr.f32.mxu0 %v14078_v6 }
 0x510   : > { %11902 = vmatmul.mubr.msk.f32.gmra.mrb[78].mxu1 %vm288_vm1, %v16827_v22 }
 0x511   : > { %12354 = vmatmul.mubr.msk.f32.gmra.mrb[22].mxu0 %vm288_vm1, %v16119_v33  ;;  %4215 = vmatprep.mubr.f32.mxu1 %v14078_v6  ;;  %v16854_v33 = vld [vmem:[%s14139_s29 + $0x162] sm:$0xff] }
 0x512   : > { %10015 = vmatprep.mubr.f32.mxu0 %v14078_v6 }
 0x514   : > { %11903 = vmatmul.mubr.msk.f32.gmra.mrb[80].mxu1 %vm288_vm1, %v16836_v25 }
 0x515   : > { %12355 = vmatmul.mubr.msk.f32.gmra.mrb[24].mxu0 %vm288_vm1, %v16128_v36  ;;  %4221 = vmatprep.mubr.f32.mxu1 %v14078_v6  ;;  %v16863_v36 = vld [vmem:[%s14139_s29 + $0x16a] sm:$0xff] }
 0x516   : > { %10021 = vmatprep.mubr.f32.mxu0 %v14078_v6 }
 0x518   : > { %11904 = vmatmul.mubr.msk.f32.gmra.mrb[82].mxu1 %vm288_vm1, %v16845_v29 }
 0x519   : > { %12356 = vmatmul.mubr.msk.f32.gmra.mrb[26].mxu0 %vm288_vm1, %v16137_v40  ;;  %4227 = vmatprep.mubr.f32.mxu1 %v14078_v6  ;;  %v16872_v40 = vld [vmem:[%s14139_s29 + $0x172] sm:$0xff] }
 0x51a   : > { %10027 = vmatprep.mubr.f32.mxu0 %v14078_v6 }
 0x51c   : > { %11905 = vmatmul.mubr.msk.f32.gmra.mrb[84].mxu1 %vm288_vm1, %v16854_v33 }
 0x51d   : > { %12357 = vmatmul.mubr.msk.f32.gmra.mrb[28].mxu0 %vm288_vm1, %v16146_v44  ;;  %4233 = vmatprep.mubr.f32.mxu1 %v14078_v6  ;;  %v16881_v44 = vld [vmem:[%s14139_s29 + $0x17a] sm:$0xff] }
 0x51e   : > { %10033 = vmatprep.mubr.f32.mxu0 %v14078_v6 }
 0x520   : > { %11906 = vmatmul.mubr.msk.f32.gmra.mrb[86].mxu1 %vm288_vm1, %v16863_v36 }
 0x521   : > { %12358 = vmatmul.mubr.msk.f32.gmra.mrb[30].mxu0 %vm288_vm1, %v16155_v48  ;;  %4239 = vmatprep.mubr.f32.mxu1 %v14078_v6  ;;  %v16890_v48 = vld [vmem:[%s14139_s29 + $0x182] sm:$0xff] }
 0x522   : > { %10039 = vmatprep.mubr.f32.mxu0 %v14078_v6 }
 0x524   : > { %11907 = vmatmul.mubr.msk.f32.gmra.mrb[88].mxu1 %vm288_vm1, %v16872_v40 }
 0x525   : > { %12359 = vmatmul.mubr.msk.f32.gmra.mrb[32].mxu0 %vm288_vm1, %v16164_v54  ;;  %4245 = vmatprep.mubr.f32.mxu1 %v14078_v6  ;;  %v16899_v54 = vld [vmem:[%s14139_s29 + $0x18a] sm:$0xff] }
 0x526   : > { %10045 = vmatprep.mubr.f32.mxu0 %v14078_v6 }
 0x528   : > { %11908 = vmatmul.mubr.msk.f32.gmra.mrb[90].mxu1 %vm288_vm1, %v16881_v44 }
 0x529   : > { %12360 = vmatmul.mubr.msk.f32.gmra.mrb[34].mxu0 %vm288_vm1, %v16173_v62  ;;  %4251 = vmatprep.mubr.f32.mxu1 %v14078_v6  ;;  %v16908_v62 = vld [vmem:[%s14139_s29 + $0x192] sm:$0xff] }
 0x52a   : > { %10051 = vmatprep.mubr.f32.mxu0 %v14078_v6 }
 0x52c   : > { %11909 = vmatmul.mubr.msk.f32.gmra.mrb[92].mxu1 %vm288_vm1, %v16890_v48 }
 0x52d   : > { %12361 = vmatmul.mubr.msk.f32.gmra.mrb[36].mxu0 %vm288_vm1, %v16182_v43  ;;  %4257 = vmatprep.mubr.f32.mxu1 %v14078_v6  ;;  %v16917_v43 = vld [vmem:[%s14139_s29 + $0x19a] sm:$0xff] }
 0x52e   : > { %10057 = vmatprep.mubr.f32.mxu0 %v14078_v6 }
 0x530   : > { %11910 = vmatmul.mubr.msk.f32.gmra.mrb[94].mxu1 %vm288_vm1, %v16899_v54 }
 0x531   : > { %12362 = vmatmul.mubr.msk.f32.gmra.mrb[38].mxu0 %vm288_vm1, %v16195_v47  ;;  %4263 = vmatprep.mubr.f32.mxu1 %v14078_v6  ;;  %v16926_v47 = vld [vmem:[%s14139_s29 + $0x1a2] sm:$0xff] }
 0x532   : > { %10063 = vmatprep.mubr.f32.mxu0 %v14078_v6 }
 0x534   : > { %11911 = vmatmul.mubr.msk.f32.gmra.mrb[96].mxu1 %vm288_vm1, %v16908_v62 }
 0x535   : > { %12363 = vmatmul.mubr.msk.f32.gmra.mrb[40].mxu0 %vm288_vm1, %v16204_v58  ;;  %4269 = vmatprep.mubr.f32.mxu1 %v14078_v6  ;;  %v3729_v58 = vld [vmem:[%s14139_s29 + $0x1aa] sm:$0xff] }
 0x536   : > { %10069 = vmatprep.mubr.f32.mxu0 %v14078_v6 }
 0x538   : > { %11912 = vmatmul.mubr.msk.f32.gmra.mrb[98].mxu1 %vm288_vm1, %v16917_v43 }
 0x539   : > { %12364 = vmatmul.mubr.msk.f32.gmra.mrb[42].mxu0 %vm288_vm1, %v16213_v39  ;;  %4275 = vmatprep.mubr.f32.mxu1 %v14078_v6  ;;  %v3730_v39 = vld [vmem:[%s14139_s29 + $0x1b2] sm:$0xff] }
 0x53a   : > { %10075 = vmatprep.mubr.f32.mxu0 %v14078_v6 }
 0x53c   : > { %11913 = vmatmul.mubr.msk.f32.gmra.mrb[100].mxu1 %vm288_vm1, %v16926_v47 }
 0x53d   : > { %12365 = vmatmul.mubr.msk.f32.gmra.mrb[44].mxu0 %vm288_vm1, %v16222_v49  ;;  %4281 = vmatprep.mubr.f32.mxu1 %v14078_v6  ;;  %v3731_v49 = vld [vmem:[%s14139_s29 + $0x1ba] sm:$0xff] }
 0x53e   : > { %10081 = vmatprep.mubr.f32.mxu0 %v14078_v6 }
 0x540   : > { %11914 = vmatmul.mubr.msk.f32.gmra.mrb[102].mxu1 %vm288_vm1, %v3729_v58  ;;  %v17867_v58 = vld [vmem:[#allocation15_spill] sm:$0xff] }
 0x541   : > { %12366 = vmatmul.mubr.msk.f32.gmra.mrb[46].mxu0 %vm288_vm1, %v16234_v45  ;;  %4287 = vmatprep.mubr.f32.mxu1 %v14078_v6  ;;  %v3732_v45 = vld [vmem:[%s14139_s29 + $0x1c2] sm:$0xff] }
 0x542   : > { %10087 = vmatprep.mubr.f32.mxu0 %v14078_v6 }
 0x544   : > { %11915 = vmatmul.mubr.msk.f32.gmra.mrb[104].mxu1 %vm288_vm1, %v3730_v39  ;;  %v4427_v39 = vld [vmem:[%s14139_s29 + $0x38] sm:$0xff] }
 0x545   : > { %12367 = vmatmul.mubr.msk.f32.gmra.mrb[48].mxu0 %vm288_vm1, %v16244_v20  ;;  %4293 = vmatprep.mubr.f32.mxu1 %v14078_v6  ;;  %v3733_v20 = vld [vmem:[%s14139_s29 + $0x1ca] sm:$0xff] }
 0x546   : > { %10093 = vmatprep.mubr.f32.mxu0 %v14078_v6 }
 0x548   : > { %11916 = vmatmul.mubr.msk.f32.gmra.mrb[106].mxu1 %vm288_vm1, %v3731_v49  ;;  %v17868_v49 = vld [vmem:[#allocation2_spill] sm:$0xff] }
 0x549   : > { %12368 = vmatmul.mubr.msk.f32.gmra.mrb[50].mxu0 %vm288_vm1, %v16253_v41  ;;  %4299 = vmatprep.mubr.f32.mxu1 %v14078_v6  ;;  %v4424_v41 = vld [vmem:[%s14139_s29 + $0x20] sm:$0xff] }
 0x54a   : > { %10099 = vmatprep.mubr.f32.mxu0 %v14078_v6 }
 0x54c   : > { %11917 = vmatmul.mubr.msk.f32.gmra.mrb[108].mxu1 %vm288_vm1, %v3732_v45  ;;  %v4428_v45 = vld [vmem:[%s14139_s29 + $0x40] sm:$0xff] }
 0x54d   : > { %12369 = vmatmul.mubr.msk.f32.gmra.mrb[52].mxu0 %vm288_vm1, %v16262_v27  ;;  %4305 = vmatprep.mubr.f32.mxu1 %v14078_v6  ;;  %v14069_v27 = vld [vmem:[%s17801_s1 + $0x70] sm:$0x3f] }
 0x54e   : > { %10105 = vmatprep.mubr.f32.mxu0 %v14078_v6 }
 0x550   : > { %11918 = vmatmul.mubr.msk.f32.gmra.mrb[110].mxu1 %vm288_vm1, %v3733_v20  ;;  %v17869_v20 = vld [vmem:[#allocation3_spill] sm:$0xff] }
 0x551   : > { %12370 = vmatmul.mubr.msk.f32.gmra.mrb[54].mxu0 %vm288_vm1, %v16271_v34  ;;  %4721 = vmatprep.mubr.f32.mxu1 %v14078_v6  ;;  %v4425_v34 = vld [vmem:[%s14139_s29 + $0x28] sm:$0xff] }
 0x552   : > { %10111 = vmatprep.mubr.f32.mxu0 %v14078_v6 }
 0x554   : > { %11923 = vmatmul.mubr.msk.f32.vlgmr.msra.gmra.mrb[0].mxu1 %vm288_vm1, %v4424_v41  ;;  %v4429_v41 = vld [vmem:[%s14139_s29 + $0x48] sm:$0xff] }
 0x555   : > { %12371 = vmatmul.mubr.msk.f32.gmra.mrb[56].mxu0 %vm288_vm1, %v16280_v42  ;;  %12488 = vmatpush1.msk.msra.mxu1 %vm457_vm0, %v14069_v27  ;;  %v4426_v42 = vld [vmem:[%s14139_s29 + $0x30] sm:$0xff] }
 0x556   : > { %4727 = vmatprep.mubr.f32.mxu1 %v14078_v6  ;;  %10117 = vmatprep.mubr.f32.mxu0 %v14078_v6  ;;  %v17870_v27 = vld [vmem:[#allocation4_spill] sm:$0xff] }
 0x558   : > { %11924 = vmatmul.mubr.msk.f32.gmra.mrb[2].mxu1 %vm288_vm1, %v4425_v34  ;;  %v4430_v34 = vld [vmem:[%s14139_s29 + $0x50] sm:$0xff] }
 0x559   : > { %12372 = vmatmul.mubr.msk.f32.gmra.mrb[58].mxu0 %vm288_vm1, %v17866_v2  ;;  %4733 = vmatprep.mubr.f32.mxu1 %v14078_v6  ;;  %v17871_v2 = vld [vmem:[#allocation5_spill] sm:$0xff] }
 0x55a   : > { %10123 = vmatprep.mubr.f32.mxu0 %v14078_v6 }
 0x55c   : > { %11925 = vmatmul.mubr.msk.f32.gmra.mrb[4].mxu1 %vm288_vm1, %v4426_v42  ;;  %v4431_v42 = vld [vmem:[%s14139_s29 + $0x58] sm:$0xff] }
 0x55d   : > { %12373 = vmatmul.mubr.msk.f32.gmra.mrb[60].mxu0 %vm288_vm1, %v17867_v58  ;;  %4739 = vmatprep.mubr.f32.mxu1 %v14078_v6  ;;  %v17872_v58 = vld [vmem:[#allocation6_spill] sm:$0xff] }
 0x55e   : > { %10129 = vmatprep.mubr.f32.mxu0 %v14078_v6 }
 0x560   : > { %11926 = vmatmul.mubr.msk.f32.gmra.mrb[6].mxu1 %vm288_vm1, %v4427_v39  ;;  %v4432_v39 = vld [vmem:[%s14139_s29 + $0x60] sm:$0xff] }
 0x561   : > { %12374 = vmatmul.mubr.msk.f32.gmra.mrb[62].mxu0 %vm288_vm1, %v17868_v49  ;;  %4745 = vmatprep.mubr.f32.mxu1 %v14078_v6  ;;  %v17873_v49 = vld [vmem:[#allocation7_spill] sm:$0xff] }
 0x562   : > { %10135 = vmatprep.mubr.f32.mxu0 %v14078_v6 }
 0x564   : > { %11927 = vmatmul.mubr.msk.f32.gmra.mrb[8].mxu1 %vm288_vm1, %v4428_v45  ;;  %v4433_v45 = vld [vmem:[%s14139_s29 + $0x68] sm:$0xff] }
 0x565   : > { %12375 = vmatmul.mubr.msk.f32.gmra.mrb[64].mxu0 %vm288_vm1, %v17869_v20  ;;  %4751 = vmatprep.mubr.f32.mxu1 %v14078_v6  ;;  %v17874_v20 = vld [vmem:[#allocation8_spill] sm:$0xff] }
 0x566   : > { %10141 = vmatprep.mubr.f32.mxu0 %v14078_v6 }
 0x568   : > { %11928 = vmatmul.mubr.msk.f32.gmra.mrb[10].mxu1 %vm288_vm1, %v4429_v41  ;;  %v4434_v41 = vld [vmem:[%s14139_s29 + $0x70] sm:$0xff] }
 0x569   : > { %12376 = vmatmul.mubr.msk.f32.gmra.mrb[66].mxu0 %vm288_vm1, %v17870_v27  ;;  %4757 = vmatprep.mubr.f32.mxu1 %v14078_v6  ;;  %v17875_v27 = vld [vmem:[#allocation9_spill] sm:$0xff] }
 0x56a   : > { %10147 = vmatprep.mubr.f32.mxu0 %v14078_v6 }
 0x56c   : > { %11929 = vmatmul.mubr.msk.f32.gmra.mrb[12].mxu1 %vm288_vm1, %v4430_v34  ;;  %v4435_v34 = vld [vmem:[%s14139_s29 + $0x78] sm:$0xff] }
 0x56d   : > { %12377 = vmatmul.mubr.msk.f32.gmra.mrb[68].mxu0 %vm288_vm1, %v17871_v2  ;;  %4763 = vmatprep.mubr.f32.mxu1 %v14078_v6  ;;  %v4436_v2 = vld [vmem:[%s14139_s29 + $0x80] sm:$0xff] }
 0x56e   : > { %10153 = vmatprep.mubr.f32.mxu0 %v14078_v6 }
 0x570   : > { %11930 = vmatmul.mubr.msk.f32.gmra.mrb[14].mxu1 %vm288_vm1, %v4431_v42  ;;  %v17876_v42 = vld [vmem:[#allocation10_spill] sm:$0xff] }
 0x571   : > { %12378 = vmatmul.mubr.msk.f32.gmra.mrb[70].mxu0 %vm288_vm1, %v17872_v58  ;;  %4769 = vmatprep.mubr.f32.mxu1 %v14078_v6  ;;  %v4437_v58 = vld [vmem:[%s14139_s29 + $0x88] sm:$0xff] }
 0x572   : > { %10159 = vmatprep.mubr.f32.mxu0 %v14078_v6 }
 0x574   : > { %11931 = vmatmul.mubr.msk.f32.gmra.mrb[16].mxu1 %vm288_vm1, %v4432_v39  ;;  %v4438_v39 = vld [vmem:[%s14139_s29 + $0x90] sm:$0xff] }
 0x575   : > { %12379 = vmatmul.mubr.msk.f32.gmra.mrb[72].mxu0 %vm288_vm1, %v17873_v49  ;;  %4775 = vmatprep.mubr.f32.mxu1 %v14078_v6  ;;  %v4439_v49 = vld [vmem:[%s14139_s29 + $0x98] sm:$0xff] }
 0x576   : > { %10165 = vmatprep.mubr.f32.mxu0 %v14078_v6 }
 0x578   : > { %11932 = vmatmul.mubr.msk.f32.gmra.mrb[18].mxu1 %vm288_vm1, %v4433_v45  ;;  %v4440_v45 = vld [vmem:[%s14139_s29 + $0xa0] sm:$0xff] }
 0x579   : > { %12380 = vmatmul.mubr.msk.f32.gmra.mrb[74].mxu0 %vm288_vm1, %v17874_v20  ;;  %4781 = vmatprep.mubr.f32.mxu1 %v14078_v6  ;;  %v4446_v20 = vld [vmem:[%s14139_s29 + $0xd0] sm:$0xff] }
 0x57a   : > { %10171 = vmatprep.mubr.f32.mxu0 %v14078_v6 }
 0x57c   : > { %11933 = vmatmul.mubr.msk.f32.gmra.mrb[20].mxu1 %vm288_vm1, %v4434_v41  ;;  %v17102_v41 = vld [vmem:[%s14139_s29 + $0x1d1] sm:$0xff] }
 0x57d   : > { %12381 = vmatmul.mubr.msk.f32.gmra.mrb[76].mxu0 %vm288_vm1, %v17875_v27  ;;  %4787 = vmatprep.mubr.f32.mxu1 %v14078_v6  ;;  %v17111_v27 = vld [vmem:[%s14139_s29 + $0x1d9] sm:$0xff] }
 0x57e   : > { %10177 = vmatprep.mubr.f32.mxu0 %v14078_v6 }
 0x580   : > { %11934 = vmatmul.mubr.msk.f32.gmra.mrb[22].mxu1 %vm288_vm1, %v4435_v34  ;;  %v4448_v34 = vld [vmem:[%s14139_s29 + $0xe0] sm:$0xff] }
 0x581   : > { %12382 = vmatmul.mubr.msk.f32.gmra.mrb[78].mxu0 %vm288_vm1, %v16379_v50  ;;  %4793 = vmatprep.mubr.f32.mxu1 %v14078_v6  ;;  %v17877_v50 = vld [vmem:[#allocation11_spill] sm:$0xff] }
 0x582   : > { %10183 = vmatprep.mubr.f32.mxu0 %v14078_v6 }
 0x584   : > { %11935 = vmatmul.mubr.msk.f32.gmra.mrb[24].mxu1 %vm288_vm1, %v4436_v2  ;;  %v9698_v2 = vld [vmem:[%s14139_s29 + $0x1e1] sm:$0xff] }
 0x585   : > { %12383 = vmatmul.mubr.msk.f32.gmra.mrb[80].mxu0 %vm288_vm1, %v17876_v42  ;;  %4799 = vmatprep.mubr.f32.mxu1 %v14078_v6  ;;  %v4449_v42 = vld [vmem:[%s14139_s29 + $0xe8] sm:$0xff] }
 0x586   : > { %10189 = vmatprep.mubr.f32.mxu0 %v14078_v6 }
 0x588   : > { %11936 = vmatmul.mubr.msk.f32.gmra.mrb[26].mxu1 %vm288_vm1, %v4437_v58  ;;  %v9699_v58 = vld [vmem:[%s14139_s29 + $0x1e9] sm:$0xff] }
 0x589   : > { %12384 = vmatmul.mubr.msk.f32.gmra.mrb[82].mxu0 %vm288_vm1, %v17877_v50  ;;  %4805 = vmatprep.mubr.f32.mxu1 %v14078_v6  ;;  %v4450_v50 = vld [vmem:[%s14139_s29 + $0xf0] sm:$0xff] }
 0x58a   : > { %10195 = vmatprep.mubr.f32.mxu0 %v14078_v6 }
 0x58c   : > { %11937 = vmatmul.mubr.msk.f32.gmra.mrb[28].mxu1 %vm288_vm1, %v4438_v39  ;;  %v9700_v39 = vld [vmem:[%s14139_s29 + $0x1f1] sm:$0xff] }
 0x58d   : > { %12385 = vmatmul.mubr.msk.f32.gmra.mrb[84].mxu0 %vm288_vm1, %v16406_v56  ;;  %4811 = vmatprep.mubr.f32.mxu1 %v14078_v6  ;;  %v4441_v56 = vld [vmem:[%s14139_s29 + $0xa8] sm:$0xff] }
 0x58e   : > { %10201 = vmatprep.mubr.f32.mxu0 %v14078_v6 }
 0x590   : > { %11938 = vmatmul.mubr.msk.f32.gmra.mrb[30].mxu1 %vm288_vm1, %v4439_v49  ;;  %v4451_v49 = vld [vmem:[%s14139_s29 + $0xf8] sm:$0xff] }
 0x591   : > { %12386 = vmatmul.mubr.msk.f32.gmra.mrb[86].mxu0 %vm288_vm1, %v16415_v0  ;;  %4817 = vmatprep.mubr.f32.mxu1 %v14078_v6  ;;  %v4442_v0 = vld [vmem:[%s14139_s29 + $0xb0] sm:$0xff] }
 0x592   : > { %10207 = vmatprep.mubr.f32.mxu0 %v14078_v6 }
 0x594   : > { %11939 = vmatmul.mubr.msk.f32.gmra.mrb[32].mxu1 %vm288_vm1, %v4440_v45  ;;  %v9701_v45 = vld [vmem:[%s14139_s29 + $0x1f9] sm:$0xff] }
 0x595   : > { %12387 = vmatmul.mubr.msk.f32.gmra.mrb[88].mxu0 %vm288_vm1, %v16424_v31  ;;  %4823 = vmatprep.mubr.f32.mxu1 %v14078_v6  ;;  %v4443_v31 = vld [vmem:[%s14139_s29 + $0xb8] sm:$0xff] }
 0x596   : > { %10213 = vmatprep.mubr.f32.mxu0 %v14078_v6 }
 0x598   : > { %11940 = vmatmul.mubr.msk.f32.gmra.mrb[34].mxu1 %vm288_vm1, %v4441_v56  ;;  %v4452_v56 = vld [vmem:[%s14139_s29 + $0x100] sm:$0xff] }
 0x599   : > { %12388 = vmatmul.mubr.msk.f32.gmra.mrb[90].mxu0 %vm288_vm1, %v16433_v38  ;;  %4829 = vmatprep.mubr.f32.mxu1 %v14078_v6  ;;  %v4444_v38 = vld [vmem:[%s14139_s29 + $0xc0] sm:$0xff] }
 0x59a   : > { %10219 = vmatprep.mubr.f32.mxu0 %v14078_v6 }
 0x59c   : > { %11941 = vmatmul.mubr.msk.f32.gmra.mrb[36].mxu1 %vm288_vm1, %v4442_v0  ;;  %v4453_v0 = vld [vmem:[%s14139_s29 + $0x108] sm:$0xff] }
 0x59d   : > { %12389 = vmatmul.mubr.msk.f32.gmra.mrb[92].mxu0 %vm288_vm1, %v16442_v24  ;;  %4835 = vmatprep.mubr.f32.mxu1 %v14078_v6  ;;  %v4445_v24 = vld [vmem:[%s14139_s29 + $0xc8] sm:$0xff] }
 0x59e   : > { %10225 = vmatprep.mubr.f32.mxu0 %v14078_v6 }
 0x5a0   : > { %11942 = vmatmul.mubr.msk.f32.gmra.mrb[38].mxu1 %vm288_vm1, %v4443_v31  ;;  %v4454_v31 = vld [vmem:[%s14139_s29 + $0x110] sm:$0xff] }
 0x5a1   : > { %12390 = vmatmul.mubr.msk.f32.gmra.mrb[94].mxu0 %vm288_vm1, %v16455_v60  ;;  %4841 = vmatprep.mubr.f32.mxu1 %v14078_v6  ;;  %v17878_v60 = vld [vmem:[#allocation12_spill] sm:$0xff] }
 0x5a2   : > { %10231 = vmatprep.mubr.f32.mxu0 %v14078_v6 }
 0x5a4   : > { %11943 = vmatmul.mubr.msk.f32.gmra.mrb[40].mxu1 %vm288_vm1, %v4444_v38 }
 0x5a5   : > { %12391 = vmatmul.mubr.msk.f32.gmra.mrb[96].mxu0 %vm288_vm1, %v16464_v46  ;;  %4847 = vmatprep.mubr.f32.mxu1 %v14078_v6  ;;  %v4447_v46 = vld [vmem:[%s14139_s29 + $0xd8] sm:$0xff] }
 0x5a6   : > { %10237 = vmatprep.mubr.f32.mxu0 %v14078_v6 }
 0x5a8   : > { %11944 = vmatmul.mubr.msk.f32.gmra.mrb[42].mxu1 %vm288_vm1, %v4445_v24 }
 0x5a9   : > { %12392 = vmatmul.mubr.msk.f32.gmra.mrb[98].mxu0 %vm288_vm1, %v17878_v60  ;;  %4853 = vmatprep.mubr.f32.mxu1 %v14078_v6 }
 0x5aa   : > { %10243 = vmatprep.mubr.f32.mxu0 %v14078_v6 }
 0x5ac   : > { %11945 = vmatmul.mubr.msk.f32.gmra.mrb[44].mxu1 %vm288_vm1, %v4446_v20 }
 0x5ad   : > { %12393 = vmatmul.mubr.msk.f32.gmra.mrb[100].mxu0 %vm288_vm1, %v17102_v41  ;;  %4859 = vmatprep.mubr.f32.mxu1 %v14078_v6 }
 0x5ae   : > { %10249 = vmatprep.mubr.f32.mxu0 %v14078_v6 }
 0x5b0   : > { %11946 = vmatmul.mubr.msk.f32.gmra.mrb[46].mxu1 %vm288_vm1, %v4447_v46 }
 0x5b1   : > { %12394 = vmatmul.mubr.msk.f32.gmra.mrb[102].mxu0 %vm288_vm1, %v17111_v27  ;;  %4865 = vmatprep.mubr.f32.mxu1 %v14078_v6 }
 0x5b2   : > { %10255 = vmatprep.mubr.f32.mxu0 %v14078_v6 }
 0x5b4   : > { %11947 = vmatmul.mubr.msk.f32.gmra.mrb[48].mxu1 %vm288_vm1, %v4448_v34 }
 0x5b5   : > { %12395 = vmatmul.mubr.msk.f32.gmra.mrb[104].mxu0 %vm288_vm1, %v9698_v2  ;;  %4871 = vmatprep.mubr.f32.mxu1 %v14078_v6 }
 0x5b6   : > { %10261 = vmatprep.mubr.f32.mxu0 %v14078_v6 }
 0x5b8   : > { %11948 = vmatmul.mubr.msk.f32.gmra.mrb[50].mxu1 %vm288_vm1, %v4449_v42 }
 0x5b9   : > { %12396 = vmatmul.mubr.msk.f32.gmra.mrb[106].mxu0 %vm288_vm1, %v9699_v58  ;;  %4877 = vmatprep.mubr.f32.mxu1 %v14078_v6 }
 0x5ba   : > { %10267 = vmatprep.mubr.f32.mxu0 %v14078_v6 }
 0x5bc   : > { %11949 = vmatmul.mubr.msk.f32.gmra.mrb[52].mxu1 %vm288_vm1, %v4450_v50 }
 0x5bd   : > { %12397 = vmatmul.mubr.msk.f32.gmra.mrb[108].mxu0 %vm288_vm1, %v9700_v39  ;;  %4883 = vmatprep.mubr.f32.mxu1 %v14078_v6 }
 0x5be   : > { %10273 = vmatprep.mubr.f32.mxu0 %v14078_v6 }
 0x5c0   : > { %11950 = vmatmul.mubr.msk.f32.gmra.mrb[54].mxu1 %vm288_vm1, %v4451_v49 }
 0x5c1   : > { %12398 = vmatmul.mubr.msk.f32.gmra.mrb[110].mxu0 %vm288_vm1, %v9701_v45  ;;  %4889 = vmatprep.mubr.f32.mxu1 %v14078_v6 }
 0x5c2   : > { %10689 = vmatprep.mubr.f32.mxu0 %v14078_v6 }
 0x5c4   : > { %11951 = vmatmul.mubr.msk.f32.gmra.mrb[56].mxu1 %vm288_vm1, %v4452_v56 }
 0x5c5   : > { %12403 = vmatmul.mubr.msk.f32.vlgmr.msra.gmra.mrb[0].mxu0 %vm288_vm1, %v16526_v9  ;;  %4895 = vmatprep.mubr.f32.mxu1 %v14078_v6  ;;  %v4455_v9 = vld [vmem:[%s14139_s29 + $0x118] sm:$0xff] }
 0x5c6   : > { %10695 = vmatprep.mubr.f32.mxu0 %v14078_v6 }
 0x5c8   : > { %11952 = vmatmul.mubr.msk.f32.gmra.mrb[58].mxu1 %vm288_vm1, %v4453_v0 }
 0x5c9   : > { %12404 = vmatmul.mubr.msk.f32.gmra.mrb[2].mxu0 %vm288_vm1, %v16535_v10  ;;  %4901 = vmatprep.mubr.f32.mxu1 %v14078_v6  ;;  %v4456_v10 = vld [vmem:[%s14139_s29 + $0x120] sm:$0xff] }
 0x5ca   : > { %10701 = vmatprep.mubr.f32.mxu0 %v14078_v6 }
 0x5cc   : > { %11953 = vmatmul.mubr.msk.f32.gmra.mrb[60].mxu1 %vm288_vm1, %v4454_v31 }
 0x5cd   : > { %12405 = vmatmul.mubr.msk.f32.gmra.mrb[4].mxu0 %vm288_vm1, %v16544_v11  ;;  %4907 = vmatprep.mubr.f32.mxu1 %v14078_v6  ;;  %v4457_v11 = vld [vmem:[%s14139_s29 + $0x128] sm:$0xff] }
 0x5ce   : > { %10707 = vmatprep.mubr.f32.mxu0 %v14078_v6 }
 0x5d0   : > { %11954 = vmatmul.mubr.msk.f32.gmra.mrb[62].mxu1 %vm288_vm1, %v4455_v9 }
 0x5d1   : > { %12406 = vmatmul.mubr.msk.f32.gmra.mrb[6].mxu0 %vm288_vm1, %v16553_v12  ;;  %4913 = vmatprep.mubr.f32.mxu1 %v14078_v6  ;;  %v4458_v12 = vld [vmem:[%s14139_s29 + $0x130] sm:$0xff] }
 0x5d2   : > { %10713 = vmatprep.mubr.f32.mxu0 %v14078_v6 }
 0x5d4   : > { %11955 = vmatmul.mubr.msk.f32.gmra.mrb[64].mxu1 %vm288_vm1, %v4456_v10 }
 0x5d5   : > { %12407 = vmatmul.mubr.msk.f32.gmra.mrb[8].mxu0 %vm288_vm1, %v16562_v13  ;;  %4919 = vmatprep.mubr.f32.mxu1 %v14078_v6  ;;  %v4459_v13 = vld [vmem:[%s14139_s29 + $0x138] sm:$0xff] }
 0x5d6   : > { %10719 = vmatprep.mubr.f32.mxu0 %v14078_v6 }
 0x5d8   : > { %11956 = vmatmul.mubr.msk.f32.gmra.mrb[66].mxu1 %vm288_vm1, %v4457_v11 }
 0x5d9   : > { %12408 = vmatmul.mubr.msk.f32.gmra.mrb[10].mxu0 %vm288_vm1, %v16571_v14  ;;  %4925 = vmatprep.mubr.f32.mxu1 %v14078_v6  ;;  %v4460_v14 = vld [vmem:[%s14139_s29 + $0x140] sm:$0xff] }
 0x5da   : > { %10725 = vmatprep.mubr.f32.mxu0 %v14078_v6 }
 0x5dc   : > { %11957 = vmatmul.mubr.msk.f32.gmra.mrb[68].mxu1 %vm288_vm1, %v4458_v12 }
 0x5dd   : > { %12409 = vmatmul.mubr.msk.f32.gmra.mrb[12].mxu0 %vm288_vm1, %v16580_v15  ;;  %4931 = vmatprep.mubr.f32.mxu1 %v14078_v6  ;;  %v4461_v15 = vld [vmem:[%s14139_s29 + $0x148] sm:$0xff] }
 0x5de   : > { %10731 = vmatprep.mubr.f32.mxu0 %v14078_v6 }
 0x5e0   : > { %11958 = vmatmul.mubr.msk.f32.gmra.mrb[70].mxu1 %vm288_vm1, %v4459_v13 }
 0x5e1   : > { %12410 = vmatmul.mubr.msk.f32.gmra.mrb[14].mxu0 %vm288_vm1, %v16589_v16  ;;  %4937 = vmatprep.mubr.f32.mxu1 %v14078_v6  ;;  %v4462_v16 = vld [vmem:[%s14139_s29 + $0x150] sm:$0xff] }
 0x5e2   : > { %10737 = vmatprep.mubr.f32.mxu0 %v14078_v6 }
 0x5e4   : > { %11959 = vmatmul.mubr.msk.f32.gmra.mrb[72].mxu1 %vm288_vm1, %v4460_v14 }
 0x5e5   : > { %12411 = vmatmul.mubr.msk.f32.gmra.mrb[16].mxu0 %vm288_vm1, %v16598_v17  ;;  %4943 = vmatprep.mubr.f32.mxu1 %v14078_v6  ;;  %v4463_v17 = vld [vmem:[%s14139_s29 + $0x158] sm:$0xff] }
 0x5e6   : > { %10743 = vmatprep.mubr.f32.mxu0 %v14078_v6 }
 0x5e8   : > { %11960 = vmatmul.mubr.msk.f32.gmra.mrb[74].mxu1 %vm288_vm1, %v4461_v15 }
 0x5e9   : > { %12412 = vmatmul.mubr.msk.f32.gmra.mrb[18].mxu0 %vm288_vm1, %v16607_v18  ;;  %4949 = vmatprep.mubr.f32.mxu1 %v14078_v6  ;;  %v4464_v18 = vld [vmem:[%s14139_s29 + $0x160] sm:$0xff] }
 0x5ea   : > { %10749 = vmatprep.mubr.f32.mxu0 %v14078_v6 }
 0x5ec   : > { %11961 = vmatmul.mubr.msk.f32.gmra.mrb[76].mxu1 %vm288_vm1, %v4462_v16 }
 0x5ed   : > { %12413 = vmatmul.mubr.msk.f32.gmra.mrb[20].mxu0 %vm288_vm1, %v16616_v19  ;;  %4955 = vmatprep.mubr.f32.mxu1 %v14078_v6  ;;  %v4465_v19 = vld [vmem:[%s14139_s29 + $0x168] sm:$0xff] }
 0x5ee   : > { %10755 = vmatprep.mubr.f32.mxu0 %v14078_v6 }
 0x5f0   : > { %11962 = vmatmul.mubr.msk.f32.gmra.mrb[78].mxu1 %vm288_vm1, %v4463_v17 }
 0x5f1   : > { %12414 = vmatmul.mubr.msk.f32.gmra.mrb[22].mxu0 %vm288_vm1, %v16625_v21  ;;  %4961 = vmatprep.mubr.f32.mxu1 %v14078_v6  ;;  %v4466_v21 = vld [vmem:[%s14139_s29 + $0x170] sm:$0xff] }
 0x5f2   : > { %10761 = vmatprep.mubr.f32.mxu0 %v14078_v6 }
 0x5f4   : > { %11963 = vmatmul.mubr.msk.f32.gmra.mrb[80].mxu1 %vm288_vm1, %v4464_v18 }
 0x5f5   : > { %12415 = vmatmul.mubr.msk.f32.gmra.mrb[24].mxu0 %vm288_vm1, %v16634_v23  ;;  %4967 = vmatprep.mubr.f32.mxu1 %v14078_v6  ;;  %v4467_v23 = vld [vmem:[%s14139_s29 + $0x178] sm:$0xff] }
 0x5f6   : > { %10767 = vmatprep.mubr.f32.mxu0 %v14078_v6 }
 0x5f8   : > { %11964 = vmatmul.mubr.msk.f32.gmra.mrb[82].mxu1 %vm288_vm1, %v4465_v19 }
 0x5f9   : > { %12416 = vmatmul.mubr.msk.f32.gmra.mrb[26].mxu0 %vm288_vm1, %v16643_v26  ;;  %4973 = vmatprep.mubr.f32.mxu1 %v14078_v6  ;;  %v4468_v26 = vld [vmem:[%s14139_s29 + $0x180] sm:$0xff] }
 0x5fa   : > { %10773 = vmatprep.mubr.f32.mxu0 %v14078_v6 }
 0x5fc   : > { %11965 = vmatmul.mubr.msk.f32.gmra.mrb[84].mxu1 %vm288_vm1, %v4466_v21 }
 0x5fd   : > { %12417 = vmatmul.mubr.msk.f32.gmra.mrb[28].mxu0 %vm288_vm1, %v16652_v28  ;;  %4979 = vmatprep.mubr.f32.mxu1 %v14078_v6  ;;  %v4469_v28 = vld [vmem:[%s14139_s29 + $0x188] sm:$0xff] }
 0x5fe   : > { %10779 = vmatprep.mubr.f32.mxu0 %v14078_v6 }
 0x600   : > { %11966 = vmatmul.mubr.msk.f32.gmra.mrb[86].mxu1 %vm288_vm1, %v4467_v23 }
 0x601   : > { %12418 = vmatmul.mubr.msk.f32.gmra.mrb[30].mxu0 %vm288_vm1, %v16661_v30  ;;  %4985 = vmatprep.mubr.f32.mxu1 %v14078_v6  ;;  %v4470_v30 = vld [vmem:[%s14139_s29 + $0x190] sm:$0xff] }
 0x602   : > { %10785 = vmatprep.mubr.f32.mxu0 %v14078_v6 }
 0x604   : > { %11967 = vmatmul.mubr.msk.f32.gmra.mrb[88].mxu1 %vm288_vm1, %v4468_v26 }
 0x605   : > { %12419 = vmatmul.mubr.msk.f32.gmra.mrb[32].mxu0 %vm288_vm1, %v16670_v35  ;;  %4991 = vmatprep.mubr.f32.mxu1 %v14078_v6  ;;  %v4471_v35 = vld [vmem:[%s14139_s29 + $0x198] sm:$0xff] }
 0x606   : > { %10791 = vmatprep.mubr.f32.mxu0 %v14078_v6 }
 0x608   : > { %11968 = vmatmul.mubr.msk.f32.gmra.mrb[90].mxu1 %vm288_vm1, %v4469_v28 }
 0x609   : > { %12420 = vmatmul.mubr.msk.f32.gmra.mrb[34].mxu0 %vm288_vm1, %v16679_v37  ;;  %4997 = vmatprep.mubr.f32.mxu1 %v14078_v6  ;;  %v4472_v37 = vld [vmem:[%s14139_s29 + $0x1a0] sm:$0xff] }
 0x60a   : > { %10797 = vmatprep.mubr.f32.mxu0 %v14078_v6 }
 0x60c   : > { %11969 = vmatmul.mubr.msk.f32.gmra.mrb[92].mxu1 %vm288_vm1, %v4470_v30 }
 0x60d   : > { %12421 = vmatmul.mubr.msk.f32.gmra.mrb[36].mxu0 %vm288_vm1, %v16688_v3  ;;  %5003 = vmatprep.mubr.f32.mxu1 %v14078_v6  ;;  %v4473_v3 = vld [vmem:[%s14139_s29 + $0x1a8] sm:$0xff] }
 0x60e   : > { %10803 = vmatprep.mubr.f32.mxu0 %v14078_v6 }
 0x610   : > { %11970 = vmatmul.mubr.msk.f32.gmra.mrb[94].mxu1 %vm288_vm1, %v4471_v35 }
 0x611   : > { %12422 = vmatmul.mubr.msk.f32.gmra.mrb[38].mxu0 %vm288_vm1, %v16697_v5  ;;  %5009 = vmatprep.mubr.f32.mxu1 %v14078_v6  ;;  %v4474_v5 = vld [vmem:[%s14139_s29 + $0x1b0] sm:$0xff] }
 0x612   : > { %10809 = vmatprep.mubr.f32.mxu0 %v14078_v6 }
 0x614   : > { %11971 = vmatmul.mubr.msk.f32.gmra.mrb[96].mxu1 %vm288_vm1, %v4472_v37 }
 0x615   : > { %12423 = vmatmul.mubr.msk.f32.gmra.mrb[40].mxu0 %vm288_vm1, %v16706_v7  ;;  %5015 = vmatprep.mubr.f32.mxu1 %v14078_v6  ;;  %v4475_v7 = vld [vmem:[%s14139_s29 + $0x1b8] sm:$0xff] }
 0x616   : > { %10815 = vmatprep.mubr.f32.mxu0 %v14078_v6 }
 0x618   : > { %11972 = vmatmul.mubr.msk.f32.gmra.mrb[98].mxu1 %vm288_vm1, %v4473_v3 }
 0x619   : > { %12424 = vmatmul.mubr.msk.f32.gmra.mrb[42].mxu0 %vm288_vm1, %v16715_v32  ;;  %5021 = vmatprep.mubr.f32.mxu1 %v14078_v6  ;;  %v4476_v32 = vld [vmem:[%s14139_s29 + $0x1c0] sm:$0xff] }
 0x61a   : > { %10821 = vmatprep.mubr.f32.mxu0 %v14078_v6 }
 0x61c   : > { %11973 = vmatmul.mubr.msk.f32.gmra.mrb[100].mxu1 %vm288_vm1, %v4474_v5 }
 0x61d   : > { %12425 = vmatmul.mubr.msk.f32.gmra.mrb[44].mxu0 %vm288_vm1, %v16724_v4  ;;  %5027 = vmatprep.mubr.f32.mxu1 %v14078_v6  ;;  %v4477_v4 = vld [vmem:[%s14139_s29 + $0x1c8] sm:$0xff] }
 0x61e   : > { %10827 = vmatprep.mubr.f32.mxu0 %v14078_v6 }
 0x620   : > { %11974 = vmatmul.mubr.msk.f32.gmra.mrb[102].mxu1 %vm288_vm1, %v4475_v7 }
 0x621   : > { %12426 = vmatmul.mubr.msk.f32.gmra.mrb[46].mxu0 %vm288_vm1, %v16736_v8  ;;  %5033 = vmatprep.mubr.f32.mxu1 %v14078_v6  ;;  %v4478_v8 = vld [vmem:[%s14139_s29 + $0x1d0] sm:$0xff] }
 0x622   : > { %10833 = vmatprep.mubr.f32.mxu0 %v14078_v6 }
 0x624   : > { %11975 = vmatmul.mubr.msk.f32.gmra.mrb[104].mxu1 %vm288_vm1, %v4476_v32 }
 0x625   : > { %12427 = vmatmul.mubr.msk.f32.gmra.mrb[48].mxu0 %vm288_vm1, %v16746_v51  ;;  %5039 = vmatprep.mubr.f32.mxu1 %v14078_v6 }
 0x626   : > { %10839 = vmatprep.mubr.f32.mxu0 %v14078_v6 }
 0x627   : > { %v17293_v38 = vpop.f32.mrb[0].mxu1 }
 0x628   : > { %v17295_v24 = vpop.f32.mrb[1].mxu1  ;;  %11976 = vmatmul.mubr.msk.f32.gmra.mrb[106].mxu1 %vm288_vm1, %v4477_v4 }
 0x629   : > { %12428 = vmatmul.mubr.msk.f32.gmra.mrb[50].mxu0 %vm288_vm1, %v16755_v52  ;;  %5045 = vmatprep.mubr.f32.mxu1 %v14078_v6  ;;  %v4479_v52 = vld [vmem:[%s14139_s29 + $0x1d8] sm:$0xff] }
 0x62a   : > { %10845 = vmatprep.mubr.f32.mxu0 %v14078_v6 }
 0x62b   : > { %v17303_v51 = vpop.f32.mrb[2].mxu1 }
 0x62c   : > { %v17305_v60 = vpop.f32.mrb[3].mxu1  ;;  %11977 = vmatmul.mubr.msk.f32.gmra.mrb[108].mxu1 %vm288_vm1, %v4478_v8  ;;  %v10437_v8 = vld [vmem:[%s14139_s29 + $0x1aa] sm:$0xff] }
 0x62d   : > { %12429 = vmatmul.mubr.msk.f32.gmra.mrb[52].mxu0 %vm288_vm1, %v16764_v53  ;;  %5051 = vmatprep.mubr.f32.mxu1 %v14078_v6  ;;  %v5198_v53 = vld [vmem:[%s14139_s29 + $0x101] sm:$0xff] }
 0x62e   : > { %10851 = vmatprep.mubr.f32.mxu0 %v14078_v6 }
 0x62f   : > { %v17313_v20 = vpop.f32.mrb[4].mxu1 }
 0x630   : > { %v17315_v46 = vpop.f32.mrb[5].mxu1  ;;  %11978 = vmatmul.mubr.msk.f32.gmra.mrb[110].mxu1 %vm288_vm1, %v4479_v52 }
 0x631   : > { %12430 = vmatmul.mubr.msk.f32.gmra.mrb[54].mxu0 %vm288_vm1, %v16773_v55  ;;  %5635 = vmatprep.mubr.f32.mxu1 %v14078_v6  ;;  %v5199_v55 = vld [vmem:[%s14139_s29 + $0x109] sm:$0xff] }
 0x632   : > { %10857 = vmatprep.mubr.f32.mxu0 %v14078_v6 }
 0x633   : > { %v17323_v34 = vpop.f32.mrb[6].mxu1 }
 0x634   : > { %v17325_v2 = vpop.f32.mrb[7].mxu1  ;;  %12011 = vmatmul.mubr.msk.f32.vlgmr.msra.gmra.mrb[56].mxu1 %vm288_vm1, %v5198_v53 }
 0x635   : > { %12431 = vmatmul.mubr.msk.f32.gmra.mrb[56].mxu0 %vm288_vm1, %v16782_v57  ;;  %5641 = vmatprep.mubr.f32.mxu1 %v14078_v6  ;;  %v5200_v57 = vld [vmem:[%s14139_s29 + $0x111] sm:$0xff] }
 0x636   : > { %10863 = vmatprep.mubr.f32.mxu0 %v14078_v6 }
 0x637   : > { %v17333_v42 = vpop.f32.mrb[8].mxu1 }
 0x638   : > { %v17335_v58 = vpop.f32.mrb[9].mxu1  ;;  %12012 = vmatmul.mubr.msk.f32.gmra.mrb[58].mxu1 %vm288_vm1, %v5199_v55  ;;  %v10438_v55 = vld [vmem:[%s14139_s29 + $0x1b2] sm:$0xff] }
 0x639   : > { %12432 = vmatmul.mubr.msk.f32.gmra.mrb[58].mxu0 %vm288_vm1, %v16791_v59  ;;  %5647 = vmatprep.mubr.f32.mxu1 %v14078_v6  ;;  %v5201_v59 = vld [vmem:[%s14139_s29 + $0x119] sm:$0xff] }
 0x63a   : > { %10869 = vmatprep.mubr.f32.mxu0 %v14078_v6 }
 0x63b   : > { %v17343_v50 = vpop.f32.mrb[10].mxu1 }
 0x63c   : > { %v17345_v39 = vpop.f32.mrb[11].mxu1  ;;  %12013 = vmatmul.mubr.msk.f32.gmra.mrb[60].mxu1 %vm288_vm1, %v5200_v57 }
 0x63d   : > { %12433 = vmatmul.mubr.msk.f32.gmra.mrb[60].mxu0 %vm288_vm1, %v16800_v61  ;;  %5653 = vmatprep.mubr.f32.mxu1 %v14078_v6  ;;  %v5202_v61 = vld [vmem:[%s14139_s29 + $0x121] sm:$0xff] }
 0x63e   : > { %10875 = vmatprep.mubr.f32.mxu0 %v14078_v6 }
 0x63f   : > { %v17353_v49 = vpop.f32.mrb[12].mxu1 }
 0x640   : > { %v17355_v45 = vpop.f32.mrb[13].mxu1  ;;  %12014 = vmatmul.mubr.msk.f32.gmra.mrb[62].mxu1 %vm288_vm1, %v5201_v59 }
 0x641   : > { %12434 = vmatmul.mubr.msk.f32.gmra.mrb[62].mxu0 %vm288_vm1, %v16809_v63  ;;  %5659 = vmatprep.mubr.f32.mxu1 %v14078_v6  ;;  %v5203_v63 = vld [vmem:[%s14139_s29 + $0x129] sm:$0xff] }
 0x642   : > { %10881 = vmatprep.mubr.f32.mxu0 %v14078_v6 }
 0x643   : > { %v17363_v56 = vpop.f32.mrb[14].mxu1 }
 0x644   : > { %v17365_v0 = vpop.f32.mrb[15].mxu1  ;;  %12015 = vmatmul.mubr.msk.f32.gmra.mrb[64].mxu1 %vm288_vm1, %v5202_v61  ;;  %v5217_v61 = vld [vmem:[%s14139_s29 + $0x199] sm:$0xff] }
 0x645   : > { %12435 = vmatmul.mubr.msk.f32.gmra.mrb[64].mxu0 %vm288_vm1, %v16818_v1  ;;  %5665 = vmatprep.mubr.f32.mxu1 %v14078_v6  ;;  %v5204_v1 = vld [vmem:[%s14139_s29 + $0x131] sm:$0xff] }
 0x646   : > { %10887 = vmatprep.mubr.f32.mxu0 %v14078_v6 }
 0x647   : > { %v17373_v31 = vpop.f32.mrb[16].mxu1 }
 0x648   : > { %v17375_v9 = vpop.f32.mrb[17].mxu1  ;;  %12016 = vmatmul.mubr.msk.f32.gmra.mrb[66].mxu1 %vm288_vm1, %v5203_v63  ;;  %v10439_v63 = vld [vmem:[%s14139_s29 + $0x1ba] sm:$0xff] }
 0x649   : > { %12436 = vmatmul.mubr.msk.f32.gmra.mrb[66].mxu0 %vm288_vm1, %v16827_v22  ;;  %5671 = vmatprep.mubr.f32.mxu1 %v14078_v6  ;;  %v5205_v22 = vld [vmem:[%s14139_s29 + $0x139] sm:$0xff] }
 0x64a   : > { %10893 = vmatprep.mubr.f32.mxu0 %v14078_v6 }
 0x64b   : > { %v17383_v10 = vpop.f32.mrb[18].mxu1 }
 0x64c   : > { %v17385_v11 = vpop.f32.mrb[19].mxu1  ;;  %12017 = vmatmul.mubr.msk.f32.gmra.mrb[68].mxu1 %vm288_vm1, %v5204_v1 }
 0x64d   : > { %12437 = vmatmul.mubr.msk.f32.gmra.mrb[68].mxu0 %vm288_vm1, %v16836_v25  ;;  %5677 = vmatprep.mubr.f32.mxu1 %v14078_v6  ;;  %v5206_v25 = vld [vmem:[%s14139_s29 + $0x141] sm:$0xff] }
 0x64e   : > { %10899 = vmatprep.mubr.f32.mxu0 %v14078_v6 }
 0x64f   : > { %v17393_v12 = vpop.f32.mrb[20].mxu1 }
 0x650   : > { %v17395_v13 = vpop.f32.mrb[21].mxu1  ;;  %12018 = vmatmul.mubr.msk.f32.gmra.mrb[70].mxu1 %vm288_vm1, %v5205_v22 }
 0x651   : > { %12438 = vmatmul.mubr.msk.f32.gmra.mrb[70].mxu0 %vm288_vm1, %v16845_v29  ;;  %5683 = vmatprep.mubr.f32.mxu1 %v14078_v6  ;;  %v5207_v29 = vld [vmem:[%s14139_s29 + $0x149] sm:$0xff] }
 0x652   : > { %10905 = vmatprep.mubr.f32.mxu0 %v14078_v6 }
 0x653   : > { %v17403_v14 = vpop.f32.mrb[22].mxu1 }
 0x654   : > { %v17405_v15 = vpop.f32.mrb[23].mxu1  ;;  %12019 = vmatmul.mubr.msk.f32.gmra.mrb[72].mxu1 %vm288_vm1, %v5206_v25  ;;  %v5218_v25 = vld [vmem:[%s14139_s29 + $0x1a1] sm:$0xff] }
 0x655   : > { %12439 = vmatmul.mubr.msk.f32.gmra.mrb[72].mxu0 %vm288_vm1, %v16854_v33  ;;  %5689 = vmatprep.mubr.f32.mxu1 %v14078_v6  ;;  %v5208_v33 = vld [vmem:[%s14139_s29 + $0x151] sm:$0xff] }
 0x656   : > { %10911 = vmatprep.mubr.f32.mxu0 %v14078_v6 }
 0x657   : > { %v17413_v16 = vpop.f32.mrb[24].mxu1 }
 0x658   : > { %v17415_v17 = vpop.f32.mrb[25].mxu1  ;;  %12020 = vmatmul.mubr.msk.f32.gmra.mrb[74].mxu1 %vm288_vm1, %v5207_v29  ;;  %v10440_v29 = vld [vmem:[%s14139_s29 + $0x1c2] sm:$0xff] }
 0x659   : > { %12440 = vmatmul.mubr.msk.f32.gmra.mrb[74].mxu0 %vm288_vm1, %v16863_v36  ;;  %5695 = vmatprep.mubr.f32.mxu1 %v14078_v6  ;;  %v5209_v36 = vld [vmem:[%s14139_s29 + $0x159] sm:$0xff] }
 0x65a   : > { %10917 = vmatprep.mubr.f32.mxu0 %v14078_v6 }
 0x65b   : > { %v17423_v18 = vpop.f32.mrb[26].mxu1 }
 0x65c   : > { %v17425_v19 = vpop.f32.mrb[27].mxu1  ;;  %12021 = vmatmul.mubr.msk.f32.gmra.mrb[76].mxu1 %vm288_vm1, %v5208_v33 }
 0x65d   : > { %12441 = vmatmul.mubr.msk.f32.gmra.mrb[76].mxu0 %vm288_vm1, %v16872_v40  ;;  %5701 = vmatprep.mubr.f32.mxu1 %v14078_v6  ;;  %v5210_v40 = vld [vmem:[%s14139_s29 + $0x161] sm:$0xff] }
 0x65e   : > { %10923 = vmatprep.mubr.f32.mxu0 %v14078_v6 }
 0x65f   : > { %v17433_v21 = vpop.f32.mrb[28].mxu1 }
 0x660   : > { %v17435_v23 = vpop.f32.mrb[29].mxu1  ;;  %12022 = vmatmul.mubr.msk.f32.gmra.mrb[78].mxu1 %vm288_vm1, %v5209_v36 }
 0x661   : > { %12442 = vmatmul.mubr.msk.f32.gmra.mrb[78].mxu0 %vm288_vm1, %v16881_v44  ;;  %5707 = vmatprep.mubr.f32.mxu1 %v14078_v6  ;;  %v5211_v44 = vld [vmem:[%s14139_s29 + $0x169] sm:$0xff] }
 0x662   : > { %10929 = vmatprep.mubr.f32.mxu0 %v14078_v6 }
 0x663   : > { %v17443_v26 = vpop.f32.mrb[30].mxu1 }
 0x664   : > { %v17445_v28 = vpop.f32.mrb[31].mxu1  ;;  %12023 = vmatmul.mubr.msk.f32.gmra.mrb[80].mxu1 %vm288_vm1, %v5210_v40  ;;  %v5219_v40 = vld [vmem:[%s14139_s29 + $0x1a9] sm:$0xff] }
 0x665   : > { %12443 = vmatmul.mubr.msk.f32.gmra.mrb[80].mxu0 %vm288_vm1, %v16890_v48  ;;  %5713 = vmatprep.mubr.f32.mxu1 %v14078_v6  ;;  %v5212_v48 = vld [vmem:[%s14139_s29 + $0x171] sm:$0xff] }
 0x666   : > { %10935 = vmatprep.mubr.f32.mxu0 %v14078_v6 }
 0x667   : > { %v17453_v30 = vpop.f32.mrb[32].mxu1 }
 0x668   : > { %v17455_v35 = vpop.f32.mrb[33].mxu1  ;;  %12024 = vmatmul.mubr.msk.f32.gmra.mrb[82].mxu1 %vm288_vm1, %v5211_v44  ;;  %v10441_v44 = vld [vmem:[%s14139_s29 + $0x1ca] sm:$0xff] }
 0x669   : > { %12444 = vmatmul.mubr.msk.f32.gmra.mrb[82].mxu0 %vm288_vm1, %v16899_v54  ;;  %5719 = vmatprep.mubr.f32.mxu1 %v14078_v6  ;;  %v5213_v54 = vld [vmem:[%s14139_s29 + $0x179] sm:$0xff] }
 0x66a   : > { %10941 = vmatprep.mubr.f32.mxu0 %v14078_v6 }
 0x66b   : > { %v17463_v37 = vpop.f32.mrb[34].mxu1 }
 0x66c   : > { %v17465_v3 = vpop.f32.mrb[35].mxu1  ;;  %12025 = vmatmul.mubr.msk.f32.gmra.mrb[84].mxu1 %vm288_vm1, %v5212_v48 }
 0x66d   : > { %12445 = vmatmul.mubr.msk.f32.gmra.mrb[84].mxu0 %vm288_vm1, %v16908_v62  ;;  %5725 = vmatprep.mubr.f32.mxu1 %v14078_v6  ;;  %v5214_v62 = vld [vmem:[%s14139_s29 + $0x181] sm:$0xff] }
 0x66e   : > { %10947 = vmatprep.mubr.f32.mxu0 %v14078_v6 }
 0x66f   : > { %v17473_v5 = vpop.f32.mrb[36].mxu1 }
 0x670   : > { %v17475_v7 = vpop.f32.mrb[37].mxu1  ;;  %12026 = vmatmul.mubr.msk.f32.gmra.mrb[86].mxu1 %vm288_vm1, %v5213_v54 }
 0x671   : > { %12446 = vmatmul.mubr.msk.f32.gmra.mrb[86].mxu0 %vm288_vm1, %v16917_v43  ;;  %5731 = vmatprep.mubr.f32.mxu1 %v14078_v6  ;;  %v5215_v43 = vld [vmem:[%s14139_s29 + $0x189] sm:$0xff] }
 0x672   : > { %10953 = vmatprep.mubr.f32.mxu0 %v14078_v6 }
 0x673   : > { %v17483_v32 = vpop.f32.mrb[38].mxu1 }
 0x674   : > { %v17485_v4 = vpop.f32.mrb[39].mxu1  ;;  %12027 = vmatmul.mubr.msk.f32.gmra.mrb[88].mxu1 %vm288_vm1, %v5214_v62  ;;  %v5220_v62 = vld [vmem:[%s14139_s29 + $0x1b1] sm:$0xff] }
 0x675   : > { %12447 = vmatmul.mubr.msk.f32.gmra.mrb[88].mxu0 %vm288_vm1, %v16926_v47  ;;  %5737 = vmatprep.mubr.f32.mxu1 %v14078_v6  ;;  %v5216_v47 = vld [vmem:[%s14139_s29 + $0x191] sm:$0xff] }
 0x676   : > { %10959 = vmatprep.mubr.f32.mxu0 %v14078_v6 }
 0x677   : > { %v17494_v52 = vpop.f32.mrb[40].mxu1 }
 0x678   : > { %v17496_v53 = vpop.f32.mrb[41].mxu1  ;;  %12028 = vmatmul.mubr.msk.f32.gmra.mrb[90].mxu1 %vm288_vm1, %v5215_v43  ;;  %v10442_v43 = vld [vmem:[%s14139_s29 + $0x1d2] sm:$0xff] }
 0x679   : > { %12448 = vmatmul.mubr.msk.f32.gmra.mrb[90].mxu0 %vm288_vm1, %v10437_v8  ;;  %5743 = vmatprep.mubr.f32.mxu1 %v14078_v6  ;;  %v11140_v8 = vlaneseq }
 0x67a   : > { %10965 = vmatprep.mubr.f32.mxu0 %v14078_v6 }
 0x67b   : > { %v17504_v57 = vpop.f32.mrb[42].mxu1 }
 0x67c   : > { %v17506_v59 = vpop.f32.mrb[43].mxu1  ;;  %12029 = vmatmul.mubr.msk.f32.gmra.mrb[92].mxu1 %vm288_vm1, %v5216_v47 }
 0x67d   : > { %12449 = vmatmul.mubr.msk.f32.gmra.mrb[92].mxu0 %vm288_vm1, %v10438_v55  ;;  %5749 = vmatprep.mubr.f32.mxu1 %v14078_v6 }
 0x67e   : > { %10971 = vmatprep.mubr.f32.mxu0 %v14078_v6 }
 0x67f   : > { %v17514_v1 = vpop.f32.mrb[44].mxu1 }
 0x680   : > { %v17516_v22 = vpop.f32.mrb[45].mxu1  ;;  %12030 = vmatmul.mubr.msk.f32.gmra.mrb[94].mxu1 %vm288_vm1, %v5217_v61  ;;  %v5221_v61 = vld [vmem:[%s14139_s29 + $0x1b9] sm:$0xff] }
 0x681   : > { %12450 = vmatmul.mubr.msk.f32.gmra.mrb[94].mxu0 %vm288_vm1, %v10439_v63  ;;  %5755 = vmatprep.mubr.f32.mxu1 %v14078_v6  ;;  %v10443_v63 = vld [vmem:[%s14139_s29 + $0x1da] sm:$0xff] }
 0x682   : > { %10977 = vmatprep.mubr.f32.mxu0 %v14078_v6 }
 0x683   : > { %v17524_v33 = vpop.f32.mrb[46].mxu1 }
 0x684   : > { %v17526_v36 = vpop.f32.mrb[47].mxu1  ;;  %12031 = vmatmul.mubr.msk.f32.gmra.mrb[96].mxu1 %vm288_vm1, %v5218_v25  ;;  %v11141_v25 = vshrl.u32 %v11140_v8, 7  ;;  %v11138_v8 = vld [vmem:[%s17802_s2] sm:$0x3] }
 0x685   : > { %12451 = vmatmul.mubr.msk.f32.gmra.mrb[96].mxu0 %vm288_vm1, %v10440_v29  ;;  %5761 = vmatprep.mubr.f32.mxu1 %v14078_v6 }
 0x686   : > { %10983 = vmatprep.mubr.f32.mxu0 %v14078_v6 }
 0x687   : > { %v17534_v48 = vpop.f32.mrb[48].mxu1 }
 0x688   : > { %17879 = vst [vmem:[#allocation13_spill] sm:$0xff] %v17534_v48  ;;  %v17536_v54 = vpop.f32.mrb[49].mxu1  ;;  %12032 = vmatmul.mubr.msk.f32.gmra.mrb[98].mxu1 %vm288_vm1, %v5219_v40 }
 0x689   : > { %17880 = vst [vmem:[#allocation14_spill] sm:$0xff] %v17536_v54  ;;  %12452 = vmatmul.mubr.msk.f32.gmra.mrb[98].mxu0 %vm288_vm1, %v10441_v44  ;;  %5767 = vmatprep.mubr.f32.mxu1 %v14078_v6  ;;  %v5222_v44 = vld [vmem:[%s14139_s29 + $0x1c1] sm:$0xff] }
 0x68a   : > { %10989 = vmatprep.mubr.f32.mxu0 %v14078_v6 }
 0x68b   : > { %v17544_v47 = vpop.f32.mrb[50].mxu1 }
 0x68c   : > { %17881 = vst [vmem:[#allocation15_spill] sm:$0xff] %v17544_v47  ;;  %v17546_v55 = vpop.f32.mrb[51].mxu1  ;;  %12033 = vmatmul.mubr.msk.f32.gmra.mrb[100].mxu1 %vm288_vm1, %v5220_v62  ;;  %v10444_v62 = vld [vmem:[%s14139_s29 + $0x1e2] sm:$0xff] }
 0x68d   : > { %17882 = vst [vmem:[#allocation2_spill] sm:$0xff] %v17546_v55  ;;  %12453 = vmatmul.mubr.msk.f32.gmra.mrb[100].mxu0 %vm288_vm1, %v10442_v43  ;;  %5773 = vmatprep.mubr.f32.mxu1 %v14078_v6  ;;  %v11142_v43 = vsub.s32 0, %v11141_v25 }
 0x68e   : > { %10995 = vmatprep.mubr.f32.mxu0 %v14078_v6 }
 0x68f   : > { %v17554_v29 = vpop.f32.mrb[52].mxu1  ;;  %v17577_v47 = vrot.slane %v11138_v8, %v11142_v43 }
 0x690   : > { %17883 = vst [vmem:[#allocation3_spill] sm:$0xff] %v17554_v29  ;;  %v17556_v40 = vpop.f32.mrb[53].mxu1  ;;  %12034 = vmatmul.mubr.msk.f32.gmra.mrb[102].mxu1 %vm288_vm1, %v5221_v61  ;;  %v5223_v61 = vld [vmem:[%s14139_s29 + $0x1c9] sm:$0xff] }
 0x691   : > { %17884 = vst [vmem:[#allocation4_spill] sm:$0xff] %v17556_v40  ;;  %12454 = vmatmul.mubr.msk.f32.gmra.mrb[102].mxu0 %vm288_vm1, %v10443_v63  ;;  %5779 = vmatprep.mubr.f32.mxu1 %v14078_v6  ;;  %v11146_v40 = vsub.s32 1, %v11141_v25  ;;  %v10445_v63 = vld [vmem:[%s14139_s29 + $0x1ea] sm:$0xff] }
 0x692   : > { %11001 = vmatprep.mubr.f32.mxu0 %v14078_v6 }
 0x693   : > { %v17564_v55 = vpop.f32.mrb[54].mxu1  ;;  %v17579_v54 = vrot.slane %v11138_v8, %v11146_v40 }
 0x694   : > { %17885 = vst [vmem:[#allocation5_spill] sm:$0xff] %v17564_v55  ;;  %v17569_v29 = vpop.f32.mrb[55].mxu1  ;;  %12035 = vmatmul.mubr.msk.f32.gmra.mrb[104].mxu1 %vm288_vm1, %v5222_v44 }
 0x695   : > { %17886 = vst [vmem:[#allocation6_spill] sm:$0xff] %v17569_v29  ;;  %12455 = vmatmul.mubr.msk.f32.gmra.mrb[104].mxu0 %vm288_vm1, %v10444_v62  ;;  %5785 = vmatprep.mubr.f32.mxu1 %v14078_v6  ;;  %v10446_v62 = vld [vmem:[%s14139_s29 + $0x1f2] sm:$0xff] }
 0x696   : > { %11007 = vmatprep.mubr.f32.mxu0 %v14078_v6 }
 0x698   : > { %v10691_v55 = vpop.f32.mrb[0].mxu0  ;;  %12036 = vmatmul.mubr.msk.f32.gmra.mrb[106].mxu1 %vm288_vm1, %v5223_v61  ;;  %v10447_v61 = vld [vmem:[%s14139_s29 + $0x1fa] sm:$0xff]  ;;  %s14058_s29 = smul.u32 224, %s17896_s13 }
 0x699   : > { %v12489_v25 = vadd.f32 %v10691_v55, %v17293_v38  ;;  %v10693_v29 = vpop.f32.mrb[1].mxu0  ;;  %12456 = vmatmul.mubr.msk.f32.gmra.mrb[106].mxu0 %vm288_vm1, %v10445_v63  ;;  %5791 = vmatprep.mubr.f32.mxu1 %v14078_v6 }
 0x69a   : > { %v12490_v44 = vadd.f32 %v10693_v29, %v17295_v24  ;;  %11013 = vmatprep.mubr.f32.mxu0 %v14078_v6  ;;  %s17615_s11 = scalar_lea.vmem %s17803_s3, %s14058_s29 }
 0x69b   : > { %v11150_v43 = vadd.f32 %v12489_v25, %v17577_v47 }
 0x69c   : > { %v11151_v40 = vadd.f32 %v12490_v44, %v17579_v54  ;;  %v10697_v8 = vpop.f32.mrb[2].mxu0  ;;  %12037 = vmatmul.mubr.msk.f32.gmra.mrb[108].mxu1 %vm288_vm1, %v17102_v41 }
 0x69d   : > { %v11262_v48 = vmax.f32 %v11150_v43, 0.0  ;;  %v12491_v38 = vadd.f32 %v10697_v8, %v17303_v51  ;;  %v10699_v55 = vpop.f32.mrb[3].mxu0  ;;  %12457 = vmatmul.mubr.msk.f32.gmra.mrb[108].mxu0 %vm288_vm1, %v10446_v62  ;;  %5797 = vmatprep.mubr.f32.mxu1 %v14078_v6 }
 0x69e   : > { %v11263_v24 = vmax.f32 %v11151_v40, 0.0  ;;  %v12492_v29 = vadd.f32 %v10699_v55, %v17305_v60  ;;  %11019 = vmatprep.mubr.f32.mxu0 %v14078_v6 }
 0x69f   : > { %v11152_v63 = vadd.f32 %v12491_v38, %v17577_v47 }
 0x6a0   : > { %v11374_v25 = vmax.f32 %v11262_v48, %v11263_v24  ;;  %v11153_v51 = vadd.f32 %v12492_v29, %v17579_v54  ;;  %v10703_v44 = vpop.f32.mrb[4].mxu0  ;;  %12038 = vmatmul.mubr.msk.f32.gmra.mrb[110].mxu1 %vm288_vm1, %v17111_v27 }
 0x6a1   : > { %v11264_v43 = vmax.f32 %v11152_v63, 0.0  ;;  %v12493_v41 = vadd.f32 %v10703_v44, %v17313_v20  ;;  %v10705_v62 = vpop.f32.mrb[5].mxu0  ;;  %12458 = vmatmul.mubr.msk.f32.gmra.mrb[110].mxu0 %vm288_vm1, %v10447_v61 }
 0x6a2   : > { %v11265_v60 = vmax.f32 %v11153_v51, 0.0  ;;  %v12494_v6 = vadd.f32 %v10705_v62, %v17315_v46 }
 0x6a3   : > { %v11154_v40 = vadd.f32 %v12493_v41, %v17577_v47 }
 0x6a4   : > { %v11375_v8 = vmax.f32 %v11264_v43, %v11265_v60  ;;  %v11155_v48 = vadd.f32 %v12494_v6, %v17579_v54  ;;  %v10709_v38 = vpop.f32.mrb[6].mxu0 }
 0x6a5   : > { %v11266_v55 = vmax.f32 %v11154_v40, 0.0  ;;  %v12495_v24 = vadd.f32 %v10709_v38, %v17323_v34  ;;  %v10711_v20 = vpop.f32.mrb[7].mxu0 }
 0x6a6   : > { %v11267_v29 = vmax.f32 %v11155_v48, 0.0  ;;  %v12496_v27 = vadd.f32 %v10711_v20, %v17325_v2 }
 0x6a7   : > { %v11156_v63 = vadd.f32 %v12495_v24, %v17577_v47 }
 0x6a8   : > { %v11376_v61 = vmax.f32 %v11266_v55, %v11267_v29  ;;  %v11157_v51 = vadd.f32 %v12496_v27, %v17579_v54  ;;  %v10715_v46 = vpop.f32.mrb[8].mxu0 }
 0x6a9   : > { %v11268_v44 = vmax.f32 %v11156_v63, 0.0  ;;  %v12497_v43 = vadd.f32 %v10715_v46, %v17333_v42  ;;  %v10717_v34 = vpop.f32.mrb[9].mxu0 }
 0x6aa   : > { %v11430_v41 = vmax.f32 %v11374_v25, %v11376_v61  ;;  %v11269_v62 = vmax.f32 %v11157_v51, 0.0  ;;  %v12498_v2 = vadd.f32 %v10717_v34, %v17335_v58 }
 0x6ab   : > { %v11158_v60 = vadd.f32 %v12497_v43, %v17577_v47 }
 0x6ac   : > { %11432 = vst [vmem:[%s17615_s11] sm:$0xff] %v11430_v41  ;;  %v11377_v6 = vmax.f32 %v11268_v44, %v11269_v62  ;;  %v11159_v40 = vadd.f32 %v12498_v2, %v17579_v54  ;;  %v10721_v48 = vpop.f32.mrb[10].mxu0 }
 0x6ad   : > { %v11270_v38 = vmax.f32 %v11158_v60, 0.0  ;;  %v12499_v55 = vadd.f32 %v10721_v48, %v17343_v50  ;;  %v10723_v24 = vpop.f32.mrb[11].mxu0 }
 0x6ae   : > { %v11431_v20 = vmax.f32 %v11375_v8, %v11377_v6  ;;  %v11271_v29 = vmax.f32 %v11159_v40, 0.0  ;;  %v12500_v42 = vadd.f32 %v10723_v24, %v17345_v39 }
 0x6af   : > { %v11160_v25 = vadd.f32 %v12499_v55, %v17577_v47 }
 0x6b0   : > { %11433 = vst [vmem:[%s17615_s11 + $0x8] sm:$0xff] %v11431_v20  ;;  %v11378_v27 = vmax.f32 %v11270_v38, %v11271_v29  ;;  %v11161_v58 = vadd.f32 %v12500_v42, %v17579_v54  ;;  %v10727_v63 = vpop.f32.mrb[12].mxu0 }
 0x6b1   : > { %v11272_v61 = vmax.f32 %v11160_v25, 0.0  ;;  %v12501_v51 = vadd.f32 %v10727_v63, %v17353_v49  ;;  %v10729_v46 = vpop.f32.mrb[13].mxu0 }
 0x6b2   : > { %v11273_v44 = vmax.f32 %v11161_v58, 0.0  ;;  %v12502_v43 = vadd.f32 %v10729_v46, %v17355_v45 }
 0x6b3   : > { %v11162_v50 = vadd.f32 %v12501_v51, %v17577_v47 }
 0x6b4   : > { %v11379_v8 = vmax.f32 %v11272_v61, %v11273_v44  ;;  %v11163_v34 = vadd.f32 %v12502_v43, %v17579_v54  ;;  %v10733_v39 = vpop.f32.mrb[14].mxu0 }
 0x6b5   : > { %v11274_v41 = vmax.f32 %v11162_v50, 0.0  ;;  %v12503_v62 = vadd.f32 %v10733_v39, %v17363_v56  ;;  %v10735_v2 = vpop.f32.mrb[15].mxu0 }
 0x6b6   : > { %v11275_v60 = vmax.f32 %v11163_v34, 0.0  ;;  %v12504_v6 = vadd.f32 %v10735_v2, %v17365_v0 }
 0x6b7   : > { %v11164_v49 = vadd.f32 %v12503_v62, %v17577_v47 }
 0x6b8   : > { %v11380_v40 = vmax.f32 %v11274_v41, %v11275_v60  ;;  %v11165_v48 = vadd.f32 %v12504_v6, %v17579_v54  ;;  %v10739_v45 = vpop.f32.mrb[16].mxu0 }
 0x6b9   : > { %v11276_v38 = vmax.f32 %v11164_v49, 0.0  ;;  %v12505_v55 = vadd.f32 %v10739_v45, %v17373_v31  ;;  %v10741_v24 = vpop.f32.mrb[17].mxu0 }
 0x6ba   : > { %v11434_v20 = vmax.f32 %v11378_v27, %v11380_v40  ;;  %v11277_v29 = vmax.f32 %v11165_v48, 0.0  ;;  %v12506_v42 = vadd.f32 %v10741_v24, %v17375_v9 }
 0x6bb   : > { %v11166_v56 = vadd.f32 %v12505_v55, %v17577_v47 }
 0x6bc   : > { %12459 = vst [vmem:[%s17615_s11 + $0x10] sm:$0xff] %v11434_v20  ;;  %v11381_v25 = vmax.f32 %v11276_v38, %v11277_v29  ;;  %v11167_v0 = vadd.f32 %v12506_v42, %v17579_v54  ;;  %v10745_v58 = vpop.f32.mrb[18].mxu0 }
 0x6bd   : > { %v11278_v63 = vmax.f32 %v11166_v56, 0.0  ;;  %v12507_v61 = vadd.f32 %v10745_v58, %v17383_v10  ;;  %v10747_v51 = vpop.f32.mrb[19].mxu0 }
 0x6be   : > { %v11435_v46 = vmax.f32 %v11379_v8, %v11381_v25  ;;  %v11279_v44 = vmax.f32 %v11167_v0, 0.0  ;;  %v12508_v31 = vadd.f32 %v10747_v51, %v17385_v11 }
 0x6bf   : > { %v11168_v27 = vadd.f32 %v12507_v61, %v17577_v47 }
 0x6c0   : > { %12460 = vst [vmem:[%s17615_s11 + $0x18] sm:$0xff] %v11435_v46  ;;  %v11382_v43 = vmax.f32 %v11278_v63, %v11279_v44  ;;  %v11169_v9 = vadd.f32 %v12508_v31, %v17579_v54  ;;  %v10751_v50 = vpop.f32.mrb[20].mxu0 }
 0x6c1   : > { %v11280_v34 = vmax.f32 %v11168_v27, 0.0  ;;  %v12509_v39 = vadd.f32 %v10751_v50, %v17393_v12  ;;  %v10753_v41 = vpop.f32.mrb[21].mxu0 }
 0x6c2   : > { %v11281_v62 = vmax.f32 %v11169_v9, 0.0  ;;  %v12510_v2 = vadd.f32 %v10753_v41, %v17395_v13 }
 0x6c3   : > { %v11170_v10 = vadd.f32 %v12509_v39, %v17577_v47 }
 0x6c4   : > { %v11383_v8 = vmax.f32 %v11280_v34, %v11281_v62  ;;  %v11171_v60 = vadd.f32 %v12510_v2, %v17579_v54  ;;  %v10757_v11 = vpop.f32.mrb[22].mxu0 }
 0x6c5   : > { %v11282_v6 = vmax.f32 %v11170_v10, 0.0  ;;  %v12511_v49 = vadd.f32 %v10757_v11, %v17403_v14  ;;  %v10759_v40 = vpop.f32.mrb[23].mxu0 }
 0x6c6   : > { %v11283_v48 = vmax.f32 %v11171_v60, 0.0  ;;  %v12512_v45 = vadd.f32 %v10759_v40, %v17405_v15 }
 0x6c7   : > { %v11172_v12 = vadd.f32 %v12511_v49, %v17577_v47 }
 0x6c8   : > { %v11384_v38 = vmax.f32 %v11282_v6, %v11283_v48  ;;  %v11173_v55 = vadd.f32 %v12512_v45, %v17579_v54  ;;  %v10763_v13 = vpop.f32.mrb[24].mxu0 }
 0x6c9   : > { %v11284_v24 = vmax.f32 %v11172_v12, 0.0  ;;  %v12513_v20 = vadd.f32 %v10763_v13, %v17413_v16  ;;  %v10765_v29 = vpop.f32.mrb[25].mxu0 }
 0x6ca   : > { %v11439_v42 = vmax.f32 %v11382_v43, %v11384_v38  ;;  %v11285_v56 = vmax.f32 %v11173_v55, 0.0  ;;  %v12514_v25 = vadd.f32 %v10765_v29, %v17415_v17 }
 0x6cb   : > { %v11174_v14 = vadd.f32 %v12513_v20, %v17577_v47 }
 0x6cc   : > { %12461 = vst [vmem:[%s17615_s11 + $0x20] sm:$0xff] %v11439_v42  ;;  %v11385_v0 = vmax.f32 %v11284_v24, %v11285_v56  ;;  %v11175_v15 = vadd.f32 %v12514_v25, %v17579_v54  ;;  %v10769_v58 = vpop.f32.mrb[26].mxu0 }
 0x6cd   : > { %v11286_v63 = vmax.f32 %v11174_v14, 0.0  ;;  %v12515_v61 = vadd.f32 %v10769_v58, %v17423_v18  ;;  %v10771_v51 = vpop.f32.mrb[27].mxu0 }
 0x6ce   : > { %v11440_v46 = vmax.f32 %v11383_v8, %v11385_v0  ;;  %v11287_v44 = vmax.f32 %v11175_v15, 0.0  ;;  %v12516_v16 = vadd.f32 %v10771_v51, %v17425_v19 }
 0x6cf   : > { %v11176_v31 = vadd.f32 %v12515_v61, %v17577_v47 }
 0x6d0   : > { %12462 = vst [vmem:[%s17615_s11 + $0x28] sm:$0xff] %v11440_v46  ;;  %v11386_v27 = vmax.f32 %v11286_v63, %v11287_v44  ;;  %v11177_v17 = vadd.f32 %v12516_v16, %v17579_v54  ;;  %v10775_v43 = vpop.f32.mrb[28].mxu0 }
 0x6d1   : > { %v11288_v9 = vmax.f32 %v11176_v31, 0.0  ;;  %v12517_v50 = vadd.f32 %v10775_v43, %v17433_v21  ;;  %v10777_v34 = vpop.f32.mrb[29].mxu0 }
 0x6d2   : > { %v11289_v39 = vmax.f32 %v11177_v17, 0.0  ;;  %v12518_v41 = vadd.f32 %v10777_v34, %v17435_v23 }
 0x6d3   : > { %v11178_v18 = vadd.f32 %v12517_v50, %v17577_v47 }
 0x6d4   : > { %v11387_v62 = vmax.f32 %v11288_v9, %v11289_v39  ;;  %v11179_v2 = vadd.f32 %v12518_v41, %v17579_v54  ;;  %v10781_v19 = vpop.f32.mrb[30].mxu0 }
 0x6d5   : > { %v11290_v10 = vmax.f32 %v11178_v18, 0.0  ;;  %v12519_v8 = vadd.f32 %v10781_v19, %v17443_v26  ;;  %v10783_v60 = vpop.f32.mrb[31].mxu0 }
 0x6d6   : > { %v11291_v11 = vmax.f32 %v11179_v2, 0.0  ;;  %v12520_v6 = vadd.f32 %v10783_v60, %v17445_v28 }
 0x6d7   : > { %v11180_v21 = vadd.f32 %v12519_v8, %v17577_v47 }
 0x6d8   : > { %v11388_v49 = vmax.f32 %v11290_v10, %v11291_v11  ;;  %v11181_v40 = vadd.f32 %v12520_v6, %v17579_v54  ;;  %v10787_v23 = vpop.f32.mrb[32].mxu0 }
 0x6d9   : > { %v11292_v48 = vmax.f32 %v11180_v21, 0.0  ;;  %v12521_v45 = vadd.f32 %v10787_v23, %v17453_v30  ;;  %v10789_v12 = vpop.f32.mrb[33].mxu0 }
 0x6da   : > { %v11444_v38 = vmax.f32 %v11386_v27, %v11388_v49  ;;  %v11293_v55 = vmax.f32 %v11181_v40, 0.0  ;;  %v12522_v13 = vadd.f32 %v10789_v12, %v17455_v35 }
 0x6db   : > { %v11182_v26 = vadd.f32 %v12521_v45, %v17577_v47 }
 0x6dc   : > { %12463 = vst [vmem:[%s17615_s11 + $0x30] sm:$0xff] %v11444_v38  ;;  %v11389_v24 = vmax.f32 %v11292_v48, %v11293_v55  ;;  %v11183_v28 = vadd.f32 %v12522_v13, %v17579_v54  ;;  %v10793_v20 = vpop.f32.mrb[34].mxu0 }
 0x6dd   : > { %v11294_v29 = vmax.f32 %v11182_v26, 0.0  ;;  %v12523_v42 = vadd.f32 %v10793_v20, %v17463_v37  ;;  %v10795_v56 = vpop.f32.mrb[35].mxu0 }
 0x6de   : > { %v11445_v25 = vmax.f32 %v11387_v62, %v11389_v24  ;;  %v11295_v14 = vmax.f32 %v11183_v28, 0.0  ;;  %v12524_v30 = vadd.f32 %v10795_v56, %v17465_v3 }
 0x6df   : > { %v11184_v0 = vadd.f32 %v12523_v42, %v17577_v47 }
 0x6e0   : > { %12464 = vst [vmem:[%s17615_s11 + $0x38] sm:$0xff] %v11445_v25  ;;  %v11390_v15 = vmax.f32 %v11294_v29, %v11295_v14  ;;  %v11185_v35 = vadd.f32 %v12524_v30, %v17579_v54  ;;  %v10799_v58 = vpop.f32.mrb[36].mxu0 }
 0x6e1   : > { %v11296_v63 = vmax.f32 %v11184_v0, 0.0  ;;  %v12525_v61 = vadd.f32 %v10799_v58, %v17473_v5  ;;  %v10801_v51 = vpop.f32.mrb[37].mxu0 }
 0x6e2   : > { %v11297_v46 = vmax.f32 %v11185_v35, 0.0  ;;  %v12526_v44 = vadd.f32 %v10801_v51, %v17475_v7  ;;  %v17888_v51 = vld [vmem:[#allocation14_spill] sm:$0xff] }
 0x6e3   : > { %v11186_v37 = vadd.f32 %v12525_v61, %v17577_v47 }
 0x6e4   : > { %v11391_v16 = vmax.f32 %v11296_v63, %v11297_v46  ;;  %v11187_v31 = vadd.f32 %v12526_v44, %v17579_v54  ;;  %v10805_v3 = vpop.f32.mrb[38].mxu0 }
 0x6e5   : > { %v11298_v27 = vmax.f32 %v11186_v37, 0.0  ;;  %v12527_v17 = vadd.f32 %v10805_v3, %v17483_v32  ;;  %v10807_v43 = vpop.f32.mrb[39].mxu0 }
 0x6e6   : > { %v11299_v9 = vmax.f32 %v11187_v31, 0.0  ;;  %v12528_v50 = vadd.f32 %v10807_v43, %v17485_v4  ;;  %v17889_v31 = vld [vmem:[#allocation15_spill] sm:$0xff] }
 0x6e7   : > { %v11188_v5 = vadd.f32 %v12527_v17, %v17577_v47 }
 0x6e8   : > { %v11392_v34 = vmax.f32 %v11298_v27, %v11299_v9  ;;  %v11189_v39 = vadd.f32 %v12528_v50, %v17579_v54  ;;  %v10811_v7 = vpop.f32.mrb[40].mxu0  ;;  %v17890_v9 = vld [vmem:[#allocation2_spill] sm:$0xff] }
 0x6e9   : > { %v11300_v41 = vmax.f32 %v11188_v5, 0.0  ;;  %v12529_v18 = vadd.f32 %v10811_v7, %v17494_v52  ;;  %v10813_v62 = vpop.f32.mrb[41].mxu0 }
 0x6ea   : > { %v11449_v2 = vmax.f32 %v11390_v15, %v11392_v34  ;;  %v11301_v19 = vmax.f32 %v11189_v39, 0.0  ;;  %v12530_v10 = vadd.f32 %v10813_v62, %v17496_v53  ;;  %v17887_v15 = vld [vmem:[#allocation13_spill] sm:$0xff] }
 0x6eb   : > { %v11190_v32 = vadd.f32 %v12529_v18, %v17577_v47  ;;  %v17891_v18 = vld [vmem:[#allocation3_spill] sm:$0xff] }
 0x6ec   : > { %12465 = vst [vmem:[%s17615_s11 + $0x40] sm:$0xff] %v11449_v2  ;;  %v11393_v8 = vmax.f32 %v11300_v41, %v11301_v19  ;;  %v11191_v4 = vadd.f32 %v12530_v10, %v17579_v54  ;;  %v10817_v60 = vpop.f32.mrb[42].mxu0  ;;  %v17892_v10 = vld [vmem:[#allocation4_spill] sm:$0xff] }
 0x6ed   : > { %v11302_v11 = vmax.f32 %v11190_v32, 0.0  ;;  %v12531_v6 = vadd.f32 %v10817_v60, %v17504_v57  ;;  %v10819_v21 = vpop.f32.mrb[43].mxu0 }
 0x6ee   : > { %v11450_v49 = vmax.f32 %v11391_v16, %v11393_v8  ;;  %v11303_v40 = vmax.f32 %v11191_v4, 0.0  ;;  %v12532_v52 = vadd.f32 %v10819_v21, %v17506_v59  ;;  %v17893_v21 = vld [vmem:[#allocation5_spill] sm:$0xff] }
 0x6ef   : > { %v11192_v23 = vadd.f32 %v12531_v6, %v17577_v47 }
 0x6f0   : > { %12466 = vst [vmem:[%s17615_s11 + $0x48] sm:$0xff] %v11450_v49  ;;  %v11394_v48 = vmax.f32 %v11302_v11, %v11303_v40  ;;  %v11193_v53 = vadd.f32 %v12532_v52, %v17579_v54  ;;  %v10823_v45 = vpop.f32.mrb[44].mxu0 }
 0x6f1   : > { %v11304_v12 = vmax.f32 %v11192_v23, 0.0  ;;  %v12533_v38 = vadd.f32 %v10823_v45, %v17514_v1  ;;  %v10825_v55 = vpop.f32.mrb[45].mxu0  ;;  %v17894_v23 = vld [vmem:[#allocation6_spill] sm:$0xff] }
 0x6f2   : > { %v11305_v13 = vmax.f32 %v11193_v53, 0.0  ;;  %v12534_v26 = vadd.f32 %v10825_v55, %v17516_v22 }
 0x6f3   : > { %v11194_v57 = vadd.f32 %v12533_v38, %v17577_v47 }
 0x6f4   : > { %v11395_v24 = vmax.f32 %v11304_v12, %v11305_v13  ;;  %v11195_v28 = vadd.f32 %v12534_v26, %v17579_v54  ;;  %v10829_v59 = vpop.f32.mrb[46].mxu0 }
 0x6f5   : > { %v11306_v20 = vmax.f32 %v11194_v57, 0.0  ;;  %v12535_v29 = vadd.f32 %v10829_v59, %v17524_v33  ;;  %v10831_v42 = vpop.f32.mrb[47].mxu0 }
 0x6f6   : > { %v11307_v56 = vmax.f32 %v11195_v28, 0.0  ;;  %v12536_v25 = vadd.f32 %v10831_v42, %v17526_v36 }
 0x6f7   : > { %v11196_v1 = vadd.f32 %v12535_v29, %v17577_v47 }
 0x6f8   : > { %v11396_v14 = vmax.f32 %v11306_v20, %v11307_v56  ;;  %v11197_v30 = vadd.f32 %v12536_v25, %v17579_v54  ;;  %v10835_v22 = vpop.f32.mrb[48].mxu0 }
 0x6f9   : > { %v11308_v0 = vmax.f32 %v11196_v1, 0.0  ;;  %v12537_v35 = vadd.f32 %v10835_v22, %v17887_v15  ;;  %v10837_v58 = vpop.f32.mrb[49].mxu0 }
 0x6fa   : > { %v11454_v63 = vmax.f32 %v11394_v48, %v11396_v14  ;;  %v11309_v61 = vmax.f32 %v11197_v30, 0.0  ;;  %v12538_v46 = vadd.f32 %v10837_v58, %v17888_v51 }
 0x6fb   : > { %v11198_v33 = vadd.f32 %v12537_v35, %v17577_v47 }
 0x6fc   : > { %12467 = vst [vmem:[%s17615_s11 + $0x50] sm:$0xff] %v11454_v63  ;;  %v11397_v44 = vmax.f32 %v11308_v0, %v11309_v61  ;;  %v11199_v36 = vadd.f32 %v12538_v46, %v17579_v54  ;;  %v10841_v37 = vpop.f32.mrb[50].mxu0 }
 0x6fd   : > { %v11310_v16 = vmax.f32 %v11198_v33, 0.0  ;;  %v12539_v3 = vadd.f32 %v10841_v37, %v17889_v31  ;;  %v10843_v27 = vpop.f32.mrb[51].mxu0 }
 0x6fe   : > { %v11455_v17 = vmax.f32 %v11395_v24, %v11397_v44  ;;  %v11311_v43 = vmax.f32 %v11199_v36, 0.0  ;;  %v12540_v50 = vadd.f32 %v10843_v27, %v17890_v9 }
 0x6ff   : > { %v11200_v5 = vadd.f32 %v12539_v3, %v17577_v47 }
 0x700   : > { %12468 = vst [vmem:[%s17615_s11 + $0x58] sm:$0xff] %v11455_v17  ;;  %v11398_v34 = vmax.f32 %v11310_v16, %v11311_v43  ;;  %v11201_v39 = vadd.f32 %v12540_v50, %v17579_v54  ;;  %v10847_v7 = vpop.f32.mrb[52].mxu0 }
 0x701   : > { %v11312_v41 = vmax.f32 %v11200_v5, 0.0  ;;  %v12541_v62 = vadd.f32 %v10847_v7, %v17891_v18  ;;  %v10849_v2 = vpop.f32.mrb[53].mxu0 }
 0x702   : > { %v11313_v19 = vmax.f32 %v11201_v39, 0.0  ;;  %v12542_v32 = vadd.f32 %v10849_v2, %v17892_v10 }
 0x703   : > { %v11202_v8 = vadd.f32 %v12541_v62, %v17577_v47 }
 0x704   : > { %v11399_v4 = vmax.f32 %v11312_v41, %v11313_v19  ;;  %v11203_v60 = vadd.f32 %v12542_v32, %v17579_v54  ;;  %v10853_v11 = vpop.f32.mrb[54].mxu0 }
 0x705   : > { %v11314_v6 = vmax.f32 %v11202_v8, 0.0  ;;  %v12543_v49 = vadd.f32 %v10853_v11, %v17893_v21  ;;  %v10855_v40 = vpop.f32.mrb[55].mxu0 }
 0x706   : > { %v11315_v52 = vmax.f32 %v11203_v60, 0.0  ;;  %v12544_v48 = vadd.f32 %v10855_v40, %v17894_v23 }
 0x707   : > { %v11204_v53 = vadd.f32 %v12543_v49, %v17577_v47  ;;  %v5637_v38 = vpop.f32.mrb[56].mxu1 }
 0x708   : > { %v11400_v45 = vmax.f32 %v11314_v6, %v11315_v52  ;;  %v11205_v12 = vadd.f32 %v12544_v48, %v17579_v54  ;;  %v10859_v55 = vpop.f32.mrb[56].mxu0  ;;  %v5639_v57 = vpop.f32.mrb[57].mxu1 }
 0x709   : > { %v11316_v13 = vmax.f32 %v11204_v53, 0.0  ;;  %v12545_v26 = vadd.f32 %v10859_v55, %v5637_v38  ;;  %v10861_v24 = vpop.f32.mrb[57].mxu0 }
 0x70a   : > { %v11459_v28 = vmax.f32 %v11398_v34, %v11400_v45  ;;  %v11317_v59 = vmax.f32 %v11205_v12, 0.0  ;;  %v12546_v20 = vadd.f32 %v10861_v24, %v5639_v57 }
 0x70b   : > { %v11206_v29 = vadd.f32 %v12545_v26, %v17577_v47  ;;  %v5643_v25 = vpop.f32.mrb[58].mxu1 }
 0x70c   : > { %12469 = vst [vmem:[%s17615_s11 + $0x60] sm:$0xff] %v11459_v28  ;;  %v11401_v42 = vmax.f32 %v11316_v13, %v11317_v59  ;;  %v11207_v56 = vadd.f32 %v12546_v20, %v17579_v54  ;;  %v10865_v1 = vpop.f32.mrb[58].mxu0  ;;  %v5645_v22 = vpop.f32.mrb[59].mxu1 }
 0x70d   : > { %v11318_v14 = vmax.f32 %v11206_v29, 0.0  ;;  %v12547_v30 = vadd.f32 %v10865_v1, %v5643_v25  ;;  %v10867_v0 = vpop.f32.mrb[59].mxu0 }
 0x70e   : > { %v11460_v15 = vmax.f32 %v11399_v4, %v11401_v42  ;;  %v11319_v35 = vmax.f32 %v11207_v56, 0.0  ;;  %v12548_v58 = vadd.f32 %v10867_v0, %v5645_v22 }
 0x70f   : > { %v11208_v63 = vadd.f32 %v12547_v30, %v17577_v47  ;;  %v5649_v46 = vpop.f32.mrb[60].mxu1 }
 0x710   : > { %12470 = vst [vmem:[%s17615_s11 + $0x68] sm:$0xff] %v11460_v15  ;;  %v11402_v61 = vmax.f32 %v11318_v14, %v11319_v35  ;;  %v11209_v51 = vadd.f32 %v12548_v58, %v17579_v54  ;;  %v10871_v33 = vpop.f32.mrb[60].mxu0  ;;  %v5651_v37 = vpop.f32.mrb[61].mxu1 }
 0x711   : > { %v11320_v44 = vmax.f32 %v11208_v63, 0.0  ;;  %v12549_v36 = vadd.f32 %v10871_v33, %v5649_v46  ;;  %v10873_v16 = vpop.f32.mrb[61].mxu0 }
 0x712   : > { %v11321_v31 = vmax.f32 %v11209_v51, 0.0  ;;  %v12550_v3 = vadd.f32 %v10873_v16, %v5651_v37 }
 0x713   : > { %v11210_v27 = vadd.f32 %v12549_v36, %v17577_v47  ;;  %v5655_v9 = vpop.f32.mrb[62].mxu1 }
 0x714   : > { %v11403_v17 = vmax.f32 %v11320_v44, %v11321_v31  ;;  %v11211_v43 = vadd.f32 %v12550_v3, %v17579_v54  ;;  %v10877_v50 = vpop.f32.mrb[62].mxu0  ;;  %v5657_v39 = vpop.f32.mrb[63].mxu1 }
 0x715   : > { %v11322_v5 = vmax.f32 %v11210_v27, 0.0  ;;  %v12551_v34 = vadd.f32 %v10877_v50, %v5655_v9  ;;  %v10879_v7 = vpop.f32.mrb[63].mxu0 }
 0x716   : > { %v11323_v41 = vmax.f32 %v11211_v43, 0.0  ;;  %v12552_v18 = vadd.f32 %v10879_v7, %v5657_v39 }
 0x717   : > { %v11212_v62 = vadd.f32 %v12551_v34, %v17577_v47  ;;  %v5661_v10 = vpop.f32.mrb[64].mxu1 }
 0x718   : > { %v11404_v2 = vmax.f32 %v11322_v5, %v11323_v41  ;;  %v11213_v19 = vadd.f32 %v12552_v18, %v17579_v54  ;;  %v10883_v32 = vpop.f32.mrb[64].mxu0  ;;  %v5663_v60 = vpop.f32.mrb[65].mxu1 }
 0x719   : > { %v11324_v8 = vmax.f32 %v11212_v62, 0.0  ;;  %v12553_v4 = vadd.f32 %v10883_v32, %v5661_v10  ;;  %v10885_v11 = vpop.f32.mrb[65].mxu0 }
 0x71a   : > { %v11464_v6 = vmax.f32 %v11402_v61, %v11404_v2  ;;  %v11325_v21 = vmax.f32 %v11213_v19, 0.0  ;;  %v12554_v49 = vadd.f32 %v10885_v11, %v5663_v60 }
 0x71b   : > { %v11214_v40 = vadd.f32 %v12553_v4, %v17577_v47  ;;  %v5667_v48 = vpop.f32.mrb[66].mxu1 }
 0x71c   : > { %12471 = vst [vmem:[%s17615_s11 + $0x70] sm:$0xff] %v11464_v6  ;;  %v11405_v52 = vmax.f32 %v11324_v8, %v11325_v21  ;;  %v11215_v23 = vadd.f32 %v12554_v49, %v17579_v54  ;;  %v10889_v53 = vpop.f32.mrb[66].mxu0  ;;  %v5669_v38 = vpop.f32.mrb[67].mxu1 }
 0x71d   : > { %v11326_v45 = vmax.f32 %v11214_v40, 0.0  ;;  %v12555_v12 = vadd.f32 %v10889_v53, %v5667_v48  ;;  %v10891_v55 = vpop.f32.mrb[67].mxu0 }
 0x71e   : > { %v11465_v13 = vmax.f32 %v11403_v17, %v11405_v52  ;;  %v11327_v26 = vmax.f32 %v11215_v23, 0.0  ;;  %v12556_v57 = vadd.f32 %v10891_v55, %v5669_v38 }
 0x71f   : > { %v11216_v24 = vadd.f32 %v12555_v12, %v17577_v47  ;;  %v5673_v20 = vpop.f32.mrb[68].mxu1 }
 0x720   : > { %12472 = vst [vmem:[%s17615_s11 + $0x78] sm:$0xff] %v11465_v13  ;;  %v11406_v28 = vmax.f32 %v11326_v45, %v11327_v26  ;;  %v11217_v59 = vadd.f32 %v12556_v57, %v17579_v54  ;;  %v10895_v29 = vpop.f32.mrb[68].mxu0  ;;  %v5675_v25 = vpop.f32.mrb[69].mxu1 }
 0x721   : > { %v11328_v42 = vmax.f32 %v11216_v24, 0.0  ;;  %v12557_v56 = vadd.f32 %v10895_v29, %v5673_v20  ;;  %v10897_v1 = vpop.f32.mrb[69].mxu0 }
 0x722   : > { %v11329_v14 = vmax.f32 %v11217_v59, 0.0  ;;  %v12558_v30 = vadd.f32 %v10897_v1, %v5675_v25 }
 0x723   : > { %v11218_v22 = vadd.f32 %v12557_v56, %v17577_v47  ;;  %v5679_v35 = vpop.f32.mrb[70].mxu1 }
 0x724   : > { %v11407_v0 = vmax.f32 %v11328_v42, %v11329_v14  ;;  %v11219_v15 = vadd.f32 %v12558_v30, %v17579_v54  ;;  %v10901_v58 = vpop.f32.mrb[70].mxu0  ;;  %v5681_v51 = vpop.f32.mrb[71].mxu1 }
 0x725   : > { %v11330_v63 = vmax.f32 %v11218_v22, 0.0  ;;  %v12559_v61 = vadd.f32 %v10901_v58, %v5679_v35  ;;  %v10903_v46 = vpop.f32.mrb[71].mxu0 }
 0x726   : > { %v11331_v33 = vmax.f32 %v11219_v15, 0.0  ;;  %v12560_v44 = vadd.f32 %v10903_v46, %v5681_v51 }
 0x727   : > { %v11220_v36 = vadd.f32 %v12559_v61, %v17577_v47  ;;  %v5685_v31 = vpop.f32.mrb[72].mxu1 }
 0x728   : > { %v11408_v37 = vmax.f32 %v11330_v63, %v11331_v33  ;;  %v11221_v16 = vadd.f32 %v12560_v44, %v17579_v54  ;;  %v10907_v3 = vpop.f32.mrb[72].mxu0  ;;  %v5687_v43 = vpop.f32.mrb[73].mxu1 }
 0x729   : > { %v11332_v27 = vmax.f32 %v11220_v36, 0.0  ;;  %v12561_v17 = vadd.f32 %v10907_v3, %v5685_v31  ;;  %v10909_v9 = vpop.f32.mrb[73].mxu0 }
 0x72a   : > { %v11469_v50 = vmax.f32 %v11406_v28, %v11408_v37  ;;  %v11333_v5 = vmax.f32 %v11221_v16, 0.0  ;;  %v12562_v34 = vadd.f32 %v10909_v9, %v5687_v43 }
 0x72b   : > { %v11222_v39 = vadd.f32 %v12561_v17, %v17577_v47  ;;  %v5691_v18 = vpop.f32.mrb[74].mxu1 }
 0x72c   : > { %12473 = vst [vmem:[%s17615_s11 + $0x80] sm:$0xff] %v11469_v50  ;;  %v11409_v7 = vmax.f32 %v11332_v27, %v11333_v5  ;;  %v11223_v41 = vadd.f32 %v12562_v34, %v17579_v54  ;;  %v10913_v62 = vpop.f32.mrb[74].mxu0  ;;  %v5693_v10 = vpop.f32.mrb[75].mxu1 }
 0x72d   : > { %v11334_v2 = vmax.f32 %v11222_v39, 0.0  ;;  %v12563_v19 = vadd.f32 %v10913_v62, %v5691_v18  ;;  %v10915_v32 = vpop.f32.mrb[75].mxu0 }
 0x72e   : > { %v11470_v8 = vmax.f32 %v11407_v0, %v11409_v7  ;;  %v11335_v4 = vmax.f32 %v11223_v41, 0.0  ;;  %v12564_v60 = vadd.f32 %v10915_v32, %v5693_v10 }
 0x72f   : > { %v11224_v11 = vadd.f32 %v12563_v19, %v17577_v47  ;;  %v5697_v49 = vpop.f32.mrb[76].mxu1 }
 0x730   : > { %12474 = vst [vmem:[%s17615_s11 + $0x88] sm:$0xff] %v11470_v8  ;;  %v11410_v6 = vmax.f32 %v11334_v2, %v11335_v4  ;;  %v11225_v21 = vadd.f32 %v12564_v60, %v17579_v54  ;;  %v10919_v40 = vpop.f32.mrb[76].mxu0  ;;  %v5699_v48 = vpop.f32.mrb[77].mxu1 }
 0x731   : > { %v11336_v52 = vmax.f32 %v11224_v11, 0.0  ;;  %v12565_v23 = vadd.f32 %v10919_v40, %v5697_v49  ;;  %v10921_v53 = vpop.f32.mrb[77].mxu0 }
 0x732   : > { %v11337_v45 = vmax.f32 %v11225_v21, 0.0  ;;  %v12566_v12 = vadd.f32 %v10921_v53, %v5699_v48 }
 0x733   : > { %v11226_v38 = vadd.f32 %v12565_v23, %v17577_v47  ;;  %v5703_v26 = vpop.f32.mrb[78].mxu1 }
 0x734   : > { %v11411_v55 = vmax.f32 %v11336_v52, %v11337_v45  ;;  %v11227_v13 = vadd.f32 %v12566_v12, %v17579_v54  ;;  %v10925_v57 = vpop.f32.mrb[78].mxu0  ;;  %v5705_v59 = vpop.f32.mrb[79].mxu1 }
 0x735   : > { %v11338_v24 = vmax.f32 %v11226_v38, 0.0  ;;  %v12567_v28 = vadd.f32 %v10925_v57, %v5703_v26  ;;  %v10927_v20 = vpop.f32.mrb[79].mxu0 }
 0x736   : > { %v11339_v29 = vmax.f32 %v11227_v13, 0.0  ;;  %v12568_v42 = vadd.f32 %v10927_v20, %v5705_v59 }
 0x737   : > { %v11228_v56 = vadd.f32 %v12567_v28, %v17577_v47  ;;  %v5709_v14 = vpop.f32.mrb[80].mxu1 }
 0x738   : > { %v11412_v25 = vmax.f32 %v11338_v24, %v11339_v29  ;;  %v11229_v1 = vadd.f32 %v12568_v42, %v17579_v54  ;;  %v10931_v30 = vpop.f32.mrb[80].mxu0  ;;  %v5711_v15 = vpop.f32.mrb[81].mxu1 }
 0x739   : > { %v11340_v22 = vmax.f32 %v11228_v56, 0.0  ;;  %v12569_v0 = vadd.f32 %v10931_v30, %v5709_v14  ;;  %v10933_v35 = vpop.f32.mrb[81].mxu0 }
 0x73a   : > { %v11474_v58 = vmax.f32 %v11410_v6, %v11412_v25  ;;  %v11341_v63 = vmax.f32 %v11229_v1, 0.0  ;;  %v12570_v61 = vadd.f32 %v10933_v35, %v5711_v15 }
 0x73b   : > { %v11230_v51 = vadd.f32 %v12569_v0, %v17577_v47  ;;  %v5715_v44 = vpop.f32.mrb[82].mxu1 }
 0x73c   : > { %12475 = vst [vmem:[%s17615_s11 + $0x90] sm:$0xff] %v11474_v58  ;;  %v11413_v46 = vmax.f32 %v11340_v22, %v11341_v63  ;;  %v11231_v33 = vadd.f32 %v12570_v61, %v17579_v54  ;;  %v10937_v36 = vpop.f32.mrb[82].mxu0  ;;  %v5717_v31 = vpop.f32.mrb[83].mxu1 }
 0x73d   : > { %v11342_v37 = vmax.f32 %v11230_v51, 0.0  ;;  %v12571_v16 = vadd.f32 %v10937_v36, %v5715_v44  ;;  %v10939_v3 = vpop.f32.mrb[83].mxu0 }
 0x73e   : > { %v11475_v27 = vmax.f32 %v11411_v55, %v11413_v46  ;;  %v11343_v17 = vmax.f32 %v11231_v33, 0.0  ;;  %v12572_v43 = vadd.f32 %v10939_v3, %v5717_v31 }
 0x73f   : > { %v11232_v9 = vadd.f32 %v12571_v16, %v17577_v47  ;;  %v5721_v34 = vpop.f32.mrb[84].mxu1 }
 0x740   : > { %12476 = vst [vmem:[%s17615_s11 + $0x98] sm:$0xff] %v11475_v27  ;;  %v11414_v50 = vmax.f32 %v11342_v37, %v11343_v17  ;;  %v11233_v5 = vadd.f32 %v12572_v43, %v17579_v54  ;;  %v10943_v39 = vpop.f32.mrb[84].mxu0  ;;  %v5723_v18 = vpop.f32.mrb[85].mxu1 }
 0x741   : > { %v11344_v7 = vmax.f32 %v11232_v9, 0.0  ;;  %v12573_v41 = vadd.f32 %v10943_v39, %v5721_v34  ;;  %v10945_v62 = vpop.f32.mrb[85].mxu0 }
 0x742   : > { %v11345_v2 = vmax.f32 %v11233_v5, 0.0  ;;  %v12574_v19 = vadd.f32 %v10945_v62, %v5723_v18 }
 0x743   : > { %v11234_v10 = vadd.f32 %v12573_v41, %v17577_v47  ;;  %v5727_v4 = vpop.f32.mrb[86].mxu1 }
 0x744   : > { %v11415_v32 = vmax.f32 %v11344_v7, %v11345_v2  ;;  %v11235_v8 = vadd.f32 %v12574_v19, %v17579_v54  ;;  %v10949_v60 = vpop.f32.mrb[86].mxu0  ;;  %v5729_v21 = vpop.f32.mrb[87].mxu1 }
 0x745   : > { %v11346_v11 = vmax.f32 %v11234_v10, 0.0  ;;  %v12575_v6 = vadd.f32 %v10949_v60, %v5727_v4  ;;  %v10951_v49 = vpop.f32.mrb[87].mxu0 }
 0x746   : > { %v11347_v40 = vmax.f32 %v11235_v8, 0.0  ;;  %v12576_v52 = vadd.f32 %v10951_v49, %v5729_v21 }
 0x747   : > { %v11236_v23 = vadd.f32 %v12575_v6, %v17577_v47  ;;  %v5733_v45 = vpop.f32.mrb[88].mxu1 }
 0x748   : > { %v11416_v48 = vmax.f32 %v11346_v11, %v11347_v40  ;;  %v11237_v53 = vadd.f32 %v12576_v52, %v17579_v54  ;;  %v10955_v12 = vpop.f32.mrb[88].mxu0  ;;  %v5735_v13 = vpop.f32.mrb[89].mxu1 }
 0x749   : > { %v11348_v38 = vmax.f32 %v11236_v23, 0.0  ;;  %v12577_v55 = vadd.f32 %v10955_v12, %v5733_v45  ;;  %v10957_v26 = vpop.f32.mrb[89].mxu0 }
 0x74a   : > { %v11479_v57 = vmax.f32 %v11414_v50, %v11416_v48  ;;  %v11349_v24 = vmax.f32 %v11237_v53, 0.0  ;;  %v12578_v28 = vadd.f32 %v10957_v26, %v5735_v13 }
 0x74b   : > { %v11238_v59 = vadd.f32 %v12577_v55, %v17577_v47  ;;  %v5739_v42 = vpop.f32.mrb[90].mxu1 }
 0x74c   : > { %12477 = vst [vmem:[%s17615_s11 + $0xa0] sm:$0xff] %v11479_v57  ;;  %v11417_v20 = vmax.f32 %v11348_v38, %v11349_v24  ;;  %v11239_v29 = vadd.f32 %v12578_v28, %v17579_v54  ;;  %v10961_v56 = vpop.f32.mrb[90].mxu0  ;;  %v5741_v14 = vpop.f32.mrb[91].mxu1 }
 0x74d   : > { %v11350_v25 = vmax.f32 %v11238_v59, 0.0  ;;  %v12579_v1 = vadd.f32 %v10961_v56, %v5739_v42  ;;  %v10963_v30 = vpop.f32.mrb[91].mxu0 }
 0x74e   : > { %v11480_v22 = vmax.f32 %v11415_v32, %v11417_v20  ;;  %v11351_v0 = vmax.f32 %v11239_v29, 0.0  ;;  %v12580_v15 = vadd.f32 %v10963_v30, %v5741_v14 }
 0x74f   : > { %v11240_v35 = vadd.f32 %v12579_v1, %v17577_v47  ;;  %v5745_v61 = vpop.f32.mrb[92].mxu1 }
 0x750   : > { %12478 = vst [vmem:[%s17615_s11 + $0xa8] sm:$0xff] %v11480_v22  ;;  %v11418_v58 = vmax.f32 %v11350_v25, %v11351_v0  ;;  %v11241_v63 = vadd.f32 %v12580_v15, %v17579_v54  ;;  %v10967_v51 = vpop.f32.mrb[92].mxu0  ;;  %v5747_v44 = vpop.f32.mrb[93].mxu1 }
 0x751   : > { %v11352_v46 = vmax.f32 %v11240_v35, 0.0  ;;  %v12581_v33 = vadd.f32 %v10967_v51, %v5745_v61  ;;  %v10969_v36 = vpop.f32.mrb[93].mxu0 }
 0x752   : > { %v11353_v37 = vmax.f32 %v11241_v63, 0.0  ;;  %v12582_v16 = vadd.f32 %v10969_v36, %v5747_v44 }
 0x753   : > { %v11242_v31 = vadd.f32 %v12581_v33, %v17577_v47  ;;  %v5751_v17 = vpop.f32.mrb[94].mxu1 }
 0x754   : > { %v11419_v3 = vmax.f32 %v11352_v46, %v11353_v37  ;;  %v11243_v27 = vadd.f32 %v12582_v16, %v17579_v54  ;;  %v10973_v43 = vpop.f32.mrb[94].mxu0  ;;  %v5753_v5 = vpop.f32.mrb[95].mxu1 }
 0x755   : > { %v11354_v9 = vmax.f32 %v11242_v31, 0.0  ;;  %v12583_v50 = vadd.f32 %v10973_v43, %v5751_v17  ;;  %v10975_v34 = vpop.f32.mrb[95].mxu0 }
 0x756   : > { %v11355_v39 = vmax.f32 %v11243_v27, 0.0  ;;  %v12584_v7 = vadd.f32 %v10975_v34, %v5753_v5 }
 0x757   : > { %v11244_v41 = vadd.f32 %v12583_v50, %v17577_v47  ;;  %v5757_v2 = vpop.f32.mrb[96].mxu1 }
 0x758   : > { %v11420_v18 = vmax.f32 %v11354_v9, %v11355_v39  ;;  %v11245_v62 = vadd.f32 %v12584_v7, %v17579_v54  ;;  %v10979_v19 = vpop.f32.mrb[96].mxu0  ;;  %v5759_v8 = vpop.f32.mrb[97].mxu1 }
 0x759   : > { %v11356_v10 = vmax.f32 %v11244_v41, 0.0  ;;  %v12585_v32 = vadd.f32 %v10979_v19, %v5757_v2  ;;  %v10981_v4 = vpop.f32.mrb[97].mxu0 }
 0x75a   : > { %v11484_v60 = vmax.f32 %v11418_v58, %v11420_v18  ;;  %v11357_v11 = vmax.f32 %v11245_v62, 0.0  ;;  %v12586_v6 = vadd.f32 %v10981_v4, %v5759_v8 }
 0x75b   : > { %v11246_v21 = vadd.f32 %v12585_v32, %v17577_v47  ;;  %v5763_v52 = vpop.f32.mrb[98].mxu1 }
 0x75c   : > { %12479 = vst [vmem:[%s17615_s11 + $0xb0] sm:$0xff] %v11484_v60  ;;  %v11421_v49 = vmax.f32 %v11356_v10, %v11357_v11  ;;  %v11247_v40 = vadd.f32 %v12586_v6, %v17579_v54  ;;  %v10985_v23 = vpop.f32.mrb[98].mxu0  ;;  %v5765_v45 = vpop.f32.mrb[99].mxu1 }
 0x75d   : > { %v11358_v48 = vmax.f32 %v11246_v21, 0.0  ;;  %v12587_v53 = vadd.f32 %v10985_v23, %v5763_v52  ;;  %v10987_v12 = vpop.f32.mrb[99].mxu0 }
 0x75e   : > { %v11485_v38 = vmax.f32 %v11419_v3, %v11421_v49  ;;  %v11359_v55 = vmax.f32 %v11247_v40, 0.0  ;;  %v12588_v13 = vadd.f32 %v10987_v12, %v5765_v45 }
 0x75f   : > { %v11248_v26 = vadd.f32 %v12587_v53, %v17577_v47  ;;  %v5769_v28 = vpop.f32.mrb[100].mxu1 }
 0x760   : > { %12480 = vst [vmem:[%s17615_s11 + $0xb8] sm:$0xff] %v11485_v38  ;;  %v11422_v57 = vmax.f32 %v11358_v48, %v11359_v55  ;;  %v11249_v24 = vadd.f32 %v12588_v13, %v17579_v54  ;;  %v10991_v59 = vpop.f32.mrb[100].mxu0  ;;  %v5771_v42 = vpop.f32.mrb[101].mxu1 }
 0x761   : > { %v11360_v20 = vmax.f32 %v11248_v26, 0.0  ;;  %v12589_v29 = vadd.f32 %v10991_v59, %v5769_v28  ;;  %v10993_v56 = vpop.f32.mrb[101].mxu0 }
 0x762   : > { %v11361_v25 = vmax.f32 %v11249_v24, 0.0  ;;  %v12590_v1 = vadd.f32 %v10993_v56, %v5771_v42 }
 0x763   : > { %v11250_v14 = vadd.f32 %v12589_v29, %v17577_v47  ;;  %v5775_v0 = vpop.f32.mrb[102].mxu1 }
 0x764   : > { %v11423_v30 = vmax.f32 %v11360_v20, %v11361_v25  ;;  %v11251_v22 = vadd.f32 %v12590_v1, %v17579_v54  ;;  %v10997_v15 = vpop.f32.mrb[102].mxu0  ;;  %v5777_v63 = vpop.f32.mrb[103].mxu1 }
 0x765   : > { %v11362_v35 = vmax.f32 %v11250_v14, 0.0  ;;  %v12591_v58 = vadd.f32 %v10997_v15, %v5775_v0  ;;  %v10999_v61 = vpop.f32.mrb[103].mxu0 }
 0x766   : > { %v11363_v51 = vmax.f32 %v11251_v22, 0.0  ;;  %v12592_v46 = vadd.f32 %v10999_v61, %v5777_v63 }
 0x767   : > { %v11252_v33 = vadd.f32 %v12591_v58, %v17577_v47  ;;  %v5781_v37 = vpop.f32.mrb[104].mxu1 }
 0x768   : > { %v11424_v44 = vmax.f32 %v11362_v35, %v11363_v51  ;;  %v11253_v36 = vadd.f32 %v12592_v46, %v17579_v54  ;;  %v11003_v16 = vpop.f32.mrb[104].mxu0  ;;  %v5783_v27 = vpop.f32.mrb[105].mxu1 }
 0x769   : > { %v11364_v31 = vmax.f32 %v11252_v33, 0.0  ;;  %v12593_v3 = vadd.f32 %v11003_v16, %v5781_v37  ;;  %v11005_v17 = vpop.f32.mrb[105].mxu0 }
 0x76a   : > { %v11489_v43 = vmax.f32 %v11422_v57, %v11424_v44  ;;  %v11365_v9 = vmax.f32 %v11253_v36, 0.0  ;;  %v12594_v50 = vadd.f32 %v11005_v17, %v5783_v27 }
 0x76b   : > { %v11254_v5 = vadd.f32 %v12593_v3, %v17577_v47  ;;  %v5787_v7 = vpop.f32.mrb[106].mxu1 }
 0x76c   : > { %12481 = vst [vmem:[%s17615_s11 + $0xc0] sm:$0xff] %v11489_v43  ;;  %v11425_v34 = vmax.f32 %v11364_v31, %v11365_v9  ;;  %v11255_v39 = vadd.f32 %v12594_v50, %v17579_v54  ;;  %v11009_v41 = vpop.f32.mrb[106].mxu0  ;;  %v5789_v2 = vpop.f32.mrb[107].mxu1 }
 0x76d   : > { %v11366_v18 = vmax.f32 %v11254_v5, 0.0  ;;  %v12595_v62 = vadd.f32 %v11009_v41, %v5787_v7  ;;  %v11011_v19 = vpop.f32.mrb[107].mxu0 }
 0x76e   : > { %v11490_v10 = vmax.f32 %v11423_v30, %v11425_v34  ;;  %v11367_v32 = vmax.f32 %v11255_v39, 0.0  ;;  %v12596_v8 = vadd.f32 %v11011_v19, %v5789_v2 }
 0x76f   : > { %v11256_v4 = vadd.f32 %v12595_v62, %v17577_v47  ;;  %v5793_v6 = vpop.f32.mrb[108].mxu1 }
 0x770   : > { %12482 = vst [vmem:[%s17615_s11 + $0xc8] sm:$0xff] %v11490_v10  ;;  %v11426_v60 = vmax.f32 %v11366_v18, %v11367_v32  ;;  %v11257_v11 = vadd.f32 %v12596_v8, %v17579_v54  ;;  %v11015_v21 = vpop.f32.mrb[108].mxu0  ;;  %v5795_v52 = vpop.f32.mrb[109].mxu1 }
 0x771   : > { %v11368_v49 = vmax.f32 %v11256_v4, 0.0  ;;  %v12597_v40 = vadd.f32 %v11015_v21, %v5793_v6  ;;  %v11017_v23 = vpop.f32.mrb[109].mxu0 }
 0x772   : > { %v11369_v48 = vmax.f32 %v11257_v11, 0.0  ;;  %v12598_v53 = vadd.f32 %v11017_v23, %v5795_v52 }
 0x773   : > { %v11258_v45 = vadd.f32 %v12597_v40, %v17577_v47  ;;  %v5799_v55 = vpop.f32.mrb[110].mxu1 }
 0x774   : > { %v11427_v12 = vmax.f32 %v11368_v49, %v11369_v48  ;;  %v11259_v38 = vadd.f32 %v12598_v53, %v17579_v54  ;;  %v11021_v13 = vpop.f32.mrb[110].mxu0  ;;  %v5801_v24 = vpop.f32.mrb[111].mxu1 }
 0x775   : > { %v11370_v26 = vmax.f32 %v11258_v45, 0.0  ;;  %v12599_v57 = vadd.f32 %v11021_v13, %v5799_v55  ;;  %v11023_v28 = vpop.f32.mrb[111].mxu0 }
 0x776   : > { %v11371_v59 = vmax.f32 %v11259_v38, 0.0  ;;  %v12600_v20 = vadd.f32 %v11023_v28, %v5801_v24 }
 0x777   : > { %v11260_v29 = vadd.f32 %v12599_v57, %v17577_v47 }
 0x778   : > { %v11428_v42 = vmax.f32 %v11370_v26, %v11371_v59  ;;  %v11261_v56 = vadd.f32 %v12600_v20, %v17579_v54 }
 0x779   : > { %v11372_v25 = vmax.f32 %v11260_v29, 0.0 }
 0x77a   : > { %v11494_v1 = vmax.f32 %v11426_v60, %v11428_v42  ;;  %v11373_v14 = vmax.f32 %v11261_v56, 0.0 }
 0x77c   : > { %12483 = vst [vmem:[%s17615_s11 + $0xd0] sm:$0xff] %v11494_v1  ;;  %v11429_v30 = vmax.f32 %v11372_v25, %v11373_v14 }
 0x77e   : > { %v11495_v22 = vmax.f32 %v11427_v12, %v11429_v30 }
 0x780   : > { %12484 = vst [vmem:[%s17615_s11 + $0xd8] sm:$0xff] %v11495_v22 }
 0x781 PF: > { %s13_s12 = sadd.s32 1, %s14076_s12  }
 0x782   : > { %p10_p4 = scmp.ge.s32.totalorder %s13_s12, 4  }
 0x784   :  { %12 = sbr.rel (!%p10_p4) target bundleno = 1 (0x1), region = 89 }

</bundles_post_ra>
